<compile_context>
chip_gen: v6e
topology: v6e:2x2x1
jax: 0.10.0
libtpu: 0.0.40
codegen_flags: <defaults>
</compile_context>

<pallas_src>
import math
import functools

import jax
import jax.numpy as jnp
from jax.experimental import pallas as pl
from jax.experimental.pallas import tpu as pltpu

LN_EPS = 1e-5      # nn.LayerNorm default
HEAD_PAD = 128     # lane-dense classifier output width


# ----------------------------- shared math helpers -----------------------------
def _layernorm(v, w, b):
    mu = jnp.mean(v, axis=-1, keepdims=True)
    var = jnp.mean(jnp.square(v - mu), axis=-1, keepdims=True)
    return (v - mu) * jax.lax.rsqrt(var + LN_EPS) * w + b


def _gelu_tanh(x):
    # NewGELUActivation (GPT-2 style tanh approximation) used by the reference repo's MLP.
    return 0.5 * x * (1.0 + jnp.tanh(math.sqrt(2.0 / math.pi) * (x + 0.044715 * x * x * x)))


def _softmax_ref(x):
    m = jnp.max(x, axis=-1, keepdims=True)
    e = jnp.exp(x - m)
    return e / jnp.sum(e, axis=-1, keepdims=True)


# ----------------------------- single fused Pallas kernel -----------------------------
def _vit_fused_kernel(patches_ref, patch_w_ref, tok_init_ref,
                      wqkv_ref, wo_ref, w1_ref, w2_ref, vecs_ref,
                      cls_w_ref, cls_b_ref,
                      out_ref,
                      *, B, N, T, D, I, nh, hs, L):
    """B here is the per-program (per grid block) batch size."""
    f32, bf16 = jnp.float32, jnp.bfloat16

    # ---- patch embedding + token assembly (conv bias / cls token / pos-embed folded) ----
    emb = jnp.dot(patches_ref[...], patch_w_ref[...],
                  preferred_element_type=f32)                          # [B*N, D] f32
    tok_init = tok_init_ref[...]                                       # [T, D]  f32
    pieces = []
    for b in range(B):                                                 # B tiny & static
        pieces.append(tok_init[0:1, :])                                # cls token (+ pos[0])
        pieces.append(emb[b * N:(b + 1) * N, :] + tok_init[1:, :])     # patches + pos[1:]
    x = jnp.concatenate(pieces, axis=0)                                # [B*T, D] residual in vregs

    for l in range(L):                                                 # L static -> unrolled
        vecs = vecs_ref[l]                                             # [8, 128] packed small params
        ln1_w, ln1_b = vecs[0:1, :D], vecs[1:2, :D]
        ln2_w, ln2_b = vecs[2:3, :D], vecs[3:4, :D]
        bqkv = vecs[4:5, :3 * D]                                       # (b_q already scaled)
        bo = vecs[5:6, :D]
        b1 = vecs[6:7, :I]
        b2 = vecs[7:8, :D]

        # ---- multi-head self-attention: fused QKV + head/batch-batched core ----
        h = _layernorm(x, ln1_w, ln1_b)
        qkv = jnp.dot(h.astype(bf16), wqkv_ref[l],
                      preferred_element_type=f32) + bqkv               # [B*T, 3D]

        def split_heads(base, _qkv=qkv):
            # per-head [B*T, hs] lane stripes -> one batched [B*nh, T, hs] tensor
            cols = [_qkv[:, base + i * hs: base + (i + 1) * hs] for i in range(nh)]
            return jnp.stack(cols, axis=0).reshape(nh * B, T, hs)

        q = split_heads(0).astype(bf16)                                # scale folded into W_q/b_q
        k = split_heads(D).astype(bf16)
        v = split_heads(2 * D).astype(bf16)

        s = jnp.einsum('nqh,nkh->nqk', q, k,
                       preferred_element_type=f32)                     # [B*nh, T, T]
        m = jnp.max(s, axis=-1, keepdims=True)
        e = jnp.exp(s - m)
        p = e * pl.reciprocal(jnp.sum(e, axis=-1, keepdims=True), approx=True)
        ctx = jnp.einsum('nqk,nkh->nqh', p.astype(bf16), v,
                         preferred_element_type=f32)                   # [B*nh, T, hs]

        # re-concatenate heads along lanes -> [B*T, D] (head-major cols == W_o's input order)
        ctx = ctx.reshape(nh, B * T, hs)
        ctx = jnp.concatenate([ctx[i] for i in range(nh)], axis=-1)
        x = x + jnp.dot(ctx.astype(bf16), wo_ref[l],
                        preferred_element_type=f32) + bo               # single K=D projection

        # ---- MLP, batch-stacked ----
        h2 = _layernorm(x, ln2_w, ln2_b)
        inter = _gelu_tanh(jnp.dot(h2.astype(bf16), w1_ref[l],
                                   preferred_element_type=f32) + b1)
        x = x + jnp.dot(inter.astype(bf16), w2_ref[l],
                        preferred_element_type=f32) + b2

    # ---- classifier head: gather cls rows, ONE matmul, ONE lane-dense store ----
    cls_tok = jnp.concatenate([x[b * T:b * T + 1, :] for b in range(B)], axis=0)   # [B, D]
    out_ref[...] = jnp.dot(cls_tok.astype(bf16), cls_w_ref[...],
                           preferred_element_type=f32) + cls_b_ref[...]


# ----------------------------- model setup / packing / forward -----------------------------
def make_config():
    return dict(
        image_size=16, patch_size=4, num_channels=4,
        hidden_size=32, num_attention_heads=4, intermediate_size=128,
        num_hidden_layers=2, num_classes=10, initializer_range=0.02,
    )


def init_params(key, cfg):
    std = cfg['initializer_range']
    D, C, P = cfg['hidden_size'], cfg['num_channels'], cfg['patch_size']
    I = cfg['intermediate_size']
    T = (cfg['image_size'] // P) ** 2 + 1

    def nrm(k, shape):
        return std * jax.random.normal(k, shape, dtype=jnp.float32)

    def trunc(k, shape):
        return std * jax.random.truncated_normal(k, -2.0, 2.0, shape, dtype=jnp.float32)

    keys = iter(jax.random.split(key, 8 + 8 * cfg['num_hidden_layers']))

    # Conv2d(C, D, kernel=P, stride=P) weight [D, C, P, P] -> equivalent matmul weight [C*P*P, D]
    conv_w = nrm(next(keys), (D, C, P, P))
    params = dict(
        patch_w=conv_w.reshape(D, C * P * P).T,
        patch_b=jnp.zeros((D,), jnp.float32),
        cls_token=trunc(next(keys), (1, 1, D)),
        pos_embed=trunc(next(keys), (1, T, D)),
        cls_w=nrm(next(keys), (cfg['num_classes'], D)).T,
        cls_b=jnp.zeros((cfg['num_classes'],), jnp.float32),
        layers=[],
    )
    for _ in range(cfg['num_hidden_layers']):
        params['layers'].append(dict(
            ln1_w=jnp.ones((1, D), jnp.float32), ln1_b=jnp.zeros((1, D), jnp.float32),
            wq=nrm(next(keys), (D, D)).T, bq=jnp.zeros((1, D), jnp.float32),
            wk=nrm(next(keys), (D, D)).T, bk=jnp.zeros((1, D), jnp.float32),
            wv=nrm(next(keys), (D, D)).T, bv=jnp.zeros((1, D), jnp.float32),
            wo=nrm(next(keys), (D, D)).T, bo=jnp.zeros((1, D), jnp.float32),
            ln2_w=jnp.ones((1, D), jnp.float32), ln2_b=jnp.zeros((1, D), jnp.float32),
            w1=nrm(next(keys), (I, D)).T, b1=jnp.zeros((1, I), jnp.float32),
            w2=nrm(next(keys), (D, I)).T, b2=jnp.zeros((1, D), jnp.float32),
        ))
    return params


def pack_params(params, cfg):
    """Host-side repacking: layer-stack weights (bf16 MXU operands), pack small vectors,
    fold conv bias / cls token into the token-init and the attention scale into W_q/b_q."""
    D, I = cfg['hidden_size'], cfg['intermediate_size']
    nh = cfg['num_attention_heads']
    hs = D // nh
    # latent-config guards called out by the review:
    assert 3 * D <= HEAD_PAD and I <= HEAD_PAD and cfg['num_classes'] <= HEAD_PAD, \
        "vecs/cls packing assumes 3*hidden <= 128, intermediate <= 128, classes <= 128"
    scale = 1.0 / math.sqrt(hs)
    bf16 = jnp.bfloat16

    def pad_row(v, width=HEAD_PAD):
        v = v.reshape(1, -1)
        return jnp.pad(v, ((0, 0), (0, width - v.shape[1])))

    # token init = pos_embed, with cls token folded into row 0 and conv bias into rows 1..N
    tok_init = params['pos_embed'][0]
    tok_init = tok_init.at[0].add(params['cls_token'][0, 0])
    tok_init = tok_init.at[1:].add(params['patch_b'])

    wqkv, wo, w1, w2, vecs = [], [], [], [], []
    for p in params['layers']:
        wqkv.append(jnp.concatenate([p['wq'] * scale, p['wk'], p['wv']], axis=1))   # [D, 3D]
        wo.append(p['wo'])                                                          # [D, D]
        w1.append(p['w1'])
        w2.append(p['w2'])
        vecs.append(jnp.concatenate([
            pad_row(p['ln1_w']), pad_row(p['ln1_b']),
            pad_row(p['ln2_w']), pad_row(p['ln2_b']),
            pad_row(jnp.concatenate([p['bq'] * scale, p['bk'], p['bv']], axis=1)),
            pad_row(p['bo']), pad_row(p['b1']), pad_row(p['b2'])], axis=0))         # [8, 128]

    cls_w = jnp.pad(params['cls_w'], ((0, 0), (0, HEAD_PAD - params['cls_w'].shape[1])))
    cls_b = pad_row(params['cls_b'])

    return dict(
        patch_w=params['patch_w'].astype(bf16),
        tok_init=tok_init,
        wqkv=jnp.stack(wqkv).astype(bf16),
        wo=jnp.stack(wo).astype(bf16),
        w1=jnp.stack(w1).astype(bf16),
        w2=jnp.stack(w2).astype(bf16),
        vecs=jnp.stack(vecs),
        cls_w=cls_w.astype(bf16),
        cls_b=cls_b,
    )


def vit_forward(x, packed, cfg, num_blocks=1):
    """Fully-fused Pallas forward. x: NCHW float32 image batch.
    num_blocks=1: single program, batch-stacked (best MXU M on 1-TC v5e/v6e).
    num_blocks=2: batch split over a "parallel" grid axis -> both TensorCores on v7x."""
    B, C, H, W = x.shape
    P, D = cfg['patch_size'], cfg['hidden_size']
    I = cfg['intermediate_size']
    nh = cfg['num_attention_heads']
    hs = D // nh
    L = cfg['num_hidden_layers']
    NC = cfg['num_classes']
    Hp, Wp = H // P, W // P
    N = Hp * Wp
    T = N + 1
    CPP = C * P * P
    assert B % num_blocks == 0
    B_loc = B // num_blocks

    # patch extraction (layout-only glue): [B,C,H,W] -> [nb, B_loc*N, C*P*P] in (c,ph,pw) order
    patches = x.reshape(B, C, Hp, P, Wp, P).transpose(0, 2, 4, 1, 3, 5)
    patches = patches.reshape(num_blocks, B_loc * N, CPP).astype(jnp.bfloat16)

    kernel = functools.partial(_vit_fused_kernel,
                               B=B_loc, N=N, T=T, D=D, I=I, nh=nh, hs=hs, L=L)
    vmem = pl.BlockSpec(memory_space=pltpu.MemorySpace.VMEM)   # weights: whole-array, VMEM-resident
    logits_pad = pl.pallas_call(
        kernel,
        out_shape=jax.ShapeDtypeStruct((num_blocks, B_loc, HEAD_PAD), jnp.float32),
        grid=(num_blocks,),
        in_specs=[pl.BlockSpec((None, B_loc * N, CPP), lambda i: (i, 0, 0))] + [vmem] * 9,
        out_specs=pl.BlockSpec((None, B_loc, HEAD_PAD), lambda i: (i, 0, 0)),
        compiler_params=pltpu.CompilerParams(dimension_semantics=("parallel",)),
    )(patches, packed['patch_w'], packed['tok_init'],
      packed['wqkv'], packed['wo'], packed['w1'], packed['w2'], packed['vecs'],
      packed['cls_w'], packed['cls_b'])
    return logits_pad.reshape(B, HEAD_PAD)[:, :NC]             # [B, num_classes]


def vit_reference(x, params, cfg):
    """Pure-JAX f32 reference mirroring the PyTorch forward (for validation)."""
    B, C, H, W = x.shape
    P, D = cfg['patch_size'], cfg['hidden_size']
    Hp, Wp = H // P, W // P
    patches = x.reshape(B, C, Hp, P, Wp, P).transpose(0, 2, 4, 1, 3, 5).reshape(B, Hp * Wp, C * P * P)
    emb = patches @ params['patch_w'] + params['patch_b']
    cls = jnp.broadcast_to(params['cls_token'], (B, 1, D))
    t = jnp.concatenate([cls, emb], axis=1) + params['pos_embed']
    nh = cfg['num_attention_heads']
    hs = D // nh
    for p in params['layers']:
        h = _layernorm(t, p['ln1_w'], p['ln1_b'])
        q = (h @ p['wq'] + p['bq']).reshape(B, -1, nh, hs).transpose(0, 2, 1, 3)
        k = (h @ p['wk'] + p['bk']).reshape(B, -1, nh, hs).transpose(0, 2, 1, 3)
        v = (h @ p['wv'] + p['bv']).reshape(B, -1, nh, hs).transpose(0, 2, 1, 3)
        s = jnp.einsum('bhqd,bhkd->bhqk', q, k) / math.sqrt(hs)
        ctx = jnp.einsum('bhqk,bhkd->bhqd', _softmax_ref(s), v)
        ctx = ctx.transpose(0, 2, 1, 3).reshape(B, -1, D)
        t = t + ctx @ p['wo'] + p['bo']
        h2 = _layernorm(t, p['ln2_w'], p['ln2_b'])
        t = t + _gelu_tanh(h2 @ p['w1'] + p['b1']) @ p['w2'] + p['b2']
    return t[:, 0, :] @ params['cls_w'] + params['cls_b']


if __name__ == "__main__":
    cfg = make_config()
    key = jax.random.PRNGKey(0)
    kx, kp = jax.random.split(key)
    x = jax.random.normal(
        kx, (2, cfg['num_channels'], cfg['image_size'], cfg['image_size']), dtype=jnp.float32)
    params = init_params(kp, cfg)
    packed = pack_params(params, cfg)

    # num_blocks=1 keeps M = B*T per matmul (best on 1-TC v5e/v6e); on v7x pass num_blocks=2
    # to shard the batch over both TensorCores via the "parallel" grid axis.
    fwd = jax.jit(functools.partial(vit_forward, cfg=cfg, num_blocks=1))
    logits = jax.block_until_ready(fwd(x, packed))

    ref = vit_reference(x, params, cfg)
    assert logits.shape == (2, cfg['num_classes'])
    assert bool(jnp.all(jnp.isfinite(logits)))
    # bf16 MXU operands (f32 accumulation) + approx softmax reciprocal vs. pure-f32 reference.
    assert bool(jnp.allclose(logits, ref, atol=5e-3, rtol=5e-3)), (logits, ref)
    print("KERNEL_OK")
</pallas_src>

<mosaic_0001>
module attributes {stable_mosaic.version = 11 : i64} {
  func.func @_vit_fused_kernel(%arg0: i32, %arg1: memref<1x32x64xbf16, #tpu.memory_space<vmem>>, %arg2: memref<64x32xbf16, #tpu.memory_space<vmem>>, %arg3: memref<17x32xf32, #tpu.memory_space<vmem>>, %arg4: memref<2x32x96xbf16, #tpu.memory_space<vmem>>, %arg5: memref<2x32x32xbf16, #tpu.memory_space<vmem>>, %arg6: memref<2x32x128xbf16, #tpu.memory_space<vmem>>, %arg7: memref<2x128x32xbf16, #tpu.memory_space<vmem>>, %arg8: memref<2x8x128xf32, #tpu.memory_space<vmem>>, %arg9: memref<32x128xbf16, #tpu.memory_space<vmem>>, %arg10: memref<1x128xf32, #tpu.memory_space<vmem>>, %arg11: memref<1x2x128xf32, #tpu.memory_space<vmem>>) attributes {dimension_semantics = [#tpu.dimension_semantics<parallel>], iteration_bounds = array<i64: 1>, scalar_prefetch = 0 : i64, scratch_operands = 0 : i64, tpu.core_type = #tpu.core_type<tc>, window_params = [{transform_indices = @transform_0, window_bounds = array<i64: 1, 32, 64>}, {pipeline_mode = #tpu.pipeline_mode<synchronous>, transform_indices = @transform_1, window_bounds = array<i64: 64, 32>}, {pipeline_mode = #tpu.pipeline_mode<synchronous>, transform_indices = @transform_2, window_bounds = array<i64: 17, 32>}, {pipeline_mode = #tpu.pipeline_mode<synchronous>, transform_indices = @transform_3, window_bounds = array<i64: 2, 32, 96>}, {pipeline_mode = #tpu.pipeline_mode<synchronous>, transform_indices = @transform_4, window_bounds = array<i64: 2, 32, 32>}, {pipeline_mode = #tpu.pipeline_mode<synchronous>, transform_indices = @transform_5, window_bounds = array<i64: 2, 32, 128>}, {pipeline_mode = #tpu.pipeline_mode<synchronous>, transform_indices = @transform_6, window_bounds = array<i64: 2, 128, 32>}, {pipeline_mode = #tpu.pipeline_mode<synchronous>, transform_indices = @transform_7, window_bounds = array<i64: 2, 8, 128>}, {pipeline_mode = #tpu.pipeline_mode<synchronous>, transform_indices = @transform_8, window_bounds = array<i64: 32, 128>}, {pipeline_mode = #tpu.pipeline_mode<synchronous>, transform_indices = @transform_9, window_bounds = array<i64: 1, 128>}, {transform_indices = @transform_10, window_bounds = array<i64: 1, 2, 128>}]} {
    %c0 = arith.constant 0 : index
    %c0_0 = arith.constant 0 : index
    %c0_1 = arith.constant 0 : index
    %0 = vector.load %arg1[%c0, %c0_0, %c0_1] : memref<1x32x64xbf16, #tpu.memory_space<vmem>>, vector<1x32x64xbf16>
    %1 = vector.shape_cast %0 : vector<1x32x64xbf16> to vector<32x64xbf16>
    %c0_2 = arith.constant 0 : index
    %c0_3 = arith.constant 0 : index
    %2 = vector.load %arg2[%c0_2, %c0_3] : memref<64x32xbf16, #tpu.memory_space<vmem>>, vector<64x32xbf16>
    %cst = arith.constant dense<0.000000e+00> : vector<32x32xf32>
    %3 = tpu.matmul %1, %2, %cst {dimension_numbers = #tpu.dot_dimension_numbers<[1], [0], [0], [1], [0, 0, 1, 1], [], []>} : vector<32x64xbf16>, vector<64x32xbf16>, vector<32x32xf32> -> vector<32x32xf32>
    %c0_4 = arith.constant 0 : index
    %c0_5 = arith.constant 0 : index
    %4 = vector.load %arg3[%c0_4, %c0_5] : memref<17x32xf32, #tpu.memory_space<vmem>>, vector<17x32xf32>
    %5 = vector.extract_strided_slice %4 {offsets = [0, 0], sizes = [1, 32], strides = [1, 1]} : vector<17x32xf32> to vector<1x32xf32>
    %6 = vector.extract_strided_slice %3 {offsets = [0, 0], sizes = [16, 32], strides = [1, 1]} : vector<32x32xf32> to vector<16x32xf32>
    %7 = vector.extract_strided_slice %4 {offsets = [1, 0], sizes = [16, 32], strides = [1, 1]} : vector<17x32xf32> to vector<16x32xf32>
    %8 = arith.addf %6, %7 : vector<16x32xf32>
    %9 = vector.extract_strided_slice %4 {offsets = [0, 0], sizes = [1, 32], strides = [1, 1]} : vector<17x32xf32> to vector<1x32xf32>
    %10 = vector.extract_strided_slice %3 {offsets = [16, 0], sizes = [16, 32], strides = [1, 1]} : vector<32x32xf32> to vector<16x32xf32>
    %11 = vector.extract_strided_slice %4 {offsets = [1, 0], sizes = [16, 32], strides = [1, 1]} : vector<17x32xf32> to vector<16x32xf32>
    %12 = arith.addf %10, %11 : vector<16x32xf32>
    %13 = tpu.concatenate %5, %8, %9, %12 in 0 : vector<1x32xf32>, vector<16x32xf32>, vector<1x32xf32>, vector<16x32xf32> -> vector<34x32xf32>
    %c0_6 = arith.constant 0 : index
    %c0_7 = arith.constant 0 : index
    %c0_8 = arith.constant 0 : index
    %14 = vector.load %arg8[%c0_6, %c0_7, %c0_8] : memref<2x8x128xf32, #tpu.memory_space<vmem>>, vector<1x8x128xf32>
    %15 = vector.shape_cast %14 : vector<1x8x128xf32> to vector<8x128xf32>
    %16 = vector.extract_strided_slice %15 {offsets = [0, 0], sizes = [1, 32], strides = [1, 1]} : vector<8x128xf32> to vector<1x32xf32>
    %17 = vector.extract_strided_slice %15 {offsets = [1, 0], sizes = [1, 32], strides = [1, 1]} : vector<8x128xf32> to vector<1x32xf32>
    %18 = vector.extract_strided_slice %15 {offsets = [2, 0], sizes = [1, 32], strides = [1, 1]} : vector<8x128xf32> to vector<1x32xf32>
    %19 = vector.extract_strided_slice %15 {offsets = [3, 0], sizes = [1, 32], strides = [1, 1]} : vector<8x128xf32> to vector<1x32xf32>
    %20 = vector.extract_strided_slice %15 {offsets = [4, 0], sizes = [1, 96], strides = [1, 1]} : vector<8x128xf32> to vector<1x96xf32>
    %21 = vector.extract_strided_slice %15 {offsets = [5, 0], sizes = [1, 32], strides = [1, 1]} : vector<8x128xf32> to vector<1x32xf32>
    %22 = vector.extract_strided_slice %15 {offsets = [6, 0], sizes = [1, 128], strides = [1, 1]} : vector<8x128xf32> to vector<1x128xf32>
    %23 = vector.extract_strided_slice %15 {offsets = [7, 0], sizes = [1, 32], strides = [1, 1]} : vector<8x128xf32> to vector<1x32xf32>
    %cst_9 = arith.constant dense<0.000000e+00> : vector<34xf32>
    %24 = vector.multi_reduction <add>, %13, %cst_9 [1] : vector<34x32xf32> to vector<34xf32>
    %25 = vector.shape_cast %24 : vector<34xf32> to vector<34x1xf32>
    %cst_10 = arith.constant 3.200000e+01 : f32
    %26 = vector.broadcast %cst_10 : f32 to vector<34x1xf32>
    %27 = arith.divf %25, %26 : vector<34x1xf32>
    %28 = vector.broadcast %27 : vector<34x1xf32> to vector<34x32xf32>
    %29 = arith.subf %13, %28 : vector<34x32xf32>
    %30 = arith.mulf %29, %29 : vector<34x32xf32>
    %cst_11 = arith.constant dense<0.000000e+00> : vector<34xf32>
    %31 = vector.multi_reduction <add>, %30, %cst_11 [1] : vector<34x32xf32> to vector<34xf32>
    %32 = vector.shape_cast %31 : vector<34xf32> to vector<34x1xf32>
    %cst_12 = arith.constant 3.200000e+01 : f32
    %33 = vector.broadcast %cst_12 : f32 to vector<34x1xf32>
    %34 = arith.divf %32, %33 : vector<34x1xf32>
    %35 = vector.broadcast %27 : vector<34x1xf32> to vector<34x32xf32>
    %36 = arith.subf %13, %35 : vector<34x32xf32>
    %cst_13 = arith.constant 9.99999974E-6 : f32
    %37 = vector.broadcast %cst_13 : f32 to vector<34x1xf32>
    %38 = arith.addf %34, %37 : vector<34x1xf32>
    %39 = math.rsqrt %38 : vector<34x1xf32>
    %40 = vector.broadcast %39 : vector<34x1xf32> to vector<34x32xf32>
    %41 = arith.mulf %36, %40 : vector<34x32xf32>
    %42 = vector.broadcast %16 : vector<1x32xf32> to vector<34x32xf32>
    %43 = arith.mulf %41, %42 : vector<34x32xf32>
    %44 = vector.broadcast %17 : vector<1x32xf32> to vector<34x32xf32>
    %45 = arith.addf %43, %44 : vector<34x32xf32>
    %46 = arith.truncf %45 : vector<34x32xf32> to vector<34x32xbf16>
    %c0_14 = arith.constant 0 : index
    %c0_15 = arith.constant 0 : index
    %c0_16 = arith.constant 0 : index
    %47 = vector.load %arg4[%c0_14, %c0_15, %c0_16] : memref<2x32x96xbf16, #tpu.memory_space<vmem>>, vector<1x32x96xbf16>
    %48 = vector.shape_cast %47 : vector<1x32x96xbf16> to vector<32x96xbf16>
    %cst_17 = arith.constant dense<0.000000e+00> : vector<34x96xf32>
    %49 = tpu.matmul %46, %48, %cst_17 {dimension_numbers = #tpu.dot_dimension_numbers<[1], [0], [0], [1], [0, 0, 1, 1], [], []>} : vector<34x32xbf16>, vector<32x96xbf16>, vector<34x96xf32> -> vector<34x96xf32>
    %50 = vector.broadcast %20 : vector<1x96xf32> to vector<34x96xf32>
    %51 = arith.addf %49, %50 : vector<34x96xf32>
    %52 = vector.extract_strided_slice %51 {offsets = [0, 0], sizes = [34, 8], strides = [1, 1]} : vector<34x96xf32> to vector<34x8xf32>
    %53 = vector.extract_strided_slice %51 {offsets = [0, 8], sizes = [34, 8], strides = [1, 1]} : vector<34x96xf32> to vector<34x8xf32>
    %54 = vector.extract_strided_slice %51 {offsets = [0, 16], sizes = [34, 8], strides = [1, 1]} : vector<34x96xf32> to vector<34x8xf32>
    %55 = vector.extract_strided_slice %51 {offsets = [0, 24], sizes = [34, 8], strides = [1, 1]} : vector<34x96xf32> to vector<34x8xf32>
    %56 = vector.shape_cast %52 : vector<34x8xf32> to vector<1x34x8xf32>
    %57 = vector.shape_cast %53 : vector<34x8xf32> to vector<1x34x8xf32>
    %58 = vector.shape_cast %54 : vector<34x8xf32> to vector<1x34x8xf32>
    %59 = vector.shape_cast %55 : vector<34x8xf32> to vector<1x34x8xf32>
    %60 = tpu.concatenate %56, %57, %58, %59 in 0 : vector<1x34x8xf32>, vector<1x34x8xf32>, vector<1x34x8xf32>, vector<1x34x8xf32> -> vector<4x34x8xf32>
    %61 = vector.shape_cast %60 : vector<4x34x8xf32> to vector<8x17x8xf32>
    %62 = arith.truncf %61 : vector<8x17x8xf32> to vector<8x17x8xbf16>
    %63 = vector.extract_strided_slice %51 {offsets = [0, 32], sizes = [34, 8], strides = [1, 1]} : vector<34x96xf32> to vector<34x8xf32>
    %64 = vector.extract_strided_slice %51 {offsets = [0, 40], sizes = [34, 8], strides = [1, 1]} : vector<34x96xf32> to vector<34x8xf32>
    %65 = vector.extract_strided_slice %51 {offsets = [0, 48], sizes = [34, 8], strides = [1, 1]} : vector<34x96xf32> to vector<34x8xf32>
    %66 = vector.extract_strided_slice %51 {offsets = [0, 56], sizes = [34, 8], strides = [1, 1]} : vector<34x96xf32> to vector<34x8xf32>
    %67 = vector.shape_cast %63 : vector<34x8xf32> to vector<1x34x8xf32>
    %68 = vector.shape_cast %64 : vector<34x8xf32> to vector<1x34x8xf32>
    %69 = vector.shape_cast %65 : vector<34x8xf32> to vector<1x34x8xf32>
    %70 = vector.shape_cast %66 : vector<34x8xf32> to vector<1x34x8xf32>
    %71 = tpu.concatenate %67, %68, %69, %70 in 0 : vector<1x34x8xf32>, vector<1x34x8xf32>, vector<1x34x8xf32>, vector<1x34x8xf32> -> vector<4x34x8xf32>
    %72 = vector.shape_cast %71 : vector<4x34x8xf32> to vector<8x17x8xf32>
    %73 = arith.truncf %72 : vector<8x17x8xf32> to vector<8x17x8xbf16>
    %74 = vector.extract_strided_slice %51 {offsets = [0, 64], sizes = [34, 8], strides = [1, 1]} : vector<34x96xf32> to vector<34x8xf32>
    %75 = vector.extract_strided_slice %51 {offsets = [0, 72], sizes = [34, 8], strides = [1, 1]} : vector<34x96xf32> to vector<34x8xf32>
    %76 = vector.extract_strided_slice %51 {offsets = [0, 80], sizes = [34, 8], strides = [1, 1]} : vector<34x96xf32> to vector<34x8xf32>
    %77 = vector.extract_strided_slice %51 {offsets = [0, 88], sizes = [34, 8], strides = [1, 1]} : vector<34x96xf32> to vector<34x8xf32>
    %78 = vector.shape_cast %74 : vector<34x8xf32> to vector<1x34x8xf32>
    %79 = vector.shape_cast %75 : vector<34x8xf32> to vector<1x34x8xf32>
    %80 = vector.shape_cast %76 : vector<34x8xf32> to vector<1x34x8xf32>
    %81 = vector.shape_cast %77 : vector<34x8xf32> to vector<1x34x8xf32>
    %82 = tpu.concatenate %78, %79, %80, %81 in 0 : vector<1x34x8xf32>, vector<1x34x8xf32>, vector<1x34x8xf32>, vector<1x34x8xf32> -> vector<4x34x8xf32>
    %83 = vector.shape_cast %82 : vector<4x34x8xf32> to vector<8x17x8xf32>
    %84 = arith.truncf %83 : vector<8x17x8xf32> to vector<8x17x8xbf16>
    "tpu.trace_start"() <{level = 10 : i32, message = "nqh,nkh->nqk"}> : () -> ()
    %cst_18 = arith.constant dense<0.000000e+00> : vector<8x17x17xf32>
    %85 = tpu.matmul %62, %73, %cst_18 {dimension_numbers = #tpu.dot_dimension_numbers<[2], [2], [1], [1], [0, 0, 0, 1, 1, 1], [0], [0]>} : vector<8x17x8xbf16>, vector<8x17x8xbf16>, vector<8x17x17xf32> -> vector<8x17x17xf32>
    "tpu.trace_stop"() : () -> ()
    %cst_19 = arith.constant dense<0xFF800000> : vector<8x17xf32>
    %86 = vector.multi_reduction <maximumf>, %85, %cst_19 [2] : vector<8x17x17xf32> to vector<8x17xf32>
    %87 = vector.shape_cast %86 : vector<8x17xf32> to vector<8x17x1xf32>
    %88 = vector.broadcast %87 : vector<8x17x1xf32> to vector<8x17x17xf32>
    %89 = arith.subf %85, %88 : vector<8x17x17xf32>
    %90 = math.exp %89 : vector<8x17x17xf32>
    %cst_20 = arith.constant dense<0.000000e+00> : vector<8x17xf32>
    %91 = vector.multi_reduction <add>, %90, %cst_20 [2] : vector<8x17x17xf32> to vector<8x17xf32>
    %92 = vector.shape_cast %91 : vector<8x17xf32> to vector<8x17x1xf32>
    %93 = tpu.reciprocal %92 {approx = true} : vector<8x17x1xf32> -> vector<8x17x1xf32>
    %94 = vector.broadcast %93 : vector<8x17x1xf32> to vector<8x17x17xf32>
    %95 = arith.mulf %90, %94 : vector<8x17x17xf32>
    %96 = arith.truncf %95 : vector<8x17x17xf32> to vector<8x17x17xbf16>
    "tpu.trace_start"() <{level = 10 : i32, message = "nqk,nkh->nqh"}> : () -> ()
    %cst_21 = arith.constant dense<0.000000e+00> : vector<8x17x8xf32>
    %97 = tpu.matmul %96, %84, %cst_21 {dimension_numbers = #tpu.dot_dimension_numbers<[2], [1], [1], [2], [0, 0, 0, 1, 1, 2], [0], [0]>} : vector<8x17x17xbf16>, vector<8x17x8xbf16>, vector<8x17x8xf32> -> vector<8x17x8xf32>
    "tpu.trace_stop"() : () -> ()
    %98 = vector.shape_cast %97 : vector<8x17x8xf32> to vector<4x34x8xf32>
    %99 = vector.extract_strided_slice %98 {offsets = [0, 0, 0], sizes = [1, 34, 8], strides = [1, 1, 1]} : vector<4x34x8xf32> to vector<1x34x8xf32>
    %100 = vector.shape_cast %99 : vector<1x34x8xf32> to vector<34x8xf32>
    %101 = vector.extract_strided_slice %98 {offsets = [1, 0, 0], sizes = [1, 34, 8], strides = [1, 1, 1]} : vector<4x34x8xf32> to vector<1x34x8xf32>
    %102 = vector.shape_cast %101 : vector<1x34x8xf32> to vector<34x8xf32>
    %103 = vector.extract_strided_slice %98 {offsets = [2, 0, 0], sizes = [1, 34, 8], strides = [1, 1, 1]} : vector<4x34x8xf32> to vector<1x34x8xf32>
    %104 = vector.shape_cast %103 : vector<1x34x8xf32> to vector<34x8xf32>
    %105 = vector.extract_strided_slice %98 {offsets = [3, 0, 0], sizes = [1, 34, 8], strides = [1, 1, 1]} : vector<4x34x8xf32> to vector<1x34x8xf32>
    %106 = vector.shape_cast %105 : vector<1x34x8xf32> to vector<34x8xf32>
    %107 = tpu.concatenate %100, %102, %104, %106 in 1 : vector<34x8xf32>, vector<34x8xf32>, vector<34x8xf32>, vector<34x8xf32> -> vector<34x32xf32>
    %108 = arith.truncf %107 : vector<34x32xf32> to vector<34x32xbf16>
    %c0_22 = arith.constant 0 : index
    %c0_23 = arith.constant 0 : index
    %c0_24 = arith.constant 0 : index
    %109 = vector.load %arg5[%c0_22, %c0_23, %c0_24] : memref<2x32x32xbf16, #tpu.memory_space<vmem>>, vector<1x32x32xbf16>
    %110 = vector.shape_cast %109 : vector<1x32x32xbf16> to vector<32x32xbf16>
    %cst_25 = arith.constant dense<0.000000e+00> : vector<34x32xf32>
    %111 = tpu.matmul %108, %110, %cst_25 {dimension_numbers = #tpu.dot_dimension_numbers<[1], [0], [0], [1], [0, 0, 1, 1], [], []>} : vector<34x32xbf16>, vector<32x32xbf16>, vector<34x32xf32> -> vector<34x32xf32>
    %112 = arith.addf %13, %111 : vector<34x32xf32>
    %113 = vector.broadcast %21 : vector<1x32xf32> to vector<34x32xf32>
    %114 = arith.addf %112, %113 : vector<34x32xf32>
    %cst_26 = arith.constant dense<0.000000e+00> : vector<34xf32>
    %115 = vector.multi_reduction <add>, %114, %cst_26 [1] : vector<34x32xf32> to vector<34xf32>
    %116 = vector.shape_cast %115 : vector<34xf32> to vector<34x1xf32>
    %cst_27 = arith.constant 3.200000e+01 : f32
    %117 = vector.broadcast %cst_27 : f32 to vector<34x1xf32>
    %118 = arith.divf %116, %117 : vector<34x1xf32>
    %119 = vector.broadcast %118 : vector<34x1xf32> to vector<34x32xf32>
    %120 = arith.subf %114, %119 : vector<34x32xf32>
    %121 = arith.mulf %120, %120 : vector<34x32xf32>
    %cst_28 = arith.constant dense<0.000000e+00> : vector<34xf32>
    %122 = vector.multi_reduction <add>, %121, %cst_28 [1] : vector<34x32xf32> to vector<34xf32>
    %123 = vector.shape_cast %122 : vector<34xf32> to vector<34x1xf32>
    %cst_29 = arith.constant 3.200000e+01 : f32
    %124 = vector.broadcast %cst_29 : f32 to vector<34x1xf32>
    %125 = arith.divf %123, %124 : vector<34x1xf32>
    %126 = vector.broadcast %118 : vector<34x1xf32> to vector<34x32xf32>
    %127 = arith.subf %114, %126 : vector<34x32xf32>
    %cst_30 = arith.constant 9.99999974E-6 : f32
    %128 = vector.broadcast %cst_30 : f32 to vector<34x1xf32>
    %129 = arith.addf %125, %128 : vector<34x1xf32>
    %130 = math.rsqrt %129 : vector<34x1xf32>
    %131 = vector.broadcast %130 : vector<34x1xf32> to vector<34x32xf32>
    %132 = arith.mulf %127, %131 : vector<34x32xf32>
    %133 = vector.broadcast %18 : vector<1x32xf32> to vector<34x32xf32>
    %134 = arith.mulf %132, %133 : vector<34x32xf32>
    %135 = vector.broadcast %19 : vector<1x32xf32> to vector<34x32xf32>
    %136 = arith.addf %134, %135 : vector<34x32xf32>
    %137 = arith.truncf %136 : vector<34x32xf32> to vector<34x32xbf16>
    %c0_31 = arith.constant 0 : index
    %c0_32 = arith.constant 0 : index
    %c0_33 = arith.constant 0 : index
    %138 = vector.load %arg6[%c0_31, %c0_32, %c0_33] : memref<2x32x128xbf16, #tpu.memory_space<vmem>>, vector<1x32x128xbf16>
    %139 = vector.shape_cast %138 : vector<1x32x128xbf16> to vector<32x128xbf16>
    %cst_34 = arith.constant dense<0.000000e+00> : vector<34x128xf32>
    %140 = tpu.matmul %137, %139, %cst_34 {dimension_numbers = #tpu.dot_dimension_numbers<[1], [0], [0], [1], [0, 0, 1, 1], [], []>} : vector<34x32xbf16>, vector<32x128xbf16>, vector<34x128xf32> -> vector<34x128xf32>
    %141 = vector.broadcast %22 : vector<1x128xf32> to vector<34x128xf32>
    %142 = arith.addf %140, %141 : vector<34x128xf32>
    %cst_35 = arith.constant 5.000000e-01 : f32
    %143 = vector.broadcast %cst_35 : f32 to vector<34x128xf32>
    %144 = arith.mulf %143, %142 : vector<34x128xf32>
    %cst_36 = arith.constant 4.471500e-02 : f32
    %145 = vector.broadcast %cst_36 : f32 to vector<34x128xf32>
    %146 = arith.mulf %145, %142 : vector<34x128xf32>
    %147 = arith.mulf %146, %142 : vector<34x128xf32>
    %148 = arith.mulf %147, %142 : vector<34x128xf32>
    %149 = arith.addf %142, %148 : vector<34x128xf32>
    %cst_37 = arith.constant 0.797884583 : f32
    %150 = vector.broadcast %cst_37 : f32 to vector<34x128xf32>
    %151 = arith.mulf %150, %149 : vector<34x128xf32>
    %152 = math.tanh %151 : vector<34x128xf32>
    %cst_38 = arith.constant 1.000000e+00 : f32
    %153 = vector.broadcast %cst_38 : f32 to vector<34x128xf32>
    %154 = arith.addf %153, %152 : vector<34x128xf32>
    %155 = arith.mulf %144, %154 : vector<34x128xf32>
    %156 = arith.truncf %155 : vector<34x128xf32> to vector<34x128xbf16>
    %c0_39 = arith.constant 0 : index
    %c0_40 = arith.constant 0 : index
    %c0_41 = arith.constant 0 : index
    %157 = vector.load %arg7[%c0_39, %c0_40, %c0_41] : memref<2x128x32xbf16, #tpu.memory_space<vmem>>, vector<1x128x32xbf16>
    %158 = vector.shape_cast %157 : vector<1x128x32xbf16> to vector<128x32xbf16>
    %cst_42 = arith.constant dense<0.000000e+00> : vector<34x32xf32>
    %159 = tpu.matmul %156, %158, %cst_42 {dimension_numbers = #tpu.dot_dimension_numbers<[1], [0], [0], [1], [0, 0, 1, 1], [], []>} : vector<34x128xbf16>, vector<128x32xbf16>, vector<34x32xf32> -> vector<34x32xf32>
    %160 = arith.addf %114, %159 : vector<34x32xf32>
    %161 = vector.broadcast %23 : vector<1x32xf32> to vector<34x32xf32>
    %162 = arith.addf %160, %161 : vector<34x32xf32>
    %c1 = arith.constant 1 : index
    %c0_43 = arith.constant 0 : index
    %c0_44 = arith.constant 0 : index
    %163 = vector.load %arg8[%c1, %c0_43, %c0_44] : memref<2x8x128xf32, #tpu.memory_space<vmem>>, vector<1x8x128xf32>
    %164 = vector.shape_cast %163 : vector<1x8x128xf32> to vector<8x128xf32>
    %165 = vector.extract_strided_slice %164 {offsets = [0, 0], sizes = [1, 32], strides = [1, 1]} : vector<8x128xf32> to vector<1x32xf32>
    %166 = vector.extract_strided_slice %164 {offsets = [1, 0], sizes = [1, 32], strides = [1, 1]} : vector<8x128xf32> to vector<1x32xf32>
    %167 = vector.extract_strided_slice %164 {offsets = [2, 0], sizes = [1, 32], strides = [1, 1]} : vector<8x128xf32> to vector<1x32xf32>
    %168 = vector.extract_strided_slice %164 {offsets = [3, 0], sizes = [1, 32], strides = [1, 1]} : vector<8x128xf32> to vector<1x32xf32>
    %169 = vector.extract_strided_slice %164 {offsets = [4, 0], sizes = [1, 96], strides = [1, 1]} : vector<8x128xf32> to vector<1x96xf32>
    %170 = vector.extract_strided_slice %164 {offsets = [5, 0], sizes = [1, 32], strides = [1, 1]} : vector<8x128xf32> to vector<1x32xf32>
    %171 = vector.extract_strided_slice %164 {offsets = [6, 0], sizes = [1, 128], strides = [1, 1]} : vector<8x128xf32> to vector<1x128xf32>
    %172 = vector.extract_strided_slice %164 {offsets = [7, 0], sizes = [1, 32], strides = [1, 1]} : vector<8x128xf32> to vector<1x32xf32>
    %cst_45 = arith.constant dense<0.000000e+00> : vector<34xf32>
    %173 = vector.multi_reduction <add>, %162, %cst_45 [1] : vector<34x32xf32> to vector<34xf32>
    %174 = vector.shape_cast %173 : vector<34xf32> to vector<34x1xf32>
    %cst_46 = arith.constant 3.200000e+01 : f32
    %175 = vector.broadcast %cst_46 : f32 to vector<34x1xf32>
    %176 = arith.divf %174, %175 : vector<34x1xf32>
    %177 = vector.broadcast %176 : vector<34x1xf32> to vector<34x32xf32>
    %178 = arith.subf %162, %177 : vector<34x32xf32>
    %179 = arith.mulf %178, %178 : vector<34x32xf32>
    %cst_47 = arith.constant dense<0.000000e+00> : vector<34xf32>
    %180 = vector.multi_reduction <add>, %179, %cst_47 [1] : vector<34x32xf32> to vector<34xf32>
    %181 = vector.shape_cast %180 : vector<34xf32> to vector<34x1xf32>
    %cst_48 = arith.constant 3.200000e+01 : f32
    %182 = vector.broadcast %cst_48 : f32 to vector<34x1xf32>
    %183 = arith.divf %181, %182 : vector<34x1xf32>
    %184 = vector.broadcast %176 : vector<34x1xf32> to vector<34x32xf32>
    %185 = arith.subf %162, %184 : vector<34x32xf32>
    %cst_49 = arith.constant 9.99999974E-6 : f32
    %186 = vector.broadcast %cst_49 : f32 to vector<34x1xf32>
    %187 = arith.addf %183, %186 : vector<34x1xf32>
    %188 = math.rsqrt %187 : vector<34x1xf32>
    %189 = vector.broadcast %188 : vector<34x1xf32> to vector<34x32xf32>
    %190 = arith.mulf %185, %189 : vector<34x32xf32>
    %191 = vector.broadcast %165 : vector<1x32xf32> to vector<34x32xf32>
    %192 = arith.mulf %190, %191 : vector<34x32xf32>
    %193 = vector.broadcast %166 : vector<1x32xf32> to vector<34x32xf32>
    %194 = arith.addf %192, %193 : vector<34x32xf32>
    %195 = arith.truncf %194 : vector<34x32xf32> to vector<34x32xbf16>
    %c1_50 = arith.constant 1 : index
    %c0_51 = arith.constant 0 : index
    %c0_52 = arith.constant 0 : index
    %196 = vector.load %arg4[%c1_50, %c0_51, %c0_52] : memref<2x32x96xbf16, #tpu.memory_space<vmem>>, vector<1x32x96xbf16>
    %197 = vector.shape_cast %196 : vector<1x32x96xbf16> to vector<32x96xbf16>
    %cst_53 = arith.constant dense<0.000000e+00> : vector<34x96xf32>
    %198 = tpu.matmul %195, %197, %cst_53 {dimension_numbers = #tpu.dot_dimension_numbers<[1], [0], [0], [1], [0, 0, 1, 1], [], []>} : vector<34x32xbf16>, vector<32x96xbf16>, vector<34x96xf32> -> vector<34x96xf32>
    %199 = vector.broadcast %169 : vector<1x96xf32> to vector<34x96xf32>
    %200 = arith.addf %198, %199 : vector<34x96xf32>
    %201 = vector.extract_strided_slice %200 {offsets = [0, 0], sizes = [34, 8], strides = [1, 1]} : vector<34x96xf32> to vector<34x8xf32>
    %202 = vector.extract_strided_slice %200 {offsets = [0, 8], sizes = [34, 8], strides = [1, 1]} : vector<34x96xf32> to vector<34x8xf32>
    %203 = vector.extract_strided_slice %200 {offsets = [0, 16], sizes = [34, 8], strides = [1, 1]} : vector<34x96xf32> to vector<34x8xf32>
    %204 = vector.extract_strided_slice %200 {offsets = [0, 24], sizes = [34, 8], strides = [1, 1]} : vector<34x96xf32> to vector<34x8xf32>
    %205 = vector.shape_cast %201 : vector<34x8xf32> to vector<1x34x8xf32>
    %206 = vector.shape_cast %202 : vector<34x8xf32> to vector<1x34x8xf32>
    %207 = vector.shape_cast %203 : vector<34x8xf32> to vector<1x34x8xf32>
    %208 = vector.shape_cast %204 : vector<34x8xf32> to vector<1x34x8xf32>
    %209 = tpu.concatenate %205, %206, %207, %208 in 0 : vector<1x34x8xf32>, vector<1x34x8xf32>, vector<1x34x8xf32>, vector<1x34x8xf32> -> vector<4x34x8xf32>
    %210 = vector.shape_cast %209 : vector<4x34x8xf32> to vector<8x17x8xf32>
    %211 = arith.truncf %210 : vector<8x17x8xf32> to vector<8x17x8xbf16>
    %212 = vector.extract_strided_slice %200 {offsets = [0, 32], sizes = [34, 8], strides = [1, 1]} : vector<34x96xf32> to vector<34x8xf32>
    %213 = vector.extract_strided_slice %200 {offsets = [0, 40], sizes = [34, 8], strides = [1, 1]} : vector<34x96xf32> to vector<34x8xf32>
    %214 = vector.extract_strided_slice %200 {offsets = [0, 48], sizes = [34, 8], strides = [1, 1]} : vector<34x96xf32> to vector<34x8xf32>
    %215 = vector.extract_strided_slice %200 {offsets = [0, 56], sizes = [34, 8], strides = [1, 1]} : vector<34x96xf32> to vector<34x8xf32>
    %216 = vector.shape_cast %212 : vector<34x8xf32> to vector<1x34x8xf32>
    %217 = vector.shape_cast %213 : vector<34x8xf32> to vector<1x34x8xf32>
    %218 = vector.shape_cast %214 : vector<34x8xf32> to vector<1x34x8xf32>
    %219 = vector.shape_cast %215 : vector<34x8xf32> to vector<1x34x8xf32>
    %220 = tpu.concatenate %216, %217, %218, %219 in 0 : vector<1x34x8xf32>, vector<1x34x8xf32>, vector<1x34x8xf32>, vector<1x34x8xf32> -> vector<4x34x8xf32>
    %221 = vector.shape_cast %220 : vector<4x34x8xf32> to vector<8x17x8xf32>
    %222 = arith.truncf %221 : vector<8x17x8xf32> to vector<8x17x8xbf16>
    %223 = vector.extract_strided_slice %200 {offsets = [0, 64], sizes = [34, 8], strides = [1, 1]} : vector<34x96xf32> to vector<34x8xf32>
    %224 = vector.extract_strided_slice %200 {offsets = [0, 72], sizes = [34, 8], strides = [1, 1]} : vector<34x96xf32> to vector<34x8xf32>
    %225 = vector.extract_strided_slice %200 {offsets = [0, 80], sizes = [34, 8], strides = [1, 1]} : vector<34x96xf32> to vector<34x8xf32>
    %226 = vector.extract_strided_slice %200 {offsets = [0, 88], sizes = [34, 8], strides = [1, 1]} : vector<34x96xf32> to vector<34x8xf32>
    %227 = vector.shape_cast %223 : vector<34x8xf32> to vector<1x34x8xf32>
    %228 = vector.shape_cast %224 : vector<34x8xf32> to vector<1x34x8xf32>
    %229 = vector.shape_cast %225 : vector<34x8xf32> to vector<1x34x8xf32>
    %230 = vector.shape_cast %226 : vector<34x8xf32> to vector<1x34x8xf32>
    %231 = tpu.concatenate %227, %228, %229, %230 in 0 : vector<1x34x8xf32>, vector<1x34x8xf32>, vector<1x34x8xf32>, vector<1x34x8xf32> -> vector<4x34x8xf32>
    %232 = vector.shape_cast %231 : vector<4x34x8xf32> to vector<8x17x8xf32>
    %233 = arith.truncf %232 : vector<8x17x8xf32> to vector<8x17x8xbf16>
    "tpu.trace_start"() <{level = 10 : i32, message = "nqh,nkh->nqk"}> : () -> ()
    %cst_54 = arith.constant dense<0.000000e+00> : vector<8x17x17xf32>
    %234 = tpu.matmul %211, %222, %cst_54 {dimension_numbers = #tpu.dot_dimension_numbers<[2], [2], [1], [1], [0, 0, 0, 1, 1, 1], [0], [0]>} : vector<8x17x8xbf16>, vector<8x17x8xbf16>, vector<8x17x17xf32> -> vector<8x17x17xf32>
    "tpu.trace_stop"() : () -> ()
    %cst_55 = arith.constant dense<0xFF800000> : vector<8x17xf32>
    %235 = vector.multi_reduction <maximumf>, %234, %cst_55 [2] : vector<8x17x17xf32> to vector<8x17xf32>
    %236 = vector.shape_cast %235 : vector<8x17xf32> to vector<8x17x1xf32>
    %237 = vector.broadcast %236 : vector<8x17x1xf32> to vector<8x17x17xf32>
    %238 = arith.subf %234, %237 : vector<8x17x17xf32>
    %239 = math.exp %238 : vector<8x17x17xf32>
    %cst_56 = arith.constant dense<0.000000e+00> : vector<8x17xf32>
    %240 = vector.multi_reduction <add>, %239, %cst_56 [2] : vector<8x17x17xf32> to vector<8x17xf32>
    %241 = vector.shape_cast %240 : vector<8x17xf32> to vector<8x17x1xf32>
    %242 = tpu.reciprocal %241 {approx = true} : vector<8x17x1xf32> -> vector<8x17x1xf32>
    %243 = vector.broadcast %242 : vector<8x17x1xf32> to vector<8x17x17xf32>
    %244 = arith.mulf %239, %243 : vector<8x17x17xf32>
    %245 = arith.truncf %244 : vector<8x17x17xf32> to vector<8x17x17xbf16>
    "tpu.trace_start"() <{level = 10 : i32, message = "nqk,nkh->nqh"}> : () -> ()
    %cst_57 = arith.constant dense<0.000000e+00> : vector<8x17x8xf32>
    %246 = tpu.matmul %245, %233, %cst_57 {dimension_numbers = #tpu.dot_dimension_numbers<[2], [1], [1], [2], [0, 0, 0, 1, 1, 2], [0], [0]>} : vector<8x17x17xbf16>, vector<8x17x8xbf16>, vector<8x17x8xf32> -> vector<8x17x8xf32>
    "tpu.trace_stop"() : () -> ()
    %247 = vector.shape_cast %246 : vector<8x17x8xf32> to vector<4x34x8xf32>
    %248 = vector.extract_strided_slice %247 {offsets = [0, 0, 0], sizes = [1, 34, 8], strides = [1, 1, 1]} : vector<4x34x8xf32> to vector<1x34x8xf32>
    %249 = vector.shape_cast %248 : vector<1x34x8xf32> to vector<34x8xf32>
    %250 = vector.extract_strided_slice %247 {offsets = [1, 0, 0], sizes = [1, 34, 8], strides = [1, 1, 1]} : vector<4x34x8xf32> to vector<1x34x8xf32>
    %251 = vector.shape_cast %250 : vector<1x34x8xf32> to vector<34x8xf32>
    %252 = vector.extract_strided_slice %247 {offsets = [2, 0, 0], sizes = [1, 34, 8], strides = [1, 1, 1]} : vector<4x34x8xf32> to vector<1x34x8xf32>
    %253 = vector.shape_cast %252 : vector<1x34x8xf32> to vector<34x8xf32>
    %254 = vector.extract_strided_slice %247 {offsets = [3, 0, 0], sizes = [1, 34, 8], strides = [1, 1, 1]} : vector<4x34x8xf32> to vector<1x34x8xf32>
    %255 = vector.shape_cast %254 : vector<1x34x8xf32> to vector<34x8xf32>
    %256 = tpu.concatenate %249, %251, %253, %255 in 1 : vector<34x8xf32>, vector<34x8xf32>, vector<34x8xf32>, vector<34x8xf32> -> vector<34x32xf32>
    %257 = arith.truncf %256 : vector<34x32xf32> to vector<34x32xbf16>
    %c1_58 = arith.constant 1 : index
    %c0_59 = arith.constant 0 : index
    %c0_60 = arith.constant 0 : index
    %258 = vector.load %arg5[%c1_58, %c0_59, %c0_60] : memref<2x32x32xbf16, #tpu.memory_space<vmem>>, vector<1x32x32xbf16>
    %259 = vector.shape_cast %258 : vector<1x32x32xbf16> to vector<32x32xbf16>
    %cst_61 = arith.constant dense<0.000000e+00> : vector<34x32xf32>
    %260 = tpu.matmul %257, %259, %cst_61 {dimension_numbers = #tpu.dot_dimension_numbers<[1], [0], [0], [1], [0, 0, 1, 1], [], []>} : vector<34x32xbf16>, vector<32x32xbf16>, vector<34x32xf32> -> vector<34x32xf32>
    %261 = arith.addf %162, %260 : vector<34x32xf32>
    %262 = vector.broadcast %170 : vector<1x32xf32> to vector<34x32xf32>
    %263 = arith.addf %261, %262 : vector<34x32xf32>
    %cst_62 = arith.constant dense<0.000000e+00> : vector<34xf32>
    %264 = vector.multi_reduction <add>, %263, %cst_62 [1] : vector<34x32xf32> to vector<34xf32>
    %265 = vector.shape_cast %264 : vector<34xf32> to vector<34x1xf32>
    %cst_63 = arith.constant 3.200000e+01 : f32
    %266 = vector.broadcast %cst_63 : f32 to vector<34x1xf32>
    %267 = arith.divf %265, %266 : vector<34x1xf32>
    %268 = vector.broadcast %267 : vector<34x1xf32> to vector<34x32xf32>
    %269 = arith.subf %263, %268 : vector<34x32xf32>
    %270 = arith.mulf %269, %269 : vector<34x32xf32>
    %cst_64 = arith.constant dense<0.000000e+00> : vector<34xf32>
    %271 = vector.multi_reduction <add>, %270, %cst_64 [1] : vector<34x32xf32> to vector<34xf32>
    %272 = vector.shape_cast %271 : vector<34xf32> to vector<34x1xf32>
    %cst_65 = arith.constant 3.200000e+01 : f32
    %273 = vector.broadcast %cst_65 : f32 to vector<34x1xf32>
    %274 = arith.divf %272, %273 : vector<34x1xf32>
    %275 = vector.broadcast %267 : vector<34x1xf32> to vector<34x32xf32>
    %276 = arith.subf %263, %275 : vector<34x32xf32>
    %cst_66 = arith.constant 9.99999974E-6 : f32
    %277 = vector.broadcast %cst_66 : f32 to vector<34x1xf32>
    %278 = arith.addf %274, %277 : vector<34x1xf32>
    %279 = math.rsqrt %278 : vector<34x1xf32>
    %280 = vector.broadcast %279 : vector<34x1xf32> to vector<34x32xf32>
    %281 = arith.mulf %276, %280 : vector<34x32xf32>
    %282 = vector.broadcast %167 : vector<1x32xf32> to vector<34x32xf32>
    %283 = arith.mulf %281, %282 : vector<34x32xf32>
    %284 = vector.broadcast %168 : vector<1x32xf32> to vector<34x32xf32>
    %285 = arith.addf %283, %284 : vector<34x32xf32>
    %286 = arith.truncf %285 : vector<34x32xf32> to vector<34x32xbf16>
    %c1_67 = arith.constant 1 : index
    %c0_68 = arith.constant 0 : index
    %c0_69 = arith.constant 0 : index
    %287 = vector.load %arg6[%c1_67, %c0_68, %c0_69] : memref<2x32x128xbf16, #tpu.memory_space<vmem>>, vector<1x32x128xbf16>
    %288 = vector.shape_cast %287 : vector<1x32x128xbf16> to vector<32x128xbf16>
    %cst_70 = arith.constant dense<0.000000e+00> : vector<34x128xf32>
    %289 = tpu.matmul %286, %288, %cst_70 {dimension_numbers = #tpu.dot_dimension_numbers<[1], [0], [0], [1], [0, 0, 1, 1], [], []>} : vector<34x32xbf16>, vector<32x128xbf16>, vector<34x128xf32> -> vector<34x128xf32>
    %290 = vector.broadcast %171 : vector<1x128xf32> to vector<34x128xf32>
    %291 = arith.addf %289, %290 : vector<34x128xf32>
    %cst_71 = arith.constant 5.000000e-01 : f32
    %292 = vector.broadcast %cst_71 : f32 to vector<34x128xf32>
    %293 = arith.mulf %292, %291 : vector<34x128xf32>
    %cst_72 = arith.constant 4.471500e-02 : f32
    %294 = vector.broadcast %cst_72 : f32 to vector<34x128xf32>
    %295 = arith.mulf %294, %291 : vector<34x128xf32>
    %296 = arith.mulf %295, %291 : vector<34x128xf32>
    %297 = arith.mulf %296, %291 : vector<34x128xf32>
    %298 = arith.addf %291, %297 : vector<34x128xf32>
    %cst_73 = arith.constant 0.797884583 : f32
    %299 = vector.broadcast %cst_73 : f32 to vector<34x128xf32>
    %300 = arith.mulf %299, %298 : vector<34x128xf32>
    %301 = math.tanh %300 : vector<34x128xf32>
    %cst_74 = arith.constant 1.000000e+00 : f32
    %302 = vector.broadcast %cst_74 : f32 to vector<34x128xf32>
    %303 = arith.addf %302, %301 : vector<34x128xf32>
    %304 = arith.mulf %293, %303 : vector<34x128xf32>
    %305 = arith.truncf %304 : vector<34x128xf32> to vector<34x128xbf16>
    %c1_75 = arith.constant 1 : index
    %c0_76 = arith.constant 0 : index
    %c0_77 = arith.constant 0 : index
    %306 = vector.load %arg7[%c1_75, %c0_76, %c0_77] : memref<2x128x32xbf16, #tpu.memory_space<vmem>>, vector<1x128x32xbf16>
    %307 = vector.shape_cast %306 : vector<1x128x32xbf16> to vector<128x32xbf16>
    %cst_78 = arith.constant dense<0.000000e+00> : vector<34x32xf32>
    %308 = tpu.matmul %305, %307, %cst_78 {dimension_numbers = #tpu.dot_dimension_numbers<[1], [0], [0], [1], [0, 0, 1, 1], [], []>} : vector<34x128xbf16>, vector<128x32xbf16>, vector<34x32xf32> -> vector<34x32xf32>
    %309 = arith.addf %263, %308 : vector<34x32xf32>
    %310 = vector.broadcast %172 : vector<1x32xf32> to vector<34x32xf32>
    %311 = arith.addf %309, %310 : vector<34x32xf32>
    %312 = vector.extract_strided_slice %311 {offsets = [0, 0], sizes = [1, 32], strides = [1, 1]} : vector<34x32xf32> to vector<1x32xf32>
    %313 = vector.extract_strided_slice %311 {offsets = [17, 0], sizes = [1, 32], strides = [1, 1]} : vector<34x32xf32> to vector<1x32xf32>
    %314 = tpu.concatenate %312, %313 in 0 : vector<1x32xf32>, vector<1x32xf32> -> vector<2x32xf32>
    %315 = arith.truncf %314 : vector<2x32xf32> to vector<2x32xbf16>
    %c0_79 = arith.constant 0 : index
    %c0_80 = arith.constant 0 : index
    %316 = vector.load %arg9[%c0_79, %c0_80] : memref<32x128xbf16, #tpu.memory_space<vmem>>, vector<32x128xbf16>
    %cst_81 = arith.constant dense<0.000000e+00> : vector<2x128xf32>
    %317 = tpu.matmul %315, %316, %cst_81 {dimension_numbers = #tpu.dot_dimension_numbers<[1], [0], [0], [1], [0, 0, 1, 1], [], []>} : vector<2x32xbf16>, vector<32x128xbf16>, vector<2x128xf32> -> vector<2x128xf32>
    %c0_82 = arith.constant 0 : index
    %c0_83 = arith.constant 0 : index
    %318 = vector.load %arg10[%c0_82, %c0_83] : memref<1x128xf32, #tpu.memory_space<vmem>>, vector<1x128xf32>
    %319 = vector.broadcast %318 : vector<1x128xf32> to vector<2x128xf32>
    %320 = arith.addf %317, %319 : vector<2x128xf32>
    %c0_84 = arith.constant 0 : index
    %c0_85 = arith.constant 0 : index
    %c0_86 = arith.constant 0 : index
    %321 = vector.load %arg11[%c0_84, %c0_85, %c0_86] : memref<1x2x128xf32, #tpu.memory_space<vmem>>, vector<1x2x128xf32>
    %322 = vector.shape_cast %321 : vector<1x2x128xf32> to vector<2x128xf32>
    %323 = vector.shape_cast %320 : vector<2x128xf32> to vector<1x2x128xf32>
    tpu.vector_store %arg11[%c0_84, %c0_85, %c0_86], %323 {strides = array<i32>} : memref<1x2x128xf32, #tpu.memory_space<vmem>>, vector<1x2x128xf32>,
    return
  }
  func.func @transform_0(%arg0: i32) -> (i32, i32, i32) {
    %c0_i32 = arith.constant 0 : i32
    %c0_i32_0 = arith.constant 0 : i32
    %c0_i32_1 = arith.constant 0 : i32
    return %arg0, %c0_i32, %c0_i32_0 : i32, i32, i32
  }
  func.func @transform_1(%arg0: i32) -> (i32, i32) {
    %c0_i32 = arith.constant 0 : i32
    %c0_i32_0 = arith.constant 0 : i32
    %c0_i32_1 = arith.constant 0 : i32
    return %c0_i32, %c0_i32_0 : i32, i32
  }
  func.func @transform_2(%arg0: i32) -> (i32, i32) {
    %c0_i32 = arith.constant 0 : i32
    %c0_i32_0 = arith.constant 0 : i32
    %c0_i32_1 = arith.constant 0 : i32
    return %c0_i32, %c0_i32_0 : i32, i32
  }
  func.func @transform_3(%arg0: i32) -> (i32, i32, i32) {
    %c0_i32 = arith.constant 0 : i32
    %c0_i32_0 = arith.constant 0 : i32
    %c0_i32_1 = arith.constant 0 : i32
    %c0_i32_2 = arith.constant 0 : i32
    return %c0_i32, %c0_i32_0, %c0_i32_1 : i32, i32, i32
  }
  func.func @transform_4(%arg0: i32) -> (i32, i32, i32) {
    %c0_i32 = arith.constant 0 : i32
    %c0_i32_0 = arith.constant 0 : i32
    %c0_i32_1 = arith.constant 0 : i32
    %c0_i32_2 = arith.constant 0 : i32
    return %c0_i32, %c0_i32_0, %c0_i32_1 : i32, i32, i32
  }
  func.func @transform_5(%arg0: i32) -> (i32, i32, i32) {
    %c0_i32 = arith.constant 0 : i32
    %c0_i32_0 = arith.constant 0 : i32
    %c0_i32_1 = arith.constant 0 : i32
    %c0_i32_2 = arith.constant 0 : i32
    return %c0_i32, %c0_i32_0, %c0_i32_1 : i32, i32, i32
  }
  func.func @transform_6(%arg0: i32) -> (i32, i32, i32) {
    %c0_i32 = arith.constant 0 : i32
    %c0_i32_0 = arith.constant 0 : i32
    %c0_i32_1 = arith.constant 0 : i32
    %c0_i32_2 = arith.constant 0 : i32
    return %c0_i32, %c0_i32_0, %c0_i32_1 : i32, i32, i32
  }
  func.func @transform_7(%arg0: i32) -> (i32, i32, i32) {
    %c0_i32 = arith.constant 0 : i32
    %c0_i32_0 = arith.constant 0 : i32
    %c0_i32_1 = arith.constant 0 : i32
    %c0_i32_2 = arith.constant 0 : i32
    return %c0_i32, %c0_i32_0, %c0_i32_1 : i32, i32, i32
  }
  func.func @transform_8(%arg0: i32) -> (i32, i32) {
    %c0_i32 = arith.constant 0 : i32
    %c0_i32_0 = arith.constant 0 : i32
    %c0_i32_1 = arith.constant 0 : i32
    return %c0_i32, %c0_i32_0 : i32, i32
  }
  func.func @transform_9(%arg0: i32) -> (i32, i32) {
    %c0_i32 = arith.constant 0 : i32
    %c0_i32_0 = arith.constant 0 : i32
    %c0_i32_1 = arith.constant 0 : i32
    return %c0_i32, %c0_i32_0 : i32, i32
  }
  func.func @transform_10(%arg0: i32) -> (i32, i32, i32) {
    %c0_i32 = arith.constant 0 : i32
    %c0_i32_0 = arith.constant 0 : i32
    %c0_i32_1 = arith.constant 0 : i32
    return %arg0, %c0_i32, %c0_i32_0 : i32, i32, i32
  }
}

</mosaic_0001>

<bundles_post_ra>
// kernel: vit_forward.1
= control target key start
LH: loop header
LB: loop body
LE: loop exit
PB: predicated region body
PF: predicated region fallthrough
CT: control target
= control target key end

     0   :  { %vm83_vm0 = vcmask 523264   ;;  %s15822_s0 = inlined_call_operand.vmem [shape: bf16[1,32,64], index: 0, kind: input, shape index: {}]   ;;  %s15823_s1 = inlined_call_operand.vmem [shape: bf16[64,32], index: 1, kind: input, shape index: {}]   ;;  %s15824_s2 = inlined_call_operand.vmem [shape: f32[17,32], index: 2, kind: input, shape index: {}]   ;;  %s15825_s3 = inlined_call_operand.vmem [shape: bf16[2,32,96], index: 3, kind: input, shape index: {}]   ;;  %s15826_s4 = inlined_call_operand.vmem [shape: bf16[2,32,32], index: 4, kind: input, shape index: {}]   ;;  %s15827_s5 = inlined_call_operand.vmem [shape: bf16[2,32,128], index: 5, kind: input, shape index: {}]   ;;  %s15828_s6 = inlined_call_operand.vmem [shape: bf16[2,128,32], index: 6, kind: input, shape index: {}]   ;;  %s15829_s7 = inlined_call_operand.vmem [shape: f32[2,8,128], index: 7, kind: input, shape index: {}]   ;;  %s15830_s8 = inlined_call_operand.vmem [shape: bf16[32,128], index: 8, kind: input, shape index: {}]   ;;  %s15831_s9 = inlined_call_operand.vmem [shape: f32[1,128], index: 9, kind: input, shape index: {}]   ;;  %s15832_s10 = inlined_call_operand.hbm [shape: f32[1,2,128], index: 10, kind: output, shape index: {}]  }
   0x1   :  { %v12408_v0 = vld [vmem:[%s15823_s1 + $0x18] sm:$0xff]   ;;  %v12409_v1 = vld [vmem:[%s15823_s1 + $0x10] sm:$0xff]   ;;  %v12410_v2 = vld [vmem:[%s15823_s1 + $0x8] sm:$0xff]  }
   0x2   :  { %11871 = vmatprep.subr.bf16.mxu0 %v12408_v0  ;;  %v12412_v3 = vld [vmem:[%s15822_s0] sm:$0xff]   ;;  %v12413_v5 = vld [vmem:[%s15822_s0 + $0x8] sm:$0xff]  }
   0x3   :  { %11872 = vmatpush3.bf16.msra.mxu0 %v12408_v0  ;;  %v12411_v4 = vld [vmem:[%s15823_s1] sm:$0xff]   ;;  %11879 = vmatprep.mubr.msk.bf16.mxu0 %vm83_vm0, %v12412_v3 }
   0x4   :  { %11873 = vmatprep.subr.bf16.mxu0 %v12409_v1 }
   0x7   :  { %11874 = vmatpush3.bf16.msra.mxu0 %v12409_v1 }
   0x8   :  { %11875 = vmatprep.subr.bf16.mxu0 %v12410_v2 }
   0xb   :  { %11876 = vmatpush3.bf16.msra.mxu0 %v12410_v2 }
   0xc   :  { %11877 = vmatprep.subr.bf16.mxu0 %v12411_v4 }
   0xf   :  { %11878 = vmatpush3.bf16.msra.mxu0 %v12411_v4 }
  0x12   :  { %11880 = vmatmul.mubr.msk.bf16.vlgmr.msra.gmra.mxu0 %vm83_vm0, %v12413_v5 }
  0x13   :  { %15 = vsyncpa [#allocation3], 0  ;;  %v139_v6 = vld [vmem:[%s15824_s2] sm:$0xff]  ;;  %v140_v7 = vld [vmem:[%s15824_s2 + $0x8] sm:$0xff]  ;;  %vm145_vm1 = vcmask 1046528   ;;  %vm159_vm2 = vcmask 1040384  }
  0x14   :  { %v141_v8 = vld [vmem:[%s15824_s2 + $0x10] sm:$0x1]  ;;  %v146_v9 = vrot.slane %v139_v6, 1  ;;  %v147_v10 = vrot.slane %v140_v7, 1  ;;  %vm181_vm3 = vcmask 261120   ;;  %v166_v24 = vrot.slane %v139_v6, 7 }
  0x15   :  { %v149_v11 = vrot.slane %v141_v8, 1  ;;  %vm170_vm4 = vcmask 1041408   ;;  %vm194_vm5 = vcmask 254976   ;;  %v12414_v62 = vld [vmem:[%s15825_s3 + $0x8] sm:$0xff]   ;;  %v15836_v63 = vmov 0.0   ;;  %v12415_v0 = vld [vmem:[%s15825_s3] sm:$0xff]  }
  0x16   :  { %v148_v13 = vsel %vm145_vm1, %v146_v9, %v147_v10  ;;  %11883 = vmatprep.subr.bf16.mxu0 %v15836_v63  ;;  %12299 = vmatprep.subr.bf16.mxu1 %v15836_v63  ;;  %vm12721_vm6 = vmmov 0   ;;  %v249_v9 = vlaneseq  ;;  %s12723_s14 = smov 120   ;;  %s12724_s15 = smov 112   ;;  %vm2204_vm7 = vcmask 64512  }
  0x17   :  { %v150_v16 = vsel %vm145_vm1, %v147_v10, %v149_v11  ;;  %11884 = vmatpush3.bf16.msra.mxu0 %v12414_v62  ;;  %12301 = vmatpush3.bf16.msra.mxu1 %v12414_v62  ;;  %s12725_s16 = smov 104   ;;  %s12726_s17 = smov 96   ;;  %vm2734_vm8 = vcmask 131072   ;;  %vm2727_vm9 = vcmask 138240   ;;  %vm5326_vm10 = vcmask 130048  }
  0x18   :  { %11885 = vmatprep.subr.bf16.mxu0 %v15836_v63  ;;  %11887 = vmatprep.mubr.msk.bf16.mxu0 %vm12721_vm6, %v15836_v63  ;;  %s12727_s18 = smov 64   ;;  %s12729_s19 = smov 8   ;;  %vm5332_vm11 = vcmask 195584  }
  0x19   :  { %12300 = vmatprep.subr.bf16.mxu1 %v15836_v63  ;;  %11891 = vmatprep.mubr.msk.bf16.mxu1 %vm12721_vm6, %v15836_v63  ;;  %s12730_s24 = smov 16   ;;  %s12731_s25 = smov 24  }
  0x1b   :  { %11886 = vmatpush3.bf16.msra.mxu0 %v12415_v0  ;;  %12302 = vmatpush3.bf16.msra.mxu1 %v12415_v0 }
  0xd2   :  { %v11881_v12 = vpop.f32.mrf.mxu0 }
  0xd3   :  { %v155_v19 = vadd.f32 %v11881_v12, %v148_v13 }
  0xd4   :  { %v124_v14 = vpop.f32.mrf.mxu0 }
  0xd5   :  { %v153_v15 = vadd.f32 %v148_v13, %v124_v14  ;;  %v171_v27 = vrot.slane %v155_v19, 6  ;;  %v180_v19 = vld [vmem:[%s15829_s7] sm:$0xff] }
  0xd6   :  { %v11882_v17 = vpop.f32.mrf.mxu0 }
  0xd7   :  { %v160_v18 = vrot.slane %v153_v15, 7  ;;  %v156_v20 = vadd.f32 %v11882_v17, %v150_v16  ;;  %v12883_v15 = vshrl.u32 %v249_v9, 7 }
  0xd8   :  { %v127_v21 = vpop.f32.mrf.mxu0 }
  0xd9   :  { %v154_v22 = vadd.f32 %v150_v16, %v127_v21  ;;  %v12816_v23 = vsel %vm159_vm2, %v139_v6, %v160_v18  ;;  %v12820_v28 = vrot.slane %v156_v20, 6  ;;  %15866 = vst [vmem:[#allocation10_spill] sm:$0xff] %v12883_v15 }
  0xda   :  { %15861 = vst [vmem:[#allocation5_spill] sm:$0xff] %v12816_v23  ;;  %v182_v25 = vsel %vm181_vm3, %v12816_v23, 0.0 }
  0xdb   :  { %v161_v26 = vrot.slane %v154_v22, 7  ;;  %183 = vadd.xlane.f32.xlu0 %v182_v25  ;;  %15862 = vst [vmem:[#allocation6_spill] sm:$0xff] %v12820_v28  ;;  %v12833_v34 = vsel %vm170_vm4, %v171_v27, %v12820_v28  ;;  %v195_v35 = vsel %vm194_vm5, %v12820_v28, 0.0 }
  0xdc   :  { %15865 = vst [vmem:[#allocation9_spill] sm:$0xff] %v12833_v34  ;;  %v191_v36 = vsel %vm181_vm3, %v12833_v34, 0.0 }
  0xdd   :  { %v12823_v29 = vsel %vm159_vm2, %v160_v18, %v161_v26  ;;  %v178_v30 = vsel %vm159_vm2, %v161_v26, %v166_v24  ;;  %v15835_v18 = vsub.s32 0, %v12883_v15  ;;  %v15834_v24 = vsub.s32 1, %v12883_v15 }
  0xde   :  { %15863 = vst [vmem:[#allocation7_spill] sm:$0xff] %v12823_v29  ;;  %v185_v31 = vsel %vm181_vm3, %v12823_v29, 0.0  ;;  %v12828_v32 = vsel %vm170_vm4, %v178_v30, %v171_v27 }
  0xdf   :  { %15864 = vst [vmem:[#allocation8_spill] sm:$0xff] %v12828_v32  ;;  %186 = vadd.xlane.f32.xlu0 %v185_v31  ;;  %v188_v33 = vsel %vm181_vm3, %v12828_v32, 0.0  ;;  %v252_v22 = vrot.slane %v180_v19, %v15835_v18  ;;  %v261_v31 = vrot.slane %v180_v19, %v15834_v24 }
  0xe0   :  { %189 = vadd.xlane.f32.xlu1 %v188_v33 }
  0xe3   :  { %196 = vadd.xlane.f32.xlu0 %v195_v35 }
  0xe4   :  { %192 = vadd.xlane.f32.xlu1 %v191_v36 }
 0x164   :  { %v184_v37 = vpop.xlane.xlu0 %183 }
 0x165   :  { %v199_v38 = vmul.f32 0.03125, %v184_v37 }
 0x167   :  { %v12840_v39 = vsub.f32 %v12816_v23, %v199_v38 }
 0x168   :  { %v187_v40 = vpop.xlane.xlu0 %186 }
 0x169   :  { %v200_v41 = vmul.f32 0.03125, %v187_v40  ;;  %v190_v42 = vpop.xlane.xlu1 %189  ;;  %v209_v43 = vmul.f32 %v12840_v39, %v12840_v39 }
 0x16a   :  { %v201_v44 = vmul.f32 0.03125, %v190_v42 }
 0x16b   :  { %v12845_v45 = vsub.f32 %v12823_v29, %v200_v41  ;;  %v214_v46 = vsel %vm181_vm3, %v209_v43, 0.0 }
 0x16c   :  { %v12849_v47 = vsub.f32 %v12828_v32, %v201_v44  ;;  %215 = vadd.xlane.f32.xlu1 %v214_v46  ;;  %v197_v48 = vpop.xlane.xlu0 %196 }
 0x16d   :  { %v203_v49 = vmul.f32 0.03125, %v197_v48  ;;  %v193_v50 = vpop.xlane.xlu1 %192  ;;  %v210_v51 = vmul.f32 %v12845_v45, %v12845_v45 }
 0x16e   :  { %v202_v52 = vmul.f32 0.03125, %v193_v50  ;;  %v211_v53 = vmul.f32 %v12849_v47, %v12849_v47 }
 0x16f   :  { %v12856_v54 = vsub.f32 %v12820_v28, %v203_v49  ;;  %v217_v55 = vsel %vm181_vm3, %v210_v51, 0.0  ;;  %v12722_v51 = vmov 1966171168  }
 0x170   :  { %v12860_v56 = vsub.f32 %v12833_v34, %v202_v52  ;;  %218 = vadd.xlane.f32.xlu0 %v217_v55  ;;  %v220_v57 = vsel %vm181_vm3, %v211_v53, 0.0  ;;  %v392_v52 = vunpack.c.l.s4 %v12722_v51  ;;  %v15833_v53 = vsub.s32 4, %v12883_v15 }
 0x171   :  { %221 = vadd.xlane.f32.xlu1 %v220_v57  ;;  %v213_v58 = vmul.f32 %v12856_v54, %v12856_v54 }
 0x172   :  { %v212_v59 = vmul.f32 %v12860_v56, %v12860_v56  ;;  %v393_v55 = vunpack.c.0.s8 %v392_v52 }
 0x173   :  { %v226_v60 = vsel %vm194_vm5, %v213_v58, 0.0 }
 0x174   :  { %v223_v61 = vsel %vm181_vm3, %v212_v59, 0.0 }
 0x175   :  { %224 = vadd.xlane.f32.xlu0 %v223_v61  ;;  %227 = vadd.xlane.f32.xlu1 %v226_v60 }
 0x1f5   :  { %v216_v1 = vpop.xlane.xlu1 %215 }
 0x1f6   :  { %v229_v2 = vmul.f32 0.03125, %v216_v1 }
 0x1f8   :  { %v234_v3 = vadd.f32 1e-05, %v229_v2 }
 0x1f9   :  { %v219_v4 = vpop.xlane.xlu0 %218 }
 0x1fa   :  { %12444 = vrsqrt.f32 %v234_v3  ;;  %v230_v5 = vmul.f32 0.03125, %v219_v4  ;;  %v222_v6 = vpop.xlane.xlu1 %221 }
 0x1fb   :  { %v231_v7 = vmul.f32 0.03125, %v222_v6 }
 0x1fc   :  { %v235_v8 = vadd.f32 1e-05, %v230_v5 }
 0x1fd   :  { %v236_v10 = vadd.f32 1e-05, %v231_v7 }
 0x1fe   :  { %12446 = vrsqrt.f32 %v235_v8  ;;  %v228_v11 = vpop.xlane.xlu1 %227  ;;  %v225_v12 = vpop.xlane.xlu0 %224 }
 0x1ff   :  { %12448 = vrsqrt.f32 %v236_v10  ;;  %v233_v13 = vmul.f32 0.03125, %v228_v11  ;;  %v232_v14 = vmul.f32 0.03125, %v225_v12 }
 0x201   :  { %v238_v16 = vadd.f32 1e-05, %v233_v13  ;;  %v237_v17 = vadd.f32 1e-05, %v232_v14 }
 0x203   :  { %12450 = vrsqrt.f32 %v238_v16 }
 0x204   :  { %12452 = vrsqrt.f32 %v237_v17 }
 0x207   :  { %v12445_v20 = vpop.eup %12444 }
 0x208   :  { %v244_v21 = vmul.f32 %v12445_v20, %v12840_v39 }
 0x20a   :  { %v253_v30 = vmul.f32 %v252_v22, %v244_v21 }
 0x20b   :  { %v12447_v25 = vpop.eup %12446 }
 0x20c   :  { %v12449_v26 = vpop.eup %12448  ;;  %v245_v27 = vmul.f32 %v12447_v25, %v12845_v45  ;;  %v262_v37 = vadd.f32 %v261_v31, %v253_v30 }
 0x20d   :  { %v246_v35 = vmul.f32 %v12449_v26, %v12849_v47 }
 0x20e   :  { %v254_v33 = vmul.f32 %v252_v22, %v245_v27 }
 0x20f   :  { %v255_v42 = vmul.f32 %v252_v22, %v246_v35 }
 0x210   :  { %v12451_v36 = vpop.eup %12450  ;;  %v263_v38 = vadd.f32 %v261_v31, %v254_v33 }
 0x211   :  { %v12453_v39 = vpop.eup %12452  ;;  %v248_v44 = vmul.f32 %v12451_v36, %v12856_v54  ;;  %v264_v45 = vadd.f32 %v261_v31, %v255_v42  ;;  %v277_v54 = vrot.slane %v180_v19, %v15833_v53 }
 0x212   :  { %v267_v40 = vpack.c.bf16 %v263_v38, %v262_v37  ;;  %v247_v41 = vmul.f32 %v12453_v39, %v12860_v56  ;;  %v12908_v56 = vsub.s32 %v393_v55, %v12883_v15 }
 0x213   :  { %v257_v49 = vmul.f32 %v252_v22, %v248_v44 }
 0x214   :  { %11888 = vmatmul.mubr.msk.bf16.vlgmr.msra.gmra.mxu0 %vm181_vm3, %v267_v40  ;;  %v256_v43 = vmul.f32 %v252_v22, %v247_v41 }
 0x215   :  { %v266_v47 = vadd.f32 %v261_v31, %v257_v49 }
 0x216   :  { %v265_v46 = vadd.f32 %v261_v31, %v256_v43 }
 0x217   :  { %v269_v50 = vpack.c.bf16 %v266_v47, %v266_v47 }
 0x218   :  { %v268_v48 = vpack.c.bf16 %v265_v46, %v264_v45 }
 0x21a   :  { %11892 = vmatmul.mubr.msk.bf16.vlgmr.msra.gmra.mxu1 %vm181_vm3, %v268_v48 }
 0x21b   :  { %11895 = vmatprep.mubr.msk.bf16.mxu1 %vm12721_vm6, %v15836_v63 }
 0x222   :  { %11896 = vmatmul.mubr.msk.bf16.gmra.mxu1 %vm181_vm3, %v269_v50 }
 0x2d4   :  { %v333_v57 = vpop.f32.mrf.mxu0 }
 0x2d5   :  { %v12910_v58 = vadd.f32 %v333_v57, %v277_v54 }
 0x2d6   :  { %v11889_v59 = vpop.f32.mrf.mxu0 }
 0x2d7   :  { %v390_v60 = vcombine.high %v12910_v58, %v12910_v58  ;;  %v397_v61 = vrot.slane %v12910_v58, %v12908_v56  ;;  %360 = vrot.lane.b32.xlu0 %v12910_v58, %s12723_s14 }
 0x2d8   :  { %v336_v62 = vpop.f32.mrf.mxu0 }
 0x2d9   :  { %v404_v0 = vrot.slane %v390_v60, %v12908_v56  ;;  %v405_v1 = vcombine.high %v397_v61, %v397_v61  ;;  %v12919_v2 = vadd.f32 %v336_v62, %v277_v54  ;;  %v413_v6 = vrot.slane %v397_v61, %v12908_v56 }
 0x2da   :  { %v341_v3 = vpop.f32.mrf.mxu1  ;;  %v11890_v4 = vpop.f32.mrf.mxu0 }
 0x2db   :  { %v406_v5 = vcombine.high %v404_v0, %v404_v0  ;;  %v427_v7 = vrot.slane %v405_v1, %v12908_v56  ;;  %v439_v8 = vcombine.high %v12919_v2, %v12919_v2  ;;  %362 = vrot.lane.b32.xlu1 %v12919_v2, %s12723_s14  ;;  %v12928_v9 = vrot.slane %v404_v0, %v12908_v56 }
 0x2dc   :  { %v446_v10 = vrot.slane %v12919_v2, %v12908_v56  ;;  %v12932_v11 = vadd.f32 %v341_v3, %v277_v54  ;;  %v11893_v12 = vpop.f32.mrf.mxu1 }
 0x2dd   :  { %v434_v13 = vrot.slane %v406_v5, %v12908_v56  ;;  %v1262_v14 = vcombine.low %v413_v6, %v427_v7  ;;  %v11480_v16 = vcombine.high %v413_v6, %v427_v7  ;;  %v453_v17 = vrot.slane %v439_v8, %v12908_v56 }
 0x2de   :  { %v454_v19 = vcombine.high %v446_v10, %v446_v10  ;;  %v462_v20 = vrot.slane %v446_v10, %v12908_v56  ;;  %v488_v21 = vcombine.high %v12932_v11, %v12932_v11  ;;  %v495_v22 = vrot.slane %v12932_v11, %v12908_v56  ;;  %v344_v25 = vpop.f32.mrf.mxu1 }
 0x2df   :  { %v455_v26 = vcombine.high %v453_v17, %v453_v17  ;;  %v12942_v27 = vrot.slane %v453_v17, %v12908_v56  ;;  %v12944_v30 = vadd.f32 %v344_v25, %v277_v54  ;;  %364 = vrot.lane.b32.xlu1 %v12932_v11, %s12723_s14  ;;  %v1264_v31 = vcombine.low %v12928_v9, %v434_v13 }
 0x2e0   :  { %v476_v33 = vrot.slane %v454_v19, %v12908_v56  ;;  %v502_v35 = vrot.slane %v488_v21, %v12908_v56  ;;  %v503_v36 = vcombine.high %v495_v22, %v495_v22  ;;  %v12952_v37 = vrot.slane %v495_v22, %v12908_v56  ;;  %v11894_v38 = vpop.f32.mrf.mxu1 }
 0x2e1   :  { %v483_v39 = vrot.slane %v455_v26, %v12908_v56  ;;  %v537_v40 = vcombine.high %v12944_v30, %v12944_v30  ;;  %v544_v41 = vrot.slane %v12944_v30, %v12908_v56  ;;  %v11481_v42 = vcombine.high %v12928_v9, %v434_v13 }
 0x2e2   :  { %v1311_v43 = vcombine.low %v462_v20, %v476_v33  ;;  %v11482_v44 = vcombine.high %v462_v20, %v476_v33  ;;  %v504_v45 = vcombine.high %v502_v35, %v502_v35  ;;  %v518_v46 = vrot.slane %v502_v35, %v12908_v56  ;;  %v349_v48 = vpop.f32.mrf.mxu1 }
 0x2e3   :  { %v525_v49 = vrot.slane %v503_v36, %v12908_v56  ;;  %v533_v47 = vcombine.high %v12952_v37, %v12952_v37  ;;  %v551_v50 = vrot.slane %v537_v40, %v12908_v56  ;;  %v552_v51 = vcombine.high %v544_v41, %v544_v41  ;;  %366 = vrot.lane.b32.xlu1 %v12944_v30, %s12723_s14 }
 0x2e4   :  { %v532_v52 = vrot.slane %v504_v45, %v12908_v56  ;;  %v534_v55 = vcombine.high %v518_v46, %v518_v46  ;;  %v560_v57 = vrot.slane %v544_v41, %v12908_v56  ;;  %v12969_v59 = vadd.f32 %v349_v48, %v277_v54  ;;  %v11897_v60 = vpop.f32.mrf.mxu1 }
 0x2e5   :  { %v535_v61 = vcombine.high %v525_v49, %v525_v49  ;;  %v553_v62 = vcombine.high %v551_v50, %v551_v50  ;;  %v567_v0 = vrot.slane %v551_v50, %v12908_v56  ;;  %v574_v1 = vrot.slane %v552_v51, %v12908_v56 }
 0x2e6   :  { %v536_v3 = vcombine.high %v532_v52, %v532_v52  ;;  %v582_v4 = vcombine.high %v560_v57, %v560_v57  ;;  %v592_v5 = vrot.slane %v12969_v59, %v12908_v56  ;;  %368 = vrot.lane.b32.xlu0 %v12969_v59, %s12723_s14  ;;  %v352_v6 = vpop.f32.mrf.mxu1  ;;  %v1272_v7 = vrot.slane %v1262_v14, %v12908_v56 }
 0x2e7   :  { %v583_v54 = vcombine.high %v567_v0, %v567_v0  ;;  %v584_v8 = vcombine.high %v574_v1, %v574_v1  ;;  %v581_v9 = vrot.slane %v553_v62, %v12908_v56  ;;  %370 = vrot.lane.b32.xlu1 %v12910_v58, %s12724_s15  ;;  %v1279_v10 = vrot.slane %v11480_v16, %v12908_v56 }
 0x2e8   :  { %v1377_v12 = vcombine.low %v536_v3, %v560_v57  ;;  %v600_v13 = vrot.slane %v592_v5, %v12908_v56  ;;  %v11898_v17 = vpop.f32.mrf.mxu1  ;;  %v1286_v19 = vrot.slane %v1264_v31, %v12908_v56  ;;  %v1293_v20 = vrot.slane %v11481_v42, %v12908_v56 }
 0x2e9   :  { %v585_v21 = vcombine.high %v581_v9, %v581_v9  ;;  %v1294_v14 = vcombine.low %v1272_v7, %v1279_v10  ;;  %v1313_v22 = vcombine.low %v12942_v27, %v483_v39  ;;  %v11483_v25 = vcombine.high %v12942_v27, %v483_v39 }
 0x2ea   :  { %372 = vrot.lane.b32.xlu0 %v12919_v2, %s12724_s15  ;;  %v1295_v26 = vcombine.low %v1286_v19, %v1293_v20  ;;  %v1321_v16 = vrot.slane %v1311_v43, %v12908_v56  ;;  %v1328_v33 = vrot.slane %v11482_v44, %v12908_v56  ;;  %v1374_v35 = vcombine.low %v525_v49, %v533_v47 }
 0x2eb   :  { %v1426_v36 = vcombine.low %v585_v21, %v600_v13  ;;  %374 = vrot.lane.b32.xlu1 %v12932_v11, %s12724_s15  ;;  %v1302_v31 = vrot.slane %v1294_v14, %v12908_v56  ;;  %v1335_v38 = vrot.slane %v1313_v22, %v12908_v56  ;;  %v1342_v40 = vrot.slane %v11483_v25, %v12908_v56 }
 0x2ec   :  { %v1309_v27 = vrot.slane %v1295_v26, %v12908_v56  ;;  %v1343_v39 = vcombine.low %v1321_v16, %v1328_v33  ;;  %v1375_v41 = vcombine.low %v535_v61, %v518_v46  ;;  %v1376_v42 = vcombine.low %v532_v52, %v534_v55 }
 0x2ed   :  { %v1454_v43 = vrot.slane %v1426_v36, %v12908_v56  ;;  %v1344_v45 = vcombine.low %v1335_v38, %v1342_v40  ;;  %v1384_v44 = vrot.slane %v1374_v35, %v12908_v56  ;;  %v1405_v48 = vrot.slane %v1377_v12, %v12908_v56 }
 0x2ee   :  { %376 = vrot.lane.b32.xlu0 %v12944_v30, %s12724_s15  ;;  %v1310_v49 = vcombine.low %v1302_v31, %v1309_v27  ;;  %v1351_v47 = vrot.slane %v1343_v39, %v12908_v56  ;;  %v1391_v50 = vrot.slane %v1375_v41, %v12908_v56  ;;  %v1398_v51 = vrot.slane %v1376_v42, %v12908_v56 }
 0x2ef   :  { %v1358_v46 = vrot.slane %v1344_v45, %v12908_v56  ;;  %378 = vrot.lane.b32.xlu1 %v12969_v59, %s12724_s15  ;;  %v1423_v52 = vcombine.low %v574_v1, %v582_v4  ;;  %v1424_v55 = vcombine.low %v584_v8, %v567_v0  ;;  %v1425_v57 = vcombine.low %v581_v9, %v583_v54 }
 0x2f0   :  { %v1406_v60 = vcombine.low %v1384_v44, %v1391_v50  ;;  %v1407_v61 = vcombine.low %v1398_v51, %v1405_v48  ;;  %v1366_v62 = vrot.slane %v12952_v37, %v12908_v56  ;;  %v593_v3 = vcombine.high %v592_v5, %v592_v5 }
 0x2f1   :  { %v1359_v6 = vcombine.low %v1351_v47, %v1358_v46  ;;  %v1433_v7 = vrot.slane %v1423_v52, %v12908_v56  ;;  %v1440_v10 = vrot.slane %v1424_v55, %v12908_v56  ;;  %v1447_v12 = vrot.slane %v1425_v57, %v12908_v56 }
 0x2f2   :  { %380 = vrot.lane.b32.xlu0 %v12910_v58, %s12725_s16  ;;  %v607_v0 = vrot.slane %v593_v3, %v12908_v56  ;;  %v1421_v37 = vrot.slane %v1407_v61, %v12908_v56  ;;  %v1414_v54 = vrot.slane %v1406_v60, %v12908_v56  ;;  %v1373_v9 = vrot.slane %v1366_v62, %v12908_v56 }
 0x2f3   :  { %v13016_v1 = vpack.c.bf16 %v1359_v6, %v1310_v49  ;;  %382 = vrot.lane.b32.xlu1 %v12919_v2, %s12725_s16  ;;  %v1455_v4 = vcombine.low %v1433_v7, %v1440_v10  ;;  %v1456_v5 = vcombine.low %v1447_v12, %v1454_v43 }
 0x2f4   :  { %v1478_v13 = vrot.slane %v607_v0, %v12908_v56  ;;  %v1422_v2 = vcombine.low %v1414_v54, %v1421_v37  ;;  %v13034_v20 = vpack.c.bf16 %v1373_v9, %v1373_v9 }
 0x2f5   :  { %11903 = vmatprep.mubr.msk.bf16.mxu0 %vm2204_vm7, %v13016_v1  ;;  %v1463_v8 = vrot.slane %v1455_v4, %v12908_v56  ;;  %v1470_v58 = vrot.slane %v1456_v5, %v12908_v56 }
 0x2f6   :  { %384 = vrot.lane.b32.xlu0 %v12932_v11, %s12725_s16  ;;  %v1485_v21 = vrot.slane %v1478_v13, %v12908_v56 }
 0x2f7   :  { %v1471_v17 = vcombine.low %v1463_v8, %v1470_v58  ;;  %386 = vrot.lane.b32.xlu1 %v12944_v30, %s12725_s16 }
 0x2f8   :  { %v13043_v11 = vpack.c.bf16 %v1485_v21, %v1485_v21 }
 0x2f9   :  { %v13032_v19 = vpack.c.bf16 %v1471_v17, %v1422_v2 }
 0x2fa   :  { %388 = vrot.lane.b32.xlu0 %v12969_v59, %s12725_s16 }
 0x2fb   :  { %11911 = vmatprep.mubr.msk.bf16.mxu1 %vm2204_vm7, %v13032_v19  ;;  %2202 = vrot.lane.b32.xlu1 %v13034_v20, %s12726_s17 }
 0x2fe   :  { %2200 = vrot.lane.b32.xlu0 %v13016_v1, %s12726_s17 }
 0x2ff   :  { %2269 = vrot.lane.b32.xlu1 %v13043_v11, %s12726_s17 }
 0x302   :  { %2267 = vrot.lane.b32.xlu0 %v13032_v19, %s12726_s17 }
 0x349   :  { %v361_v30 = vpop.permute.xlu0 %360 }
 0x34a   :  { %v608_v59 = vcombine.high %v361_v30, %v361_v30  ;;  %v615_v14 = vrot.slane %v361_v30, %v12908_v56 }
 0x34c   :  { %v622_v22 = vrot.slane %v608_v59, %v12908_v56  ;;  %v623_v25 = vcombine.high %v615_v14, %v615_v14  ;;  %v631_v33 = vrot.slane %v615_v14, %v12908_v56 }
 0x34d   :  { %v363_v26 = vpop.permute.xlu1 %362 }
 0x34e   :  { %v624_v16 = vcombine.high %v622_v22, %v622_v22  ;;  %v645_v35 = vrot.slane %v623_v25, %v12908_v56  ;;  %v657_v36 = vcombine.high %v363_v26, %v363_v26  ;;  %v638_v31 = vrot.slane %v622_v22, %v12908_v56 }
 0x34f   :  { %v664_v38 = vrot.slane %v363_v26, %v12908_v56 }
 0x350   :  { %v652_v40 = vrot.slane %v624_v16, %v12908_v56  ;;  %v1486_v27 = vcombine.low %v631_v33, %v645_v35  ;;  %v11484_v39 = vcombine.high %v631_v33, %v645_v35  ;;  %v671_v41 = vrot.slane %v657_v36, %v12908_v56 }
 0x351   :  { %v672_v42 = vcombine.high %v664_v38, %v664_v38  ;;  %v680_v43 = vrot.slane %v664_v38, %v12908_v56  ;;  %v365_v45 = vpop.permute.xlu1 %364 }
 0x352   :  { %v1488_v44 = vcombine.low %v638_v31, %v652_v40  ;;  %v11485_v48 = vcombine.high %v638_v31, %v652_v40  ;;  %v13061_v49 = vrot.slane %v1486_v27, %v12908_v56  ;;  %v13064_v47 = vrot.slane %v11484_v39, %v12908_v56 }
 0x353   :  { %v673_v50 = vcombine.high %v671_v41, %v671_v41  ;;  %v687_v51 = vrot.slane %v671_v41, %v12908_v56  ;;  %v694_v46 = vrot.slane %v672_v42, %v12908_v56  ;;  %v706_v52 = vcombine.high %v365_v45, %v365_v45 }
 0x354   :  { %v13069_v55 = vrot.slane %v1488_v44, %v12908_v56  ;;  %v13072_v57 = vrot.slane %v11485_v48, %v12908_v56  ;;  %v713_v60 = vrot.slane %v365_v45, %v12908_v56  ;;  %v1518_v61 = vcombine.low %v13061_v49, %v13064_v47 }
 0x355   :  { %v701_v62 = vrot.slane %v673_v50, %v12908_v56  ;;  %v1535_v3 = vcombine.low %v680_v43, %v694_v46  ;;  %v11486_v6 = vcombine.high %v680_v43, %v694_v46  ;;  %v720_v7 = vrot.slane %v706_v52, %v12908_v56  ;;  %v367_v10 = vpop.permute.xlu1 %366 }
 0x356   :  { %v721_v12 = vcombine.high %v713_v60, %v713_v60  ;;  %v13080_v0 = vrot.slane %v713_v60, %v12908_v56  ;;  %v755_v37 = vcombine.high %v367_v10, %v367_v10  ;;  %v762_v4 = vrot.slane %v367_v10, %v12908_v56 }
 0x357   :  { %v1537_v5 = vcombine.low %v687_v51, %v701_v62  ;;  %v11487_v54 = vcombine.high %v687_v51, %v701_v62  ;;  %v13084_v8 = vrot.slane %v1535_v3, %v12908_v56  ;;  %v13087_v58 = vrot.slane %v11486_v6, %v12908_v56 }
 0x358   :  { %v722_v9 = vcombine.high %v720_v7, %v720_v7  ;;  %v736_v13 = vrot.slane %v720_v7, %v12908_v56  ;;  %v743_v2 = vrot.slane %v721_v12, %v12908_v56  ;;  %v751_v17 = vcombine.high %v13080_v0, %v13080_v0  ;;  %v369_v35 = vpop.permute.xlu0 %368 }
 0x359   :  { %v13094_v21 = vrot.slane %v1537_v5, %v12908_v56  ;;  %v13097_v30 = vrot.slane %v11487_v54, %v12908_v56  ;;  %v769_v59 = vrot.slane %v755_v37, %v12908_v56  ;;  %v770_v14 = vcombine.high %v762_v4, %v762_v4  ;;  %v371_v22 = vpop.permute.xlu1 %370 }
 0x35a   :  { %v750_v25 = vrot.slane %v722_v9, %v12908_v56  ;;  %v752_v26 = vcombine.high %v736_v13, %v736_v13  ;;  %v753_v16 = vcombine.high %v743_v2, %v743_v2  ;;  %v13101_v33 = vcombine.low %v743_v2, %v751_v17 }
 0x35b   :  { %v771_v36 = vcombine.high %v769_v59, %v769_v59  ;;  %v778_v31 = vrot.slane %v762_v4, %v12908_v56  ;;  %v785_v38 = vrot.slane %v769_v59, %v12908_v56  ;;  %v792_v40 = vrot.slane %v770_v14, %v12908_v56 }
 0x35c   :  { %v13106_v27 = vcombine.low %v753_v16, %v736_v13  ;;  %v13108_v39 = vcombine.low %v750_v25, %v752_v26  ;;  %v754_v42 = vcombine.high %v750_v25, %v750_v25  ;;  %v810_v52 = vrot.slane %v369_v35, %v12908_v56  ;;  %v373_v5 = vpop.permute.xlu0 %372 }
 0x35d   :  { %v799_v43 = vrot.slane %v771_v36, %v12908_v56  ;;  %v800_v45 = vcombine.high %v778_v31, %v778_v31  ;;  %v801_v44 = vcombine.high %v785_v38, %v785_v38  ;;  %v802_v48 = vcombine.high %v792_v40, %v792_v40  ;;  %v375_v50 = vpop.permute.xlu1 %374 }
 0x35e   :  { %v13115_v46 = vcombine.low %v754_v42, %v778_v31  ;;  %v826_v60 = vcombine.high %v371_v22, %v371_v22  ;;  %v811_v12 = vcombine.high %v810_v52, %v810_v52  ;;  %v818_v37 = vrot.slane %v810_v52, %v12908_v56 }
 0x35f   :  { %v13118_v62 = vcombine.low %v792_v40, %v800_v45  ;;  %v13120_v3 = vcombine.low %v802_v48, %v785_v38  ;;  %v1649_v6 = vcombine.low %v799_v43, %v801_v44  ;;  %v803_v7 = vcombine.high %v799_v43, %v799_v43 }
 0x360   :  { %v833_v4 = vrot.slane %v371_v22, %v12908_v56  ;;  %v840_v2 = vrot.slane %v826_v60, %v12908_v56  ;;  %v13133_v59 = vrot.slane %v811_v12, %v12908_v56  ;;  %v875_v35 = vcombine.high %v373_v5, %v373_v5 }
 0x361   :  { %v1671_v13 = vrot.slane %v1649_v6, %v12908_v56  ;;  %v379_v17 = vpop.permute.xlu1 %378  ;;  %v1650_v14 = vcombine.low %v803_v7, %v818_v37  ;;  %v882_v36 = vrot.slane %v373_v5, %v12908_v56  ;;  %v1590_v40 = vrot.slane %v13080_v0, %v12908_v56 }
 0x362   :  { %v841_v25 = vcombine.high %v833_v4, %v833_v4  ;;  %v849_v26 = vrot.slane %v833_v4, %v12908_v56  ;;  %v842_v22 = vcombine.high %v840_v2, %v840_v2  ;;  %v856_v16 = vrot.slane %v840_v2, %v12908_v56  ;;  %v377_v2 = vpop.permute.xlu0 %376 }
 0x363   :  { %v1678_v31 = vrot.slane %v1650_v14, %v12908_v56  ;;  %v924_v42 = vcombine.high %v375_v50, %v375_v50  ;;  %v889_v45 = vrot.slane %v875_v35, %v12908_v56  ;;  %v890_v44 = vcombine.high %v882_v36, %v882_v36 }
 0x364   :  { %v863_v38 = vrot.slane %v841_v25, %v12908_v56  ;;  %v870_v43 = vrot.slane %v842_v22, %v12908_v56  ;;  %v898_v48 = vrot.slane %v882_v36, %v12908_v56  ;;  %v1597_v12 = vrot.slane %v1590_v40, %v12908_v56 }
 0x365   :  { %v13145_v52 = vpop.permute.xlu1 %382  ;;  %v13147_v60 = vcombine.low %v1671_v13, %v1678_v31  ;;  %v891_v5 = vcombine.high %v889_v45, %v889_v45  ;;  %v905_v0 = vrot.slane %v889_v45, %v12908_v56  ;;  %v912_v22 = vrot.slane %v890_v44, %v12908_v56 }
 0x366   :  { %v1710_v6 = vcombine.low %v849_v26, %v863_v38  ;;  %v11488_v7 = vcombine.high %v849_v26, %v863_v38  ;;  %v1712_v37 = vcombine.low %v856_v16, %v870_v43  ;;  %v11489_v4 = vcombine.high %v856_v16, %v870_v43 }
 0x367   :  { %v13158_v13 = vpack.c.bf16 %v1597_v12, %v1597_v12  ;;  %v919_v16 = vrot.slane %v891_v5, %v12908_v56  ;;  %v931_v36 = vrot.slane %v375_v50, %v12908_v56  ;;  %v1759_v38 = vcombine.low %v898_v48, %v912_v22 }
 0x368   :  { %v13152_v14 = vrot.slane %v1710_v6, %v12908_v56  ;;  %v13155_v25 = vrot.slane %v11488_v7, %v12908_v56  ;;  %v13161_v26 = vrot.slane %v1712_v37, %v12908_v56  ;;  %v13164_v35 = vrot.slane %v11489_v4, %v12908_v56 }
 0x369   :  { %v13168_v31 = vpop.permute.xlu1 %386  ;;  %v11490_v40 = vcombine.high %v898_v48, %v912_v22  ;;  %2335 = vrot.lane.b32.xlu1 %v13158_v13, %s12726_s17  ;;  %v938_v43 = vrot.slane %v924_v42, %v12908_v56  ;;  %v973_v45 = vcombine.high %v377_v2, %v377_v2  ;;  %v1761_v44 = vcombine.low %v905_v0, %v919_v16 }
 0x36a   :  { %v11491_v6 = vcombine.high %v905_v0, %v919_v16  ;;  %v939_v7 = vcombine.high %v931_v36, %v931_v36  ;;  %v13174_v12 = vrot.slane %v931_v36, %v12908_v56  ;;  %v13177_v37 = vrot.slane %v1759_v38, %v12908_v56 }
 0x36b   :  { %v13180_v50 = vrot.slane %v11490_v40, %v12908_v56  ;;  %v940_v4 = vcombine.high %v938_v43, %v938_v43  ;;  %v954_v48 = vrot.slane %v938_v43, %v12908_v56  ;;  %v13184_v5 = vrot.slane %v1761_v44, %v12908_v56 }
 0x36c   :  { %v13187_v42 = vrot.slane %v11491_v6, %v12908_v56  ;;  %v961_v0 = vrot.slane %v939_v7, %v12908_v56  ;;  %v969_v22 = vcombine.high %v13174_v12, %v13174_v12  ;;  %v980_v40 = vrot.slane %v377_v2, %v12908_v56 }
 0x36d   :  { %v13192_v16 = vpop.permute.xlu1 %2202  ;;  %v968_v36 = vrot.slane %v940_v4, %v12908_v56  ;;  %v970_v38 = vcombine.high %v954_v48, %v954_v48  ;;  %v987_v43 = vrot.slane %v973_v45, %v12908_v56  ;;  %v1028_v7 = vrot.slane %v379_v17, %v12908_v56 }
 0x36e   :  { %12303 = vmatprep.subr.msk.bf16.mxu0 %vm2204_vm7, %v13192_v16  ;;  %v971_v44 = vcombine.high %v961_v0, %v961_v0  ;;  %v13199_v6 = vcombine.low %v961_v0, %v969_v22  ;;  %v1519_v53 = vcombine.low %v13069_v55, %v13072_v57  ;;  %v988_v4 = vcombine.high %v980_v40, %v980_v40  ;;  %v381_v22 = vpop.permute.xlu0 %380 }
 0x36f   :  { %v13204_v24 = vcombine.low %v968_v36, %v970_v38  ;;  %v972_v18 = vcombine.high %v968_v36, %v968_v36  ;;  %v989_v63 = vcombine.high %v987_v43, %v987_v43  ;;  %v996_v45 = vrot.slane %v980_v40, %v12908_v56 }
 0x370   :  { %v13206_v10 = vcombine.low %v971_v44, %v954_v48  ;;  %v1003_v0 = vrot.slane %v987_v43, %v12908_v56  ;;  %v1010_v17 = vrot.slane %v988_v4, %v12908_v56  ;;  %v1029_v57 = vcombine.high %v1028_v7, %v1028_v7 }
 0x371   :  { %v13212_v54 = vpop.permute.xlu1 %2269  ;;  %v1017_v55 = vrot.slane %v989_v63, %v12908_v56  ;;  %v1036_v36 = vrot.slane %v1028_v7, %v12908_v56  ;;  %v1018_v38 = vcombine.high %v996_v45, %v996_v45  ;;  %v13221_v44 = vcombine.low %v972_v18, %v996_v45 }
 0x372   :  { %12305 = vmatprep.subr.msk.bf16.mxu1 %vm2204_vm7, %v13212_v54  ;;  %v1019_v40 = vcombine.high %v1003_v0, %v1003_v0  ;;  %v1020_v43 = vcombine.high %v1010_v17, %v1010_v17  ;;  %v13224_v9 = vrot.slane %v1029_v57, %v12908_v56  ;;  %v1526_v63 = vrot.slane %v1518_v61, %v12908_v56 }
 0x373   :  { %v1021_v2 = vcombine.high %v1017_v55, %v1017_v55  ;;  %v13232_v4 = vcombine.low %v1010_v17, %v1018_v38  ;;  %v1533_v41 = vrot.slane %v1519_v53, %v12908_v56  ;;  %v1567_v57 = vcombine.low %v13084_v8, %v13087_v58  ;;  %v385_v38 = vpop.permute.xlu0 %384 }
 0x374   :  { %v1873_v48 = vcombine.low %v1017_v55, %v1019_v40  ;;  %v13235_v18 = vcombine.low %v1020_v43, %v1003_v0  ;;  %v1568_v51 = vcombine.low %v13094_v21, %v13097_v30  ;;  %v1044_v17 = vcombine.high %v381_v22, %v381_v22 }
 0x375   :  { %v1874_v45 = vcombine.low %v1021_v2, %v1036_v36  ;;  %v1534_v61 = vcombine.low %v1526_v63, %v1533_v41  ;;  %v1575_v2 = vrot.slane %v1567_v57, %v12908_v56  ;;  %v1051_v58 = vrot.slane %v381_v22, %v12908_v56 }
 0x376   :  { %v1895_v47 = vrot.slane %v1873_v48, %v12908_v56  ;;  %v1582_v8 = vrot.slane %v1568_v51, %v12908_v56  ;;  %v1058_v21 = vrot.slane %v1044_v17, %v12908_v56  ;;  %v1702_v30 = vrot.slane %v13133_v59, %v12908_v56 }
 0x377   :  { %v1902_v0 = vrot.slane %v1874_v45, %v12908_v56  ;;  %v1093_v41 = vcombine.high %v13145_v52, %v13145_v52  ;;  %v1100_v48 = vrot.slane %v13145_v52, %v12908_v56  ;;  %v1142_v40 = vcombine.high %v385_v38, %v385_v38 }
 0x378   :  { %v1583_v36 = vcombine.low %v1575_v2, %v1582_v8  ;;  %v1059_v43 = vcombine.high %v1051_v58, %v1051_v58  ;;  %v1060_v63 = vcombine.high %v1058_v21, %v1058_v21  ;;  %v1067_v51 = vrot.slane %v1051_v58, %v12908_v56 }
 0x379   :  { %v13255_v55 = vcombine.low %v1895_v47, %v1902_v0  ;;  %v1074_v22 = vrot.slane %v1058_v21, %v12908_v56  ;;  %v1709_v59 = vrot.slane %v1702_v30, %v12908_v56  ;;  %v1107_v57 = vrot.slane %v1093_v41, %v12908_v56 }
 0x37a   :  { %v13261_v45 = vpack.c.bf16 %v1583_v36, %v1534_v61  ;;  %v1108_v17 = vcombine.high %v1100_v48, %v1100_v48  ;;  %v1081_v47 = vrot.slane %v1059_v43, %v12908_v56  ;;  %v1088_v0 = vrot.slane %v1060_v63, %v12908_v56 }
 0x37b   :  { %v1116_v52 = vrot.slane %v1100_v48, %v12908_v56  ;;  %v1149_v2 = vrot.slane %v385_v38, %v12908_v56  ;;  %v13271_v8 = vpack.c.bf16 %v1709_v59, %v1709_v59  ;;  %v1109_v61 = vcombine.high %v1107_v57, %v1107_v57 }
 0x37c   :  { %2333 = vrot.lane.b32.xlu0 %v13261_v45, %s12726_s17  ;;  %v1123_v58 = vrot.slane %v1107_v57, %v12908_v56  ;;  %v1130_v21 = vrot.slane %v1108_v17, %v12908_v56  ;;  %v1934_v30 = vcombine.low %v1067_v51, %v1081_v47  ;;  %v11492_v41 = vcombine.high %v1067_v51, %v1081_v47 }
 0x37d   :  { %v1936_v36 = vcombine.low %v1074_v22, %v1088_v0  ;;  %v11493_v43 = vcombine.high %v1074_v22, %v1088_v0  ;;  %2401 = vrot.lane.b32.xlu1 %v13271_v8, %s12726_s17  ;;  %v1137_v48 = vrot.slane %v1109_v61, %v12908_v56  ;;  %v1156_v7 = vrot.slane %v1142_v40, %v12908_v56 }
 0x37e   :  { %v1983_v38 = vcombine.low %v1116_v52, %v1130_v21  ;;  %v11494_v63 = vcombine.high %v1116_v52, %v1130_v21  ;;  %v13280_v59 = vrot.slane %v1934_v30, %v12908_v56  ;;  %v13283_v57 = vrot.slane %v11492_v41, %v12908_v56  ;;  %v389_v41 = vpop.permute.xlu0 %388 }
 0x37f   :  { %v13286_v17 = vrot.slane %v1936_v36, %v12908_v56  ;;  %v13289_v51 = vrot.slane %v11493_v43, %v12908_v56  ;;  %v1985_v22 = vcombine.low %v1123_v58, %v1137_v48  ;;  %v11495_v47 = vcombine.high %v1123_v58, %v1137_v48 }
 0x380   :  { %v13292_v0 = vrot.slane %v1983_v38, %v12908_v56  ;;  %v13295_v52 = vrot.slane %v11494_v63, %v12908_v56  ;;  %v1157_v40 = vcombine.high %v1149_v2, %v1149_v2  ;;  %v1158_v61 = vcombine.high %v1156_v7, %v1156_v7 }
 0x381   :  { %v13298_v21 = vrot.slane %v1149_v2, %v12908_v56  ;;  %v1172_v30 = vrot.slane %v1156_v7, %v12908_v56  ;;  %v13302_v36 = vrot.slane %v1985_v22, %v12908_v56  ;;  %v13305_v43 = vrot.slane %v11495_v47, %v12908_v56 }
 0x382   :  { %v1814_v58 = vrot.slane %v13174_v12, %v12908_v56  ;;  %v1191_v48 = vcombine.high %v13168_v31, %v13168_v31  ;;  %v1179_v38 = vrot.slane %v1157_v40, %v12908_v56  ;;  %v1186_v2 = vrot.slane %v1158_v61, %v12908_v56 }
 0x383   :  { %v1187_v7 = vcombine.high %v13298_v21, %v13298_v21  ;;  %v1188_v63 = vcombine.high %v1172_v30, %v1172_v30  ;;  %v1198_v47 = vrot.slane %v13168_v31, %v12908_v56  ;;  %v1246_v12 = vrot.slane %v389_v41, %v12908_v56 }
 0x384   :  { %v1821_v22 = vrot.slane %v1814_v58, %v12908_v56  ;;  %v1205_v49 = vrot.slane %v1191_v48, %v12908_v56  ;;  %v1189_v53 = vcombine.high %v1179_v38, %v1179_v38  ;;  %v1190_v40 = vcombine.high %v1186_v2, %v1186_v2 }
 0x385   :  { %v13320_v28 = vcombine.low %v1179_v38, %v1187_v7  ;;  %v13322_v34 = vcombine.low %v1186_v2, %v1188_v63  ;;  %v1206_v32 = vcombine.high %v1198_v47, %v1198_v47  ;;  %v1214_v23 = vrot.slane %v1198_v47, %v12908_v56 }
 0x386   :  { %v13324_v61 = vpack.c.bf16 %v1821_v22, %v1821_v22  ;;  %v1207_v29 = vcombine.high %v1205_v49, %v1205_v49  ;;  %v13327_v58 = vcombine.low %v1189_v53, %v1172_v30  ;;  %v1221_v48 = vrot.slane %v1205_v49, %v12908_v56 }
 0x387   :  { %v1247_v41 = vcombine.high %v1246_v12, %v1246_v12  ;;  %v1228_v38 = vrot.slane %v1206_v32, %v12908_v56  ;;  %v1236_v7 = vcombine.high %v1214_v23, %v1214_v23  ;;  %v13336_v63 = vcombine.low %v1190_v40, %v1214_v23 }
 0x388   :  { %15867 = vst [vmem:[#allocation11_spill] sm:$0xff] %v13324_v61  ;;  %2467 = vrot.lane.b32.xlu1 %v13324_v61, %s12726_s17  ;;  %v1235_v2 = vrot.slane %v1207_v29, %v12908_v56  ;;  %v1237_v30 = vcombine.high %v1221_v48, %v1221_v48  ;;  %v1254_v22 = vrot.slane %v1246_v12, %v12908_v56 }
 0x389   :  { %v13342_v47 = vrot.slane %v1247_v41, %v12908_v56  ;;  %v1238_v49 = vcombine.high %v1228_v38, %v1228_v38  ;;  %v13346_v15 = vcombine.low %v1228_v38, %v1236_v7  ;;  %v1622_v23 = vrot.slane %v13108_v39, %v12908_v56  ;;  %v2201_v7 = vpop.permute.xlu0 %2200 }
 0x38a   :  { %v1239_v32 = vcombine.high %v1235_v2, %v1235_v2  ;;  %v2097_v29 = vcombine.low %v1235_v2, %v1237_v30  ;;  %v15868_v40 = vrot.slane %v13106_v27, %v12908_v56  ;;  %v15869_v12 = vrot.slane %v13101_v33, %v12908_v56 }
 0x38b   :  { %v15870_v41 = vrot.slane %v13120_v3, %v12908_v56  ;;  %v15871_v31 = vrot.slane %v13118_v62, %v12908_v56  ;;  %v13362_v61 = vcombine.low %v1238_v49, %v1221_v48  ;;  %v2105_v39 = vrot.slane %v13346_v15, %v12908_v56 }
 0x38c   :  { %v1630_v53 = vcombine.low %v15869_v12, %v15868_v40  ;;  %v2098_v2 = vcombine.low %v1239_v32, %v1254_v22  ;;  %v1694_v27 = vrot.slane %v13147_v60, %v12908_v56  ;;  %v2119_v33 = vrot.slane %v2097_v29, %v12908_v56 }
 0x38d   :  { %v1679_v38 = vcombine.low %v15871_v31, %v15870_v41  ;;  %v15872_v30 = vrot.slane %v13115_v46, %v12908_v56  ;;  %v2112_v31 = vrot.slane %v13362_v61, %v12908_v56  ;;  %v1926_v22 = vrot.slane %v13224_v9, %v12908_v56 }
 0x38e   :  { %v1638_v40 = vrot.slane %v1630_v53, %v12908_v56  ;;  %v2126_v48 = vrot.slane %v2098_v2, %v12908_v56  ;;  %v2215_v60 = vsel %vm2204_vm7, %v13192_v16, 0  ;;  %v1742_v46 = vcombine.low %v13152_v14, %v13155_v25 }
 0x38f   :  { %v1631_v3 = vcombine.low %v1622_v23, %v15872_v30  ;;  %v1687_v62 = vrot.slane %v1679_v38, %v12908_v56  ;;  %11900 = vmatpush3.bf16.xpose.msra.mxu0 %v2215_v60  ;;  %v1743_v53 = vcombine.low %v13161_v26, %v13164_v35  ;;  %v1933_v61 = vrot.slane %v1926_v22, %v12908_v56  ;;  %v2268_v26 = vpop.permute.xlu0 %2267 }
 0x390   :  { %v13386_v29 = vcombine.low %v2119_v33, %v2126_v48  ;;  %v1791_v9 = vcombine.low %v13177_v37, %v13180_v50  ;;  %v1792_v16 = vcombine.low %v13184_v5, %v13187_v42  ;;  %12304 = vmatprep.subr.msk.bf16.mxu0 %vm2204_vm7, %v2201_v7  ;;  %v1750_v12 = vrot.slane %v1742_v46, %v12908_v56 }
 0x391   :  { %v1645_v49 = vrot.slane %v1631_v3, %v12908_v56  ;;  %v1695_v32 = vcombine.low %v1687_v62, %v1694_v27  ;;  %v1757_v14 = vrot.slane %v1743_v53, %v12908_v56  ;;  %v2038_v25 = vrot.slane %v13298_v21, %v12908_v56 }
 0x392   :  { %v13398_v35 = vpack.c.bf16 %v1933_v61, %v1933_v61  ;;  %v1799_v41 = vrot.slane %v1791_v9, %v12908_v56  ;;  %v1806_v37 = vrot.slane %v1792_v16, %v12908_v56  ;;  %v2281_v50 = vsel %vm2204_vm7, %v13212_v54, 0 }
 0x393   :  { %v1646_v23 = vcombine.low %v1638_v40, %v1645_v49  ;;  %v1758_v42 = vcombine.low %v1750_v12, %v1757_v14  ;;  %v2045_v38 = vrot.slane %v2038_v25, %v12908_v56  ;;  %11908 = vmatpush3.bf16.xpose.msra.mxu1 %v2281_v50  ;;  %v1846_v2 = vrot.slane %v13204_v24, %v12908_v56 }
 0x394   :  { %2533 = vrot.lane.b32.xlu1 %v13398_v35, %s12726_s17  ;;  %v1807_v21 = vcombine.low %v1799_v41, %v1806_v37  ;;  %12306 = vmatprep.subr.msk.bf16.mxu1 %vm2204_vm7, %v2268_v26  ;;  %v15873_v27 = vrot.slane %v13206_v10, %v12908_v56  ;;  %v15874_v54 = vrot.slane %v13199_v6, %v12908_v56  ;;  %v2212_v40 = vsel %vm2204_vm7, %v2201_v7, 0 }
 0x395   :  { %v13404_v5 = vpack.c.bf16 %v1695_v32, %v1646_v23  ;;  %v15875_v30 = vrot.slane %v13235_v18, %v12908_v56  ;;  %v15876_v3 = vrot.slane %v13232_v4, %v12908_v56  ;;  %v13427_v62 = vpack.c.bf16 %v2045_v38, %v2045_v38 }
 0x396   :  { %v1854_v33 = vcombine.low %v15874_v54, %v15873_v27  ;;  %v15877_v10 = vrot.slane %v13221_v44, %v12908_v56  ;;  %v1918_v6 = vrot.slane %v13255_v55, %v12908_v56  ;;  %v2150_v18 = vrot.slane %v13342_v47, %v12908_v56 }
 0x397   :  { %v1903_v24 = vcombine.low %v15876_v3, %v15875_v30  ;;  %2399 = vrot.lane.b32.xlu0 %v13404_v5, %s12726_s17  ;;  %v13436_v22 = vpack.c.bf16 %v1807_v21, %v1758_v42  ;;  %v1966_v60 = vcombine.low %v13280_v59, %v13283_v57  ;;  %11902 = vmatpush3.bf16.xpose.msra.mxu0 %v2212_v40  ;;  %v2278_v57 = vsel %vm2204_vm7, %v2268_v26, 0 }
 0x398   :  { %v1855_v48 = vcombine.low %v1846_v2, %v15877_v10  ;;  %v1862_v4 = vrot.slane %v1854_v33, %v12908_v56  ;;  %v2157_v44 = vrot.slane %v2150_v18, %v12908_v56  ;;  %v1967_v55 = vcombine.low %v13286_v17, %v13289_v51  ;;  %2599 = vrot.lane.b32.xlu1 %v13427_v62, %s12726_s17 }
 0x399   :  { %v1911_v7 = vrot.slane %v1903_v24, %v12908_v56  ;;  %v2015_v47 = vcombine.low %v13292_v0, %v13295_v52  ;;  %v1974_v46 = vrot.slane %v1966_v60, %v12908_v56  ;;  %v2016_v59 = vcombine.low %v13302_v36, %v13305_v43 }
 0x39a   :  { %v1869_v49 = vrot.slane %v1855_v48, %v12908_v56  ;;  %v13456_v61 = vpack.c.bf16 %v2157_v44, %v2157_v44  ;;  %v1981_v17 = vrot.slane %v1967_v55, %v12908_v56  ;;  %v2070_v52 = vrot.slane %v13322_v34, %v12908_v56 }
 0x39b   :  { %v1919_v32 = vcombine.low %v1911_v7, %v1918_v6  ;;  %2465 = vrot.lane.b32.xlu0 %v13436_v22, %s12726_s17  ;;  %v2023_v51 = vrot.slane %v2015_v47, %v12908_v56  ;;  %v2030_v0 = vrot.slane %v2016_v59, %v12908_v56  ;;  %v15878_v36 = vrot.slane %v13327_v58, %v12908_v56 }
 0x39c   :  { %v1870_v53 = vcombine.low %v1862_v4, %v1869_v49  ;;  %v15879_v43 = vrot.slane %v13320_v28, %v12908_v56  ;;  %v2127_v16 = vcombine.low %v2105_v39, %v2112_v31  ;;  %11910 = vmatpush3.bf16.xpose.msra.mxu1 %v2278_v57  ;;  %v2142_v12 = vrot.slane %v13386_v29, %v12908_v56 }
 0x39d   :  { %2665 = vrot.lane.b32.xlu1 %v13456_v61, %s12726_s17  ;;  %v1982_v34 = vcombine.low %v1974_v46, %v1981_v17  ;;  %v2031_v14 = vcombine.low %v2023_v51, %v2030_v0  ;;  %v15880_v58 = vrot.slane %v13336_v63, %v12908_v56  ;;  %v12728_v10 = vmov 0  }
 0x39e   :  { %v2078_v9 = vcombine.low %v15879_v43, %v15878_v36  ;;  %v13472_v23 = vpack.c.bf16 %v1919_v32, %v1870_v53  ;;  %v2135_v25 = vrot.slane %v2127_v16, %v12908_v56  ;;  %11904 = vmatmul.mubr.msk.bf16.vlgmr.msra.gmra.mxu0 %vm2204_vm7, %v13034_v20  ;;  %v13559_v48 = vsel %vm159_vm2, 65535, %v12728_v10 }
 0x39f   :  { %v2079_v28 = vcombine.low %v2070_v52, %v15880_v58  ;;  %v13484_v15 = vpack.c.bf16 %v2031_v14, %v1982_v34  ;;  %11919 = vmatprep.mubr.msk.bf16.mxu0 %vm2204_vm7, %v13261_v45 }
 0x3a0   :  { %2531 = vrot.lane.b32.xlu0 %v13472_v23, %s12726_s17  ;;  %v2086_v39 = vrot.slane %v2078_v9, %v12908_v56  ;;  %v2143_v29 = vcombine.low %v2135_v25, %v2142_v12 }
 0x3a1   :  { %v2093_v31 = vrot.slane %v2079_v28, %v12908_v56  ;;  %3075 = vrot.lane.b32.xlu1 %v13043_v11, %s12727_s18 }
 0x3a3   :  { %v2094_v63 = vcombine.low %v2086_v39, %v2093_v31  ;;  %11912 = vmatmul.mubr.msk.bf16.vlgmr.msra.gmra.mxu1 %vm2204_vm7, %v13043_v11  ;;  %v15881_v11 = vld [vmem:[#allocation11_spill] sm:$0xff] }
 0x3a4   :  { %2597 = vrot.lane.b32.xlu0 %v13484_v15, %s12726_s17  ;;  %11927 = vmatprep.mubr.msk.bf16.mxu1 %vm2204_vm7, %v13404_v5  ;;  %15882 = vst [vmem:[#allocation11_spill] sm:$0xff] %v13559_v48 }
 0x3a5   :  { %v13496_v26 = vpack.c.bf16 %v2143_v29, %v2094_v63  ;;  %3135 = vrot.lane.b32.xlu1 %v13261_v45, %s12727_s18 }
 0x3a8   :  { %2663 = vrot.lane.b32.xlu0 %v13496_v26, %s12726_s17 }
 0x3a9   :  { %3323 = vrot.lane.b32.xlu1 %v13398_v35, %s12727_s18 }
 0x3ac   :  { %3011 = vrot.lane.b32.xlu0 %v13034_v20, %s12727_s18 }
 0x3ad   :  { %3197 = vrot.lane.b32.xlu1 %v13404_v5, %s12727_s18 }
 0x3b0   :  { %3009 = vrot.lane.b32.xlu0 %v13016_v1, %s12727_s18 }
 0x3b4   :  { %3137 = vrot.lane.b32.xlu0 %v13158_v13, %s12727_s18 }
 0x3b8   :  { %3073 = vrot.lane.b32.xlu0 %v13032_v19, %s12727_s18 }
 0x3bc   :  { %3199 = vrot.lane.b32.xlu0 %v13271_v8, %s12727_s18 }
 0x3c0   :  { %3261 = vrot.lane.b32.xlu0 %v15881_v11, %s12727_s18 }
 0x3c4   :  { %3259 = vrot.lane.b32.xlu0 %v13436_v22, %s12727_s18 }
 0x3c8   :  { %3385 = vrot.lane.b32.xlu0 %v13427_v62, %s12727_s18 }
 0x3db   :  { %v2336_v20 = vpop.permute.xlu1 %2335 }
 0x3dc   :  { %12307 = vmatprep.subr.msk.bf16.mxu0 %vm2204_vm7, %v2336_v20  ;;  %v2347_v1 = vsel %vm2204_vm7, %v2336_v20, 0 }
 0x3dd   :  { %11916 = vmatpush3.bf16.xpose.msra.mxu0 %v2347_v1 }
 0x3ee   :  { %v2334_v45 = vpop.permute.xlu0 %2333 }
 0x3ef   :  { %12308 = vmatprep.subr.msk.bf16.mxu0 %vm2204_vm7, %v2334_v45  ;;  %v2344_v19 = vsel %vm2204_vm7, %v2334_v45, 0  ;;  %v2402_v41 = vpop.permute.xlu1 %2401 }
 0x3f0   :  { %11918 = vmatpush3.bf16.xpose.msra.mxu0 %v2344_v19  ;;  %12309 = vmatprep.subr.msk.bf16.mxu1 %vm2204_vm7, %v2402_v41  ;;  %v2413_v37 = vsel %vm2204_vm7, %v2402_v41, 0 }
 0x3f1   :  { %11924 = vmatpush3.bf16.xpose.msra.mxu1 %v2413_v37 }
 0x3f7   :  { %11920 = vmatmul.mubr.msk.bf16.vlgmr.msra.gmra.mxu0 %vm2204_vm7, %v13158_v13 }
 0x3f8   :  { %11935 = vmatprep.mubr.msk.bf16.mxu0 %vm2204_vm7, %v13436_v22 }
 0x3fa   :  { %v2468_v50 = vpop.permute.xlu1 %2467 }
 0x3fb   :  { %12311 = vmatprep.subr.msk.bf16.mxu0 %vm2204_vm7, %v2468_v50  ;;  %v2479_v5 = vsel %vm2204_vm7, %v2468_v50, 0 }
 0x3fc   :  { %11932 = vmatpush3.bf16.xpose.msra.mxu0 %v2479_v5 }
 0x406   :  { %v2534_v38 = vpop.permute.xlu1 %2533 }
 0x407   :  { %v2545_v33 = vsel %vm2204_vm7, %v2534_v38, 0 }
 0x409   :  { %v2400_v42 = vpop.permute.xlu0 %2399 }
 0x40a   :  { %12310 = vmatprep.subr.msk.bf16.mxu1 %vm2204_vm7, %v2400_v42  ;;  %v2410_v2 = vsel %vm2204_vm7, %v2400_v42, 0  ;;  %v2600_v27 = vpop.permute.xlu1 %2599 }
 0x40b   :  { %11926 = vmatpush3.bf16.xpose.msra.mxu1 %v2410_v2  ;;  %v2611_v3 = vsel %vm2204_vm7, %v2600_v27, 0 }
 0x40c   :  { %12313 = vmatprep.subr.msk.bf16.mxu1 %vm2204_vm7, %v2534_v38 }
 0x40d   :  { %v2466_v21 = vpop.permute.xlu0 %2465 }
 0x40e   :  { %12312 = vmatprep.subr.msk.bf16.mxu0 %vm2204_vm7, %v2466_v21  ;;  %v2476_v13 = vsel %vm2204_vm7, %v2466_v21, 0 }
 0x40f   :  { %11934 = vmatpush3.bf16.xpose.msra.mxu0 %v2476_v13  ;;  %v2666_v40 = vpop.permute.xlu1 %2665 }
 0x410   :  { %12315 = vmatprep.subr.msk.bf16.mxu0 %vm2204_vm7, %v2600_v27  ;;  %v2677_v7 = vsel %vm2204_vm7, %v2666_v40, 0 }
 0x412   :  { %v2532_v54 = vpop.permute.xlu0 %2531  ;;  %11928 = vmatmul.mubr.msk.bf16.vlgmr.msra.gmra.mxu1 %vm2204_vm7, %v13271_v8 }
 0x413   :  { %11940 = vmatpush3.bf16.xpose.msra.mxu1 %v2545_v33  ;;  %11943 = vmatprep.mubr.msk.bf16.mxu1 %vm2204_vm7, %v13472_v23  ;;  %v2542_v24 = vsel %vm2204_vm7, %v2532_v54, 0  ;;  %v3076_v60 = vpop.permute.xlu1 %3075 }
 0x414   :  { %12314 = vmatprep.subr.msk.bf16.mxu1 %vm2204_vm7, %v2532_v54  ;;  %v3085_v44 = vand.u32 %v3076_v60, %v13559_v48 }
 0x416   :  { %v2598_v30 = vpop.permute.xlu0 %2597  ;;  %11936 = vmatmul.mubr.msk.bf16.vlgmr.msra.gmra.mxu0 %vm2204_vm7, %v15881_v11 }
 0x417   :  { %11948 = vmatpush3.bf16.xpose.msra.mxu0 %v2611_v3  ;;  %11951 = vmatprep.mubr.msk.bf16.mxu0 %vm2204_vm7, %v13484_v15  ;;  %v2608_v22 = vsel %vm2204_vm7, %v2598_v30, 0 }
 0x418   :  { %12316 = vmatprep.subr.msk.bf16.mxu0 %vm2204_vm7, %v2598_v30 }
 0x41a   :  { %v2664_v8 = vpop.permute.xlu0 %2663 }
 0x41b   :  { %11942 = vmatpush3.bf16.xpose.msra.mxu1 %v2542_v24 }
 0x41c   :  { %12317 = vmatprep.subr.msk.bf16.mxu1 %vm2204_vm7, %v2666_v40 }
 0x41e   :  { %v3012_v6 = vpop.permute.xlu0 %3011 }
 0x41f   :  { %v3023_v18 = vand.u32 %v13559_v48, %v3012_v6  ;;  %11950 = vmatpush3.bf16.xpose.msra.mxu0 %v2608_v22 }
 0x421   :  { %11963 = vmatprep.subr.bf16.mxu0 %v3023_v18 }
 0x422   :  { %v3010_v4 = vpop.permute.xlu0 %3009  ;;  %11944 = vmatmul.mubr.msk.bf16.vlgmr.msra.gmra.mxu1 %vm2204_vm7, %v13398_v35  ;;  %v2674_v35 = vsel %vm2204_vm7, %v2664_v8, 0 }
 0x423   :  { %11956 = vmatpush3.bf16.xpose.msra.mxu1 %v2677_v7  ;;  %11959 = vmatprep.mubr.msk.bf16.mxu1 %vm2204_vm7, %v13496_v26 }
 0x424   :  { %12318 = vmatprep.subr.msk.bf16.mxu1 %vm2204_vm7, %v2664_v8 }
 0x426   :  { %11952 = vmatmul.mubr.msk.bf16.vlgmr.msra.gmra.mxu0 %vm2204_vm7, %v13427_v62  ;;  %v3138_v49 = vpop.permute.xlu0 %3137 }
 0x427   :  { %11964 = vmatpush3.bf16.msra.mxu0 %v3023_v18  ;;  %v13573_v55 = vand.u32 %v3138_v49, %v13559_v48 }
 0x428   :  { %11965 = vmatprep.subr.bf16.mxu0 %v3010_v4 }
 0x42a   :  { %v3074_v47 = vpop.permute.xlu0 %3073 }
 0x42b   :  { %11958 = vmatpush3.bf16.xpose.msra.mxu1 %v2674_v35  ;;  %11966 = vmatpush3.bf16.msra.mxu0 %v3010_v4 }
 0x42c   :  { %11971 = vmatprep.subr.bf16.mxu1 %v3085_v44  ;;  %11979 = vmatprep.subr.bf16.mxu0 %v13573_v55 }
 0x42e   :  { %v3200_v62 = vpop.permute.xlu0 %3199 }
 0x42f   :  { %v13580_v32 = vand.u32 %v3200_v62, %v13559_v48 }
 0x432   :  { %11960 = vmatmul.mubr.msk.bf16.vlgmr.msra.gmra.mxu1 %vm2204_vm7, %v13456_v61  ;;  %v13637_v38 = vpop.permute.xlu0 %3261 }
 0x433   :  { %11972 = vmatpush3.bf16.msra.mxu1 %v3085_v44 }
 0x434   :  { %11973 = vmatprep.subr.bf16.mxu1 %v3074_v47 }
 0x436   :  { %v13645_v27 = vpop.permute.xlu0 %3259 }
 0x437   :  { %11974 = vmatpush3.bf16.msra.mxu1 %v3074_v47 }
 0x438   :  { %11987 = vmatprep.subr.bf16.mxu1 %v13580_v32 }
 0x43a   :  { %v13655_v24 = vpop.permute.xlu0 %3385 }
 0x45e   :  { %v13583_v46 = vpop.f32.mrf.mxu0 }
 0x45f   :  { %v2735_v59 = vsel %vm2734_vm8, %v13583_v46, -inf }
 0x460   :  { %2736 = vmax.xlane.f32.xlu0 %v2735_v59  ;;  %v13587_v57 = vpop.f32.mrf.mxu0 }
 0x461   :  { %v2728_v53 = vsel %vm2727_vm9, %v13587_v57, -inf }
 0x462   :  { %2729 = vmax.xlane.f32.xlu1 %v2728_v53  ;;  %v11906_v17 = vpop.f32.mrf.mxu0 }
 0x463   :  { %v13591_v51 = vpop.f32.mrf.mxu1 }
 0x464   :  { %v2744_v0 = vsel %vm2734_vm8, %v13591_v51, -inf  ;;  %v13595_v52 = vpop.f32.mrf.mxu0 }
 0x465   :  { %2745 = vmax.xlane.f32.xlu0 %v2744_v0  ;;  %v13597_v36 = vpop.f32.mrf.mxu1  ;;  %v2731_v9 = vsel %vm2727_vm9, %v13595_v52, -inf }
 0x466   :  { %v2738_v34 = vsel %vm2727_vm9, %v13597_v36, -inf }
 0x467   :  { %v11914_v43 = vpop.f32.mrf.mxu1 }
 0x469   :  { %2732 = vmax.xlane.f32.xlu0 %v2731_v9  ;;  %v13601_v16 = vpop.f32.mrf.mxu1 }
 0x46a   :  { %v2741_v12 = vsel %vm2727_vm9, %v13601_v16, -inf }
 0x46b   :  { %2742 = vmax.xlane.f32.xlu1 %v2741_v12 }
 0x46d   :  { %2739 = vmax.xlane.f32.xlu0 %v2738_v34 }
 0x4b7   :  { %v13607_v14 = vpop.f32.mrf.mxu0 }
 0x4b8   :  { %v2753_v58 = vsel %vm2734_vm8, %v13607_v14, -inf }
 0x4b9   :  { %2754 = vmax.xlane.f32.xlu1 %v2753_v58  ;;  %v13611_v28 = vpop.f32.mrf.mxu0 }
 0x4ba   :  { %v2747_v25 = vsel %vm2727_vm9, %v13611_v28, -inf }
 0x4bb   :  { %2748 = vmax.xlane.f32.xlu0 %v2747_v25  ;;  %v11922_v39 = vpop.f32.mrf.mxu0 }
 0x4bd   :  { %v13615_v31 = vpop.f32.mrf.mxu0 }
 0x4be   :  { %v2750_v29 = vsel %vm2727_vm9, %v13615_v31, -inf }
 0x4bf   :  { %2751 = vmax.xlane.f32.xlu1 %v2750_v29 }
 0x4d2   :  { %v13619_v63 = vpop.f32.mrf.mxu1 }
 0x4d3   :  { %v2762_v11 = vsel %vm2734_vm8, %v13619_v63, -inf }
 0x4d4   :  { %2763 = vmax.xlane.f32.xlu0 %v2762_v11  ;;  %v13623_v20 = vpop.f32.mrf.mxu1 }
 0x4d5   :  { %v2756_v19 = vsel %vm2727_vm9, %v13623_v20, -inf }
 0x4d6   :  { %v11930_v1 = vpop.f32.mrf.mxu1  ;;  %v13625_v45 = vpop.f32.mrf.mxu0 }
 0x4d7   :  { %v2771_v21 = vsel %vm2734_vm8, %v13625_v45, -inf }
 0x4d8   :  { %2757 = vmax.xlane.f32.xlu0 %v2756_v19  ;;  %v13629_v41 = vpop.f32.mrf.mxu1  ;;  %v13631_v37 = vpop.f32.mrf.mxu0 }
 0x4d9   :  { %v2759_v50 = vsel %vm2727_vm9, %v13629_v41, -inf  ;;  %v2765_v5 = vsel %vm2727_vm9, %v13631_v37, -inf }
 0x4da   :  { %2760 = vmax.xlane.f32.xlu1 %v2759_v50  ;;  %v11938_v42 = vpop.f32.mrf.mxu0 }
 0x4dc   :  { %2766 = vmax.xlane.f32.xlu0 %v2765_v5  ;;  %v13639_v2 = vpop.f32.mrf.mxu0 }
 0x4dd   :  { %v2768_v13 = vsel %vm2727_vm9, %v13639_v2, -inf }
 0x4de   :  { %2772 = vmax.xlane.f32.xlu1 %v2771_v21 }
 0x4e2   :  { %2769 = vmax.xlane.f32.xlu1 %v2768_v13  ;;  %v13647_v54 = vpop.f32.mrf.mxu1  ;;  %v13705_v13 = vpop.permute.xlu1 %3135 }
 0x4e3   :  { %v2780_v33 = vsel %vm2734_vm8, %v13647_v54, -inf }
 0x4e4   :  { %2781 = vmax.xlane.f32.xlu0 %v2780_v33  ;;  %v13651_v30 = vpop.f32.mrf.mxu1 }
 0x4e5   :  { %v2774_v40 = vsel %vm2727_vm9, %v13651_v30, -inf }
 0x4e6   :  { %v11946_v3 = vpop.f32.mrf.mxu1  ;;  %v13653_v8 = vpop.f32.mrf.mxu0 }
 0x4e7   :  { %v2789_v44 = vsel %vm2734_vm8, %v13653_v8, -inf  ;;  %v13707_v33 = vpop.permute.xlu1 %3323 }
 0x4e8   :  { %2775 = vmax.xlane.f32.xlu0 %v2774_v40  ;;  %v13659_v10 = vpop.f32.mrf.mxu1  ;;  %v13661_v6 = vpop.f32.mrf.mxu0 }
 0x4e9   :  { %v2777_v18 = vsel %vm2727_vm9, %v13659_v10, -inf  ;;  %v2783_v22 = vsel %vm2727_vm9, %v13661_v6, -inf  ;;  %v2737_v7 = vpop.xlane.xlu0 %2736 }
 0x4ea   :  { %2778 = vmax.xlane.f32.xlu1 %v2777_v18  ;;  %v11954_v4 = vpop.f32.mrf.mxu0  ;;  %v2803_v49 = vsub.f32 %v13583_v46, %v2737_v7 }
 0x4eb   :  { %v13711_v3 = vpop.permute.xlu1 %3197 }
 0x4ec   :  { %2784 = vmax.xlane.f32.xlu0 %v2783_v22  ;;  %v13667_v60 = vpop.f32.mrf.mxu0  ;;  %v2829_v35 = vmul.f32 1.442695, %v2803_v49 }
 0x4ed   :  { %v2786_v47 = vsel %vm2727_vm9, %v13667_v60, -inf }
 0x4ee   :  { %2790 = vmax.xlane.f32.xlu1 %v2789_v44  ;;  %v2746_v62 = vpop.xlane.xlu0 %2745  ;;  %12454 = vpow2.f32 %v2829_v35 }
 0x4ef   :  { %v2806_v59 = vsub.f32 %v13591_v51, %v2746_v62  ;;  %v2730_v40 = vpop.xlane.xlu1 %2729 }
 0x4f0   :  { %v2801_v18 = vsub.f32 %v13587_v57, %v2730_v40 }
 0x4f1   :  { %v2835_v17 = vmul.f32 1.442695, %v2806_v59 }
 0x4f2   :  { %2787 = vmax.xlane.f32.xlu1 %v2786_v47  ;;  %v13675_v53 = vpop.f32.mrf.mxu1  ;;  %v2733_v46 = vpop.xlane.xlu0 %2732  ;;  %v2825_v4 = vmul.f32 1.442695, %v2801_v18 }
 0x4f3   :  { %v2798_v0 = vsel %vm2734_vm8, %v13675_v53, -inf  ;;  %12456 = vpow2.f32 %v2835_v17  ;;  %v2802_v9 = vsub.f32 %v13595_v52, %v2733_v46 }
 0x4f4   :  { %2799 = vmax.xlane.f32.xlu0 %v2798_v0  ;;  %v13679_v43 = vpop.f32.mrf.mxu1  ;;  %v2743_v22 = vpop.xlane.xlu1 %2742 }
 0x4f5   :  { %v2827_v34 = vmul.f32 1.442695, %v2802_v9  ;;  %v2792_v58 = vsel %vm2727_vm9, %v13679_v43, -inf  ;;  %v2805_v7 = vsub.f32 %v13601_v16, %v2743_v22 }
 0x4f6   :  { %v11962_v12 = vpop.f32.mrf.mxu1  ;;  %v2740_v51 = vpop.xlane.xlu0 %2739 }
 0x4f7   :  { %12458 = vpow2.f32 %v2827_v34  ;;  %v2804_v25 = vsub.f32 %v13597_v36, %v2740_v51  ;;  %v2833_v49 = vmul.f32 1.442695, %v2805_v7 }
 0x4f8   :  { %2793 = vmax.xlane.f32.xlu0 %v2792_v58  ;;  %v13689_v1 = vpop.f32.mrf.mxu1 }
 0x4f9   :  { %v2831_v39 = vmul.f32 1.442695, %v2804_v25  ;;  %v2795_v19 = vsel %vm2727_vm9, %v13689_v1, -inf }
 0x4fb   :  { %12460 = vpow2.f32 %v2831_v39  ;;  %v13685_v29 = vpop.eup %12454 }
 0x4fc   :  { %v2879_v11 = vsel %vm2734_vm8, %v13685_v29, 0.0  ;;  %12462 = vpow2.f32 %v2825_v4 }
 0x4fd   :  { %2880 = vadd.xlane.f32.xlu1 %v2879_v11  ;;  %12464 = vpow2.f32 %v2833_v49 }
 0x500   :  { %v13691_v52 = vpop.eup %12456 }
 0x501   :  { %v2888_v50 = vsel %vm2734_vm8, %v13691_v52, 0.0  ;;  %2796 = vmax.xlane.f32.xlu1 %v2795_v19 }
 0x502   :  { %2889 = vadd.xlane.f32.xlu0 %v2888_v50 }
 0x504   :  { %v13697_v36 = vpop.eup %12458 }
 0x505   :  { %v2876_v5 = vsel %vm2727_vm9, %v13697_v36, 0.0 }
 0x506   :  { %2877 = vadd.xlane.f32.xlu0 %v2876_v5 }
 0x508   :  { %v13701_v42 = vpop.eup %12460 }
 0x509   :  { %v2882_v21 = vsel %vm2727_vm9, %v13701_v42, 0.0  ;;  %v13715_v44 = vpop.eup %12462 }
 0x50a   :  { %2883 = vadd.xlane.f32.xlu0 %v2882_v21  ;;  %v2873_v35 = vsel %vm2727_vm9, %v13715_v44, 0.0  ;;  %v13719_v47 = vpop.eup %12464 }
 0x512   :  { %3321 = vrot.lane.b32.xlu1 %v13472_v23, %s12727_s18  ;;  %v2885_v23 = vsel %vm2727_vm9, %v13719_v47, 0.0 }
 0x536   :  { %2874 = vadd.xlane.f32.xlu1 %v2873_v35 }
 0x53a   :  { %2886 = vadd.xlane.f32.xlu1 %v2885_v23 }
 0x542   :  { %v2755_v57 = vpop.xlane.xlu1 %2754 }
 0x543   :  { %v2809_v62 = vsub.f32 %v13607_v14, %v2755_v57 }
 0x544   :  { %v2749_v59 = vpop.xlane.xlu0 %2748 }
 0x545   :  { %v2841_v16 = vmul.f32 1.442695, %v2809_v62  ;;  %v2807_v17 = vsub.f32 %v13611_v28, %v2749_v59 }
 0x547   :  { %12466 = vpow2.f32 %v2841_v16  ;;  %v2837_v0 = vmul.f32 1.442695, %v2807_v17 }
 0x548   :  { %v2752_v46 = vpop.xlane.xlu1 %2751 }
 0x549   :  { %12468 = vpow2.f32 %v2837_v0  ;;  %v2808_v9 = vsub.f32 %v13615_v31, %v2752_v46 }
 0x54b   :  { %v2839_v12 = vmul.f32 1.442695, %v2808_v9 }
 0x54d   :  { %12470 = vpow2.f32 %v2839_v12 }
 0x554   :  { %v13726_v34 = vpop.eup %12466 }
 0x555   :  { %v2897_v58 = vsel %vm2734_vm8, %v13726_v34, 0.0 }
 0x556   :  { %v13730_v51 = vpop.eup %12468  ;;  %2898 = vadd.xlane.f32.xlu1 %v2897_v58 }
 0x557   :  { %v2891_v14 = vsel %vm2727_vm9, %v13730_v51, 0.0 }
 0x558   :  { %2892 = vadd.xlane.f32.xlu0 %v2891_v14 }
 0x55a   :  { %v13734_v28 = vpop.eup %12470 }
 0x55b   :  { %v2894_v31 = vsel %vm2727_vm9, %v13734_v28, 0.0 }
 0x55c   :  { %2895 = vadd.xlane.f32.xlu1 %v2894_v31 }
 0x55d   :  { %v2764_v25 = vpop.xlane.xlu0 %2763 }
 0x55e   :  { %v2812_v39 = vsub.f32 %v13619_v63, %v2764_v25 }
 0x560   :  { %v2847_v11 = vmul.f32 1.442695, %v2812_v39 }
 0x561   :  { %v2758_v19 = vpop.xlane.xlu0 %2757 }
 0x562   :  { %12472 = vpow2.f32 %v2847_v11  ;;  %v2810_v50 = vsub.f32 %v13623_v20, %v2758_v19 }
 0x563   :  { %v2761_v5 = vpop.xlane.xlu1 %2760 }
 0x564   :  { %v2843_v21 = vmul.f32 1.442695, %v2810_v50  ;;  %v2811_v40 = vsub.f32 %v13629_v41, %v2761_v5 }
 0x565   :  { %v2767_v18 = vpop.xlane.xlu0 %2766 }
 0x566   :  { %12474 = vpow2.f32 %v2843_v21  ;;  %v2845_v22 = vmul.f32 1.442695, %v2811_v40  ;;  %v2813_v4 = vsub.f32 %v13631_v37, %v2767_v18 }
 0x567   :  { %v2773_v7 = vpop.xlane.xlu1 %2772 }
 0x568   :  { %12476 = vpow2.f32 %v2845_v22  ;;  %v2815_v49 = vsub.f32 %v13625_v45, %v2773_v7  ;;  %v2849_v63 = vmul.f32 1.442695, %v2813_v4 }
 0x56a   :  { %v2853_v35 = vmul.f32 1.442695, %v2815_v49  ;;  %12478 = vpow2.f32 %v2849_v63 }
 0x56b   :  { %v2770_v23 = vpop.xlane.xlu1 %2769 }
 0x56c   :  { %12480 = vpow2.f32 %v2853_v35  ;;  %v2814_v20 = vsub.f32 %v13639_v2, %v2770_v23 }
 0x56d   :  { %v2782_v57 = vpop.xlane.xlu0 %2781 }
 0x56e   :  { %v2818_v62 = vsub.f32 %v13647_v54, %v2782_v57  ;;  %v2851_v59 = vmul.f32 1.442695, %v2814_v20 }
 0x56f   :  { %v13745_v41 = vpop.eup %12472 }
 0x570   :  { %v2859_v16 = vmul.f32 1.442695, %v2818_v62  ;;  %v2906_v37 = vsel %vm2734_vm8, %v13745_v41, 0.0 }
 0x571   :  { %2907 = vadd.xlane.f32.xlu0 %v2906_v37  ;;  %v2776_v17 = vpop.xlane.xlu0 %2775 }
 0x572   :  { %12482 = vpow2.f32 %v2859_v16  ;;  %v2816_v45 = vsub.f32 %v13651_v30, %v2776_v17 }
 0x573   :  { %v13750_v0 = vpop.eup %12474  ;;  %v2779_v46 = vpop.xlane.xlu1 %2778  ;;  %12484 = vpow2.f32 %v2851_v59 }
 0x574   :  { %v2855_v2 = vmul.f32 1.442695, %v2816_v45  ;;  %v2817_v9 = vsub.f32 %v13659_v10, %v2779_v46  ;;  %v2900_v54 = vsel %vm2727_vm9, %v13750_v0, 0.0 }
 0x575   :  { %v13755_v12 = vpop.eup %12476  ;;  %2901 = vadd.xlane.f32.xlu0 %v2900_v54  ;;  %v2785_v11 = vpop.xlane.xlu0 %2784 }
 0x576   :  { %v2903_v58 = vsel %vm2727_vm9, %v13755_v12, 0.0  ;;  %12486 = vpow2.f32 %v2855_v2  ;;  %v2857_v30 = vmul.f32 1.442695, %v2817_v9  ;;  %v2819_v5 = vsub.f32 %v13661_v6, %v2785_v11 }
 0x577   :  { %v13759_v14 = vpop.eup %12478  ;;  %v2791_v25 = vpop.xlane.xlu1 %2790  ;;  %2904 = vadd.xlane.f32.xlu1 %v2903_v58 }
 0x578   :  { %v2821_v31 = vsub.f32 %v13653_v8, %v2791_v25  ;;  %v2909_v10 = vsel %vm2727_vm9, %v13759_v14, 0.0  ;;  %12488 = vpow2.f32 %v2857_v30  ;;  %v2861_v8 = vmul.f32 1.442695, %v2819_v5 }
 0x579   :  { %v13764_v39 = vpop.eup %12480  ;;  %2910 = vadd.xlane.f32.xlu0 %v2909_v10 }
 0x57a   :  { %v2915_v19 = vsel %vm2734_vm8, %v13764_v39, 0.0  ;;  %v2865_v50 = vmul.f32 1.442695, %v2821_v31 }
 0x57b   :  { %2916 = vadd.xlane.f32.xlu1 %v2915_v19  ;;  %v2788_v21 = vpop.xlane.xlu1 %2787 }
 0x57c   :  { %12490 = vpow2.f32 %v2865_v50  ;;  %v2820_v18 = vsub.f32 %v13667_v60, %v2788_v21 }
 0x57d   :  { %12492 = vpow2.f32 %v2861_v8  ;;  %v2800_v16 = vpop.xlane.xlu0 %2799 }
 0x57e   :  { %v2863_v7 = vmul.f32 1.442695, %v2820_v18  ;;  %v2824_v2 = vsub.f32 %v13675_v53, %v2800_v16 }
 0x57f   :  { %v13769_v40 = vpop.eup %12482 }
 0x580   :  { %v2924_v22 = vsel %vm2734_vm8, %v13769_v40, 0.0  ;;  %v13774_v4 = vpop.eup %12484  ;;  %12494 = vpow2.f32 %v2863_v7  ;;  %v2871_v9 = vmul.f32 1.442695, %v2824_v2 }
 0x581   :  { %2925 = vadd.xlane.f32.xlu1 %v2924_v22  ;;  %v2912_v49 = vsel %vm2727_vm9, %v13774_v4, 0.0 }
 0x583   :  { %v13778_v63 = vpop.eup %12486 }
 0x584   :  { %v2918_v6 = vsel %vm2727_vm9, %v13778_v63, 0.0 }
 0x585   :  { %2913 = vadd.xlane.f32.xlu1 %v2912_v49  ;;  %v13782_v60 = vpop.eup %12488 }
 0x586   :  { %v2881_v35 = vpop.xlane.xlu1 %2880  ;;  %v2921_v23 = vsel %vm2727_vm9, %v13782_v60, 0.0 }
 0x589   :  { %2919 = vadd.xlane.f32.xlu1 %v2918_v6  ;;  %v13786_v57 = vpop.eup %12490 }
 0x58a   :  { %v2797_v20 = vpop.xlane.xlu1 %2796  ;;  %v2933_v37 = vsel %vm2734_vm8, %v13786_v57, 0.0  ;;  %v13793_v17 = vpop.eup %12492 }
 0x58b   :  { %v2823_v62 = vsub.f32 %v13689_v1, %v2797_v20  ;;  %v2927_v45 = vsel %vm2727_vm9, %v13793_v17, 0.0  ;;  %v2794_v1 = vpop.xlane.xlu0 %2793 }
 0x58c   :  { %v2822_v54 = vsub.f32 %v13679_v43, %v2794_v1 }
 0x58d   :  { %2922 = vadd.xlane.f32.xlu1 %v2921_v23  ;;  %v2869_v59 = vmul.f32 1.442695, %v2823_v62  ;;  %v13797_v46 = vpop.eup %12494 }
 0x58e   :  { %v2867_v58 = vmul.f32 1.442695, %v2822_v54  ;;  %v13817_v50 = vpop.permute.xlu1 %3321  ;;  %v3395_v54 = vand.u32 %v13655_v24, %v13559_v48 }
 0x58f   :  { %3383 = vrot.lane.b32.xlu0 %v13484_v15, %s12727_s18  ;;  %12496 = vpow2.f32 %v2869_v59  ;;  %v2930_v15 = vsel %vm2727_vm9, %v13797_v46, 0.0  ;;  %v2890_v11 = vpop.xlane.xlu0 %2889 }
 0x590   :  { %12498 = vpow2.f32 %v2871_v9 }
 0x591   :  { %2934 = vadd.xlane.f32.xlu1 %v2933_v37  ;;  %12500 = vpow2.f32 %v2867_v58 }
 0x592   :  { %12502 = vrcp.f32 %v2881_v35 }
 0x593   :  { %v2878_v19 = vpop.xlane.xlu0 %2877 }
 0x594   :  { %12504 = vrcp.f32 %v2878_v19 }
 0x595   :  { %2928 = vadd.xlane.f32.xlu1 %v2927_v45 }
 0x597   :  { %v2884_v5 = vpop.xlane.xlu0 %2883 }
 0x599   :  { %2931 = vadd.xlane.f32.xlu1 %v2930_v15 }
 0x59c   :  { %v13803_v25 = vpop.eup %12496 }
 0x59d   :  { %v2939_v30 = vsel %vm2727_vm9, %v13803_v25, 0.0  ;;  %v13807_v31 = vpop.eup %12498 }
 0x59e   :  { %2940 = vadd.xlane.f32.xlu1 %v2939_v30  ;;  %v2942_v53 = vsel %vm2734_vm8, %v13807_v31, 0.0  ;;  %v13811_v10 = vpop.eup %12500 }
 0x59f   :  { %v2936_v43 = vsel %vm2727_vm9, %v13811_v10, 0.0  ;;  %v12503_v18 = vpop.eup %12502 }
 0x5a0   :  { %v2971_v7 = vmul.f32 %v12503_v18, %v13685_v29 }
 0x5a1   :  { %v12505_v22 = vpop.eup %12504 }
 0x5a2   :  { %v2970_v35 = vmul.f32 %v12505_v22, %v13697_v36  ;;  %v2994_v59 = vpack.c.bf16 %v2971_v7, %v2971_v7 }
 0x5ae   :  { %2943 = vadd.xlane.f32.xlu0 %v2942_v53 }
 0x5af   :  { %3447 = vrot.lane.b32.xlu1 %v13456_v61, %s12727_s18 }
 0x5b2   :  { %2937 = vadd.xlane.f32.xlu0 %v2936_v43 }
 0x5bf   :  { %v2875_v21 = vpop.xlane.xlu1 %2874 }
 0x5c0   :  { %12506 = vrcp.f32 %v2875_v21 }
 0x5c1   :  { %12508 = vrcp.f32 %v2890_v11 }
 0x5c2   :  { %12510 = vrcp.f32 %v2884_v5 }
 0x5c3   :  { %v2887_v8 = vpop.xlane.xlu1 %2886 }
 0x5c4   :  { %12512 = vrcp.f32 %v2887_v8 }
 0x5c8   :  { %3445 = vrot.lane.b32.xlu0 %v13496_v26, %s12727_s18 }
 0x5cd   :  { %v12507_v61 = vpop.eup %12506 }
 0x5ce   :  { %v12509_v49 = vpop.eup %12508  ;;  %v2969_v6 = vmul.f32 %v12507_v61, %v13715_v44  ;;  %v3271_v44 = vand.u32 %v13637_v38, %v13559_v48 }
 0x5cf   :  { %v12511_v23 = vpop.eup %12510  ;;  %v2974_v16 = vmul.f32 %v12509_v49, %v13691_v52 }
 0x5d0   :  { %v2993_v20 = vpack.c.bf16 %v2970_v35, %v2969_v6  ;;  %v2972_v26 = vmul.f32 %v12511_v23, %v13701_v42 }
 0x5d1   :  { %v12513_v62 = vpop.eup %12512  ;;  %v2996_v36 = vpack.c.bf16 %v2974_v16, %v2974_v16 }
 0x5d2   :  { %11967 = vmatprep.mubr.msk.bf16.mxu0 %vm2727_vm9, %v2993_v20  ;;  %v2973_v37 = vmul.f32 %v12513_v62, %v13719_v47 }
 0x5d3   :  { %11968 = vmatmul.mubr.msk.bf16.vlgmr.msra.gmra.mxu0 %vm2727_vm9, %v2994_v59 }
 0x5d4   :  { %11980 = vmatpush3.bf16.msra.mxu0 %v13573_v55  ;;  %v2995_v29 = vpack.c.bf16 %v2973_v37, %v2972_v26  ;;  %v3333_v55 = vand.u32 %v13707_v33, %v13559_v48 }
 0x5d5   :  { %11981 = vmatprep.subr.bf16.mxu0 %v13705_v13 }
 0x5d6   :  { %11975 = vmatprep.mubr.msk.bf16.mxu1 %vm2727_vm9, %v2995_v29  ;;  %v15883_v29 = vmov 0.0  }
 0x5d7   :  { %11976 = vmatmul.mubr.msk.bf16.vlgmr.msra.gmra.mxu1 %vm2727_vm9, %v2996_v36 }
 0x5d8   :  { %11982 = vmatpush3.bf16.msra.mxu0 %v13705_v13  ;;  %11988 = vmatpush3.bf16.msra.mxu1 %v13580_v32 }
 0x5d9   :  { %11989 = vmatprep.subr.bf16.mxu1 %v13711_v3  ;;  %11995 = vmatprep.subr.bf16.mxu0 %v3271_v44 }
 0x5dc   :  { %11990 = vmatpush3.bf16.msra.mxu1 %v13711_v3 }
 0x5dd   :  { %12003 = vmatprep.subr.bf16.mxu1 %v3333_v55 }
 0x5df   :  { %v2899_v52 = vpop.xlane.xlu1 %2898 }
 0x5e0   :  { %12514 = vrcp.f32 %v2899_v52 }
 0x5e1   :  { %v2893_v42 = vpop.xlane.xlu0 %2892 }
 0x5e2   :  { %12516 = vrcp.f32 %v2893_v42 }
 0x5e5   :  { %v2896_v38 = vpop.xlane.xlu1 %2895 }
 0x5e6   :  { %12518 = vrcp.f32 %v2896_v38 }
 0x5ed   :  { %v12515_v47 = vpop.eup %12514 }
 0x5ee   :  { %v2977_v32 = vmul.f32 %v12515_v47, %v13726_v34 }
 0x5ef   :  { %v12517_v45 = vpop.eup %12516 }
 0x5f0   :  { %v2975_v2 = vmul.f32 %v12517_v45, %v13730_v51  ;;  %v2998_v33 = vpack.c.bf16 %v2977_v32, %v2977_v32 }
 0x5f3   :  { %v12519_v13 = vpop.eup %12518 }
 0x5f4   :  { %v2976_v1 = vmul.f32 %v12519_v13, %v13734_v28 }
 0x5f6   :  { %v2997_v15 = vpack.c.bf16 %v2976_v1, %v2975_v2 }
 0x5f8   :  { %11983 = vmatprep.mubr.msk.bf16.mxu0 %vm2727_vm9, %v2997_v15 }
 0x5f9   :  { %11984 = vmatmul.mubr.msk.bf16.vlgmr.msra.gmra.mxu0 %vm2727_vm9, %v2998_v33 }
 0x5fa   :  { %v2908_v9 = vpop.xlane.xlu0 %2907  ;;  %11996 = vmatpush3.bf16.msra.mxu0 %v3271_v44 }
 0x5fb   :  { %11997 = vmatprep.subr.bf16.mxu0 %v13645_v27  ;;  %12520 = vrcp.f32 %v2908_v9 }
 0x5fe   :  { %v2902_v3 = vpop.xlane.xlu0 %2901  ;;  %11998 = vmatpush3.bf16.msra.mxu0 %v13645_v27 }
 0x5ff   :  { %12522 = vrcp.f32 %v2902_v3  ;;  %12011 = vmatprep.subr.bf16.mxu0 %v3395_v54 }
 0x600   :  { %v2905_v34 = vpop.xlane.xlu1 %2904 }
 0x601   :  { %12524 = vrcp.f32 %v2905_v34 }
 0x602   :  { %v2911_v28 = vpop.xlane.xlu0 %2910 }
 0x604   :  { %v2917_v51 = vpop.xlane.xlu1 %2916 }
 0x605   :  { %12526 = vrcp.f32 %v2917_v51 }
 0x606   :  { %12528 = vrcp.f32 %v2911_v28 }
 0x608   :  { %v12521_v30 = vpop.eup %12520 }
 0x609   :  { %v2980_v19 = vmul.f32 %v12521_v30, %v13745_v41 }
 0x60a   :  { %v2926_v58 = vpop.xlane.xlu1 %2925 }
 0x60b   :  { %v3000_v8 = vpack.c.bf16 %v2980_v19, %v2980_v19 }
 0x60c   :  { %v12523_v53 = vpop.eup %12522 }
 0x60d   :  { %v2978_v24 = vmul.f32 %v12523_v53, %v13750_v0 }
 0x60e   :  { %v12525_v43 = vpop.eup %12524  ;;  %v2914_v11 = vpop.xlane.xlu1 %2913 }
 0x60f   :  { %12530 = vrcp.f32 %v2914_v11  ;;  %v2979_v5 = vmul.f32 %v12525_v43, %v13755_v12 }
 0x610   :  { %12532 = vrcp.f32 %v2926_v58 }
 0x611   :  { %v2999_v21 = vpack.c.bf16 %v2979_v5, %v2978_v24 }
 0x612   :  { %v2920_v27 = vpop.xlane.xlu1 %2919  ;;  %v12527_v41 = vpop.eup %12526 }
 0x613   :  { %11991 = vmatprep.mubr.msk.bf16.mxu1 %vm2727_vm9, %v2999_v21  ;;  %12534 = vrcp.f32 %v2920_v27  ;;  %v12529_v0 = vpop.eup %12528  ;;  %v2983_v61 = vmul.f32 %v12527_v41, %v13764_v39 }
 0x614   :  { %11992 = vmatmul.mubr.msk.bf16.vlgmr.msra.gmra.mxu1 %vm2727_vm9, %v3000_v8  ;;  %v2981_v7 = vmul.f32 %v12529_v0, %v13759_v14 }
 0x615   :  { %12004 = vmatpush3.bf16.msra.mxu1 %v3333_v55  ;;  %v3002_v23 = vpack.c.bf16 %v2983_v61, %v2983_v61 }
 0x616   :  { %12005 = vmatprep.subr.bf16.mxu1 %v13817_v50  ;;  %v2923_v18 = vpop.xlane.xlu1 %2922 }
 0x617   :  { %12536 = vrcp.f32 %v2923_v18 }
 0x619   :  { %12006 = vmatpush3.bf16.msra.mxu1 %v13817_v50  ;;  %v3384_v50 = vpop.permute.xlu0 %3383 }
 0x61a   :  { %v2935_v22 = vpop.xlane.xlu1 %2934 }
 0x61b   :  { %12538 = vrcp.f32 %v2935_v22 }
 0x61c   :  { %v12531_v12 = vpop.eup %12530 }
 0x61d   :  { %v2982_v49 = vmul.f32 %v12531_v12, %v13774_v4  ;;  %v12533_v20 = vpop.eup %12532 }
 0x61e   :  { %v2929_v6 = vpop.xlane.xlu1 %2928  ;;  %v2986_v14 = vmul.f32 %v12533_v20, %v13769_v40 }
 0x61f   :  { %v3001_v35 = vpack.c.bf16 %v2982_v49, %v2981_v7  ;;  %12540 = vrcp.f32 %v2929_v6 }
 0x620   :  { %v12535_v62 = vpop.eup %12534  ;;  %v3004_v37 = vpack.c.bf16 %v2986_v14, %v2986_v14 }
 0x621   :  { %11999 = vmatprep.mubr.msk.bf16.mxu0 %vm2727_vm9, %v3001_v35  ;;  %v2984_v4 = vmul.f32 %v12535_v62, %v13778_v63 }
 0x622   :  { %v2932_v59 = vpop.xlane.xlu1 %2931  ;;  %12000 = vmatmul.mubr.msk.bf16.vlgmr.msra.gmra.mxu0 %vm2727_vm9, %v3002_v23 }
 0x623   :  { %12542 = vrcp.f32 %v2932_v59  ;;  %12012 = vmatpush3.bf16.msra.mxu0 %v3395_v54 }
 0x624   :  { %v12537_v39 = vpop.eup %12536  ;;  %12013 = vmatprep.subr.bf16.mxu0 %v3384_v50 }
 0x625   :  { %v2985_v16 = vmul.f32 %v12537_v39, %v13782_v60 }
 0x627   :  { %12014 = vmatpush3.bf16.msra.mxu0 %v3384_v50  ;;  %v3003_v26 = vpack.c.bf16 %v2985_v16, %v2984_v4  ;;  %v2941_v36 = vpop.xlane.xlu1 %2940 }
 0x628   :  { %12027 = vmatprep.subr.bf16.mxu0 %v15883_v29  ;;  %v12539_v44 = vpop.eup %12538 }
 0x629   :  { %12007 = vmatprep.mubr.msk.bf16.mxu1 %vm2727_vm9, %v3003_v26  ;;  %v2989_v63 = vmul.f32 %v12539_v44, %v13786_v57 }
 0x62a   :  { %12008 = vmatmul.mubr.msk.bf16.vlgmr.msra.gmra.mxu1 %vm2727_vm9, %v3004_v37 }
 0x62b   :  { %v3448_v55 = vpop.permute.xlu1 %3447  ;;  %v3006_v45 = vpack.c.bf16 %v2989_v63, %v2989_v63 }
 0x62c   :  { %v12541_v52 = vpop.eup %12540  ;;  %v3457_v42 = vand.u32 %v3448_v55, %v13559_v48 }
 0x62d   :  { %v2987_v60 = vmul.f32 %v12541_v52, %v13793_v17 }
 0x62e   :  { %12019 = vmatprep.subr.bf16.mxu1 %v3457_v42 }
 0x62f   :  { %12020 = vmatpush3.bf16.msra.mxu1 %v3457_v42 }
 0x630   :  { %v12543_v40 = vpop.eup %12542 }
 0x631   :  { %v2988_v38 = vmul.f32 %v12543_v40, %v13797_v46 }
 0x633   :  { %v3005_v47 = vpack.c.bf16 %v2988_v38, %v2987_v60 }
 0x635   :  { %12015 = vmatprep.mubr.msk.bf16.mxu0 %vm2727_vm9, %v3005_v47 }
 0x636   :  { %12016 = vmatmul.mubr.msk.bf16.vlgmr.msra.gmra.mxu0 %vm2727_vm9, %v3006_v45 }
 0x637   :  { %v2944_v13 = vpop.xlane.xlu0 %2943  ;;  %12031 = vmatprep.mubr.msk.bf16.mxu0 %vm12721_vm6, %v15883_v29 }
 0x638   :  { %12544 = vrcp.f32 %v2944_v13 }
 0x639   :  { %12546 = vrcp.f32 %v2941_v36 }
 0x63b   :  { %v2938_v32 = vpop.xlane.xlu0 %2937 }
 0x63c   :  { %12548 = vrcp.f32 %v2938_v32 }
 0x63f   :  { %v3446_v57 = vpop.permute.xlu0 %3445 }
 0x640   :  { %12021 = vmatprep.subr.bf16.mxu1 %v3446_v57 }
 0x641   :  { %12022 = vmatpush3.bf16.msra.mxu1 %v3446_v57 }
 0x642   :  { %12043 = vmatprep.subr.bf16.mxu1 %v15883_v29 }
 0x645   :  { %v12545_v17 = vpop.eup %12544 }
 0x646   :  { %v12547_v46 = vpop.eup %12546  ;;  %v2992_v1 = vmul.f32 %v12545_v17, %v13807_v31 }
 0x647   :  { %v2991_v33 = vmul.f32 %v12547_v46, %v13803_v25 }
 0x648   :  { %v3008_v3 = vpack.c.bf16 %v2992_v1, %v2992_v1 }
 0x649   :  { %v12549_v2 = vpop.eup %12548 }
 0x64a   :  { %v2990_v15 = vmul.f32 %v12549_v2, %v13811_v10 }
 0x64c   :  { %v3007_v9 = vpack.c.bf16 %v2991_v33, %v2990_v15 }
 0x64e   :  { %12023 = vmatprep.mubr.msk.bf16.mxu1 %vm2727_vm9, %v3007_v9 }
 0x64f   :  { %12024 = vmatmul.mubr.msk.bf16.vlgmr.msra.gmra.mxu1 %vm2727_vm9, %v3008_v3 }
 0x650   :  { %12047 = vmatprep.mubr.msk.bf16.mxu1 %vm12721_vm6, %v15883_v29 }
 0x693   :  { %v11969_v54 = vpop.f32.mrf.mxu0 }
 0x694   :  { %v3635_v43 = vrot.slane %v11969_v54, %v12908_v56 }
 0x695   :  { %v13884_v34 = vpop.f32.mrf.mxu0 }
 0x696   :  { %v3642_v21 = vrot.slane %v3635_v43, %v12908_v56 }
 0x697   :  { %v11970_v51 = vpop.f32.mrf.mxu0  ;;  %v11977_v28 = vpop.f32.mrf.mxu1 }
 0x698   :  { %v3747_v16 = vrot.slane %v11977_v28, %v12908_v56 }
 0x699   :  { %v3121_v58 = vpop.f32.mrf.mxu1  ;;  %v13918_v28 = vpop.f32.mrf.mxu0 }
 0x69a   :  { %v3643_v31 = vcombine.high %v3121_v58, %v3121_v58  ;;  %v3650_v10 = vrot.slane %v3121_v58, %v12908_v56  ;;  %v3754_v13 = vrot.slane %v3747_v16, %v12908_v56 }
 0x69b   :  { %v11978_v30 = vpop.f32.mrf.mxu1 }
 0x69c   :  { %v3657_v25 = vrot.slane %v3643_v31, %v12908_v56  ;;  %v3658_v53 = vcombine.high %v3650_v10, %v3650_v10  ;;  %v3666_v19 = vrot.slane %v3650_v10, %v12908_v56 }
 0x69d   :  { %v3124_v41 = vpop.f32.mrf.mxu1 }
 0x69e   :  { %v3659_v11 = vcombine.high %v3657_v25, %v3657_v25  ;;  %v3673_v24 = vrot.slane %v3657_v25, %v12908_v56  ;;  %v3680_v5 = vrot.slane %v3658_v53, %v12908_v56  ;;  %v3688_v8 = vcombine.high %v3666_v19, %v3666_v19 }
 0x69f   :  { %v4525_v22 = vcombine.low %v3642_v21, %v3666_v19  ;;  %v3692_v6 = vcombine.high %v3124_v41, %v3124_v41  ;;  %v3699_v62 = vrot.slane %v3124_v41, %v12908_v56 }
 0x6a0   :  { %v3687_v27 = vrot.slane %v3659_v11, %v12908_v56  ;;  %v3689_v18 = vcombine.high %v3673_v24, %v3673_v24  ;;  %v3690_v0 = vcombine.high %v3680_v5, %v3680_v5  ;;  %v4526_v12 = vcombine.low %v3680_v5, %v3688_v8 }
 0x6a1   :  { %v4535_v35 = vrot.slane %v4525_v22, %v12908_v56  ;;  %v3706_v50 = vrot.slane %v3692_v6, %v12908_v56  ;;  %v3707_v14 = vcombine.high %v3699_v62, %v3699_v62  ;;  %v3715_v4 = vrot.slane %v3699_v62, %v12908_v56 }
 0x6a2   :  { %v4528_v61 = vcombine.low %v3687_v27, %v3689_v18  ;;  %v4527_v7 = vcombine.low %v3690_v0, %v3673_v24  ;;  %v3691_v49 = vcombine.high %v3687_v27, %v3687_v27  ;;  %v4542_v23 = vrot.slane %v4526_v12, %v12908_v56 }
 0x6a3   :  { %v3708_v37 = vcombine.high %v3706_v50, %v3706_v50  ;;  %v3722_v36 = vrot.slane %v3706_v50, %v12908_v56  ;;  %v3729_v44 = vrot.slane %v3707_v14, %v12908_v56  ;;  %v3737_v55 = vcombine.high %v3715_v4, %v3715_v4 }
 0x6a4   :  { %v4556_v20 = vrot.slane %v4528_v61, %v12908_v56  ;;  %v4549_v59 = vrot.slane %v4527_v7, %v12908_v56  ;;  %v4557_v39 = vcombine.low %v4535_v35, %v4542_v23  ;;  %v4574_v52 = vcombine.low %v3691_v49, %v3715_v4 }
 0x6a5   :  { %v3736_v63 = vrot.slane %v3708_v37, %v12908_v56  ;;  %v3738_v60 = vcombine.high %v3722_v36, %v3722_v36  ;;  %v3739_v38 = vcombine.high %v3729_v44, %v3729_v44  ;;  %v4575_v47 = vcombine.low %v3729_v44, %v3737_v55 }
 0x6a6   :  { %v4558_v26 = vcombine.low %v4549_v59, %v4556_v20  ;;  %v4565_v42 = vrot.slane %v4557_v39, %v12908_v56  ;;  %v4584_v45 = vrot.slane %v4574_v52, %v12908_v56 }
 0x6a7   :  { %v3740_v32 = vcombine.high %v3736_v63, %v3736_v63  ;;  %v4577_v57 = vcombine.low %v3736_v63, %v3738_v60  ;;  %v4576_v46 = vcombine.low %v3739_v38, %v3722_v36  ;;  %v4591_v2 = vrot.slane %v4575_v47, %v12908_v56 }
 0x6a8   :  { %v4572_v40 = vrot.slane %v4558_v26, %v12908_v56 }
 0x6a9   :  { %v4605_v1 = vrot.slane %v4577_v57, %v12908_v56  ;;  %v13913_v15 = vcombine.low %v3740_v32, %v3754_v13  ;;  %v4598_v33 = vrot.slane %v4576_v46, %v12908_v56  ;;  %v4606_v9 = vcombine.low %v4584_v45, %v4591_v2 }
 0x6aa   :  { %v13909_v17 = vcombine.low %v4565_v42, %v4572_v40 }
 0x6ab   :  { %v4607_v3 = vcombine.low %v4598_v33, %v4605_v1  ;;  %v4614_v54 = vrot.slane %v4606_v9, %v12908_v56 }
 0x6ad   :  { %v4621_v51 = vrot.slane %v4607_v3, %v12908_v56 }
 0x6af   :  { %v13920_v58 = vcombine.low %v4614_v54, %v4621_v51 }
 0x6b9   :  { %v13922_v31 = vpop.f32.mrf.mxu0 }
 0x6bb   :  { %v3183_v10 = vpop.f32.mrf.mxu0 }
 0x6bc   :  { %v3755_v30 = vcombine.high %v3183_v10, %v3183_v10  ;;  %v3762_v25 = vrot.slane %v3183_v10, %v12908_v56 }
 0x6bd   :  { %v11986_v53 = vpop.f32.mrf.mxu0 }
 0x6be   :  { %v3769_v43 = vrot.slane %v3755_v30, %v12908_v56  ;;  %v3770_v11 = vcombine.high %v3762_v25, %v3762_v25  ;;  %v3778_v5 = vrot.slane %v3762_v25, %v12908_v56  ;;  %v3859_v30 = vrot.slane %v13922_v31, %v12908_v56 }
 0x6bf   :  { %v3186_v19 = vpop.f32.mrf.mxu0 }
 0x6c0   :  { %v3771_v24 = vcombine.high %v3769_v43, %v3769_v43  ;;  %v3792_v21 = vrot.slane %v3770_v11, %v12908_v56  ;;  %v3804_v27 = vcombine.high %v3186_v19, %v3186_v19  ;;  %v3785_v8 = vrot.slane %v3769_v43, %v12908_v56 }
 0x6c1   :  { %v3811_v18 = vrot.slane %v3186_v19, %v12908_v56 }
 0x6c2   :  { %v3799_v41 = vrot.slane %v3771_v24, %v12908_v56  ;;  %v4643_v0 = vcombine.low %v3778_v5, %v3792_v21  ;;  %v11532_v22 = vcombine.high %v3778_v5, %v3792_v21  ;;  %v3818_v12 = vrot.slane %v3804_v27, %v12908_v56 }
 0x6c3   :  { %v3819_v61 = vcombine.high %v3811_v18, %v3811_v18  ;;  %v3827_v35 = vrot.slane %v3811_v18, %v12908_v56  ;;  %v3866_v18 = vrot.slane %v3859_v30, %v12908_v56 }
 0x6c4   :  { %v4645_v7 = vcombine.low %v3785_v8, %v3799_v41  ;;  %v11533_v49 = vcombine.high %v3785_v8, %v3799_v41  ;;  %v3820_v6 = vcombine.high %v3818_v12, %v3818_v12  ;;  %v4653_v20 = vrot.slane %v4643_v0, %v12908_v56 }
 0x6c5   :  { %v3841_v23 = vrot.slane %v3819_v61, %v12908_v56  ;;  %v4660_v62 = vrot.slane %v11532_v22, %v12908_v56  ;;  %v3834_v39 = vrot.slane %v3818_v12, %v12908_v56 }
 0x6c6   :  { %v4667_v59 = vrot.slane %v4645_v7, %v12908_v56  ;;  %v4674_v50 = vrot.slane %v11533_v49, %v12908_v56  ;;  %v3848_v14 = vrot.slane %v3820_v6, %v12908_v56 }
 0x6c7   :  { %v4692_v4 = vcombine.low %v3827_v35, %v3841_v23  ;;  %v11534_v16 = vcombine.high %v3827_v35, %v3841_v23  ;;  %v4675_v52 = vcombine.low %v4653_v20, %v4660_v62 }
 0x6c8   :  { %v4676_v26 = vcombine.low %v4667_v59, %v4674_v50  ;;  %v4694_v37 = vcombine.low %v3834_v39, %v3848_v14  ;;  %v11535_v36 = vcombine.high %v3834_v39, %v3848_v14 }
 0x6c9   :  { %v4702_v44 = vrot.slane %v4692_v4, %v12908_v56  ;;  %v4709_v55 = vrot.slane %v11534_v16, %v12908_v56  ;;  %v4683_v47 = vrot.slane %v4675_v52, %v12908_v56 }
 0x6ca   :  { %v4716_v42 = vrot.slane %v4694_v37, %v12908_v56  ;;  %v4723_v40 = vrot.slane %v11535_v36, %v12908_v56  ;;  %v4690_v38 = vrot.slane %v4676_v26, %v12908_v56 }
 0x6cb   :  { %v4724_v63 = vcombine.low %v4702_v44, %v4709_v55 }
 0x6cc   :  { %v4725_v60 = vcombine.low %v4716_v42, %v4723_v40  ;;  %v4691_v32 = vcombine.low %v4683_v47, %v4690_v38 }
 0x6cd   :  { %v4732_v45 = vrot.slane %v4724_v63, %v12908_v56 }
 0x6ce   :  { %v4739_v13 = vrot.slane %v4725_v60, %v12908_v56 }
 0x6d0   :  { %v4740_v57 = vcombine.low %v4732_v45, %v4739_v13 }
 0x6d2   :  { %v12348_v2 = vpack.i.bf16 %v4740_v57, %v4691_v32 }
 0x6d4   :  { %v13948_v46 = vpop.f32.mrf.mxu1  ;;  %12349 = vrot.lane.b32.xlu1 %v12348_v2, %s12729_s19 }
 0x6d6   :  { %v3245_v1 = vpop.f32.mrf.mxu1 }
 0x6d7   :  { %v3867_v33 = vcombine.high %v3245_v1, %v3245_v1  ;;  %v3874_v9 = vrot.slane %v3245_v1, %v12908_v56 }
 0x6d8   :  { %v11994_v3 = vpop.f32.mrf.mxu1 }
 0x6d9   :  { %v3881_v54 = vrot.slane %v3867_v33, %v12908_v56  ;;  %v3882_v51 = vcombine.high %v3874_v9, %v3874_v9  ;;  %v3890_v10 = vrot.slane %v3874_v9, %v12908_v56 }
 0x6da   :  { %v3248_v25 = vpop.f32.mrf.mxu1 }
 0x6db   :  { %v3883_v53 = vcombine.high %v3881_v54, %v3881_v54  ;;  %v3897_v43 = vrot.slane %v3881_v54, %v12908_v56  ;;  %v3904_v11 = vrot.slane %v3882_v51, %v12908_v56  ;;  %v3912_v19 = vcombine.high %v3890_v10, %v3890_v10 }
 0x6dc   :  { %v3916_v24 = vcombine.high %v3248_v25, %v3248_v25  ;;  %v3923_v5 = vrot.slane %v3248_v25, %v12908_v56  ;;  %v4741_v20 = vcombine.low %v3866_v18, %v3890_v10 }
 0x6dd   :  { %v3911_v21 = vrot.slane %v3883_v53, %v12908_v56  ;;  %v3913_v27 = vcombine.high %v3897_v43, %v3897_v43  ;;  %v3914_v8 = vcombine.high %v3904_v11, %v3904_v11  ;;  %v4742_v22 = vcombine.low %v3904_v11, %v3912_v19 }
 0x6de   :  { %v3930_v41 = vrot.slane %v3916_v24, %v12908_v56  ;;  %v3931_v0 = vcombine.high %v3923_v5, %v3923_v5  ;;  %v3939_v31 = vrot.slane %v3923_v5, %v12908_v56  ;;  %v4751_v52 = vrot.slane %v4741_v20, %v12908_v56 }
 0x6df   :  { %v4743_v12 = vcombine.low %v3914_v8, %v3897_v43  ;;  %v4744_v61 = vcombine.low %v3911_v21, %v3913_v27  ;;  %v3915_v7 = vcombine.high %v3911_v21, %v3911_v21  ;;  %v4758_v16 = vrot.slane %v4742_v22, %v12908_v56 }
 0x6e0   :  { %v3932_v49 = vcombine.high %v3930_v41, %v3930_v41  ;;  %v3946_v6 = vrot.slane %v3930_v41, %v12908_v56  ;;  %v3953_v35 = vrot.slane %v3931_v0, %v12908_v56  ;;  %v3961_v23 = vcombine.high %v3939_v31, %v3939_v31 }
 0x6e1   :  { %v4790_v62 = vcombine.low %v3915_v7, %v3939_v31  ;;  %v4765_v26 = vrot.slane %v4743_v12, %v12908_v56  ;;  %v4772_v37 = vrot.slane %v4744_v61, %v12908_v56  ;;  %v13979_v57 = vcombine.low %v4751_v52, %v4758_v16 }
 0x6e2   :  { %v13966_v59 = vrot.slane %v3932_v49, %v12908_v56  ;;  %v3962_v50 = vcombine.high %v3946_v6, %v3946_v6  ;;  %v3963_v39 = vcombine.high %v3953_v35, %v3953_v35  ;;  %v4791_v14 = vcombine.low %v3953_v35, %v3961_v23  ;;  %v12001_v4 = vpop.f32.mrf.mxu0 }
 0x6e3   :  { %v4800_v63 = vrot.slane %v4790_v62, %v12908_v56  ;;  %v13981_v2 = vcombine.low %v4765_v26, %v4772_v37  ;;  %v4083_v33 = vrot.slane %v12001_v4, %v12908_v56  ;;  %v3971_v19 = vrot.slane %v13948_v46, %v12908_v56 }
 0x6e4   :  { %v4792_v36 = vcombine.low %v3963_v39, %v3946_v6  ;;  %v4793_v44 = vcombine.low %v13966_v59, %v3962_v50  ;;  %v3307_v55 = vpop.f32.mrf.mxu0  ;;  %v4807_v60 = vrot.slane %v4791_v14, %v12908_v56  ;;  %v3964_v24 = vcombine.high %v13966_v59, %v13966_v59 }
 0x6e5   :  { %v3979_v42 = vcombine.high %v3307_v55, %v3307_v55  ;;  %v3986_v40 = vrot.slane %v3307_v55, %v12908_v56  ;;  %v4781_v27 = vrot.slane %v13979_v57, %v12908_v56  ;;  %v14002_v8 = vrot.slane %v4083_v33, %v12908_v56 }
 0x6e6   :  { %v4814_v38 = vrot.slane %v4792_v36, %v12908_v56  ;;  %v4821_v47 = vrot.slane %v4793_v44, %v12908_v56  ;;  %v12002_v45 = vpop.f32.mrf.mxu0  ;;  %v13985_v51 = vcombine.low %v4800_v63, %v4807_v60  ;;  %v4788_v0 = vrot.slane %v13981_v2, %v12908_v56 }
 0x6e7   :  { %v3993_v13 = vrot.slane %v3979_v42, %v12908_v56  ;;  %v3994_v32 = vcombine.high %v3986_v40, %v3986_v40  ;;  %v4002_v53 = vrot.slane %v3986_v40, %v12908_v56 }
 0x6e8   :  { %v3310_v1 = vpop.f32.mrf.mxu0  ;;  %v13987_v10 = vcombine.low %v4814_v38, %v4821_v47  ;;  %v4830_v61 = vrot.slane %v13985_v51, %v12908_v56  ;;  %v4789_v51 = vcombine.low %v4781_v27, %v4788_v0 }
 0x6e9   :  { %v3995_v9 = vcombine.high %v3993_v13, %v3993_v13  ;;  %v4016_v3 = vrot.slane %v3994_v32, %v12908_v56  ;;  %v4028_v54 = vcombine.high %v3310_v1, %v3310_v1  ;;  %v4035_v30 = vrot.slane %v3310_v1, %v12908_v56 }
 0x6ea   :  { %v13990_v25 = vpop.f32.mrf.mxu1  ;;  %v4009_v18 = vrot.slane %v3993_v13, %v12908_v56  ;;  %v4837_v7 = vrot.slane %v13987_v10, %v12908_v56 }
 0x6eb   :  { %v4023_v43 = vrot.slane %v3995_v9, %v12908_v56  ;;  %v4042_v11 = vrot.slane %v4028_v54, %v12908_v56  ;;  %v4043_v5 = vcombine.high %v4035_v30, %v4035_v30  ;;  %v4869_v41 = vcombine.low %v4002_v53, %v4016_v3 }
 0x6ec   :  { %v3369_v21 = vpop.f32.mrf.mxu1  ;;  %v11536_v49 = vcombine.high %v4002_v53, %v4016_v3  ;;  %v4051_v35 = vrot.slane %v4035_v30, %v12908_v56 }
 0x6ed   :  { %v4044_v31 = vcombine.high %v4042_v11, %v4042_v11  ;;  %v4065_v22 = vrot.slane %v4043_v5, %v12908_v56  ;;  %v4871_v6 = vcombine.low %v4009_v18, %v4023_v43  ;;  %v4091_v23 = vcombine.high %v3369_v21, %v3369_v21 }
 0x6ee   :  { %v12010_v12 = vpop.f32.mrf.mxu1  ;;  %v11537_v20 = vcombine.high %v4009_v18, %v4023_v43  ;;  %v4058_v62 = vrot.slane %v4042_v11, %v12908_v56  ;;  %v4098_v39 = vrot.slane %v3369_v21, %v12908_v56  ;;  %v14017_v4 = vrot.slane %v4869_v41, %v12908_v56 }
 0x6ef   :  { %v4072_v50 = vrot.slane %v4044_v31, %v12908_v56  ;;  %v4918_v16 = vcombine.low %v4051_v35, %v4065_v22  ;;  %v4105_v26 = vrot.slane %v4091_v23, %v12908_v56  ;;  %v11538_v36 = vcombine.high %v4051_v35, %v4065_v22 }
 0x6f0   :  { %v3372_v14 = vpop.f32.mrf.mxu1  ;;  %v4106_v42 = vcombine.high %v4098_v39, %v4098_v39  ;;  %v14022_v63 = vrot.slane %v4098_v39, %v12908_v56  ;;  %v4886_v38 = vrot.slane %v11536_v49, %v12908_v56  ;;  %v14027_v47 = vrot.slane %v4871_v6, %v12908_v56 }
 0x6f1   :  { %v4140_v37 = vcombine.high %v3372_v14, %v3372_v14  ;;  %v4920_v44 = vcombine.low %v4058_v62, %v4072_v50  ;;  %v11539_v55 = vcombine.high %v4058_v62, %v4072_v50  ;;  %v4147_v52 = vrot.slane %v3372_v14, %v12908_v56 }
 0x6f2   :  { %v4107_v40 = vcombine.high %v4105_v26, %v4105_v26  ;;  %v4121_v60 = vrot.slane %v4105_v26, %v12908_v56  ;;  %v4900_v45 = vrot.slane %v11537_v20, %v12908_v56  ;;  %v4128_v32 = vrot.slane %v4106_v42, %v12908_v56 }
 0x6f3   :  { %v4154_v13 = vrot.slane %v4140_v37, %v12908_v56  ;;  %v4136_v33 = vcombine.high %v14022_v63, %v14022_v63  ;;  %v14036_v3 = vrot.slane %v4918_v16, %v12908_v56  ;;  %v4935_v54 = vrot.slane %v11538_v36, %v12908_v56 }
 0x6f4   :  { %v4135_v1 = vrot.slane %v4107_v40, %v12908_v56  ;;  %v4137_v9 = vcombine.high %v4121_v60, %v4121_v60  ;;  %v4155_v30 = vcombine.high %v4147_v52, %v4147_v52  ;;  %v4942_v11 = vrot.slane %v4920_v44, %v12908_v56 }
 0x6f5   :  { %v4156_v53 = vcombine.high %v4154_v13, %v4154_v13  ;;  %v4949_v5 = vrot.slane %v11539_v55, %v12908_v56  ;;  %v4138_v21 = vcombine.high %v4128_v32, %v4128_v32  ;;  %v14043_v41 = vcombine.low %v4128_v32, %v4136_v33 }
 0x6f6   :  { %v14039_v43 = vpop.f32.mrf.mxu0  ;;  %v4139_v18 = vcombine.high %v4135_v1, %v4135_v1  ;;  %v4163_v31 = vrot.slane %v4147_v52, %v12908_v56  ;;  %v4170_v22 = vrot.slane %v4154_v13, %v12908_v56  ;;  %v4177_v12 = vrot.slane %v4155_v30, %v12908_v56 }
 0x6f7   :  { %v4901_v6 = vcombine.low %v14017_v4, %v4886_v38  ;;  %v14049_v35 = vcombine.low %v4138_v21, %v4121_v60  ;;  %v14051_v23 = vcombine.low %v4135_v1, %v4137_v9  ;;  %v14054_v20 = vrot.slane %v4156_v53, %v12908_v56 }
 0x6f8   :  { %v3431_v49 = vpop.f32.mrf.mxu0  ;;  %v4185_v62 = vcombine.high %v4163_v31, %v4163_v31  ;;  %v4186_v50 = vcombine.high %v4170_v22, %v4170_v22  ;;  %v4187_v39 = vcombine.high %v4177_v12, %v4177_v12  ;;  %v14056_v14 = vcombine.low %v4139_v18, %v4163_v31 }
 0x6f9   :  { %v4902_v26 = vcombine.low %v14027_v47, %v4900_v45  ;;  %v4950_v37 = vcombine.low %v14036_v3, %v4935_v54  ;;  %v4951_v36 = vcombine.low %v4942_v11, %v4949_v5  ;;  %v4967_v4 = vcombine.low %v14002_v8, %v14022_v63 }
 0x6fa   :  { %v12018_v16 = vpop.f32.mrf.mxu0  ;;  %v4984_v44 = vrot.slane %v14043_v41, %v12908_v56  ;;  %v5017_v55 = vcombine.low %v4177_v12, %v4185_v62  ;;  %v5018_v52 = vcombine.low %v4187_v39, %v4170_v22  ;;  %v5019_v42 = vcombine.low %v14054_v20, %v4186_v50 }
 0x6fb   :  { %v4991_v60 = vrot.slane %v14049_v35, %v12908_v56  ;;  %v4998_v38 = vrot.slane %v14051_v23, %v12908_v56  ;;  %v4203_v47 = vcombine.high %v3431_v49, %v3431_v49  ;;  %v4210_v45 = vrot.slane %v3431_v49, %v12908_v56 }
 0x6fc   :  { %v3434_v40 = vpop.f32.mrf.mxu0  ;;  %v5026_v8 = vrot.slane %v14056_v14, %v12908_v56  ;;  %v5040_v63 = vrot.slane %v5018_v52, %v12908_v56  ;;  %v5047_v13 = vrot.slane %v5019_v42, %v12908_v56  ;;  %v5033_v1 = vrot.slane %v5017_v55, %v12908_v56  ;;  %v12416_v52 = vld [vmem:[%s15826_s4 + $0x8] sm:$0xff]  }
 0x6fd   :  { %v4252_v32 = vcombine.high %v3434_v40, %v3434_v40  ;;  %v4217_v33 = vrot.slane %v4203_v47, %v12908_v56  ;;  %v4218_v9 = vcombine.high %v4210_v45, %v4210_v45  ;;  %v4259_v3 = vrot.slane %v3434_v40, %v12908_v56  ;;  %12028 = vmatpush3.bf16.msra.mxu0 %v12416_v52 }
 0x6fe   :  { %v14077_v54 = vcombine.low %v5040_v63, %v5047_v13  ;;  %v4226_v30 = vrot.slane %v4210_v45, %v12908_v56  ;;  %v4909_v11 = vrot.slane %v4901_v6, %v12908_v56  ;;  %v4916_v35 = vrot.slane %v4902_v26, %v12908_v56  ;;  %12029 = vmatprep.subr.bf16.mxu0 %v15883_v29 }
 0x6ff   :  { %v4266_v53 = vrot.slane %v4252_v32, %v12908_v56  ;;  %v4219_v5 = vcombine.high %v4217_v33, %v4217_v33  ;;  %v4233_v21 = vrot.slane %v4217_v33, %v12908_v56  ;;  %v4240_v18 = vrot.slane %v4218_v9, %v12908_v56 }
 0x700   :  { %v4267_v31 = vcombine.high %v4259_v3, %v4259_v3  ;;  %v4275_v12 = vrot.slane %v4259_v3, %v12908_v56  ;;  %v4917_v14 = vcombine.low %v4909_v11, %v4916_v35  ;;  %v4958_v16 = vrot.slane %v4950_v37, %v12908_v56 }
 0x701   :  { %v4268_v22 = vcombine.high %v4266_v53, %v4266_v53  ;;  %v4282_v49 = vrot.slane %v4266_v53, %v12908_v56  ;;  %v4247_v23 = vrot.slane %v4219_v5, %v12908_v56  ;;  %v5095_v62 = vcombine.low %v4226_v30, %v4240_v18  ;;  %v12417_v5 = vld [vmem:[%s15826_s4] sm:$0xff]  }
 0x702   :  { %v11540_v50 = vcombine.high %v4226_v30, %v4240_v18  ;;  %v4289_v39 = vrot.slane %v4267_v31, %v12908_v56  ;;  %v4965_v55 = vrot.slane %v4951_v36, %v12908_v56  ;;  %12030 = vmatpush3.bf16.msra.mxu0 %v12417_v5 }
 0x703   :  { %v4296_v6 = vrot.slane %v4268_v22, %v12908_v56  ;;  %v5097_v42 = vcombine.low %v4233_v21, %v4247_v23  ;;  %v11541_v40 = vcombine.high %v4233_v21, %v4247_v23  ;;  %v5105_v26 = vrot.slane %v5095_v62, %v12908_v56  ;;  %12059 = vmatprep.subr.bf16.mxu0 %v15883_v29 }
 0x704   :  { %v5112_v47 = vrot.slane %v11540_v50, %v12908_v56  ;;  %v5144_v45 = vcombine.low %v4275_v12, %v4289_v39  ;;  %v11542_v63 = vcombine.high %v4275_v12, %v4289_v39  ;;  %v4966_v9 = vcombine.low %v4958_v16, %v4965_v55 }
 0x705   :  { %v5146_v13 = vcombine.low %v4282_v49, %v4296_v6  ;;  %v11543_v32 = vcombine.high %v4282_v49, %v4296_v6  ;;  %v5119_v33 = vrot.slane %v5097_v42, %v12908_v56  ;;  %v5126_v37 = vrot.slane %v11541_v40, %v12908_v56 }
 0x706   :  { %v5127_v36 = vcombine.low %v5105_v26, %v5112_v47  ;;  %v5154_v3 = vrot.slane %v5144_v45, %v12908_v56  ;;  %v5161_v30 = vrot.slane %v11542_v63, %v12908_v56  ;;  %v4977_v21 = vrot.slane %v4967_v4, %v12908_v56 }
 0x707   :  { %v5168_v53 = vrot.slane %v5146_v13, %v12908_v56  ;;  %v5175_v11 = vrot.slane %v11543_v32, %v12908_v56  ;;  %v5128_v18 = vcombine.low %v5119_v33, %v5126_v37  ;;  %v12353_v31 = vpack.i.bf16 %v4966_v9, %v4917_v14 }
 0x708   :  { %v4838_v22 = vcombine.low %v4830_v61, %v4837_v7  ;;  %v5000_v12 = vcombine.low %v4991_v60, %v4998_v38  ;;  %v5048_v49 = vcombine.low %v5026_v8, %v5033_v1  ;;  %v5176_v35 = vcombine.low %v5154_v3, %v5161_v30 }
 0x709   :  { %v5177_v23 = vcombine.low %v5168_v53, %v5175_v11  ;;  %v3978_v62 = vrot.slane %v3971_v19, %v12908_v56  ;;  %v4999_v4 = vcombine.low %v4977_v21, %v4984_v44  ;;  %12354 = vrot.lane.b32.xlu0 %v12353_v31, %s12730_s24  ;;  %v5142_v10 = vrot.slane %v5128_v18, %v12908_v56 }
 0x70a   :  { %v5135_v61 = vrot.slane %v5127_v36, %v12908_v56  ;;  %v5184_v46 = vrot.slane %v5176_v35, %v12908_v56  ;;  %v5063_v7 = vrot.slane %v14077_v54, %v12908_v56  ;;  %v12363_v41 = vpack.i.bf16 %v4838_v22, %v4789_v51 }
 0x70b   :  { %v5191_v19 = vrot.slane %v5177_v23, %v12908_v56  ;;  %v4839_v2 = vcombine.low %v3964_v24, %v3978_v62  ;;  %v5014_v0 = vrot.slane %v5000_v12, %v12908_v56  ;;  %v5056_v44 = vrot.slane %v5048_v49, %v12908_v56 }
 0x70c   :  { %v5143_v57 = vcombine.low %v5135_v61, %v5142_v10  ;;  %v5007_v8 = vrot.slane %v4999_v4, %v12908_v56  ;;  %v4307_v6 = vrot.slane %v14039_v43, %v12908_v56  ;;  %v4195_v43 = vrot.slane %v13990_v25, %v12908_v56 }
 0x70d   :  { %v5192_v27 = vcombine.low %v5184_v46, %v5191_v19  ;;  %12364 = vrot.lane.b32.xlu0 %v12363_v41, %s12729_s19  ;;  %v5064_v1 = vcombine.low %v5056_v44, %v5063_v7  ;;  %v4846_v50 = vrot.slane %v4839_v2, %v12908_v56 }
 0x70e   :  { %v5015_v39 = vcombine.low %v5007_v8, %v5014_v0  ;;  %v4314_v32 = vrot.slane %v4307_v6, %v12908_v56  ;;  %v4188_v8 = vcombine.high %v14054_v20, %v14054_v20 }
 0x70f   :  { %v12025_v60 = vpop.f32.mrf.mxu1  ;;  %v12358_v38 = vpack.i.bf16 %v5192_v27, %v5143_v57  ;;  %v4853_v26 = vrot.slane %v4846_v50, %v12908_v56 }
 0x710   :  { %v12368_v42 = vpack.i.bf16 %v5064_v1, %v5015_v39  ;;  %v4419_v53 = vrot.slane %v12025_v60, %v12908_v56  ;;  %v4202_v39 = vrot.slane %v4195_v43, %v12908_v56  ;;  %v3531_v43 = vcombine.high %v13884_v34, %v13884_v34 }
 0x711   :  { %v3493_v54 = vpop.f32.mrf.mxu1  ;;  %12359 = vrot.lane.b32.xlu1 %v12358_v38, %s12731_s25 }
 0x712   :  { %v4315_v59 = vcombine.high %v3493_v54, %v3493_v54  ;;  %v4322_v24 = vrot.slane %v3493_v54, %v12908_v56  ;;  %v4426_v41 = vrot.slane %v4419_v53, %v12908_v56 }
 0x713   :  { %v12026_v14 = vpop.f32.mrf.mxu1 }
 0x714   :  { %v4329_v16 = vrot.slane %v4315_v59, %v12908_v56  ;;  %v4330_v55 = vcombine.high %v4322_v24, %v4322_v24  ;;  %v4338_v52 = vrot.slane %v4322_v24, %v12908_v56 }
 0x715   :  { %v3496_v40 = vpop.f32.mrf.mxu1  ;;  %12369 = vrot.lane.b32.xlu1 %v12368_v42, %s12730_s24 }
 0x716   :  { %v4331_v47 = vcombine.high %v4329_v16, %v4329_v16  ;;  %v4345_v45 = vrot.slane %v4329_v16, %v12908_v56  ;;  %v4352_v63 = vrot.slane %v4330_v55, %v12908_v56  ;;  %v4360_v13 = vcombine.high %v4338_v52, %v4338_v52 }
 0x717   :  { %v4364_v33 = vcombine.high %v3496_v40, %v3496_v40  ;;  %v4371_v37 = vrot.slane %v3496_v40, %v12908_v56  ;;  %v5193_v18 = vcombine.low %v4314_v32, %v4338_v52  ;;  %v5065_v55 = vcombine.low %v4188_v8, %v4202_v39 }
 0x718   :  { %v4359_v36 = vrot.slane %v4331_v47, %v12908_v56  ;;  %v4361_v9 = vcombine.high %v4345_v45, %v4345_v45  ;;  %v4362_v3 = vcombine.high %v4352_v63, %v4352_v63  ;;  %v5194_v30 = vcombine.low %v4352_v63, %v4360_v13 }
 0x719   :  { %v4378_v11 = vrot.slane %v4364_v33, %v12908_v56  ;;  %v4379_v5 = vcombine.high %v4371_v37, %v4371_v37  ;;  %v4387_v21 = vrot.slane %v4371_v37, %v12908_v56  ;;  %4862 = vrot.lane.b32.xlu1 %v4853_v26, %s12729_s19  ;;  %v5203_v2 = vrot.slane %v5193_v18, %v12908_v56 }
 0x71a   :  { %v5195_v31 = vcombine.low %v4362_v3, %v4345_v45  ;;  %v5196_v25 = vcombine.low %v4359_v36, %v4361_v9  ;;  %v4363_v22 = vcombine.high %v4359_v36, %v4359_v36  ;;  %v5210_v62 = vrot.slane %v5194_v30, %v12908_v56 }
 0x71b   :  { %v4380_v12 = vcombine.high %v4378_v11, %v4378_v11  ;;  %v4394_v49 = vrot.slane %v4378_v11, %v12908_v56  ;;  %v4401_v35 = vrot.slane %v4379_v5, %v12908_v56  ;;  %v4409_v23 = vcombine.high %v4387_v21, %v4387_v21 }
 0x71c   :  { %v5217_v4 = vrot.slane %v5195_v31, %v12908_v56  ;;  %v5224_v51 = vrot.slane %v5196_v25, %v12908_v56  ;;  %v5242_v10 = vcombine.low %v4363_v22, %v4387_v21  ;;  %v5225_v1 = vcombine.low %v5203_v2, %v5210_v62 }
 0x71d   :  { %v4408_v61 = vrot.slane %v4380_v12, %v12908_v56  ;;  %v4410_v46 = vcombine.high %v4394_v49, %v4394_v49  ;;  %v4411_v19 = vcombine.high %v4401_v35, %v4401_v35  ;;  %v5243_v7 = vcombine.low %v4401_v35, %v4409_v23 }
 0x71e   :  { %v5226_v57 = vcombine.low %v5217_v4, %v5224_v51  ;;  %v5252_v27 = vrot.slane %v5242_v10, %v12908_v56  ;;  %v5233_v42 = vrot.slane %v5225_v1, %v12908_v56  ;;  %v5072_v63 = vrot.slane %v5065_v55, %v12908_v56 }
 0x71f   :  { %v4412_v0 = vcombine.high %v4408_v61, %v4408_v61  ;;  %v5244_v44 = vcombine.low %v4411_v19, %v4394_v49  ;;  %v5245_v60 = vcombine.low %v4408_v61, %v4410_v46  ;;  %v5259_v38 = vrot.slane %v5243_v7, %v12908_v56 }
 0x720   :  { %v5240_v16 = vrot.slane %v5226_v57, %v12908_v56  ;;  %v5079_v13 = vrot.slane %v5072_v63, %v12908_v56  ;;  %v3580_v32 = vcombine.high %v13918_v28, %v13918_v28  ;;  %v3545_v33 = vrot.slane %v3531_v43, %v12908_v56 }
 0x721   :  { %v5266_v54 = vrot.slane %v5244_v44, %v12908_v56  ;;  %v5273_v50 = vrot.slane %v5245_v60, %v12908_v56  ;;  %v5274_v59 = vcombine.low %v5252_v27, %v5259_v38  ;;  %v5291_v24 = vcombine.low %v4412_v0, %v4426_v41 }
 0x722   :  { %v5241_v26 = vcombine.low %v5233_v42, %v5240_v16  ;;  %v3594_v37 = vrot.slane %v3580_v32, %v12908_v56  ;;  %v3538_v36 = vrot.slane %v13884_v34, %v12908_v56  ;;  %v3587_v9 = vrot.slane %v13918_v28, %v12908_v56 }
 0x723   :  { %v5275_v6 = vcombine.low %v5266_v54, %v5273_v50  ;;  %v5298_v14 = vrot.slane %v5291_v24, %v12908_v56  ;;  %v5282_v20 = vrot.slane %v5274_v59, %v12908_v56  ;;  %v3547_v3 = vcombine.high %v3545_v33, %v3545_v33 }
 0x724   :  { %v3596_v30 = vcombine.high %v3594_v37, %v3594_v37  ;;  %v3546_v53 = vcombine.high %v3538_v36, %v3538_v36  ;;  %v3595_v11 = vcombine.high %v3587_v9, %v3587_v9  ;;  %v3561_v18 = vrot.slane %v3545_v33, %v12908_v56 }
 0x725   :  { %v5305_v52 = vrot.slane %v5298_v14, %v12908_v56  ;;  %v5289_v40 = vrot.slane %v5275_v6, %v12908_v56  ;;  %v3575_v5 = vrot.slane %v3547_v3, %v12908_v56  ;;  %v3610_v25 = vrot.slane %v3594_v37, %v12908_v56 }
 0x726   :  { %v3624_v21 = vrot.slane %v3596_v30, %v12908_v56  ;;  %v3568_v31 = vrot.slane %v3546_v53, %v12908_v56  ;;  %v3617_v22 = vrot.slane %v3595_v11, %v12908_v56  ;;  %v3554_v34 = vrot.slane %v3538_v36, %v12908_v56 }
 0x727   :  { %5314 = vrot.lane.b32.xlu1 %v5305_v52, %s12731_s25  ;;  %v5290_v47 = vcombine.low %v5282_v20, %v5289_v40  ;;  %v3603_v28 = vrot.slane %v3587_v9, %v12908_v56  ;;  %v4429_v12 = vcombine.low %v3561_v18, %v3575_v5  ;;  %v11529_v49 = vcombine.high %v3561_v18, %v3575_v5 }
 0x728   :  { %v4478_v35 = vcombine.low %v3610_v25, %v3624_v21  ;;  %v11531_v23 = vcombine.high %v3610_v25, %v3624_v21  ;;  %v4427_v62 = vcombine.low %v3554_v34, %v3568_v31  ;;  %v11528_v4 = vcombine.high %v3554_v34, %v3568_v31 }
 0x729   :  { %v12373_v45 = vpack.i.bf16 %v5290_v47, %v5241_v26  ;;  %v4476_v51 = vcombine.low %v3603_v28, %v3617_v22  ;;  %v11530_v10 = vcombine.high %v3603_v28, %v3617_v22  ;;  %v4451_v61 = vrot.slane %v4429_v12, %v12908_v56 }
 0x72a   :  { %v4458_v46 = vrot.slane %v11529_v49, %v12908_v56  ;;  %v4500_v19 = vrot.slane %v4478_v35, %v12908_v56  ;;  %v4507_v7 = vrot.slane %v11531_v23, %v12908_v56  ;;  %v4437_v41 = vrot.slane %v4427_v62, %v12908_v56 }
 0x72b   :  { %12374 = vrot.lane.b32.xlu0 %v12373_v45, %s12731_s25  ;;  %v4444_v2 = vrot.slane %v11528_v4, %v12908_v56  ;;  %v4486_v57 = vrot.slane %v4476_v51, %v12908_v56  ;;  %v4493_v27 = vrot.slane %v11530_v10, %v12908_v56  ;;  %v4630_v53 = vrot.slane %v13913_v15, %v12908_v56  ;;  %v15884_v51 = vld [vmem:[#allocation10_spill] sm:$0xff] }
 0x72c   :  { %v4460_v0 = vcombine.low %v4451_v61, %v4458_v46  ;;  %v4509_v44 = vcombine.low %v4500_v19, %v4507_v7  ;;  %v15851_v10 = vsub.s32 5, %v15884_v51  ;;  %v14251_v61 = vld [vmem:[%s15829_s7] sm:$0xff] }
 0x72d   :  { %v4459_v60 = vcombine.low %v4437_v41, %v4444_v2  ;;  %v4508_v38 = vcombine.low %v4486_v57, %v4493_v27  ;;  %v4637_v28 = vrot.slane %v4630_v53, %v12908_v56  ;;  %v15885_v7 = vld [vmem:[#allocation5_spill] sm:$0xff] }
 0x72e   :  { %v4474_v1 = vrot.slane %v4460_v0, %v12908_v56  ;;  %v4523_v54 = vrot.slane %v4509_v44, %v12908_v56  ;;  %v5430_v46 = vrot.slane %v14251_v61, %v15851_v10  ;;  %v15886_v0 = vld [vmem:[#allocation7_spill] sm:$0xff] }
 0x72f   :  { %5088 = vrot.lane.b32.xlu0 %v5079_v13, %s12730_s24  ;;  %v4467_v59 = vrot.slane %v4459_v60, %v12908_v56  ;;  %v4516_v24 = vrot.slane %v4508_v38, %v12908_v56 }
 0x731   :  { %v4475_v55 = vcombine.low %v4467_v59, %v4474_v1  ;;  %v4524_v52 = vcombine.low %v4516_v24, %v4523_v54 }
 0x746   :  { %v12350_v8 = vpop.permute.xlu1 %12349 }
 0x747   :  { %v12352_v39 = vunpack.i.h.bf16 %v12350_v8  ;;  %v12351_v6 = vunpack.i.l.bf16 %v12350_v8 }
 0x749   :  { %v5322_v20 = vsel %vm2204_vm7, %v4524_v52, %v12352_v39  ;;  %v5321_v40 = vsel %vm2204_vm7, %v4475_v55, %v12351_v6 }
 0x77b   :  { %v12355_v50 = vpop.permute.xlu0 %12354 }
 0x77c   :  { %v12357_v14 = vunpack.i.h.bf16 %v12355_v50  ;;  %v12356_v16 = vunpack.i.l.bf16 %v12355_v50  ;;  %v15887_v50 = vld [vmem:[#allocation8_spill] sm:$0xff] }
 0x77e   :  { %v5328_v45 = vsel %vm5326_vm10, %v5322_v20, %v12357_v14  ;;  %v5327_v63 = vsel %vm5326_vm10, %v5321_v40, %v12356_v16  ;;  %v15888_v14 = vld [vmem:[#allocation9_spill] sm:$0xff]  ;;  %v15889_v40 = vld [vmem:[#allocation6_spill] sm:$0xff] }
 0x77f   :  { %v12365_v33 = vpop.permute.xlu0 %12364 }
 0x780   :  { %v12367_v36 = vunpack.i.h.bf16 %v12365_v33  ;;  %v12366_v9 = vunpack.i.l.bf16 %v12365_v33 }
 0x782   :  { %v5324_v5 = vsel %vm2204_vm7, %v13920_v58, %v12367_v36  ;;  %v5323_v21 = vsel %vm2204_vm7, %v13909_v17, %v12366_v9 }
 0x783   :  { %v12360_v42 = vpop.permute.xlu1 %12359 }
 0x784   :  { %v12362_v26 = vunpack.i.h.bf16 %v12360_v42  ;;  %v12361_v47 = vunpack.i.l.bf16 %v12360_v42 }
 0x786   :  { %v5333_v13 = vsel %vm5332_vm11, %v5327_v63, %v12361_v47  ;;  %v5334_v43 = vsel %vm5332_vm11, %v5328_v45, %v12362_v26 }
 0x787   :  { %v5338_v32 = vpack.c.bf16 %v5334_v43, %v5333_v13  ;;  %v12370_v37 = vpop.permute.xlu1 %12369 }
 0x788   :  { %v12372_v3 = vunpack.i.h.bf16 %v12370_v37  ;;  %v12371_v30 = vunpack.i.l.bf16 %v12370_v37 }
 0x789   :  { %12032 = vmatmul.mubr.msk.bf16.vlgmr.msra.gmra.mxu0 %vm181_vm3, %v5338_v32 }
 0x78a   :  { %12035 = vmatprep.mubr.msk.bf16.mxu0 %vm12721_vm6, %v15883_v29  ;;  %v5329_v25 = vsel %vm5326_vm10, %v5323_v21, %v12371_v30  ;;  %v5330_v22 = vsel %vm5326_vm10, %v5324_v5, %v12372_v3 }
 0x78b   :  { %v4863_v34 = vpop.permute.xlu1 %4862 }
 0x78c   :  { %v5325_v58 = vsel %vm2204_vm7, %v4637_v28, %v4863_v34 }
 0x799   :  { %v5315_v17 = vpop.permute.xlu1 %5314 }
 0x79d   :  { %v12375_v11 = vpop.permute.xlu0 %12374 }
 0x79e   :  { %v12377_v18 = vunpack.i.h.bf16 %v12375_v11  ;;  %v12376_v31 = vunpack.i.l.bf16 %v12375_v11 }
 0x7a0   :  { %v5335_v12 = vsel %vm5332_vm11, %v5329_v25, %v12376_v31  ;;  %v5336_v15 = vsel %vm5332_vm11, %v5330_v22, %v12377_v18 }
 0x7a1   :  { %v5089_v49 = vpop.permute.xlu0 %5088  ;;  %v5339_v35 = vpack.c.bf16 %v5336_v15, %v5335_v12 }
 0x7a2   :  { %v5331_v23 = vsel %vm5326_vm10, %v5325_v58, %v5089_v49 }
 0x7a3   :  { %12036 = vmatmul.mubr.msk.bf16.gmra.mxu0 %vm181_vm3, %v5339_v35  ;;  %v5337_v62 = vsel %vm5332_vm11, %v5331_v23, %v5315_v17 }
 0x7a4   :  { %12039 = vmatprep.mubr.msk.bf16.mxu0 %vm12721_vm6, %v15883_v29  ;;  %v5340_v4 = vpack.c.bf16 %v5337_v62, %v5337_v62 }
 0x7ab   :  { %12040 = vmatmul.mubr.msk.bf16.gmra.mxu0 %vm181_vm3, %v5340_v4 }
 0x7ac   :  { %12075 = vmatprep.mubr.msk.bf16.mxu0 %vm12721_vm6, %v15883_v29 }
 0x849   :  { %v5400_v19 = vpop.f32.mrf.mxu0 }
 0x84a   :  { %v5422_v41 = vadd.f32 %v5400_v19, %v15885_v7  ;;  %v12419_v19 = vld [vmem:[%s15827_s5] sm:$0xff]  }
 0x84b   :  { %v12033_v2 = vpop.f32.mrf.mxu0 }
 0x84c   :  { %v14257_v57 = vadd.f32 %v5430_v46, %v5422_v41 }
 0x84d   :  { %v5403_v27 = vpop.f32.mrf.mxu0 }
 0x84e   :  { %v5423_v44 = vadd.f32 %v5403_v27, %v15886_v0  ;;  %v5436_v60 = vsel %vm181_vm3, %v14257_v57, 0.0 }
 0x84f   :  { %5437 = vadd.xlane.f32.xlu0 %v5436_v60  ;;  %v12034_v38 = vpop.f32.mrf.mxu0  ;;  %v15850_v60 = vsub.s32 2, %v15884_v51 }
 0x850   :  { %v14262_v8 = vadd.f32 %v5430_v46, %v5423_v44 }
 0x852   :  { %v5439_v1 = vsel %vm181_vm3, %v14262_v8, 0.0 }
 0x853   :  { %5440 = vadd.xlane.f32.xlu1 %v5439_v1 }
 0x863   :  { %v5408_v54 = vpop.f32.mrf.mxu0 }
 0x864   :  { %v5424_v59 = vadd.f32 %v5408_v54, %v15887_v50  ;;  %v5504_v54 = vrot.slane %v14251_v61, %v15850_v60  ;;  %v15849_v50 = vsub.s32 3, %v15884_v51 }
 0x865   :  { %v12037_v24 = vpop.f32.mrf.mxu0 }
 0x866   :  { %v14267_v39 = vadd.f32 %v5430_v46, %v5424_v59 }
 0x867   :  { %v5411_v6 = vpop.f32.mrf.mxu0 }
 0x868   :  { %v5425_v16 = vadd.f32 %v5411_v6, %v15888_v14  ;;  %v5442_v55 = vsel %vm181_vm3, %v14267_v39, 0.0  ;;  %v5513_v14 = vrot.slane %v14251_v61, %v15849_v50 }
 0x869   :  { %5443 = vadd.xlane.f32.xlu0 %v5442_v55  ;;  %v12038_v52 = vpop.f32.mrf.mxu0 }
 0x86a   :  { %v14272_v42 = vadd.f32 %v5430_v46, %v5425_v16 }
 0x86b   :  { %v5416_v20 = vpop.f32.mrf.mxu0 }
 0x86c   :  { %v5426_v26 = vadd.f32 %v5416_v20, %v15889_v40  ;;  %v5445_v47 = vsel %vm181_vm3, %v14272_v42, 0.0 }
 0x86d   :  { %5446 = vadd.xlane.f32.xlu0 %v5445_v47  ;;  %v12041_v45 = vpop.f32.mrf.mxu0 }
 0x86e   :  { %v14277_v63 = vadd.f32 %v5430_v46, %v5426_v26  ;;  %v12418_v46 = vld [vmem:[%s15827_s5 + $0x8] sm:$0xff]  }
 0x86f   :  { %v5419_v13 = vpop.f32.mrf.mxu0  ;;  %12044 = vmatpush3.bf16.msra.mxu1 %v12418_v46 }
 0x870   :  { %v5448_v43 = vsel %vm194_vm5, %v14277_v63, 0.0  ;;  %12045 = vmatprep.subr.bf16.mxu1 %v15883_v29 }
 0x871   :  { %5449 = vadd.xlane.f32.xlu0 %v5448_v43  ;;  %v12042_v32 = vpop.f32.mrf.mxu0 }
 0x873   :  { %12046 = vmatpush3.bf16.msra.mxu1 %v12419_v19 }
 0x874   :  { %12087 = vmatprep.subr.bf16.mxu1 %v15883_v29 }
 0x8d8   :  { %v5438_v33 = vpop.xlane.xlu0 %5437 }
 0x8d9   :  { %v5451_v37 = vmul.f32 0.03125, %v5438_v33 }
 0x8db   :  { %v5456_v36 = vsub.f32 %v14257_v57, %v5451_v37 }
 0x8dc   :  { %v5441_v9 = vpop.xlane.xlu1 %5440 }
 0x8dd   :  { %v5452_v3 = vmul.f32 0.03125, %v5441_v9  ;;  %v5461_v30 = vmul.f32 %v5456_v36, %v5456_v36 }
 0x8df   :  { %v5457_v53 = vsub.f32 %v14262_v8, %v5452_v3  ;;  %v5466_v11 = vsel %vm181_vm3, %v5461_v30, 0.0 }
 0x8e0   :  { %5467 = vadd.xlane.f32.xlu1 %v5466_v11 }
 0x8e1   :  { %v5462_v5 = vmul.f32 %v5457_v53, %v5457_v53 }
 0x8e3   :  { %v5469_v21 = vsel %vm181_vm3, %v5462_v5, 0.0 }
 0x8e4   :  { %5470 = vadd.xlane.f32.xlu0 %v5469_v21 }
 0x8f2   :  { %v5444_v18 = vpop.xlane.xlu0 %5443 }
 0x8f3   :  { %v5453_v31 = vmul.f32 0.03125, %v5444_v18 }
 0x8f5   :  { %v5458_v25 = vsub.f32 %v14267_v39, %v5453_v31 }
 0x8f6   :  { %v5447_v22 = vpop.xlane.xlu0 %5446 }
 0x8f7   :  { %v5454_v34 = vmul.f32 0.03125, %v5447_v22  ;;  %v5463_v28 = vmul.f32 %v5458_v25, %v5458_v25 }
 0x8f9   :  { %v5459_v12 = vsub.f32 %v14272_v42, %v5454_v34  ;;  %v5472_v15 = vsel %vm181_vm3, %v5463_v28, 0.0 }
 0x8fa   :  { %5473 = vadd.xlane.f32.xlu1 %v5472_v15  ;;  %v5450_v49 = vpop.xlane.xlu0 %5449 }
 0x8fb   :  { %v5455_v35 = vmul.f32 0.03125, %v5450_v49  ;;  %v5464_v58 = vmul.f32 %v5459_v12, %v5459_v12  ;;  %v12422_v49 = vld [vmem:[%s15828_s6 + $0x28] sm:$0xff]  }
 0x8fd   :  { %v5460_v23 = vsub.f32 %v14277_v63, %v5455_v35  ;;  %v5475_v17 = vsel %vm181_vm3, %v5464_v58, 0.0  ;;  %v12423_v35 = vld [vmem:[%s15828_s6 + $0x20] sm:$0xff]   ;;  %v12424_v58 = vld [vmem:[%s15828_s6 + $0x18] sm:$0xff]  }
 0x8fe   :  { %5476 = vadd.xlane.f32.xlu0 %v5475_v17  ;;  %v12426_v17 = vld [vmem:[%s15828_s6 + $0x8] sm:$0xff]  }
 0x8ff   :  { %v5465_v62 = vmul.f32 %v5460_v23, %v5460_v23 }
 0x901   :  { %v5478_v4 = vsel %vm194_vm5, %v5465_v62, 0.0  ;;  %v12427_v62 = vld [vmem:[%s15828_s6] sm:$0xff]  }
 0x902   :  { %5479 = vadd.xlane.f32.xlu1 %v5478_v4  ;;  %v15848_v4 = vsub.s32 6, %v15884_v51 }
 0x904   :  { %v5529_v46 = vrot.slane %v14251_v61, %v15848_v4 }
 0x969   :  { %v5468_v7 = vpop.xlane.xlu1 %5467 }
 0x96a   :  { %v5481_v41 = vmul.f32 0.03125, %v5468_v7 }
 0x96c   :  { %v5486_v2 = vadd.f32 1e-05, %v5481_v41 }
 0x96d   :  { %v5471_v27 = vpop.xlane.xlu0 %5470 }
 0x96e   :  { %12550 = vrsqrt.f32 %v5486_v2  ;;  %v5482_v0 = vmul.f32 0.03125, %v5471_v27 }
 0x970   :  { %v5487_v44 = vadd.f32 1e-05, %v5482_v0 }
 0x972   :  { %12552 = vrsqrt.f32 %v5487_v44 }
 0x97b   :  { %v12551_v38 = vpop.eup %12550 }
 0x97c   :  { %v5496_v1 = vmul.f32 %v12551_v38, %v5456_v36 }
 0x97e   :  { %v5505_v6 = vmul.f32 %v5504_v54, %v5496_v1 }
 0x97f   :  { %v12553_v59 = vpop.eup %12552 }
 0x980   :  { %v5497_v24 = vmul.f32 %v12553_v59, %v5457_v53  ;;  %v5514_v20 = vadd.f32 %v5513_v14, %v5505_v6 }
 0x982   :  { %v5506_v55 = vmul.f32 %v5504_v54, %v5497_v24 }
 0x983   :  { %v5474_v16 = vpop.xlane.xlu1 %5473 }
 0x984   :  { %v5483_v52 = vmul.f32 0.03125, %v5474_v16  ;;  %v5515_v40 = vadd.f32 %v5513_v14, %v5506_v55 }
 0x986   :  { %v5488_v26 = vadd.f32 1e-05, %v5483_v52  ;;  %v5519_v47 = vpack.c.bf16 %v5515_v40, %v5514_v20 }
 0x987   :  { %v5477_v45 = vpop.xlane.xlu0 %5476 }
 0x988   :  { %12554 = vrsqrt.f32 %v5488_v26  ;;  %v5484_v13 = vmul.f32 0.03125, %v5477_v45  ;;  %12048 = vmatmul.mubr.msk.bf16.vlgmr.msra.gmra.mxu1 %vm181_vm3, %v5519_v47 }
 0x989   :  { %12051 = vmatprep.mubr.msk.bf16.mxu1 %vm12721_vm6, %v15883_v29 }
 0x98a   :  { %v5489_v43 = vadd.f32 1e-05, %v5484_v13 }
 0x98b   :  { %v5480_v32 = vpop.xlane.xlu1 %5479 }
 0x98c   :  { %12556 = vrsqrt.f32 %v5489_v43  ;;  %v5485_v33 = vmul.f32 0.03125, %v5480_v32 }
 0x98e   :  { %v5490_v37 = vadd.f32 1e-05, %v5485_v33 }
 0x990   :  { %12558 = vrsqrt.f32 %v5490_v37 }
 0x995   :  { %v12555_v36 = vpop.eup %12554 }
 0x996   :  { %v5498_v9 = vmul.f32 %v12555_v36, %v5458_v25  ;;  %v12420_v25 = vld [vmem:[%s15828_s6 + $0x38] sm:$0xff]  }
 0x997   :  { %12060 = vmatpush3.bf16.msra.mxu0 %v12420_v25 }
 0x998   :  { %v5507_v53 = vmul.f32 %v5504_v54, %v5498_v9  ;;  %12061 = vmatprep.subr.bf16.mxu0 %v15883_v29 }
 0x999   :  { %v12557_v3 = vpop.eup %12556 }
 0x99a   :  { %v5499_v30 = vmul.f32 %v12557_v3, %v5459_v12  ;;  %v5516_v21 = vadd.f32 %v5513_v14, %v5507_v53  ;;  %v12421_v12 = vld [vmem:[%s15828_s6 + $0x30] sm:$0xff]  }
 0x99b   :  { %12062 = vmatpush3.bf16.msra.mxu0 %v12421_v12 }
 0x99c   :  { %v5508_v11 = vmul.f32 %v5504_v54, %v5499_v30  ;;  %12063 = vmatprep.subr.bf16.mxu0 %v15883_v29 }
 0x99d   :  { %v12559_v5 = vpop.eup %12558 }
 0x99e   :  { %v5517_v18 = vadd.f32 %v5513_v14, %v5508_v11  ;;  %v5500_v31 = vmul.f32 %v12559_v5, %v5460_v23  ;;  %v12425_v23 = vld [vmem:[%s15828_s6 + $0x10] sm:$0xff]  }
 0x99f   :  { %12064 = vmatpush3.bf16.msra.mxu0 %v12422_v49 }
 0x9a0   :  { %v5520_v22 = vpack.c.bf16 %v5517_v18, %v5516_v21  ;;  %v5509_v34 = vmul.f32 %v5504_v54, %v5500_v31  ;;  %12065 = vmatprep.subr.bf16.mxu0 %v15883_v29 }
 0x9a2   :  { %12052 = vmatmul.mubr.msk.bf16.gmra.mxu1 %vm181_vm3, %v5520_v22  ;;  %v5518_v28 = vadd.f32 %v5513_v14, %v5509_v34 }
 0x9a3   :  { %12055 = vmatprep.mubr.msk.bf16.mxu1 %vm12721_vm6, %v15883_v29  ;;  %12066 = vmatpush3.bf16.msra.mxu0 %v12423_v35 }
 0x9a4   :  { %v5521_v15 = vpack.c.bf16 %v5518_v28, %v5518_v28  ;;  %12067 = vmatprep.subr.bf16.mxu0 %v15883_v29 }
 0x9a7   :  { %12068 = vmatpush3.bf16.msra.mxu0 %v12424_v58 }
 0x9a8   :  { %12069 = vmatprep.subr.bf16.mxu0 %v15883_v29 }
 0x9aa   :  { %12056 = vmatmul.mubr.msk.bf16.gmra.mxu1 %vm181_vm3, %v5521_v15 }
 0x9ab   :  { %12091 = vmatprep.mubr.msk.bf16.mxu1 %vm12721_vm6, %v15883_v29  ;;  %12070 = vmatpush3.bf16.msra.mxu0 %v12425_v23 }
 0x9ac   :  { %12071 = vmatprep.subr.bf16.mxu0 %v15883_v29 }
 0x9af   :  { %12072 = vmatpush3.bf16.msra.mxu0 %v12426_v17 }
 0x9b0   :  { %12073 = vmatprep.subr.bf16.mxu0 %v15883_v29 }
 0x9b3   :  { %12074 = vmatpush3.bf16.msra.mxu0 %v12427_v62 }
 0xa48   :  { %v5585_v19 = vpop.f32.mrf.mxu1 }
 0xa49   :  { %v5586_v7 = vadd.f32 %v5585_v19, %v5529_v46 }
 0xa4a   :  { %v12049_v41 = vpop.f32.mrf.mxu1 }
 0xa4b   :  { %v5612_v2 = vmul.f32 0.044715, %v5586_v7  ;;  %v5607_v37 = vmul.f32 0.5, %v5586_v7 }
 0xa4c   :  { %v5588_v27 = vpop.f32.mrf.mxu1 }
 0xa4d   :  { %v5617_v0 = vmul.f32 %v5612_v2, %v5586_v7  ;;  %v5589_v44 = vadd.f32 %v5588_v27, %v5529_v46 }
 0xa4e   :  { %v12050_v38 = vpop.f32.mrf.mxu1 }
 0xa4f   :  { %v5622_v1 = vmul.f32 %v5617_v0, %v5586_v7  ;;  %v5613_v54 = vmul.f32 0.044715, %v5589_v44  ;;  %v5608_v36 = vmul.f32 0.5, %v5589_v44 }
 0xa51   :  { %v5627_v59 = vadd.f32 %v5622_v1, %v5586_v7  ;;  %v5618_v24 = vmul.f32 %v5613_v54, %v5589_v44 }
 0xa53   :  { %v5632_v6 = vmul.f32 0.7978846, %v5627_v59  ;;  %v5623_v14 = vmul.f32 %v5618_v24, %v5589_v44 }
 0xa55   :  { %12560 = vtanh.f32 %v5632_v6  ;;  %v5628_v16 = vadd.f32 %v5623_v14, %v5589_v44 }
 0xa57   :  { %v5633_v55 = vmul.f32 0.7978846, %v5628_v16 }
 0xa59   :  { %12562 = vtanh.f32 %v5633_v55  ;;  %v15847_v55 = vsub.s32 7, %v15884_v51 }
 0xa62   :  { %v5593_v52 = vpop.f32.mrf.mxu1  ;;  %v12561_v20 = vpop.eup %12560 }
 0xa63   :  { %v5594_v40 = vadd.f32 %v5593_v52, %v5529_v46  ;;  %v5642_v13 = vadd.f32 1.0, %v12561_v20  ;;  %v5783_v52 = vrot.slane %v14251_v61, %v15847_v55 }
 0xa64   :  { %v12053_v26 = vpop.f32.mrf.mxu1 }
 0xa65   :  { %v5614_v47 = vmul.f32 0.044715, %v5594_v40  ;;  %v5647_v5 = vmul.f32 %v5642_v13, %v5607_v37  ;;  %v5609_v27 = vmul.f32 0.5, %v5594_v40 }
 0xa66   :  { %v5596_v45 = vpop.f32.mrf.mxu1  ;;  %v12563_v43 = vpop.eup %12562 }
 0xa67   :  { %v5619_v32 = vmul.f32 %v5614_v47, %v5594_v40  ;;  %v5597_v33 = vadd.f32 %v5596_v45, %v5529_v46  ;;  %v5643_v3 = vadd.f32 1.0, %v12563_v43 }
 0xa68   :  { %v12054_v9 = vpop.f32.mrf.mxu1 }
 0xa69   :  { %v5624_v30 = vmul.f32 %v5619_v32, %v5594_v40  ;;  %v5615_v53 = vmul.f32 0.044715, %v5597_v33  ;;  %v5648_v21 = vmul.f32 %v5643_v3, %v5608_v36  ;;  %v5610_v0 = vmul.f32 0.5, %v5597_v33 }
 0xa6a   :  { %v5601_v11 = vpop.f32.mrf.mxu1 }
 0xa6b   :  { %v5620_v18 = vmul.f32 %v5615_v53, %v5597_v33  ;;  %v5602_v31 = vadd.f32 %v5601_v11, %v5529_v46  ;;  %v5629_v22 = vadd.f32 %v5624_v30, %v5594_v40  ;;  %v5652_v28 = vpack.c.bf16 %v5648_v21, %v5647_v5 }
 0xa6c   :  { %v12057_v34 = vpop.f32.mrf.mxu1 }
 0xa6d   :  { %v5625_v15 = vmul.f32 %v5620_v18, %v5597_v33  ;;  %v5616_v25 = vmul.f32 0.044715, %v5602_v31  ;;  %v5634_v12 = vmul.f32 0.7978846, %v5629_v22  ;;  %12076 = vmatmul.mubr.bf16.vlgmr.msra.gmra.mxu0 %v5652_v28  ;;  %v5611_v6 = vmul.f32 0.5, %v5602_v31 }
 0xa6e   :  { %v5604_v49 = vpop.f32.mrf.mxu1  ;;  %12079 = vmatprep.mubr.msk.bf16.mxu0 %vm12721_vm6, %v15883_v29 }
 0xa6f   :  { %v5621_v35 = vmul.f32 %v5616_v25, %v5602_v31  ;;  %v5630_v58 = vadd.f32 %v5625_v15, %v5597_v33  ;;  %12564 = vtanh.f32 %v5634_v12 }
 0xa70   :  { %v12058_v23 = vpop.f32.mrf.mxu1 }
 0xa71   :  { %v5635_v17 = vmul.f32 0.7978846, %v5630_v58  ;;  %v5626_v62 = vmul.f32 %v5621_v35, %v5602_v31 }
 0xa73   :  { %12566 = vtanh.f32 %v5635_v17  ;;  %v5631_v19 = vadd.f32 %v5626_v62, %v5602_v31 }
 0xa75   :  { %v5636_v46 = vmul.f32 0.7978846, %v5631_v19 }
 0xa77   :  { %12568 = vtanh.f32 %v5636_v46 }
 0xa7c   :  { %v12565_v7 = vpop.eup %12564 }
 0xa7d   :  { %v5644_v41 = vadd.f32 1.0, %v12565_v7 }
 0xa7f   :  { %v5649_v38 = vmul.f32 %v5644_v41, %v5609_v27 }
 0xa80   :  { %v12567_v2 = vpop.eup %12566 }
 0xa81   :  { %v5645_v44 = vadd.f32 1.0, %v12567_v2 }
 0xa83   :  { %v5650_v1 = vmul.f32 %v5645_v44, %v5610_v0 }
 0xa84   :  { %v12569_v54 = vpop.eup %12568 }
 0xa85   :  { %v5653_v59 = vpack.c.bf16 %v5650_v1, %v5649_v38  ;;  %v5646_v24 = vadd.f32 1.0, %v12569_v54 }
 0xa87   :  { %12080 = vmatmul.mubr.bf16.gmra.mxu0 %v5653_v59  ;;  %v5651_v14 = vmul.f32 %v5646_v24, %v5611_v6 }
 0xa88   :  { %12083 = vmatprep.mubr.msk.bf16.mxu0 %vm12721_vm6, %v15883_v29 }
 0xa89   :  { %v5654_v16 = vpack.c.bf16 %v5651_v14, %v5651_v14  ;;  %v12428_v14 = vld [vmem:[%s15825_s3 + $0x18] sm:$0xff]  }
 0xa8a   :  { %12088 = vmatpush3.bf16.msra.mxu1 %v12428_v14 }
 0xa8b   :  { %12089 = vmatprep.subr.bf16.mxu1 %v15883_v29 }
 0xa8f   :  { %12084 = vmatmul.mubr.bf16.gmra.mxu0 %v5654_v16  ;;  %v12429_v16 = vld [vmem:[%s15825_s3 + $0x10] sm:$0xff]  }
 0xa90   :  { %12090 = vmatpush3.bf16.msra.mxu1 %v12429_v16 }
 0xb2d   :  { %v5753_v20 = vpop.f32.mrf.mxu0 }
 0xb2e   :  { %v5775_v40 = vadd.f32 %v5753_v20, %v14257_v57 }
 0xb2f   :  { %v12077_v26 = vpop.f32.mrf.mxu0 }
 0xb30   :  { %v14360_v47 = vadd.f32 %v5783_v52, %v5775_v40 }
 0xb31   :  { %v5756_v45 = vpop.f32.mrf.mxu0 }
 0xb32   :  { %15890 = vst [vmem:[#allocation5_spill] sm:$0xff] %v14360_v47  ;;  %v5776_v13 = vadd.f32 %v5756_v45, %v14262_v8  ;;  %v5791_v43 = vsel %vm181_vm3, %v14360_v47, 0.0 }
 0xb33   :  { %5792 = vadd.xlane.f32.xlu0 %v5791_v43  ;;  %v12078_v32 = vpop.f32.mrf.mxu0  ;;  %v11562_v43 = vld [vmem:[%s15829_s7 + $0x8] sm:$0xff] }
 0xb34   :  { %v14365_v33 = vadd.f32 %v5783_v52, %v5776_v13 }
 0xb36   :  { %15891 = vst [vmem:[#allocation7_spill] sm:$0xff] %v14365_v33  ;;  %v5794_v37 = vsel %vm181_vm3, %v14365_v33, 0.0 }
 0xb37   :  { %5795 = vadd.xlane.f32.xlu1 %v5794_v37  ;;  %v15895_v37 = vsub.s32 0, %v15884_v51 }
 0xb47   :  { %v5761_v61 = vpop.f32.mrf.mxu0 }
 0xb48   :  { %v5777_v57 = vadd.f32 %v5761_v61, %v14267_v39  ;;  %v5859_v61 = vrot.slane %v11562_v43, %v15895_v37 }
 0xb49   :  { %v12081_v36 = vpop.f32.mrf.mxu0 }
 0xb4a   :  { %v14370_v9 = vadd.f32 %v5783_v52, %v5777_v57 }
 0xb4b   :  { %v5764_v3 = vpop.f32.mrf.mxu0 }
 0xb4c   :  { %15892 = vst [vmem:[#allocation8_spill] sm:$0xff] %v14370_v9  ;;  %v5778_v8 = vadd.f32 %v5764_v3, %v14272_v42  ;;  %v5797_v30 = vsel %vm181_vm3, %v14370_v9, 0.0  ;;  %v15896_v3 = vsub.s32 1, %v15884_v51 }
 0xb4d   :  { %5798 = vadd.xlane.f32.xlu0 %v5797_v30  ;;  %v12082_v53 = vpop.f32.mrf.mxu0 }
 0xb4e   :  { %v14375_v11 = vadd.f32 %v5783_v52, %v5778_v8  ;;  %v5868_v8 = vrot.slane %v11562_v43, %v15896_v3 }
 0xb4f   :  { %v5769_v5 = vpop.f32.mrf.mxu0 }
 0xb50   :  { %15893 = vst [vmem:[#allocation9_spill] sm:$0xff] %v14375_v11  ;;  %v5779_v21 = vadd.f32 %v5769_v5, %v14277_v63  ;;  %v5800_v18 = vsel %vm181_vm3, %v14375_v11, 0.0 }
 0xb51   :  { %5801 = vadd.xlane.f32.xlu1 %v5800_v18  ;;  %v12085_v39 = vpop.f32.mrf.mxu0 }
 0xb52   :  { %v14380_v31 = vadd.f32 %v5783_v52, %v5779_v21 }
 0xb53   :  { %v5772_v22 = vpop.f32.mrf.mxu0 }
 0xb54   :  { %15894 = vst [vmem:[#allocation6_spill] sm:$0xff] %v14380_v31  ;;  %v5803_v42 = vsel %vm194_vm5, %v14380_v31, 0.0 }
 0xb55   :  { %5804 = vadd.xlane.f32.xlu0 %v5803_v42  ;;  %v12086_v34 = vpop.f32.mrf.mxu0 }
 0xbbc   :  { %v5793_v28 = vpop.xlane.xlu0 %5792 }
 0xbbd   :  { %v5806_v15 = vmul.f32 0.03125, %v5793_v28 }
 0xbbf   :  { %v5811_v25 = vsub.f32 %v14360_v47, %v5806_v15 }
 0xbc0   :  { %v5796_v12 = vpop.xlane.xlu1 %5795 }
 0xbc1   :  { %v5807_v49 = vmul.f32 0.03125, %v5796_v12  ;;  %v5816_v63 = vmul.f32 %v5811_v25, %v5811_v25 }
 0xbc3   :  { %v5812_v35 = vsub.f32 %v14365_v33, %v5807_v49  ;;  %v5821_v58 = vsel %vm181_vm3, %v5816_v63, 0.0 }
 0xbc4   :  { %5822 = vadd.xlane.f32.xlu1 %v5821_v58 }
 0xbc5   :  { %v5817_v23 = vmul.f32 %v5812_v35, %v5812_v35 }
 0xbc7   :  { %v5824_v17 = vsel %vm181_vm3, %v5817_v23, 0.0 }
 0xbc8   :  { %5825 = vadd.xlane.f32.xlu0 %v5824_v17 }
 0xbd6   :  { %v5799_v62 = vpop.xlane.xlu0 %5798 }
 0xbd7   :  { %v5808_v19 = vmul.f32 0.03125, %v5799_v62 }
 0xbd9   :  { %v5813_v46 = vsub.f32 %v14370_v9, %v5808_v19 }
 0xbda   :  { %v5802_v7 = vpop.xlane.xlu1 %5801 }
 0xbdb   :  { %v5809_v41 = vmul.f32 0.03125, %v5802_v7  ;;  %v5818_v2 = vmul.f32 %v5813_v46, %v5813_v46 }
 0xbdd   :  { %v5814_v27 = vsub.f32 %v14375_v11, %v5809_v41  ;;  %v5827_v0 = vsel %vm181_vm3, %v5818_v2, 0.0 }
 0xbde   :  { %5828 = vadd.xlane.f32.xlu1 %v5827_v0  ;;  %v5805_v44 = vpop.xlane.xlu0 %5804 }
 0xbdf   :  { %v5810_v38 = vmul.f32 0.03125, %v5805_v44  ;;  %v5819_v1 = vmul.f32 %v5814_v27, %v5814_v27 }
 0xbe1   :  { %v5815_v54 = vsub.f32 %v14380_v31, %v5810_v38  ;;  %v5830_v59 = vsel %vm181_vm3, %v5819_v1, 0.0 }
 0xbe2   :  { %5831 = vadd.xlane.f32.xlu0 %v5830_v59 }
 0xbe3   :  { %v5820_v24 = vmul.f32 %v5815_v54, %v5815_v54 }
 0xbe5   :  { %v5833_v6 = vsel %vm194_vm5, %v5820_v24, 0.0 }
 0xbe6   :  { %5834 = vadd.xlane.f32.xlu1 %v5833_v6 }
 0xc4d   :  { %v5823_v52 = vpop.xlane.xlu1 %5822 }
 0xc4e   :  { %v5836_v20 = vmul.f32 0.03125, %v5823_v52 }
 0xc50   :  { %v5841_v40 = vadd.f32 1e-05, %v5836_v20 }
 0xc51   :  { %v5826_v26 = vpop.xlane.xlu0 %5825 }
 0xc52   :  { %12570 = vrsqrt.f32 %v5841_v40  ;;  %v5837_v45 = vmul.f32 0.03125, %v5826_v26 }
 0xc54   :  { %v5842_v13 = vadd.f32 1e-05, %v5837_v45 }
 0xc56   :  { %12572 = vrsqrt.f32 %v5842_v13 }
 0xc5f   :  { %v12571_v32 = vpop.eup %12570 }
 0xc60   :  { %v5851_v57 = vmul.f32 %v12571_v32, %v5811_v25 }
 0xc62   :  { %v5860_v30 = vmul.f32 %v5859_v61, %v5851_v57 }
 0xc63   :  { %v12573_v36 = vpop.eup %12572 }
 0xc64   :  { %v5852_v53 = vmul.f32 %v12573_v36, %v5812_v35  ;;  %v5869_v39 = vadd.f32 %v5868_v8, %v5860_v30 }
 0xc66   :  { %v5861_v5 = vmul.f32 %v5859_v61, %v5852_v53 }
 0xc67   :  { %v5829_v21 = vpop.xlane.xlu1 %5828 }
 0xc68   :  { %v5838_v18 = vmul.f32 0.03125, %v5829_v21  ;;  %v5870_v22 = vadd.f32 %v5868_v8, %v5861_v5 }
 0xc6a   :  { %v5843_v42 = vadd.f32 1e-05, %v5838_v18  ;;  %v5874_v34 = vpack.c.bf16 %v5870_v22, %v5869_v39 }
 0xc6b   :  { %v5832_v28 = vpop.xlane.xlu0 %5831 }
 0xc6c   :  { %12574 = vrsqrt.f32 %v5843_v42  ;;  %v5839_v15 = vmul.f32 0.03125, %v5832_v28  ;;  %12092 = vmatmul.mubr.msk.bf16.vlgmr.msra.gmra.mxu1 %vm181_vm3, %v5874_v34 }
 0xc6d   :  { %12095 = vmatprep.mubr.msk.bf16.mxu1 %vm12721_vm6, %v15883_v29 }
 0xc6e   :  { %v5844_v12 = vadd.f32 1e-05, %v5839_v15 }
 0xc6f   :  { %v5835_v25 = vpop.xlane.xlu1 %5834 }
 0xc70   :  { %12576 = vrsqrt.f32 %v5844_v12  ;;  %v5840_v49 = vmul.f32 0.03125, %v5835_v25 }
 0xc72   :  { %v5845_v63 = vadd.f32 1e-05, %v5840_v49 }
 0xc74   :  { %12578 = vrsqrt.f32 %v5845_v63 }
 0xc79   :  { %v12575_v35 = vpop.eup %12574 }
 0xc7a   :  { %v5853_v58 = vmul.f32 %v12575_v35, %v5813_v46  ;;  %v15897_v46 = vsub.s32 4, %v15884_v51 }
 0xc7c   :  { %v5862_v62 = vmul.f32 %v5859_v61, %v5853_v58 }
 0xc7d   :  { %v12577_v23 = vpop.eup %12576 }
 0xc7e   :  { %v5854_v17 = vmul.f32 %v12577_v23, %v5814_v27  ;;  %v5871_v41 = vadd.f32 %v5868_v8, %v5862_v62  ;;  %v14417_v27 = vrot.slane %v11562_v43, %v15897_v46 }
 0xc80   :  { %v5863_v19 = vmul.f32 %v5859_v61, %v5854_v17 }
 0xc81   :  { %v12579_v7 = vpop.eup %12578 }
 0xc82   :  { %v5872_v2 = vadd.f32 %v5868_v8, %v5863_v19  ;;  %v5855_v0 = vmul.f32 %v12579_v7, %v5815_v54 }
 0xc84   :  { %v5875_v44 = vpack.c.bf16 %v5872_v2, %v5871_v41  ;;  %v5864_v38 = vmul.f32 %v5859_v61, %v5855_v0 }
 0xc86   :  { %12096 = vmatmul.mubr.msk.bf16.gmra.mxu1 %vm181_vm3, %v5875_v44  ;;  %v5873_v1 = vadd.f32 %v5868_v8, %v5864_v38 }
 0xc87   :  { %12099 = vmatprep.mubr.msk.bf16.mxu1 %vm12721_vm6, %v15883_v29 }
 0xc88   :  { %v5876_v59 = vpack.c.bf16 %v5873_v1, %v5873_v1 }
 0xc8e   :  { %12100 = vmatmul.mubr.msk.bf16.gmra.mxu1 %vm181_vm3, %v5876_v59 }
 0xd2c   :  { %v5941_v24 = vpop.f32.mrf.mxu1 }
 0xd2d   :  { %v14420_v6 = vadd.f32 %v5941_v24, %v14417_v27 }
 0xd2e   :  { %v12093_v54 = vpop.f32.mrf.mxu1 }
 0xd2f   :  { %v5998_v14 = vcombine.high %v14420_v6, %v14420_v6  ;;  %v6005_v16 = vrot.slane %v14420_v6, %v12908_v56  ;;  %5968 = vrot.lane.b32.xlu0 %v14420_v6, %s12723_s14 }
 0xd30   :  { %v5944_v52 = vpop.f32.mrf.mxu1 }
 0xd31   :  { %v6012_v20 = vrot.slane %v5998_v14, %v12908_v56  ;;  %v6013_v40 = vcombine.high %v6005_v16, %v6005_v16  ;;  %v14430_v26 = vadd.f32 %v5944_v52, %v14417_v27  ;;  %v6021_v43 = vrot.slane %v6005_v16, %v12908_v56 }
 0xd32   :  { %v12094_v45 = vpop.f32.mrf.mxu1 }
 0xd33   :  { %v6014_v13 = vcombine.high %v6012_v20, %v6012_v20  ;;  %v6035_v32 = vrot.slane %v6013_v40, %v12908_v56  ;;  %v6047_v37 = vcombine.high %v14430_v26, %v14430_v26  ;;  %5970 = vrot.lane.b32.xlu1 %v14430_v26, %s12723_s14  ;;  %v6028_v61 = vrot.slane %v6012_v20, %v12908_v56 }
 0xd34   :  { %v6054_v57 = vrot.slane %v14430_v26, %v12908_v56 }
 0xd35   :  { %v6042_v36 = vrot.slane %v6014_v13, %v12908_v56  ;;  %v6870_v3 = vcombine.low %v6021_v43, %v6035_v32  ;;  %v11572_v8 = vcombine.high %v6021_v43, %v6035_v32  ;;  %v6061_v30 = vrot.slane %v6047_v37, %v12908_v56 }
 0xd36   :  { %v6062_v53 = vcombine.high %v6054_v57, %v6054_v57  ;;  %v6070_v39 = vrot.slane %v6054_v57, %v12908_v56 }
 0xd37   :  { %v6063_v5 = vcombine.high %v6061_v30, %v6061_v30  ;;  %v6872_v21 = vcombine.low %v6028_v61, %v6042_v36  ;;  %v11573_v18 = vcombine.high %v6028_v61, %v6042_v36  ;;  %v6077_v22 = vrot.slane %v6061_v30, %v12908_v56 }
 0xd38   :  { %v6084_v42 = vrot.slane %v6062_v53, %v12908_v56  ;;  %v6880_v34 = vrot.slane %v6870_v3, %v12908_v56  ;;  %v6887_v15 = vrot.slane %v11572_v8, %v12908_v56 }
 0xd39   :  { %v6091_v28 = vrot.slane %v6063_v5, %v12908_v56  ;;  %v6894_v12 = vrot.slane %v6872_v21, %v12908_v56  ;;  %v6901_v25 = vrot.slane %v11573_v18, %v12908_v56 }
 0xd3a   :  { %v6919_v49 = vcombine.low %v6070_v39, %v6084_v42  ;;  %v11574_v63 = vcombine.high %v6070_v39, %v6084_v42  ;;  %v6902_v19 = vcombine.low %v6880_v34, %v6887_v15 }
 0xd3b   :  { %v6903_v35 = vcombine.low %v6894_v12, %v6901_v25  ;;  %v6921_v58 = vcombine.low %v6077_v22, %v6091_v28  ;;  %v11575_v23 = vcombine.high %v6077_v22, %v6091_v28 }
 0xd3c   :  { %v6929_v17 = vrot.slane %v6919_v49, %v12908_v56  ;;  %v6936_v62 = vrot.slane %v11574_v63, %v12908_v56  ;;  %v6910_v38 = vrot.slane %v6902_v19, %v12908_v56 }
 0xd3d   :  { %v6943_v7 = vrot.slane %v6921_v58, %v12908_v56  ;;  %v6950_v41 = vrot.slane %v11575_v23, %v12908_v56  ;;  %v6917_v0 = vrot.slane %v6903_v35, %v12908_v56 }
 0xd3e   :  { %v6951_v2 = vcombine.low %v6929_v17, %v6936_v62 }
 0xd3f   :  { %v6952_v44 = vcombine.low %v6943_v7, %v6950_v41  ;;  %v6918_v46 = vcombine.low %v6910_v38, %v6917_v0 }
 0xd40   :  { %v6959_v1 = vrot.slane %v6951_v2, %v12908_v56 }
 0xd41   :  { %v6966_v59 = vrot.slane %v6952_v44, %v12908_v56 }
 0xd43   :  { %v6967_v24 = vcombine.low %v6959_v1, %v6966_v59 }
 0xd45   :  { %v14459_v14 = vpack.c.bf16 %v6967_v24, %v6918_v46 }
 0xd46   :  { %v5949_v54 = vpop.f32.mrf.mxu1 }
 0xd47   :  { %v14462_v16 = vadd.f32 %v5949_v54, %v14417_v27  ;;  %12107 = vmatprep.mubr.msk.bf16.mxu1 %vm2204_vm7, %v14459_v14 }
 0xd48   :  { %v12097_v52 = vpop.f32.mrf.mxu1 }
 0xd49   :  { %v6096_v20 = vcombine.high %v14462_v16, %v14462_v16  ;;  %v6103_v40 = vrot.slane %v14462_v16, %v12908_v56  ;;  %5972 = vrot.lane.b32.xlu1 %v14462_v16, %s12723_s14 }
 0xd4a   :  { %v5952_v45 = vpop.f32.mrf.mxu1 }
 0xd4b   :  { %v6110_v13 = vrot.slane %v6096_v20, %v12908_v56  ;;  %v6111_v43 = vcombine.high %v6103_v40, %v6103_v40  ;;  %v14474_v32 = vrot.slane %v6103_v40, %v12908_v56  ;;  %v14477_v37 = vadd.f32 %v5952_v45, %v14417_v27 }
 0xd4c   :  { %v12098_v61 = vpop.f32.mrf.mxu1 }
 0xd4d   :  { %v6112_v57 = vcombine.high %v6110_v13, %v6110_v13  ;;  %v6126_v36 = vrot.slane %v6110_v13, %v12908_v56  ;;  %v6133_v3 = vrot.slane %v6111_v43, %v12908_v56  ;;  %5974 = vrot.lane.b32.xlu1 %v14477_v37, %s12723_s14  ;;  %v6141_v8 = vcombine.high %v14474_v32, %v14474_v32 }
 0xd4e   :  { %v6145_v30 = vcombine.high %v14477_v37, %v14477_v37  ;;  %v6152_v53 = vrot.slane %v14477_v37, %v12908_v56  ;;  %v5957_v5 = vpop.f32.mrf.mxu1 }
 0xd4f   :  { %v6140_v21 = vrot.slane %v6112_v57, %v12908_v56  ;;  %v6142_v18 = vcombine.high %v6126_v36, %v6126_v36  ;;  %v6143_v39 = vcombine.high %v6133_v3, %v6133_v3  ;;  %v14491_v22 = vadd.f32 %v5957_v5, %v14417_v27 }
 0xd50   :  { %v6159_v42 = vrot.slane %v6145_v30, %v12908_v56  ;;  %v6160_v34 = vcombine.high %v6152_v53, %v6152_v53  ;;  %v6168_v28 = vrot.slane %v6152_v53, %v12908_v56  ;;  %v12101_v15 = vpop.f32.mrf.mxu1  ;;  %v6982_v62 = vcombine.low %v6133_v3, %v6141_v8 }
 0xd51   :  { %v6144_v12 = vcombine.high %v6140_v21, %v6140_v21  ;;  %v6200_v25 = vrot.slane %v14491_v22, %v12908_v56  ;;  %5978 = vrot.lane.b32.xlu1 %v14420_v6, %s12724_s15  ;;  %5976 = vrot.lane.b32.xlu0 %v14491_v22, %s12723_s14  ;;  %v6983_v49 = vcombine.low %v6143_v39, %v6126_v36 }
 0xd52   :  { %v6161_v63 = vcombine.high %v6159_v42, %v6159_v42  ;;  %v6175_v27 = vrot.slane %v6159_v42, %v12908_v56  ;;  %v6182_v35 = vrot.slane %v6160_v34, %v12908_v56  ;;  %v6190_v58 = vcombine.high %v6168_v28, %v6168_v28  ;;  %v5960_v23 = vpop.f32.mrf.mxu1 }
 0xd53   :  { %v6985_v17 = vcombine.low %v6144_v12, %v6168_v28  ;;  %v6984_v19 = vcombine.low %v6140_v21, %v6142_v18  ;;  %v6208_v0 = vrot.slane %v6200_v25, %v12908_v56  ;;  %v6999_v38 = vrot.slane %v6983_v49, %v12908_v56 }
 0xd54   :  { %v6191_v7 = vcombine.high %v6175_v27, %v6175_v27  ;;  %v6192_v41 = vcombine.high %v6182_v35, %v6182_v35  ;;  %v6189_v2 = vrot.slane %v6161_v63, %v12908_v56  ;;  %v12102_v44 = vpop.f32.mrf.mxu1  ;;  %v7031_v24 = vcombine.low %v6182_v35, %v6190_v58 }
 0xd55   :  { %5982 = vrot.lane.b32.xlu1 %v14462_v16, %s12724_s15  ;;  %5980 = vrot.lane.b32.xlu0 %v14430_v26, %s12724_s15  ;;  %v7006_v1 = vrot.slane %v6984_v19, %v12908_v56  ;;  %v7013_v59 = vrot.slane %v6985_v17, %v12908_v56  ;;  %v6201_v20 = vcombine.high %v6200_v25, %v6200_v25 }
 0xd56   :  { %v6193_v46 = vcombine.high %v6189_v2, %v6189_v2  ;;  %v7032_v54 = vcombine.low %v6192_v41, %v6175_v27  ;;  %v7033_v52 = vcombine.low %v6189_v2, %v6191_v7  ;;  %v6992_v40 = vrot.slane %v6982_v62, %v12908_v56 }
 0xd57   :  { %v7015_v13 = vcombine.low %v7006_v1, %v7013_v59  ;;  %v7041_v43 = vrot.slane %v7031_v24, %v12908_v56  ;;  %v6974_v30 = vrot.slane %v14474_v32, %v12908_v56  ;;  %v6215_v53 = vrot.slane %v6201_v20, %v12908_v56 }
 0xd58   :  { %v7034_v45 = vcombine.low %v6193_v46, %v6208_v0  ;;  %v7048_v61 = vrot.slane %v7032_v54, %v12908_v56  ;;  %v7014_v36 = vcombine.low %v6992_v40, %v6999_v38  ;;  %v7055_v3 = vrot.slane %v7033_v52, %v12908_v56 }
 0xd59   :  { %5986 = vrot.lane.b32.xlu1 %v14491_v22, %s12724_s15  ;;  %5984 = vrot.lane.b32.xlu0 %v14477_v37, %s12724_s15  ;;  %v7029_v5 = vrot.slane %v7015_v13, %v12908_v56  ;;  %v6981_v34 = vrot.slane %v6974_v30, %v12908_v56  ;;  %v7086_v32 = vrot.slane %v6215_v53, %v12908_v56 }
 0xd5a   :  { %v7062_v57 = vrot.slane %v7034_v45, %v12908_v56  ;;  %v7063_v8 = vcombine.low %v7041_v43, %v7048_v61  ;;  %v7022_v18 = vrot.slane %v7014_v36, %v12908_v56 }
 0xd5b   :  { %v7093_v12 = vrot.slane %v7086_v32, %v12908_v56 }
 0xd5c   :  { %v7064_v21 = vcombine.low %v7055_v3, %v7062_v57  ;;  %v7071_v39 = vrot.slane %v7063_v8, %v12908_v56  ;;  %v7030_v28 = vcombine.low %v7022_v18, %v7029_v5 }
 0xd5d   :  { %5990 = vrot.lane.b32.xlu1 %v14430_v26, %s12725_s16  ;;  %5988 = vrot.lane.b32.xlu0 %v14420_v6, %s12725_s16  ;;  %v14540_v6 = vpack.c.bf16 %v6981_v34, %v6981_v34  ;;  %v14549_v25 = vpack.c.bf16 %v7093_v12, %v7093_v12 }
 0xd5e   :  { %v7078_v42 = vrot.slane %v7064_v21, %v12908_v56 }
 0xd60   :  { %v7079_v15 = vcombine.low %v7071_v39, %v7078_v42 }
 0xd61   :  { %5994 = vrot.lane.b32.xlu1 %v14477_v37, %s12725_s16  ;;  %5992 = vrot.lane.b32.xlu0 %v14462_v16, %s12725_s16 }
 0xd62   :  { %v14538_v26 = vpack.c.bf16 %v7079_v15, %v7030_v28 }
 0xd64   :  { %12115 = vmatprep.mubr.msk.bf16.mxu0 %vm2204_vm7, %v14538_v26 }
 0xd65   :  { %7810 = vrot.lane.b32.xlu1 %v14540_v6, %s12726_s17  ;;  %5996 = vrot.lane.b32.xlu0 %v14491_v22, %s12725_s16  ;;  %s12732_s16 = smov [#allocation2]  }
 0xd69   :  { %7808 = vrot.lane.b32.xlu0 %v14459_v14, %s12726_s17  ;;  %7876 = vrot.lane.b32.xlu1 %v14549_v25, %s12726_s17 }
 0xd6d   :  { %7874 = vrot.lane.b32.xlu0 %v14538_v26, %s12726_s17 }
 0xda1   :  { %v5969_v16 = vpop.permute.xlu0 %5968 }
 0xda2   :  { %v6216_v37 = vcombine.high %v5969_v16, %v5969_v16  ;;  %v6223_v49 = vrot.slane %v5969_v16, %v12908_v56 }
 0xda4   :  { %v6230_v63 = vrot.slane %v6216_v37, %v12908_v56  ;;  %v6231_v27 = vcombine.high %v6223_v49, %v6223_v49  ;;  %v6239_v58 = vrot.slane %v6223_v49, %v12908_v56 }
 0xda5   :  { %v5971_v35 = vpop.permute.xlu1 %5970 }
 0xda6   :  { %v6232_v22 = vcombine.high %v6230_v63, %v6230_v63  ;;  %v6253_v23 = vrot.slane %v6231_v27, %v12908_v56  ;;  %v6265_v17 = vcombine.high %v5971_v35, %v5971_v35  ;;  %v6246_v62 = vrot.slane %v6230_v63, %v12908_v56 }
 0xda7   :  { %v6272_v19 = vrot.slane %v5971_v35, %v12908_v56 }
 0xda8   :  { %v6260_v7 = vrot.slane %v6232_v22, %v12908_v56  ;;  %v7094_v41 = vcombine.low %v6239_v58, %v6253_v23  ;;  %v11576_v2 = vcombine.high %v6239_v58, %v6253_v23  ;;  %v6279_v0 = vrot.slane %v6265_v17, %v12908_v56 }
 0xda9   :  { %v6280_v44 = vcombine.high %v6272_v19, %v6272_v19  ;;  %v6288_v46 = vrot.slane %v6272_v19, %v12908_v56 }
 0xdaa   :  { %v7096_v38 = vcombine.low %v6246_v62, %v6260_v7  ;;  %v11577_v1 = vcombine.high %v6246_v62, %v6260_v7  ;;  %v6281_v59 = vcombine.high %v6279_v0, %v6279_v0  ;;  %v7104_v54 = vrot.slane %v7094_v41, %v12908_v56 }
 0xdab   :  { %v6302_v24 = vrot.slane %v6280_v44, %v12908_v56  ;;  %v7111_v52 = vrot.slane %v11576_v2, %v12908_v56  ;;  %v6295_v45 = vrot.slane %v6279_v0, %v12908_v56 }
 0xdac   :  { %v7118_v20 = vrot.slane %v7096_v38, %v12908_v56  ;;  %v7125_v40 = vrot.slane %v11577_v1, %v12908_v56  ;;  %v6309_v13 = vrot.slane %v6281_v59, %v12908_v56 }
 0xdad   :  { %v7143_v43 = vcombine.low %v6288_v46, %v6302_v24  ;;  %v11578_v61 = vcombine.high %v6288_v46, %v6302_v24  ;;  %v7126_v53 = vcombine.low %v7104_v54, %v7111_v52 }
 0xdae   :  { %v7127_v57 = vcombine.low %v7118_v20, %v7125_v40  ;;  %v7145_v36 = vcombine.low %v6295_v45, %v6309_v13  ;;  %v11579_v3 = vcombine.high %v6295_v45, %v6309_v13 }
 0xdaf   :  { %v7153_v8 = vrot.slane %v7143_v43, %v12908_v56  ;;  %v7160_v30 = vrot.slane %v11578_v61, %v12908_v56  ;;  %v7134_v34 = vrot.slane %v7126_v53, %v12908_v56 }
 0xdb0   :  { %v7167_v5 = vrot.slane %v7145_v36, %v12908_v56  ;;  %v7174_v21 = vrot.slane %v11579_v3, %v12908_v56  ;;  %v7141_v39 = vrot.slane %v7127_v57, %v12908_v56 }
 0xdb1   :  { %v7175_v18 = vcombine.low %v7153_v8, %v7160_v30 }
 0xdb2   :  { %v7176_v42 = vcombine.low %v7167_v5, %v7174_v21  ;;  %v7142_v15 = vcombine.low %v7134_v34, %v7141_v39 }
 0xdb3   :  { %v7183_v32 = vrot.slane %v7175_v18, %v12908_v56 }
 0xdb4   :  { %v7190_v28 = vrot.slane %v7176_v42, %v12908_v56 }
 0xdb6   :  { %v7191_v12 = vcombine.low %v7183_v32, %v7190_v28 }
 0xdb8   :  { %v14581_v16 = vpack.c.bf16 %v7191_v12, %v7142_v15 }
 0xdba   :  { %7940 = vrot.lane.b32.xlu0 %v14581_v16, %s12726_s17 }
 0xdbb   :  { %v5973_v37 = vpop.permute.xlu1 %5972 }
 0xdbc   :  { %v6314_v49 = vcombine.high %v5973_v37, %v5973_v37  ;;  %v6321_v63 = vrot.slane %v5973_v37, %v12908_v56 }
 0xdbe   :  { %v6328_v27 = vrot.slane %v6314_v49, %v12908_v56  ;;  %v6329_v35 = vcombine.high %v6321_v63, %v6321_v63  ;;  %v6337_v22 = vrot.slane %v6321_v63, %v12908_v56 }
 0xdbf   :  { %v5975_v58 = vpop.permute.xlu1 %5974 }
 0xdc0   :  { %v6330_v23 = vcombine.high %v6328_v27, %v6328_v27  ;;  %v6344_v17 = vrot.slane %v6328_v27, %v12908_v56  ;;  %v6351_v62 = vrot.slane %v6329_v35, %v12908_v56  ;;  %v6359_v19 = vcombine.high %v6337_v22, %v6337_v22 }
 0xdc1   :  { %v7198_v7 = vrot.slane %v6337_v22, %v12908_v56  ;;  %v6363_v41 = vcombine.high %v5975_v58, %v5975_v58  ;;  %v6370_v2 = vrot.slane %v5975_v58, %v12908_v56 }
 0xdc2   :  { %v6358_v0 = vrot.slane %v6330_v23, %v12908_v56  ;;  %v6360_v44 = vcombine.high %v6344_v17, %v6344_v17  ;;  %v6361_v38 = vcombine.high %v6351_v62, %v6351_v62  ;;  %v14593_v1 = vcombine.low %v6351_v62, %v6359_v19 }
 0xdc3   :  { %v6377_v59 = vrot.slane %v6363_v41, %v12908_v56  ;;  %v6378_v46 = vcombine.high %v6370_v2, %v6370_v2  ;;  %v6386_v24 = vrot.slane %v6370_v2, %v12908_v56  ;;  %v5979_v54 = vpop.permute.xlu1 %5978  ;;  %v5977_v45 = vpop.permute.xlu0 %5976  ;;  %v7205_v30 = vrot.slane %v7198_v7, %v12908_v56 }
 0xdc4   :  { %v14597_v52 = vcombine.low %v6361_v38, %v6344_v17  ;;  %v7208_v20 = vcombine.low %v6358_v0, %v6360_v44  ;;  %v6362_v40 = vcombine.high %v6358_v0, %v6358_v0  ;;  %v6434_v8 = vcombine.high %v5979_v54, %v5979_v54 }
 0xdc5   :  { %v6379_v13 = vcombine.high %v6377_v59, %v6377_v59  ;;  %v6393_v43 = vrot.slane %v6377_v59, %v12908_v56  ;;  %v6400_v61 = vrot.slane %v6378_v46, %v12908_v56  ;;  %v6408_v57 = vcombine.high %v6386_v24, %v6386_v24 }
 0xdc6   :  { %v7209_v3 = vcombine.low %v6362_v40, %v6386_v24  ;;  %v6441_v34 = vrot.slane %v5979_v54, %v12908_v56  ;;  %v6448_v32 = vrot.slane %v6434_v8, %v12908_v56  ;;  %v6418_v28 = vrot.slane %v5977_v45, %v12908_v56 }
 0xdc7   :  { %v6407_v53 = vrot.slane %v6379_v13, %v12908_v56  ;;  %v6409_v5 = vcombine.high %v6393_v43, %v6393_v43  ;;  %v6410_v21 = vcombine.high %v6400_v61, %v6400_v61  ;;  %v14605_v18 = vcombine.low %v6400_v61, %v6408_v57  ;;  %v5983_v39 = vpop.permute.xlu1 %5982  ;;  %v5981_v58 = vpop.permute.xlu0 %5980 }
 0xdc8   :  { %v7237_v42 = vrot.slane %v7209_v3, %v12908_v56  ;;  %v7230_v12 = vrot.slane %v7208_v20, %v12908_v56  ;;  %v6449_v27 = vcombine.high %v6441_v34, %v6441_v34  ;;  %v6450_v35 = vcombine.high %v6448_v32, %v6448_v32 }
 0xdc9   :  { %v14614_v37 = vcombine.low %v6410_v21, %v6393_v43  ;;  %v7257_v49 = vcombine.low %v6407_v53, %v6409_v5  ;;  %v6411_v22 = vcombine.high %v6407_v53, %v6407_v53  ;;  %v6457_v17 = vrot.slane %v6441_v34, %v12908_v56 }
 0xdca   :  { %v14618_v23 = vcombine.low %v7230_v12, %v7237_v42  ;;  %v6464_v62 = vrot.slane %v6448_v32, %v12908_v56  ;;  %v6419_v19 = vcombine.high %v6418_v28, %v6418_v28  ;;  %v6471_v41 = vrot.slane %v6449_v27, %v12908_v56 }
 0xdcb   :  { %v5987_v7 = vpop.permute.xlu1 %5986  ;;  %v6478_v2 = vrot.slane %v6450_v35, %v12908_v56  ;;  %v6426_v0 = vrot.slane %v6418_v28, %v12908_v56  ;;  %v14625_v44 = vpack.c.bf16 %v7205_v30, %v7205_v30  ;;  %v6532_v59 = vcombine.high %v5983_v39, %v5983_v39 }
 0xdcc   :  { %v14628_v38 = vrot.slane %v6419_v19, %v12908_v56  ;;  %v6539_v46 = vrot.slane %v5983_v39, %v12908_v56  ;;  %v6483_v24 = vcombine.high %v5981_v58, %v5981_v58  ;;  %v7318_v54 = vcombine.low %v6457_v17, %v6471_v41 }
 0xdcd   :  { %v11580_v20 = vcombine.high %v6457_v17, %v6471_v41  ;;  %v7320_v40 = vcombine.low %v6464_v62, %v6478_v2  ;;  %v11581_v45 = vcombine.high %v6464_v62, %v6478_v2  ;;  %7942 = vrot.lane.b32.xlu1 %v14625_v44, %s12726_s17  ;;  %v7258_v43 = vcombine.low %v6411_v22, %v6426_v0 }
 0xdce   :  { %v6546_v61 = vrot.slane %v6532_v59, %v12908_v56  ;;  %v6547_v57 = vcombine.high %v6539_v46, %v6539_v46  ;;  %v14639_v8 = vrot.slane %v7318_v54, %v12908_v56  ;;  %v7279_v53 = vrot.slane %v7257_v49, %v12908_v56  ;;  %v5985_v59 = vpop.permute.xlu0 %5984 }
 0xdcf   :  { %v14636_v3 = vpop.permute.xlu1 %5990  ;;  %v14642_v30 = vrot.slane %v11580_v20, %v12908_v56  ;;  %v7310_v5 = vrot.slane %v14628_v38, %v12908_v56  ;;  %v14648_v21 = vrot.slane %v7320_v40, %v12908_v56  ;;  %v14651_v42 = vrot.slane %v6539_v46, %v12908_v56 }
 0xdd0   :  { %v6548_v39 = vcombine.high %v6546_v61, %v6546_v61  ;;  %v6562_v34 = vrot.slane %v6546_v61, %v12908_v56  ;;  %v14655_v32 = vrot.slane %v11581_v45, %v12908_v56  ;;  %v6569_v28 = vrot.slane %v6547_v57, %v12908_v56 }
 0xdd1   :  { %v6490_v12 = vrot.slane %v5981_v58, %v12908_v56  ;;  %v6497_v49 = vrot.slane %v6483_v24, %v12908_v56  ;;  %v7286_v27 = vrot.slane %v7258_v43, %v12908_v56  ;;  %v6577_v22 = vcombine.high %v14651_v42, %v14651_v42 }
 0xdd2   :  { %v6576_v35 = vrot.slane %v6548_v39, %v12908_v56  ;;  %v6578_v17 = vcombine.high %v6562_v34, %v6562_v34  ;;  %v6579_v41 = vcombine.high %v6569_v28, %v6569_v28  ;;  %v6636_v43 = vrot.slane %v5987_v7, %v12908_v56 }
 0xdd3   :  { %v14664_v62 = vpop.permute.xlu1 %5994  ;;  %v6498_v2 = vcombine.high %v6490_v12, %v6490_v12  ;;  %v6499_v0 = vcombine.high %v6497_v49, %v6497_v49  ;;  %v14668_v58 = vcombine.low %v6569_v28, %v6577_v22  ;;  %v6506_v24 = vrot.slane %v6490_v12, %v12908_v56 }
 0xdd4   :  { %v7432_v46 = vcombine.low %v6576_v35, %v6578_v17  ;;  %v6513_v54 = vrot.slane %v6497_v49, %v12908_v56  ;;  %v14672_v20 = vcombine.low %v6579_v41, %v6562_v34  ;;  %v14677_v61 = vcombine.low %v7279_v53, %v7286_v27 }
 0xdd5   :  { %v6520_v40 = vrot.slane %v6498_v2, %v12908_v56  ;;  %v6527_v45 = vrot.slane %v6499_v0, %v12908_v56  ;;  %v6581_v28 = vcombine.high %v5985_v59, %v5985_v59  ;;  %v6580_v17 = vcombine.high %v6576_v35, %v6576_v35 }
 0xdd6   :  { %v6637_v7 = vcombine.high %v6636_v43, %v6636_v43  ;;  %v7454_v53 = vrot.slane %v7432_v46, %v12908_v56  ;;  %v6588_v27 = vrot.slane %v5985_v59, %v12908_v56  ;;  %v6644_v55 = vrot.slane %v6636_v43, %v12908_v56 }
 0xdd7   :  { %v14683_v12 = vpop.permute.xlu1 %7810  ;;  %v7367_v49 = vcombine.low %v6506_v24, %v6520_v40  ;;  %v11582_v34 = vcombine.high %v6506_v24, %v6520_v40  ;;  %v7369_v22 = vcombine.low %v6513_v54, %v6527_v45  ;;  %v11583_v41 = vcombine.high %v6513_v54, %v6527_v45 }
 0xdd8   :  { %12319 = vmatprep.subr.msk.bf16.mxu1 %vm2204_vm7, %v14683_v12  ;;  %v6595_v24 = vrot.slane %v6581_v28, %v12908_v56  ;;  %v6596_v40 = vcombine.high %v6588_v27, %v6588_v27  ;;  %v6604_v46 = vrot.slane %v6588_v27, %v12908_v56  ;;  %v6701_v43 = vcombine.high %v14636_v3, %v14636_v3  ;;  %v5989_v28 = vpop.permute.xlu0 %5988 }
 0xdd9   :  { %v14692_v0 = vrot.slane %v7367_v49, %v12908_v56  ;;  %v14697_v35 = vrot.slane %v11582_v34, %v12908_v56  ;;  %v14700_v54 = vrot.slane %v7369_v22, %v12908_v56  ;;  %v14706_v45 = vrot.slane %v11583_v41, %v12908_v56 }
 0xdda   :  { %v6597_v49 = vcombine.high %v6595_v24, %v6595_v24  ;;  %v6611_v4 = vrot.slane %v6595_v24, %v12908_v56  ;;  %v14714_v34 = vrot.slane %v6637_v7, %v12908_v56  ;;  %v6618_v22 = vrot.slane %v6596_v40, %v12908_v56 }
 0xddb   :  { %v14703_v59 = vpop.permute.xlu1 %7876  ;;  %v6626_v27 = vcombine.high %v6604_v46, %v6604_v46  ;;  %v7433_v50 = vcombine.low %v6580_v17, %v6604_v46  ;;  %v6708_v24 = vrot.slane %v14636_v3, %v12908_v56  ;;  %v6715_v10 = vrot.slane %v6701_v43, %v12908_v56 }
 0xddc   :  { %12321 = vmatprep.subr.msk.bf16.mxu0 %vm2204_vm7, %v14703_v59  ;;  %v6625_v41 = vrot.slane %v6597_v49, %v12908_v56  ;;  %v6627_v60 = vcombine.high %v6611_v4, %v6611_v4  ;;  %v6628_v39 = vcombine.high %v6618_v22, %v6618_v22  ;;  %v6652_v63 = vcombine.high %v5989_v28, %v5989_v28 }
 0xddd   :  { %v7461_v2 = vrot.slane %v7433_v50, %v12908_v56  ;;  %v14722_v19 = vcombine.low %v6618_v22, %v6626_v27  ;;  %v6716_v13 = vcombine.high %v6708_v24, %v6708_v24  ;;  %v6717_v17 = vcombine.high %v6715_v10, %v6715_v10 }
 0xdde   :  { %v6629_v40 = vcombine.high %v6625_v41, %v6625_v41  ;;  %v14730_v3 = vcombine.low %v6628_v39, %v6611_v4  ;;  %v14732_v43 = vcombine.low %v6625_v41, %v6627_v60  ;;  %v6724_v22 = vrot.slane %v6708_v24, %v12908_v56  ;;  %v5993_v41 = vpop.permute.xlu0 %5992 }
 0xddf   :  { %v14728_v49 = vcombine.low %v7454_v53, %v7461_v2  ;;  %v6738_v27 = vrot.slane %v6716_v13, %v12908_v56  ;;  %v6731_v7 = vrot.slane %v6715_v10, %v12908_v56  ;;  %v6745_v15 = vrot.slane %v6717_v17, %v12908_v56 }
 0xde0   :  { %v14734_v36 = vcombine.low %v6629_v40, %v6644_v55  ;;  %v6659_v53 = vrot.slane %v5989_v28, %v12908_v56  ;;  %v6666_v4 = vrot.slane %v6652_v63, %v12908_v56  ;;  %v7317_v55 = vrot.slane %v7310_v5, %v12908_v56 }
 0xde1   :  { %v7591_v39 = vcombine.low %v6724_v22, %v6738_v27  ;;  %v11586_v60 = vcombine.high %v6724_v22, %v6738_v27  ;;  %v6799_v2 = vcombine.high %v14664_v62, %v14664_v62  ;;  %v7593_v13 = vcombine.low %v6731_v7, %v6745_v15 }
 0xde2   :  { %v6667_v24 = vcombine.high %v6659_v53, %v6659_v53  ;;  %v6668_v40 = vcombine.high %v6666_v4, %v6666_v4  ;;  %v11587_v28 = vcombine.high %v6731_v7, %v6745_v15  ;;  %v6675_v5 = vrot.slane %v6659_v53, %v12908_v56 }
 0xde3   :  { %v14755_v17 = vrot.slane %v7591_v39, %v12908_v56  ;;  %v14758_v38 = vrot.slane %v11586_v60, %v12908_v56  ;;  %v6682_v22 = vrot.slane %v6666_v4, %v12908_v56  ;;  %v14765_v50 = vrot.slane %v7593_v13, %v12908_v56 }
 0xde4   :  { %v6689_v27 = vrot.slane %v6667_v24, %v12908_v56  ;;  %v6696_v10 = vrot.slane %v6668_v40, %v12908_v56  ;;  %v14767_v46 = vpack.c.bf16 %v7317_v55, %v7317_v55  ;;  %v6806_v15 = vrot.slane %v14664_v62, %v12908_v56  ;;  %v5997_v55 = vpop.permute.xlu0 %5996 }
 0xde5   :  { %v6813_v7 = vrot.slane %v6799_v2, %v12908_v56  ;;  %v14777_v57 = vrot.slane %v11587_v28, %v12908_v56  ;;  %v6750_v28 = vcombine.high %v5993_v41, %v5993_v41  ;;  %v6757_v31 = vrot.slane %v5993_v41, %v12908_v56 }
 0xde6   :  { %v7542_v39 = vcombine.low %v6675_v5, %v6689_v27  ;;  %v11584_v60 = vcombine.high %v6675_v5, %v6689_v27  ;;  %v7544_v63 = vcombine.low %v6682_v22, %v6696_v10  ;;  %v11585_v53 = vcombine.high %v6682_v22, %v6696_v10  ;;  %8008 = vrot.lane.b32.xlu1 %v14767_v46, %s12726_s17 }
 0xde7   :  { %v6814_v4 = vcombine.high %v6806_v15, %v6806_v15  ;;  %v6815_v24 = vcombine.high %v6813_v7, %v6813_v7  ;;  %v6822_v40 = vrot.slane %v6806_v15, %v12908_v56  ;;  %v6829_v13 = vrot.slane %v6813_v7, %v12908_v56 }
 0xde8   :  { %v14782_v2 = vrot.slane %v7542_v39, %v12908_v56  ;;  %v14785_v10 = vrot.slane %v11584_v60, %v12908_v56  ;;  %v14792_v7 = vrot.slane %v7544_v63, %v12908_v56  ;;  %v15898_v39 = vrot.slane %v14651_v42, %v12908_v56 }
 0xde9   :  { %v6836_v5 = vrot.slane %v6814_v4, %v12908_v56  ;;  %v14789_v22 = vrot.slane %v6815_v24, %v12908_v56  ;;  %v6844_v27 = vcombine.high %v6822_v40, %v6822_v40  ;;  %v6845_v15 = vcombine.high %v6829_v13, %v6829_v13 }
 0xdea   :  { %v7429_v62 = vrot.slane %v15898_v39, %v12908_v56  ;;  %v14800_v60 = vrot.slane %v11585_v53, %v12908_v56  ;;  %v15899_v24 = vrot.slane %v14597_v52, %v12908_v56  ;;  %v15900_v63 = vrot.slane %v14593_v1, %v12908_v56  ;;  %v7809_v1 = vpop.permute.xlu0 %7808 }
 0xdeb   :  { %v6846_v4 = vcombine.high %v6836_v5, %v6836_v5  ;;  %v14802_v11 = vcombine.low %v6836_v5, %v6844_v27  ;;  %v6764_v41 = vrot.slane %v6750_v28, %v12908_v56  ;;  %v6765_v33 = vcombine.high %v6757_v31, %v6757_v31 }
 0xdec   :  { %v7238_v9 = vcombine.low %v15900_v63, %v15899_v24  ;;  %v6773_v47 = vrot.slane %v6757_v31, %v12908_v56  ;;  %v14812_v42 = vpack.c.bf16 %v7429_v62, %v7429_v62  ;;  %v14819_v5 = vcombine.low %v14789_v22, %v6845_v15 }
 0xded   :  { %v14816_v39 = vcombine.low %v6846_v4, %v6829_v13  ;;  %v7253_v52 = vrot.slane %v14618_v23, %v12908_v56  ;;  %v6766_v27 = vcombine.high %v6764_v41, %v6764_v41  ;;  %v6780_v28 = vrot.slane %v6764_v41, %v12908_v56 }
 0xdee   :  { %v6787_v24 = vrot.slane %v6765_v33, %v12908_v56  ;;  %v6795_v31 = vcombine.high %v6773_v47, %v6773_v47  ;;  %8074 = vrot.lane.b32.xlu1 %v14812_v42, %s12726_s17  ;;  %v7246_v15 = vrot.slane %v7238_v9, %v12908_v56  ;;  %v15901_v23 = vrot.slane %v14614_v37, %v12908_v56 }
 0xdef   :  { %v15902_v4 = vrot.slane %v14605_v18, %v12908_v56  ;;  %v6794_v33 = vrot.slane %v6766_v27, %v12908_v56  ;;  %v6796_v41 = vcombine.high %v6780_v28, %v6780_v28  ;;  %v7646_v13 = vrot.slane %v6773_v47, %v12908_v56 }
 0xdf0   :  { %v6797_v53 = vcombine.high %v6787_v24, %v6787_v24  ;;  %v14839_v51 = vcombine.low %v6787_v24, %v6795_v31  ;;  %v7302_v9 = vrot.slane %v14677_v61, %v12908_v56  ;;  %v7822_v37 = vsel %vm2204_vm7, %v14683_v12, 0  ;;  %v7875_v12 = vpop.permute.xlu0 %7874 }
 0xdf1   :  { %v7287_v63 = vcombine.low %v15902_v4, %v15901_v23  ;;  %v6798_v62 = vcombine.high %v6794_v33, %v6794_v33  ;;  %v7254_v18 = vcombine.low %v7246_v15, %v7253_v52  ;;  %v6847_v27 = vcombine.high %v14789_v22, %v14789_v22  ;;  %12104 = vmatpush3.bf16.xpose.msra.mxu1 %v7822_v37 }
 0xdf2   :  { %v7655_v48 = vcombine.low %v6797_v53, %v6780_v28  ;;  %v14849_v23 = vcombine.low %v6794_v33, %v6796_v41  ;;  %v6854_v47 = vrot.slane %v5997_v55, %v12908_v56  ;;  %v15903_v31 = vrot.slane %v14714_v34, %v12908_v56  ;;  %12320 = vmatprep.subr.msk.bf16.mxu1 %vm2204_vm7, %v7809_v1 }
 0xdf3   :  { %v7295_v29 = vrot.slane %v7287_v63, %v12908_v56  ;;  %v7657_v4 = vcombine.low %v6798_v62, %v6822_v40  ;;  %v7664_v53 = vrot.slane %v14839_v51, %v12908_v56  ;;  %v7727_v22 = vrot.slane %v14819_v5, %v12908_v56 }
 0xdf4   :  { %v7541_v61 = vrot.slane %v15903_v31, %v12908_v56  ;;  %v6855_v55 = vcombine.high %v6854_v47, %v6854_v47  ;;  %v6862_v28 = vrot.slane %v6854_v47, %v12908_v56  ;;  %v7671_v15 = vrot.slane %v7655_v48, %v12908_v56 }
 0xdf5   :  { %v7303_v24 = vcombine.low %v7295_v29, %v7302_v9  ;;  %v7888_v29 = vsel %vm2204_vm7, %v14703_v59, 0  ;;  %v7351_v40 = vcombine.low %v14648_v21, %v14655_v32  ;;  %v15904_v51 = vcombine.low %v14639_v8, %v14642_v30 }
 0xdf6   :  { %v14866_v34 = vpack.c.bf16 %v7541_v61, %v7541_v61  ;;  %12112 = vmatpush3.bf16.xpose.msra.mxu0 %v7888_v29  ;;  %v7400_v59 = vcombine.low %v14700_v54, %v14706_v45  ;;  %v6869_v62 = vrot.slane %v6855_v55, %v12908_v56  ;;  %v7706_v63 = vcombine.low %v6847_v27, %v6862_v28 }
 0xdf7   :  { %v14863_v52 = vpack.c.bf16 %v7303_v24, %v7254_v18  ;;  %v7358_v5 = vrot.slane %v15904_v51, %v12908_v56  ;;  %12322 = vmatprep.subr.msk.bf16.mxu0 %vm2204_vm7, %v7875_v12  ;;  %v7653_v48 = vrot.slane %v7646_v13, %v12908_v56  ;;  %v7365_v21 = vrot.slane %v7351_v40, %v12908_v56 }
 0xdf8   :  { %8140 = vrot.lane.b32.xlu1 %v14866_v34, %s12726_s17  ;;  %v15905_v8 = vcombine.low %v14692_v0, %v14697_v35  ;;  %v7414_v32 = vrot.slane %v7400_v59, %v12908_v56  ;;  %v7819_v54 = vsel %vm2204_vm7, %v7809_v1, 0  ;;  %v7734_v45 = vrot.slane %v7706_v63, %v12908_v56 }
 0xdf9   :  { %8006 = vrot.lane.b32.xlu0 %v14863_v52, %s12726_s17  ;;  %v7758_v33 = vrot.slane %v6869_v62, %v12908_v56  ;;  %v14893_v41 = vpack.c.bf16 %v7653_v48, %v7653_v48  ;;  %v15906_v13 = vrot.slane %v14672_v20, %v12908_v56  ;;  %v15907_v9 = vrot.slane %v14668_v58, %v12908_v56 }
 0xdfa   :  { %v7407_v30 = vrot.slane %v15905_v8, %v12908_v56  ;;  %v7678_v0 = vrot.slane %v14849_v23, %v12908_v56  ;;  %v7366_v35 = vcombine.low %v7358_v5, %v7365_v21  ;;  %12106 = vmatpush3.bf16.xpose.msra.mxu1 %v7819_v54  ;;  %v7510_v1 = vrot.slane %v14734_v36, %v12908_v56 }
 0xdfb   :  { %v7462_v37 = vcombine.low %v15907_v9, %v15906_v13  ;;  %v7477_v27 = vrot.slane %v14728_v49, %v12908_v56  ;;  %v15908_v20 = vrot.slane %v14730_v3, %v12908_v56  ;;  %v15909_v58 = vrot.slane %v14722_v19, %v12908_v56 }
 0xdfc   :  { %v7415_v18 = vcombine.low %v7407_v30, %v7414_v32  ;;  %8206 = vrot.lane.b32.xlu1 %v14893_v41, %s12726_s17  ;;  %v7765_v23 = vrot.slane %v7758_v33, %v12908_v56  ;;  %v7575_v47 = vcombine.low %v14792_v7, %v14800_v60  ;;  %v7736_v31 = vcombine.low %v7727_v22, %v7734_v45 }
 0xdfd   :  { %v7511_v24 = vcombine.low %v15909_v58, %v15908_v20  ;;  %v7885_v61 = vsel %vm2204_vm7, %v7875_v12, 0  ;;  %v15910_v29 = vrot.slane %v14732_v43, %v12908_v56  ;;  %v7470_v55 = vrot.slane %v7462_v37, %v12908_v56 }
 0xdfe   :  { %v7798_v36 = vpack.c.bf16 %v7415_v18, %v7366_v35  ;;  %v14923_v3 = vpack.c.bf16 %v7765_v23, %v7765_v23  ;;  %12114 = vmatpush3.bf16.xpose.msra.mxu0 %v7885_v61  ;;  %v7589_v19 = vrot.slane %v7575_v47, %v12908_v56  ;;  %v7624_v28 = vcombine.low %v14765_v50, %v14777_v57 }
 0xdff   :  { %v7512_v49 = vcombine.low %v15910_v29, %v7510_v1  ;;  %v7519_v7 = vrot.slane %v7511_v24, %v12908_v56  ;;  %v7685_v12 = vrot.slane %v7657_v4, %v12908_v56  ;;  %v7686_v43 = vcombine.low %v7664_v53, %v7671_v15 }
 0xe00   :  { %8072 = vrot.lane.b32.xlu0 %v7798_v36, %s12726_s17  ;;  %v7478_v22 = vcombine.low %v7470_v55, %v7477_v27  ;;  %8272 = vrot.lane.b32.xlu1 %v14923_v3, %s12726_s17  ;;  %v15911_v40 = vcombine.low %v14782_v2, %v14785_v10  ;;  %v7638_v57 = vrot.slane %v7624_v28, %v12908_v56 }
 0xe01   :  { %v7526_v60 = vrot.slane %v7512_v49, %v12908_v56  ;;  %v15912_v50 = vrot.slane %v14816_v39, %v12908_v56  ;;  %v15913_v5 = vrot.slane %v14802_v11, %v12908_v56  ;;  %v15914_v53 = vcombine.low %v14755_v17, %v14758_v38  ;;  %12108 = vmatmul.mubr.msk.bf16.vlgmr.msra.gmra.mxu1 %vm2204_vm7, %v14540_v6 }
 0xe02   :  { %v7582_v51 = vrot.slane %v15911_v40, %v12908_v56  ;;  %v7687_v62 = vcombine.low %v7678_v0, %v7685_v12  ;;  %v7750_v63 = vrot.slane %v7736_v31, %v12908_v56  ;;  %v7694_v10 = vrot.slane %v7686_v43, %v12908_v56  ;;  %12123 = vmatprep.mubr.msk.bf16.mxu1 %vm2204_vm7, %v14581_v16 }
 0xe03   :  { %v7735_v59 = vcombine.low %v15913_v5, %v15912_v50  ;;  %v7527_v4 = vcombine.low %v7519_v7, %v7526_v60  ;;  %v7631_v15 = vrot.slane %v15914_v53, %v12908_v56 }
 0xe04   :  { %v7590_v2 = vcombine.low %v7582_v51, %v7589_v19  ;;  %v7701_v11 = vrot.slane %v7687_v62, %v12908_v56  ;;  %8678 = vrot.lane.b32.xlu1 %v14549_v25, %s12727_s18 }
 0xe05   :  { %v14953_v39 = vpack.c.bf16 %v7527_v4, %v7478_v22  ;;  %v7639_v48 = vcombine.low %v7631_v15, %v7638_v57  ;;  %v7743_v17 = vrot.slane %v7735_v59, %v12908_v56  ;;  %12116 = vmatmul.mubr.msk.bf16.vlgmr.msra.gmra.mxu0 %vm2204_vm7, %v14549_v25 }
 0xe06   :  { %v7702_v38 = vcombine.low %v7694_v10, %v7701_v11  ;;  %12131 = vmatprep.mubr.msk.bf16.mxu0 %vm2204_vm7, %v14863_v52 }
 0xe07   :  { %8138 = vrot.lane.b32.xlu0 %v14953_v39, %s12726_s17  ;;  %v7751_v21 = vcombine.low %v7743_v17, %v7750_v63  ;;  %v14967_v8 = vpack.c.bf16 %v7639_v48, %v7590_v2 }
 0xe08   :  { %8738 = vrot.lane.b32.xlu1 %v14581_v16, %s12727_s18 }
 0xe09   :  { %v14973_v30 = vpack.c.bf16 %v7751_v21, %v7702_v38 }
 0xe0b   :  { %8204 = vrot.lane.b32.xlu0 %v14967_v8, %s12726_s17 }
 0xe0c   :  { %8926 = vrot.lane.b32.xlu1 %v14866_v34, %s12727_s18 }
 0xe0f   :  { %8270 = vrot.lane.b32.xlu0 %v14973_v30, %s12726_s17 }
 0xe10   :  { %8800 = vrot.lane.b32.xlu1 %v14863_v52, %s12727_s18 }
 0xe13   :  { %8616 = vrot.lane.b32.xlu0 %v14540_v6, %s12727_s18 }
 0xe17   :  { %8614 = vrot.lane.b32.xlu0 %v14459_v14, %s12727_s18 }
 0xe1b   :  { %8740 = vrot.lane.b32.xlu0 %v14625_v44, %s12727_s18 }
 0xe1f   :  { %8676 = vrot.lane.b32.xlu0 %v14538_v26, %s12727_s18 }
 0xe23   :  { %8802 = vrot.lane.b32.xlu0 %v14767_v46, %s12727_s18 }
 0xe27   :  { %8864 = vrot.lane.b32.xlu0 %v14812_v42, %s12727_s18 }
 0xe2b   :  { %8862 = vrot.lane.b32.xlu0 %v7798_v36, %s12727_s18 }
 0xe2c   :  { %v7941_v25 = vpop.permute.xlu0 %7940 }
 0xe2d   :  { %v7951_v26 = vsel %vm2204_vm7, %v7941_v25, 0 }
 0xe2f   :  { %8988 = vrot.lane.b32.xlu0 %v14893_v41, %s12727_s18 }
 0xe3f   :  { %v7943_v6 = vpop.permute.xlu1 %7942 }
 0xe40   :  { %v7954_v14 = vsel %vm2204_vm7, %v7943_v6, 0  ;;  %12323 = vmatprep.subr.msk.bf16.mxu1 %vm2204_vm7, %v7943_v6 }
 0xe41   :  { %12120 = vmatpush3.bf16.xpose.msra.mxu1 %v7954_v14 }
 0xe42   :  { %12324 = vmatprep.subr.msk.bf16.mxu1 %vm2204_vm7, %v7941_v25 }
 0xe49   :  { %12122 = vmatpush3.bf16.xpose.msra.mxu1 %v7951_v26 }
 0xe50   :  { %12124 = vmatmul.mubr.msk.bf16.vlgmr.msra.gmra.mxu1 %vm2204_vm7, %v14625_v44 }
 0xe51   :  { %12139 = vmatprep.mubr.msk.bf16.mxu1 %vm2204_vm7, %v7798_v36 }
 0xe58   :  { %v8009_v16 = vpop.permute.xlu1 %8008 }
 0xe59   :  { %v8020_v52 = vsel %vm2204_vm7, %v8009_v16, 0  ;;  %12325 = vmatprep.subr.msk.bf16.mxu0 %vm2204_vm7, %v8009_v16 }
 0xe5a   :  { %12128 = vmatpush3.bf16.xpose.msra.mxu0 %v8020_v52 }
 0xe60   :  { %v8075_v32 = vpop.permute.xlu1 %8074 }
 0xe61   :  { %v8086_v54 = vsel %vm2204_vm7, %v8075_v32, 0  ;;  %12327 = vmatprep.subr.msk.bf16.mxu1 %vm2204_vm7, %v8075_v32 }
 0xe62   :  { %12136 = vmatpush3.bf16.xpose.msra.mxu1 %v8086_v54 }
 0xe6a   :  { %v8141_v44 = vpop.permute.xlu1 %8140 }
 0xe6b   :  { %v8007_v45 = vpop.permute.xlu0 %8006  ;;  %v8152_v37 = vsel %vm2204_vm7, %v8141_v44, 0 }
 0xe6c   :  { %v8017_v33 = vsel %vm2204_vm7, %v8007_v45, 0  ;;  %12326 = vmatprep.subr.msk.bf16.mxu0 %vm2204_vm7, %v8007_v45 }
 0xe6d   :  { %12130 = vmatpush3.bf16.xpose.msra.mxu0 %v8017_v33 }
 0xe6e   :  { %12329 = vmatprep.subr.msk.bf16.mxu0 %vm2204_vm7, %v8141_v44  ;;  %v8207_v0 = vpop.permute.xlu1 %8206 }
 0xe6f   :  { %v8218_v18 = vsel %vm2204_vm7, %v8207_v0, 0 }
 0xe72   :  { %v8073_v13 = vpop.permute.xlu0 %8072 }
 0xe73   :  { %v8083_v9 = vsel %vm2204_vm7, %v8073_v13, 0  ;;  %12328 = vmatprep.subr.msk.bf16.mxu1 %vm2204_vm7, %v8073_v13 }
 0xe74   :  { %12138 = vmatpush3.bf16.xpose.msra.mxu1 %v8083_v9  ;;  %12132 = vmatmul.mubr.msk.bf16.vlgmr.msra.gmra.mxu0 %vm2204_vm7, %v14767_v46  ;;  %v8273_v46 = vpop.permute.xlu1 %8272 }
 0xe75   :  { %12331 = vmatprep.subr.msk.bf16.mxu1 %vm2204_vm7, %v8207_v0  ;;  %12144 = vmatpush3.bf16.xpose.msra.mxu0 %v8152_v37  ;;  %v8284_v24 = vsel %vm2204_vm7, %v8273_v46, 0 }
 0xe76   :  { %12147 = vmatprep.mubr.msk.bf16.mxu0 %vm2204_vm7, %v14953_v39 }
 0xe78   :  { %v8679_v36 = vpop.permute.xlu1 %8678 }
 0xe79   :  { %v8139_v35 = vpop.permute.xlu0 %8138 }
 0xe7a   :  { %12330 = vmatprep.subr.msk.bf16.mxu0 %vm2204_vm7, %v8139_v35  ;;  %v8149_v1 = vsel %vm2204_vm7, %v8139_v35, 0 }
 0xe7b   :  { %12140 = vmatmul.mubr.msk.bf16.vlgmr.msra.gmra.mxu1 %vm2204_vm7, %v14812_v42  ;;  %v15915_v42 = vld [vmem:[#allocation11_spill] sm:$0xff] }
 0xe7c   :  { %12152 = vmatpush3.bf16.xpose.msra.mxu1 %v8218_v18  ;;  %12155 = vmatprep.mubr.msk.bf16.mxu1 %vm2204_vm7, %v14967_v8  ;;  %v8688_v61 = vand.u32 %v8679_v36, %v15915_v42  ;;  %v15107_v44 = vpop.permute.xlu1 %8738 }
 0xe7d   :  { %v8205_v27 = vpop.permute.xlu0 %8204  ;;  %12146 = vmatpush3.bf16.xpose.msra.mxu0 %v8149_v1 }
 0xe7e   :  { %12332 = vmatprep.subr.msk.bf16.mxu1 %vm2204_vm7, %v8205_v27  ;;  %12333 = vmatprep.subr.msk.bf16.mxu0 %vm2204_vm7, %v8273_v46  ;;  %v8215_v58 = vsel %vm2204_vm7, %v8205_v27, 0 }
 0xe80   :  { %v15119_v18 = vpop.permute.xlu1 %8926 }
 0xe81   :  { %v8271_v20 = vpop.permute.xlu0 %8270 }
 0xe82   :  { %v8281_v29 = vsel %vm2204_vm7, %v8271_v20, 0 }
 0xe84   :  { %12154 = vmatpush3.bf16.xpose.msra.mxu1 %v8215_v58  ;;  %12148 = vmatmul.mubr.msk.bf16.vlgmr.msra.gmra.mxu0 %vm2204_vm7, %v14866_v34 }
 0xe85   :  { %v8617_v23 = vpop.permute.xlu0 %8616  ;;  %12160 = vmatpush3.bf16.xpose.msra.mxu0 %v8284_v24  ;;  %12163 = vmatprep.mubr.msk.bf16.mxu0 %vm2204_vm7, %v14973_v30 }
 0xe86   :  { %v8626_v47 = vand.u32 %v8617_v23, %v15915_v42  ;;  %12334 = vmatprep.subr.msk.bf16.mxu0 %vm2204_vm7, %v8271_v20 }
 0xe88   :  { %12167 = vmatprep.subr.bf16.mxu1 %v8626_v47 }
 0xe89   :  { %v8615_v31 = vpop.permute.xlu0 %8614 }
 0xe8b   :  { %12156 = vmatmul.mubr.msk.bf16.vlgmr.msra.gmra.mxu1 %vm2204_vm7, %v14893_v41 }
 0xe8c   :  { %12168 = vmatpush3.bf16.msra.mxu1 %v8626_v47  ;;  %v15133_v47 = vpop.permute.xlu1 %8800 }
 0xe8d   :  { %v8741_v49 = vpop.permute.xlu0 %8740  ;;  %12169 = vmatprep.subr.bf16.mxu1 %v8615_v31  ;;  %12162 = vmatpush3.bf16.xpose.msra.mxu0 %v8281_v29 }
 0xe8e   :  { %12175 = vmatprep.subr.bf16.mxu0 %v8688_v61  ;;  %v15040_v34 = vand.u32 %v8741_v49, %v15915_v42 }
 0xe90   :  { %12170 = vmatpush3.bf16.msra.mxu1 %v8615_v31 }
 0xe91   :  { %v8677_v55 = vpop.permute.xlu0 %8676  ;;  %12183 = vmatprep.subr.bf16.mxu1 %v15040_v34 }
 0xe94   :  { %12164 = vmatmul.mubr.msk.bf16.vlgmr.msra.gmra.mxu0 %vm2204_vm7, %v14923_v3 }
 0xe95   :  { %v8803_v41 = vpop.permute.xlu0 %8802  ;;  %12176 = vmatpush3.bf16.msra.mxu0 %v8688_v61 }
 0xe96   :  { %12177 = vmatprep.subr.bf16.mxu0 %v8677_v55  ;;  %v15046_v19 = vand.u32 %v8803_v41, %v15915_v42 }
 0xe99   :  { %12178 = vmatpush3.bf16.msra.mxu0 %v8677_v55  ;;  %v15101_v32 = vpop.permute.xlu0 %8864 }
 0xe9a   :  { %12191 = vmatprep.subr.bf16.mxu0 %v15046_v19 }
 0xe9d   :  { %v15113_v37 = vpop.permute.xlu0 %8862 }
 0xea1   :  { %v15125_v20 = vpop.permute.xlu0 %8988 }
 0xec1   :  { %v15049_v28 = vpop.f32.mrf.mxu1 }
 0xec2   :  { %v8340_v7 = vsel %vm2734_vm8, %v15049_v28, -inf }
 0xec3   :  { %8341 = vmax.xlane.f32.xlu0 %v8340_v7  ;;  %v15053_v60 = vpop.f32.mrf.mxu1 }
 0xec4   :  { %v8334_v12 = vsel %vm2727_vm9, %v15053_v60, -inf }
 0xec5   :  { %v15057_v43 = vpop.f32.mrf.mxu0  ;;  %8335 = vmax.xlane.f32.xlu1 %v8334_v12  ;;  %v12110_v22 = vpop.f32.mrf.mxu1 }
 0xec6   :  { %v8349_v4 = vsel %vm2734_vm8, %v15057_v43, -inf }
 0xec7   :  { %v15059_v40 = vpop.f32.mrf.mxu0  ;;  %v15061_v51 = vpop.f32.mrf.mxu1 }
 0xec8   :  { %v8337_v57 = vsel %vm2727_vm9, %v15061_v51, -inf  ;;  %v8343_v53 = vsel %vm2727_vm9, %v15059_v40, -inf }
 0xec9   :  { %v12118_v50 = vpop.f32.mrf.mxu0  ;;  %8338 = vmax.xlane.f32.xlu0 %v8337_v57 }
 0xecb   :  { %v15065_v5 = vpop.f32.mrf.mxu0 }
 0xecc   :  { %v8346_v59 = vsel %vm2727_vm9, %v15065_v5, -inf }
 0xecd   :  { %8347 = vmax.xlane.f32.xlu1 %v8346_v59  ;;  %8350 = vmax.xlane.f32.xlu0 %v8349_v4 }
 0xed1   :  { %8344 = vmax.xlane.f32.xlu0 %v8343_v53 }
 0xf10   :  { %v15073_v15 = vpop.f32.mrf.mxu1 }
 0xf11   :  { %v8358_v62 = vsel %vm2734_vm8, %v15073_v15, -inf }
 0xf12   :  { %v15077_v63 = vpop.f32.mrf.mxu1  ;;  %8359 = vmax.xlane.f32.xlu1 %v8358_v62 }
 0xf13   :  { %v8352_v2 = vsel %vm2727_vm9, %v15077_v63, -inf }
 0xf14   :  { %v12126_v10 = vpop.f32.mrf.mxu1  ;;  %8353 = vmax.xlane.f32.xlu0 %v8352_v2 }
 0xf16   :  { %v15081_v48 = vpop.f32.mrf.mxu1 }
 0xf17   :  { %v8355_v11 = vsel %vm2727_vm9, %v15081_v48, -inf }
 0xf18   :  { %8356 = vmax.xlane.f32.xlu1 %v8355_v11 }
 0xf34   :  { %v15085_v17 = vpop.f32.mrf.mxu0 }
 0xf35   :  { %v8367_v38 = vsel %vm2734_vm8, %v15085_v17, -inf }
 0xf36   :  { %8368 = vmax.xlane.f32.xlu0 %v8367_v38  ;;  %v15089_v21 = vpop.f32.mrf.mxu0 }
 0xf37   :  { %v8361_v14 = vsel %vm2727_vm9, %v15089_v21, -inf }
 0xf38   :  { %v12134_v6 = vpop.f32.mrf.mxu0 }
 0xf3a   :  { %8362 = vmax.xlane.f32.xlu0 %v8361_v14  ;;  %v15093_v25 = vpop.f32.mrf.mxu0 }
 0xf3b   :  { %v15095_v26 = vpop.f32.mrf.mxu1  ;;  %v8364_v16 = vsel %vm2727_vm9, %v15093_v25, -inf }
 0xf3c   :  { %8365 = vmax.xlane.f32.xlu1 %v8364_v16  ;;  %v8376_v33 = vsel %vm2734_vm8, %v15095_v26, -inf }
 0xf3d   :  { %v15099_v52 = vpop.f32.mrf.mxu1 }
 0xf3e   :  { %v8370_v54 = vsel %vm2727_vm9, %v15099_v52, -inf }
 0xf3f   :  { %v12142_v45 = vpop.f32.mrf.mxu1  ;;  %8371 = vmax.xlane.f32.xlu0 %v8370_v54 }
 0xf40   :  { %8377 = vmax.xlane.f32.xlu1 %v8376_v33 }
 0xf41   :  { %v15109_v13 = vpop.f32.mrf.mxu1 }
 0xf42   :  { %v8373_v9 = vsel %vm2727_vm9, %v15109_v13, -inf }
 0xf44   :  { %8374 = vmax.xlane.f32.xlu1 %v8373_v9  ;;  %v15115_v0 = vpop.f32.mrf.mxu0 }
 0xf45   :  { %v8385_v35 = vsel %vm2734_vm8, %v15115_v0, -inf }
 0xf46   :  { %8386 = vmax.xlane.f32.xlu0 %v8385_v35  ;;  %v15121_v1 = vpop.f32.mrf.mxu0 }
 0xf47   :  { %v8379_v46 = vsel %vm2727_vm9, %v15121_v1, -inf }
 0xf48   :  { %v12150_v27 = vpop.f32.mrf.mxu0 }
 0xf4a   :  { %8380 = vmax.xlane.f32.xlu0 %v8379_v46  ;;  %v15127_v58 = vpop.f32.mrf.mxu0 }
 0xf4b   :  { %v15129_v24 = vpop.f32.mrf.mxu1  ;;  %v8382_v23 = vsel %vm2727_vm9, %v15127_v58, -inf }
 0xf4c   :  { %8383 = vmax.xlane.f32.xlu1 %v8382_v23  ;;  %v8342_v61 = vpop.xlane.xlu0 %8341  ;;  %v8394_v49 = vsel %vm2734_vm8, %v15129_v24, -inf }
 0xf4d   :  { %v15135_v31 = vpop.f32.mrf.mxu1  ;;  %v8408_v55 = vsub.f32 %v15049_v28, %v8342_v61 }
 0xf4e   :  { %v8388_v36 = vsel %vm2727_vm9, %v15135_v31, -inf  ;;  %v8336_v41 = vpop.xlane.xlu1 %8335 }
 0xf4f   :  { %v12158_v29 = vpop.f32.mrf.mxu1  ;;  %8389 = vmax.xlane.f32.xlu0 %v8388_v36  ;;  %v8434_v12 = vmul.f32 1.442695, %v8408_v55  ;;  %v8406_v22 = vsub.f32 %v15053_v60, %v8336_v41 }
 0xf50   :  { %8395 = vmax.xlane.f32.xlu1 %v8394_v49 }
 0xf51   :  { %v15142_v7 = vpop.f32.mrf.mxu1  ;;  %12580 = vpow2.f32 %v8434_v12  ;;  %v8430_v50 = vmul.f32 1.442695, %v8406_v22 }
 0xf52   :  { %v8391_v57 = vsel %vm2727_vm9, %v15142_v7, -inf  ;;  %v8339_v4 = vpop.xlane.xlu0 %8338 }
 0xf53   :  { %12582 = vpow2.f32 %v8430_v50  ;;  %v8407_v53 = vsub.f32 %v15061_v51, %v8339_v4 }
 0xf54   :  { %8392 = vmax.xlane.f32.xlu1 %v8391_v57  ;;  %v15147_v59 = vpop.f32.mrf.mxu0 }
 0xf55   :  { %v8403_v28 = vsel %vm2734_vm8, %v15147_v59, -inf  ;;  %v8432_v2 = vmul.f32 1.442695, %v8407_v53 }
 0xf56   :  { %8404 = vmax.xlane.f32.xlu0 %v8403_v28  ;;  %v15152_v62 = vpop.f32.mrf.mxu0  ;;  %v8351_v10 = vpop.xlane.xlu0 %8350 }
 0xf57   :  { %12584 = vpow2.f32 %v8432_v2  ;;  %v8397_v11 = vsel %vm2727_vm9, %v15152_v62, -inf  ;;  %v8411_v38 = vsub.f32 %v15057_v43, %v8351_v10  ;;  %v8348_v29 = vpop.xlane.xlu1 %8347 }
 0xf58   :  { %v12166_v60 = vpop.f32.mrf.mxu0  ;;  %v8410_v49 = vsub.f32 %v15065_v5, %v8348_v29 }
 0xf59   :  { %v8440_v6 = vmul.f32 1.442695, %v8411_v38 }
 0xf5a   :  { %8398 = vmax.xlane.f32.xlu0 %v8397_v11  ;;  %v8345_v14 = vpop.xlane.xlu0 %8344  ;;  %v15168_v35 = vpop.f32.mrf.mxu0  ;;  %v8438_v55 = vmul.f32 1.442695, %v8410_v49 }
 0xf5b   :  { %12586 = vpow2.f32 %v8440_v6  ;;  %v8409_v16 = vsub.f32 %v15059_v40, %v8345_v14  ;;  %v8400_v27 = vsel %vm2727_vm9, %v15168_v35, -inf }
 0xf5d   :  { %v8436_v54 = vmul.f32 1.442695, %v8409_v16 }
 0xf5e   :  { %v15158_v51 = vpop.eup %12580 }
 0xf5f   :  { %12588 = vpow2.f32 %v8436_v54  ;;  %v8484_v45 = vsel %vm2734_vm8, %v15158_v51, 0.0 }
 0xf60   :  { %v15162_v33 = vpop.eup %12582  ;;  %8485 = vadd.xlane.f32.xlu1 %v8484_v45  ;;  %12590 = vpow2.f32 %v8438_v55 }
 0xf61   :  { %v8478_v9 = vsel %vm2727_vm9, %v15162_v33, 0.0 }
 0xf64   :  { %v15166_v43 = vpop.eup %12584  ;;  %8479 = vadd.xlane.f32.xlu1 %v8478_v9 }
 0xf65   :  { %v8481_v40 = vsel %vm2727_vm9, %v15166_v43, 0.0 }
 0xf66   :  { %8482 = vadd.xlane.f32.xlu0 %v8481_v40 }
 0xf68   :  { %v15174_v46 = vpop.eup %12586  ;;  %8401 = vmax.xlane.f32.xlu1 %v8400_v27 }
 0xf69   :  { %v8493_v23 = vsel %vm2734_vm8, %v15174_v46, 0.0 }
 0xf6a   :  { %8494 = vadd.xlane.f32.xlu0 %v8493_v23 }
 0xf6c   :  { %v15178_v36 = vpop.eup %12588 }
 0xf6d   :  { %v8487_v61 = vsel %vm2727_vm9, %v15178_v36, 0.0  ;;  %v15185_v41 = vpop.eup %12590 }
 0xf6e   :  { %8488 = vadd.xlane.f32.xlu0 %v8487_v61  ;;  %v8490_v50 = vsel %vm2727_vm9, %v15185_v41, 0.0 }
 0xf79   :  { %8924 = vrot.lane.b32.xlu1 %v14953_v39, %s12727_s18 }
 0xf9b   :  { %v8360_v12 = vpop.xlane.xlu1 %8359 }
 0xf9c   :  { %v8414_v22 = vsub.f32 %v15073_v15, %v8360_v12 }
 0xf9d   :  { %v8354_v57 = vpop.xlane.xlu0 %8353  ;;  %8491 = vadd.xlane.f32.xlu1 %v8490_v50 }
 0xf9e   :  { %v8446_v4 = vmul.f32 1.442695, %v8414_v22  ;;  %v8412_v28 = vsub.f32 %v15077_v63, %v8354_v57 }
 0xfa0   :  { %12592 = vpow2.f32 %v8446_v4  ;;  %v8442_v39 = vmul.f32 1.442695, %v8412_v28 }
 0xfa1   :  { %v8357_v53 = vpop.xlane.xlu1 %8356 }
 0xfa2   :  { %12594 = vpow2.f32 %v8442_v39  ;;  %v8413_v5 = vsub.f32 %v15081_v48, %v8357_v53 }
 0xfa4   :  { %v8444_v2 = vmul.f32 1.442695, %v8413_v5 }
 0xfa6   :  { %12596 = vpow2.f32 %v8444_v2 }
 0xfad   :  { %v15192_v60 = vpop.eup %12592 }
 0xfae   :  { %v8502_v15 = vsel %vm2734_vm8, %v15192_v60, 0.0 }
 0xfaf   :  { %v15196_v10 = vpop.eup %12594  ;;  %8503 = vadd.xlane.f32.xlu1 %v8502_v15 }
 0xfb0   :  { %v8496_v63 = vsel %vm2727_vm9, %v15196_v10, 0.0 }
 0xfb1   :  { %8497 = vadd.xlane.f32.xlu0 %v8496_v63 }
 0xfb3   :  { %v15200_v11 = vpop.eup %12596 }
 0xfb4   :  { %v8499_v38 = vsel %vm2727_vm9, %v15200_v11, 0.0 }
 0xfb5   :  { %8500 = vadd.xlane.f32.xlu1 %v8499_v38 }
 0xfbf   :  { %v8369_v48 = vpop.xlane.xlu0 %8368 }
 0xfc0   :  { %v8417_v6 = vsub.f32 %v15085_v17, %v8369_v48 }
 0xfc2   :  { %v8452_v14 = vmul.f32 1.442695, %v8417_v6 }
 0xfc3   :  { %v8363_v16 = vpop.xlane.xlu0 %8362 }
 0xfc4   :  { %12598 = vpow2.f32 %v8452_v14  ;;  %v8415_v54 = vsub.f32 %v15089_v21, %v8363_v16 }
 0xfc5   :  { %v8366_v45 = vpop.xlane.xlu1 %8365 }
 0xfc6   :  { %v8448_v9 = vmul.f32 1.442695, %v8415_v54  ;;  %v8416_v40 = vsub.f32 %v15093_v25, %v8366_v45 }
 0xfc8   :  { %12600 = vpow2.f32 %v8448_v9  ;;  %v8450_v27 = vmul.f32 1.442695, %v8416_v40  ;;  %v8372_v23 = vpop.xlane.xlu0 %8371 }
 0xfc9   :  { %v8418_v61 = vsub.f32 %v15099_v52, %v8372_v23  ;;  %v8378_v29 = vpop.xlane.xlu1 %8377 }
 0xfca   :  { %12602 = vpow2.f32 %v8450_v27  ;;  %v8420_v49 = vsub.f32 %v15095_v26, %v8378_v29 }
 0xfcb   :  { %v8454_v55 = vmul.f32 1.442695, %v8418_v61 }
 0xfcc   :  { %v8458_v17 = vmul.f32 1.442695, %v8420_v49 }
 0xfcd   :  { %12604 = vpow2.f32 %v8454_v55  ;;  %v8375_v12 = vpop.xlane.xlu1 %8374 }
 0xfce   :  { %12606 = vpow2.f32 %v8458_v17  ;;  %v8419_v21 = vsub.f32 %v15109_v13, %v8375_v12 }
 0xfcf   :  { %v8387_v22 = vpop.xlane.xlu0 %8386 }
 0xfd0   :  { %v8456_v57 = vmul.f32 1.442695, %v8419_v21  ;;  %v8423_v25 = vsub.f32 %v15115_v0, %v8387_v22 }
 0xfd1   :  { %v15211_v50 = vpop.eup %12598 }
 0xfd2   :  { %12608 = vpow2.f32 %v8456_v57  ;;  %v8464_v4 = vmul.f32 1.442695, %v8423_v25  ;;  %v8511_v52 = vsel %vm2734_vm8, %v15211_v50, 0.0 }
 0xfd3   :  { %v8381_v28 = vpop.xlane.xlu0 %8380  ;;  %8512 = vadd.xlane.f32.xlu0 %v8511_v52 }
 0xfd4   :  { %12610 = vpow2.f32 %v8464_v4  ;;  %v8421_v26 = vsub.f32 %v15121_v1, %v8381_v28 }
 0xfd5   :  { %v15216_v39 = vpop.eup %12600  ;;  %v8384_v53 = vpop.xlane.xlu1 %8383 }
 0xfd6   :  { %v8460_v13 = vmul.f32 1.442695, %v8421_v26  ;;  %v8422_v5 = vsub.f32 %v15127_v58, %v8384_v53  ;;  %v8505_v0 = vsel %vm2727_vm9, %v15216_v39, 0.0 }
 0xfd7   :  { %v15221_v2 = vpop.eup %12602  ;;  %8506 = vadd.xlane.f32.xlu0 %v8505_v0 }
 0xfd8   :  { %12612 = vpow2.f32 %v8460_v13  ;;  %v8462_v15 = vmul.f32 1.442695, %v8422_v5  ;;  %v8508_v63 = vsel %vm2727_vm9, %v15221_v2, 0.0  ;;  %v8390_v38 = vpop.xlane.xlu0 %8389 }
 0xfd9   :  { %v8396_v48 = vpop.xlane.xlu1 %8395  ;;  %8509 = vadd.xlane.f32.xlu1 %v8508_v63  ;;  %v8424_v16 = vsub.f32 %v15135_v31, %v8390_v38 }
 0xfda   :  { %v15225_v1 = vpop.eup %12604  ;;  %v8426_v6 = vsub.f32 %v15129_v24, %v8396_v48  ;;  %12614 = vpow2.f32 %v8462_v15 }
 0xfdb   :  { %v15228_v14 = vpop.eup %12606  ;;  %v8514_v58 = vsel %vm2727_vm9, %v15225_v1, 0.0  ;;  %v8466_v27 = vmul.f32 1.442695, %v8424_v16 }
 0xfdc   :  { %v8470_v54 = vmul.f32 1.442695, %v8426_v6  ;;  %8515 = vadd.xlane.f32.xlu0 %v8514_v58  ;;  %v8520_v45 = vsel %vm2734_vm8, %v15228_v14, 0.0 }
 0xfdd   :  { %v8393_v9 = vpop.xlane.xlu1 %8392  ;;  %8521 = vadd.xlane.f32.xlu1 %v8520_v45 }
 0xfde   :  { %12616 = vpow2.f32 %v8470_v54  ;;  %v8425_v24 = vsub.f32 %v15142_v7, %v8393_v9 }
 0xfdf   :  { %v15235_v40 = vpop.eup %12608  ;;  %12618 = vpow2.f32 %v8466_v27  ;;  %v8405_v55 = vpop.xlane.xlu0 %8404 }
 0xfe0   :  { %v8517_v23 = vsel %vm2727_vm9, %v15235_v40, 0.0  ;;  %v8468_v31 = vmul.f32 1.442695, %v8425_v24  ;;  %v8429_v15 = vsub.f32 %v15147_v59, %v8405_v55 }
 0xfe1   :  { %v15240_v61 = vpop.eup %12610  ;;  %8518 = vadd.xlane.f32.xlu1 %v8517_v23 }
 0xfe2   :  { %v8529_v29 = vsel %vm2734_vm8, %v15240_v61, 0.0  ;;  %12620 = vpow2.f32 %v8468_v31 }
 0xfe3   :  { %v8399_v57 = vpop.xlane.xlu0 %8398 }
 0xfe4   :  { %v8427_v48 = vsub.f32 %v15152_v62, %v8399_v57 }
 0xfe5   :  { %v15244_v49 = vpop.eup %12612  ;;  %8530 = vadd.xlane.f32.xlu1 %v8529_v29 }
 0xfe6   :  { %v8523_v17 = vsel %vm2727_vm9, %v15244_v49, 0.0 }
 0xfe7   :  { %v15248_v7 = vpop.eup %12614 }
 0xfe8   :  { %v8526_v21 = vsel %vm2727_vm9, %v15248_v7, 0.0 }
 0xfe9   :  { %8524 = vadd.xlane.f32.xlu1 %v8523_v17  ;;  %v8486_v12 = vpop.xlane.xlu1 %8485 }
 0xfea   :  { %12622 = vrcp.f32 %v8486_v12 }
 0xfeb   :  { %v15252_v22 = vpop.eup %12616 }
 0xfec   :  { %v8538_v4 = vsel %vm2734_vm8, %v15252_v22, 0.0  ;;  %v15256_v52 = vpop.eup %12618 }
 0xfed   :  { %8527 = vadd.xlane.f32.xlu1 %v8526_v21  ;;  %v8480_v25 = vpop.xlane.xlu1 %8479  ;;  %v8532_v53 = vsel %vm2727_vm9, %v15256_v52, 0.0 }
 0xfee   :  { %12624 = vrcp.f32 %v8480_v25 }
 0xfef   :  { %v8483_v28 = vpop.xlane.xlu0 %8482  ;;  %v15263_v5 = vpop.eup %12620 }
 0xff0   :  { %12626 = vrcp.f32 %v8483_v28  ;;  %v8535_v63 = vsel %vm2727_vm9, %v15263_v5, 0.0 }
 0xff1   :  { %8539 = vadd.xlane.f32.xlu1 %v8538_v4  ;;  %v8402_v26 = vpop.xlane.xlu1 %8401 }
 0xff2   :  { %8986 = vrot.lane.b32.xlu0 %v14967_v8, %s12727_s18  ;;  %v8428_v13 = vsub.f32 %v15168_v35, %v8402_v26  ;;  %v8476_v8 = vmul.f32 1.442695, %v8429_v15  ;;  %v8472_v35 = vmul.f32 1.442695, %v8427_v48 }
 0xff3   :  { %v8495_v23 = vpop.xlane.xlu0 %8494 }
 0xff4   :  { %v8474_v0 = vmul.f32 1.442695, %v8428_v13 }
 0xff5   :  { %8533 = vadd.xlane.f32.xlu1 %v8532_v53 }
 0xff6   :  { %12628 = vpow2.f32 %v8474_v0 }
 0xff7   :  { %v12623_v38 = vpop.eup %12622  ;;  %12630 = vpow2.f32 %v8476_v8 }
 0xff8   :  { %v8576_v16 = vmul.f32 %v12623_v38, %v15158_v51  ;;  %12632 = vpow2.f32 %v8472_v35  ;;  %v8874_v51 = vand.u32 %v15101_v32, %v15915_v42  ;;  %v15293_v32 = vpop.permute.xlu1 %8924 }
 0xff9   :  { %8536 = vadd.xlane.f32.xlu1 %v8535_v63  ;;  %12634 = vrcp.f32 %v8495_v23 }
 0xffa   :  { %v8599_v9 = vpack.c.bf16 %v8576_v16, %v8576_v16 }
 0xffb   :  { %v12625_v6 = vpop.eup %12624 }
 0xffc   :  { %v8574_v54 = vmul.f32 %v12625_v6, %v15162_v33 }
 0xffd   :  { %v12627_v58 = vpop.eup %12626 }
 0xffe   :  { %v8575_v45 = vmul.f32 %v12627_v58, %v15166_v43 }
0x1000   :  { %v8598_v59 = vpack.c.bf16 %v8575_v45, %v8574_v54 }
0x1002   :  { %12171 = vmatprep.mubr.msk.bf16.mxu1 %vm2727_vm9, %v8598_v59 }
0x1003   :  { %v15273_v27 = vpop.eup %12628  ;;  %12172 = vmatmul.mubr.msk.bf16.vlgmr.msra.gmra.mxu1 %vm2727_vm9, %v8599_v9 }
0x1004   :  { %12184 = vmatpush3.bf16.msra.mxu1 %v15040_v34  ;;  %v8544_v62 = vsel %vm2727_vm9, %v15273_v27, 0.0  ;;  %v15283_v33 = vpop.eup %12630 }
0x1005   :  { %12185 = vmatprep.subr.bf16.mxu1 %v15107_v44  ;;  %8545 = vadd.xlane.f32.xlu1 %v8544_v62  ;;  %v8547_v43 = vsel %vm2734_vm8, %v15283_v33, 0.0  ;;  %v15287_v24 = vpop.eup %12632 }
0x1006   :  { %v8541_v34 = vsel %vm2727_vm9, %v15287_v24, 0.0  ;;  %v12635_v29 = vpop.eup %12634 }
0x1007   :  { %v8579_v12 = vmul.f32 %v12635_v29, %v15174_v46  ;;  %v8936_v46 = vand.u32 %v15119_v18, %v15915_v42  ;;  %v8998_v18 = vand.u32 %v15125_v20, %v15915_v42 }
0x1008   :  { %12186 = vmatpush3.bf16.msra.mxu1 %v15107_v44  ;;  %v8489_v44 = vpop.xlane.xlu0 %8488 }
0x1009   :  { %12199 = vmatprep.subr.bf16.mxu1 %v8874_v51  ;;  %12636 = vrcp.f32 %v8489_v44  ;;  %v8601_v4 = vpack.c.bf16 %v8579_v12, %v8579_v12 }
0x1011   :  { %8548 = vadd.xlane.f32.xlu0 %v8547_v43 }
0x1015   :  { %8542 = vadd.xlane.f32.xlu0 %v8541_v34 }
0x1016   :  { %9050 = vrot.lane.b32.xlu1 %v14923_v3, %s12727_s18  ;;  %v12637_v55 = vpop.eup %12636 }
0x1017   :  { %v8577_v21 = vmul.f32 %v12637_v55, %v15178_v36  ;;  %v15916_v55 = vmov 0.0  }
0x1026   :  { %v8492_v31 = vpop.xlane.xlu1 %8491 }
0x1027   :  { %12638 = vrcp.f32 %v8492_v31 }
0x102b   :  { %9048 = vrot.lane.b32.xlu0 %v14973_v30, %s12727_s18 }
0x1034   :  { %v12639_v17 = vpop.eup %12638 }
0x1035   :  { %v8578_v3 = vmul.f32 %v12639_v17, %v15185_v41 }
0x1037   :  { %v8600_v57 = vpack.c.bf16 %v8578_v3, %v8577_v21 }
0x1038   :  { %v8504_v25 = vpop.xlane.xlu1 %8503 }
0x1039   :  { %12179 = vmatprep.mubr.msk.bf16.mxu0 %vm2727_vm9, %v8600_v57  ;;  %12640 = vrcp.f32 %v8504_v25 }
0x103a   :  { %v8498_v28 = vpop.xlane.xlu0 %8497  ;;  %12180 = vmatmul.mubr.msk.bf16.vlgmr.msra.gmra.mxu0 %vm2727_vm9, %v8601_v4 }
0x103b   :  { %12192 = vmatpush3.bf16.msra.mxu0 %v15046_v19  ;;  %12642 = vrcp.f32 %v8498_v28 }
0x103c   :  { %12193 = vmatprep.subr.bf16.mxu0 %v15133_v47 }
0x103e   :  { %v8501_v30 = vpop.xlane.xlu1 %8500 }
0x103f   :  { %12644 = vrcp.f32 %v8501_v30  ;;  %12194 = vmatpush3.bf16.msra.mxu0 %v15133_v47 }
0x1040   :  { %12207 = vmatprep.subr.bf16.mxu0 %v8936_v46 }
0x1046   :  { %v12641_v36 = vpop.eup %12640 }
0x1047   :  { %v8582_v53 = vmul.f32 %v12641_v36, %v15192_v60 }
0x1048   :  { %v12643_v41 = vpop.eup %12642 }
0x1049   :  { %v8580_v13 = vmul.f32 %v12643_v41, %v15196_v10  ;;  %v8603_v15 = vpack.c.bf16 %v8582_v53, %v8582_v53 }
0x104c   :  { %v12645_v26 = vpop.eup %12644 }
0x104d   :  { %v8581_v19 = vmul.f32 %v12645_v26, %v15200_v11 }
0x104f   :  { %v8602_v0 = vpack.c.bf16 %v8581_v19, %v8580_v13 }
0x1051   :  { %12187 = vmatprep.mubr.msk.bf16.mxu1 %vm2727_vm9, %v8602_v0 }
0x1052   :  { %12188 = vmatmul.mubr.msk.bf16.vlgmr.msra.gmra.mxu1 %vm2727_vm9, %v8603_v15 }
0x1053   :  { %12200 = vmatpush3.bf16.msra.mxu1 %v8874_v51 }
0x1054   :  { %12201 = vmatprep.subr.bf16.mxu1 %v15113_v37 }
0x1057   :  { %12202 = vmatpush3.bf16.msra.mxu1 %v15113_v37 }
0x1058   :  { %12215 = vmatprep.subr.bf16.mxu1 %v8998_v18 }
0x105c   :  { %v8513_v47 = vpop.xlane.xlu0 %8512 }
0x105d   :  { %12646 = vrcp.f32 %v8513_v47 }
0x1060   :  { %v8507_v60 = vpop.xlane.xlu0 %8506 }
0x1061   :  { %12648 = vrcp.f32 %v8507_v60 }
0x1062   :  { %v8510_v10 = vpop.xlane.xlu1 %8509 }
0x1063   :  { %12650 = vrcp.f32 %v8510_v10 }
0x1065   :  { %v8516_v11 = vpop.xlane.xlu0 %8515 }
0x1066   :  { %v8522_v63 = vpop.xlane.xlu1 %8521 }
0x1067   :  { %12652 = vrcp.f32 %v8522_v63 }
0x1068   :  { %12654 = vrcp.f32 %v8516_v11 }
0x1069   :  { %v8987_v31 = vpop.permute.xlu0 %8986 }
0x106a   :  { %v8519_v38 = vpop.xlane.xlu1 %8518  ;;  %v12647_v8 = vpop.eup %12646 }
0x106b   :  { %12656 = vrcp.f32 %v8519_v38  ;;  %v8585_v20 = vmul.f32 %v12647_v8, %v15211_v50 }
0x106d   :  { %v8605_v45 = vpack.c.bf16 %v8585_v20, %v8585_v20 }
0x106e   :  { %v12649_v48 = vpop.eup %12648  ;;  %v8531_v6 = vpop.xlane.xlu1 %8530 }
0x106f   :  { %v8583_v37 = vmul.f32 %v12649_v48, %v15216_v39  ;;  %12658 = vrcp.f32 %v8531_v6 }
0x1070   :  { %v12651_v58 = vpop.eup %12650 }
0x1071   :  { %v8584_v16 = vmul.f32 %v12651_v58, %v15221_v2 }
0x1072   :  { %v8525_v35 = vpop.xlane.xlu1 %8524 }
0x1073   :  { %v8604_v54 = vpack.c.bf16 %v8584_v16, %v8583_v37  ;;  %12660 = vrcp.f32 %v8525_v35 }
0x1074   :  { %v12653_v59 = vpop.eup %12652 }
0x1075   :  { %12195 = vmatprep.mubr.msk.bf16.mxu0 %vm2727_vm9, %v8604_v54  ;;  %v12655_v9 = vpop.eup %12654  ;;  %v8588_v50 = vmul.f32 %v12653_v59, %v15228_v14 }
0x1076   :  { %12196 = vmatmul.mubr.msk.bf16.vlgmr.msra.gmra.mxu0 %vm2727_vm9, %v8605_v45  ;;  %v8528_v62 = vpop.xlane.xlu1 %8527  ;;  %v8586_v39 = vmul.f32 %v12655_v9, %v15225_v1 }
0x1077   :  { %12208 = vmatpush3.bf16.msra.mxu0 %v8936_v46  ;;  %12662 = vrcp.f32 %v8528_v62  ;;  %v8607_v23 = vpack.c.bf16 %v8588_v50, %v8588_v50 }
0x1078   :  { %v12657_v51 = vpop.eup %12656  ;;  %12209 = vmatprep.subr.bf16.mxu0 %v15293_v32 }
0x1079   :  { %v8587_v2 = vmul.f32 %v12657_v51, %v15235_v40 }
0x107a   :  { %v8540_v43 = vpop.xlane.xlu1 %8539 }
0x107b   :  { %12210 = vmatpush3.bf16.msra.mxu0 %v15293_v32  ;;  %v8606_v34 = vpack.c.bf16 %v8587_v2, %v8586_v39  ;;  %12664 = vrcp.f32 %v8540_v43 }
0x107c   :  { %v12659_v29 = vpop.eup %12658 }
0x107d   :  { %12203 = vmatprep.mubr.msk.bf16.mxu1 %vm2727_vm9, %v8606_v34  ;;  %v8591_v32 = vmul.f32 %v12659_v29, %v15240_v61 }
0x107e   :  { %12204 = vmatmul.mubr.msk.bf16.vlgmr.msra.gmra.mxu1 %vm2727_vm9, %v8607_v23  ;;  %v8534_v44 = vpop.xlane.xlu1 %8533 }
0x107f   :  { %12216 = vmatpush3.bf16.msra.mxu1 %v8998_v18  ;;  %12666 = vrcp.f32 %v8534_v44  ;;  %v8609_v3 = vpack.c.bf16 %v8591_v32, %v8591_v32 }
0x1080   :  { %12217 = vmatprep.subr.bf16.mxu1 %v8987_v31  ;;  %v12661_v14 = vpop.eup %12660 }
0x1081   :  { %v8589_v17 = vmul.f32 %v12661_v14, %v15244_v49 }
0x1082   :  { %v8537_v1 = vpop.xlane.xlu1 %8536 }
0x1083   :  { %12218 = vmatpush3.bf16.msra.mxu1 %v8987_v31  ;;  %12668 = vrcp.f32 %v8537_v1 }
0x1084   :  { %v12663_v40 = vpop.eup %12662  ;;  %12231 = vmatprep.subr.bf16.mxu1 %v15916_v55 }
0x1085   :  { %v8590_v12 = vmul.f32 %v12663_v40, %v15248_v7 }
0x1087   :  { %v8608_v21 = vpack.c.bf16 %v8590_v12, %v8589_v17 }
0x1088   :  { %v12665_v57 = vpop.eup %12664 }
0x1089   :  { %12211 = vmatprep.mubr.msk.bf16.mxu0 %vm2727_vm9, %v8608_v21  ;;  %v8594_v28 = vmul.f32 %v12665_v57, %v15252_v22 }
0x108a   :  { %12212 = vmatmul.mubr.msk.bf16.vlgmr.msra.gmra.mxu0 %vm2727_vm9, %v8609_v3 }
0x108b   :  { %v8611_v49 = vpack.c.bf16 %v8594_v28, %v8594_v28 }
0x108c   :  { %v12667_v25 = vpop.eup %12666 }
0x108d   :  { %v8592_v61 = vmul.f32 %v12667_v25, %v15256_v52 }
0x108e   :  { %v8546_v30 = vpop.xlane.xlu1 %8545 }
0x1090   :  { %v12669_v4 = vpop.eup %12668 }
0x1091   :  { %v8593_v46 = vmul.f32 %v12669_v4, %v15263_v5 }
0x1092   :  { %v9051_v41 = vpop.permute.xlu1 %9050 }
0x1093   :  { %v8610_v36 = vpack.c.bf16 %v8593_v46, %v8592_v61  ;;  %v9060_v7 = vand.u32 %v9051_v41, %v15915_v42 }
0x1095   :  { %12219 = vmatprep.mubr.msk.bf16.mxu1 %vm2727_vm9, %v8610_v36  ;;  %12223 = vmatprep.subr.bf16.mxu0 %v9060_v7 }
0x1096   :  { %12220 = vmatmul.mubr.msk.bf16.vlgmr.msra.gmra.mxu1 %vm2727_vm9, %v8611_v49  ;;  %12224 = vmatpush3.bf16.msra.mxu0 %v9060_v7 }
0x1097   :  { %12235 = vmatprep.mubr.msk.bf16.mxu1 %vm12721_vm6, %v15916_v55 }
0x109a   :  { %v8549_v22 = vpop.xlane.xlu0 %8548 }
0x109b   :  { %12670 = vrcp.f32 %v8549_v22 }
0x109c   :  { %12672 = vrcp.f32 %v8546_v30 }
0x109e   :  { %v8543_v52 = vpop.xlane.xlu0 %8542 }
0x109f   :  { %12674 = vrcp.f32 %v8543_v52 }
0x10a2   :  { %v9049_v5 = vpop.permute.xlu0 %9048 }
0x10a3   :  { %12225 = vmatprep.subr.bf16.mxu0 %v9049_v5 }
0x10a4   :  { %12226 = vmatpush3.bf16.msra.mxu0 %v9049_v5 }
0x10a5   :  { %12247 = vmatprep.subr.bf16.mxu0 %v15916_v55 }
0x10a8   :  { %v12671_v26 = vpop.eup %12670 }
0x10a9   :  { %v12673_v53 = vpop.eup %12672  ;;  %v8597_v13 = vmul.f32 %v12671_v26, %v15283_v33 }
0x10aa   :  { %v8596_v0 = vmul.f32 %v12673_v53, %v15273_v27 }
0x10ab   :  { %v8613_v18 = vpack.c.bf16 %v8597_v13, %v8597_v13 }
0x10ac   :  { %v12675_v42 = vpop.eup %12674 }
0x10ad   :  { %v8595_v19 = vmul.f32 %v12675_v42, %v15287_v24 }
0x10af   :  { %v8612_v15 = vpack.c.bf16 %v8596_v0, %v8595_v19 }
0x10b1   :  { %12227 = vmatprep.mubr.msk.bf16.mxu0 %vm2727_vm9, %v8612_v15 }
0x10b2   :  { %12228 = vmatmul.mubr.msk.bf16.vlgmr.msra.gmra.mxu0 %vm2727_vm9, %v8613_v18 }
0x10b3   :  { %12251 = vmatprep.mubr.msk.bf16.mxu0 %vm12721_vm6, %v15916_v55 }
0x10c3   :  { %v12173_v47 = vpop.f32.mrf.mxu1 }
0x10c4   :  { %v9238_v33 = vrot.slane %v12173_v47, %v12908_v56 }
0x10c5   :  { %v15350_v60 = vpop.f32.mrf.mxu1 }
0x10c6   :  { %v9245_v58 = vrot.slane %v9238_v33, %v12908_v56 }
0x10c7   :  { %v12174_v10 = vpop.f32.mrf.mxu1 }
0x10c9   :  { %v15382_v15 = vpop.f32.mrf.mxu1 }
0x10fa   :  { %v12181_v11 = vpop.f32.mrf.mxu0 }
0x10fb   :  { %v9350_v45 = vrot.slane %v12181_v11, %v12908_v56 }
0x10fc   :  { %v8724_v63 = vpop.f32.mrf.mxu0 }
0x10fd   :  { %v9246_v24 = vcombine.high %v8724_v63, %v8724_v63  ;;  %v9253_v27 = vrot.slane %v8724_v63, %v12908_v56  ;;  %v9357_v46 = vrot.slane %v9350_v45, %v12908_v56 }
0x10fe   :  { %v12182_v38 = vpop.f32.mrf.mxu0 }
0x10ff   :  { %v9260_v8 = vrot.slane %v9246_v24, %v12908_v56  ;;  %v9261_v48 = vcombine.high %v9253_v27, %v9253_v27  ;;  %v9269_v6 = vrot.slane %v9253_v27, %v12908_v56 }
0x1100   :  { %v8727_v20 = vpop.f32.mrf.mxu0 }
0x1101   :  { %v9262_v37 = vcombine.high %v9260_v8, %v9260_v8  ;;  %v9276_v16 = vrot.slane %v9260_v8, %v12908_v56  ;;  %v9283_v35 = vrot.slane %v9261_v48, %v12908_v56  ;;  %v9291_v54 = vcombine.high %v9269_v6, %v9269_v6 }
0x1102   :  { %v10128_v59 = vcombine.low %v9245_v58, %v9269_v6  ;;  %v9295_v9 = vcombine.high %v8727_v20, %v8727_v20  ;;  %v9302_v62 = vrot.slane %v8727_v20, %v12908_v56 }
0x1103   :  { %v9290_v51 = vrot.slane %v9262_v37, %v12908_v56  ;;  %v9292_v50 = vcombine.high %v9276_v16, %v9276_v16  ;;  %v9293_v39 = vcombine.high %v9283_v35, %v9283_v35  ;;  %v10129_v2 = vcombine.low %v9283_v35, %v9291_v54 }
0x1104   :  { %v10138_v43 = vrot.slane %v10128_v59, %v12908_v56  ;;  %v9309_v34 = vrot.slane %v9295_v9, %v12908_v56  ;;  %v9310_v23 = vcombine.high %v9302_v62, %v9302_v62  ;;  %v9318_v44 = vrot.slane %v9302_v62, %v12908_v56 }
0x1105   :  { %v10130_v31 = vcombine.low %v9293_v39, %v9276_v16  ;;  %v10131_v29 = vcombine.low %v9290_v51, %v9292_v50  ;;  %v10145_v14 = vrot.slane %v10129_v2, %v12908_v56  ;;  %v9294_v1 = vcombine.high %v9290_v51, %v9290_v51 }
0x1106   :  { %v9311_v40 = vcombine.high %v9309_v34, %v9309_v34  ;;  %v9325_v32 = vrot.slane %v9309_v34, %v12908_v56  ;;  %v9332_v17 = vrot.slane %v9310_v23, %v12908_v56  ;;  %v9340_v12 = vcombine.high %v9318_v44, %v9318_v44 }
0x1107   :  { %v10152_v21 = vrot.slane %v10130_v31, %v12908_v56  ;;  %v10159_v3 = vrot.slane %v10131_v29, %v12908_v56  ;;  %v10160_v57 = vcombine.low %v10138_v43, %v10145_v14  ;;  %v10177_v25 = vcombine.low %v9294_v1, %v9318_v44 }
0x1108   :  { %v9339_v4 = vrot.slane %v9311_v40, %v12908_v56  ;;  %v9341_v28 = vcombine.high %v9325_v32, %v9325_v32  ;;  %v9342_v30 = vcombine.high %v9332_v17, %v9332_v17  ;;  %v10178_v61 = vcombine.low %v9332_v17, %v9340_v12 }
0x1109   :  { %v10161_v36 = vcombine.low %v10152_v21, %v10159_v3  ;;  %v10187_v49 = vrot.slane %v10177_v25, %v12908_v56  ;;  %v10168_v5 = vrot.slane %v10160_v57, %v12908_v56 }
0x110a   :  { %v9343_v41 = vcombine.high %v9339_v4, %v9339_v4  ;;  %v10179_v7 = vcombine.low %v9342_v30, %v9325_v32  ;;  %v10180_v22 = vcombine.low %v9339_v4, %v9341_v28  ;;  %v10194_v52 = vrot.slane %v10178_v61, %v12908_v56 }
0x110b   :  { %v10175_v26 = vrot.slane %v10161_v36, %v12908_v56 }
0x110c   :  { %v10201_v53 = vrot.slane %v10179_v7, %v12908_v56  ;;  %v10208_v42 = vrot.slane %v10180_v22, %v12908_v56  ;;  %v10209_v13 = vcombine.low %v10187_v49, %v10194_v52  ;;  %v15378_v19 = vcombine.low %v9343_v41, %v9357_v46 }
0x110d   :  { %v15380_v0 = vcombine.low %v10168_v5, %v10175_v26 }
0x110e   :  { %v10210_v18 = vcombine.low %v10201_v53, %v10208_v42  ;;  %v10217_v47 = vrot.slane %v10209_v13, %v12908_v56 }
0x1110   :  { %v10224_v11 = vrot.slane %v10210_v18, %v12908_v56 }
0x1112   :  { %v15385_v10 = vpop.f32.mrf.mxu1  ;;  %v15388_v63 = vcombine.low %v10217_v47, %v10224_v11 }
0x1114   :  { %v8786_v33 = vpop.f32.mrf.mxu1 }
0x1115   :  { %v9358_v24 = vcombine.high %v8786_v33, %v8786_v33  ;;  %v9365_v27 = vrot.slane %v8786_v33, %v12908_v56  ;;  %v9462_v33 = vrot.slane %v15385_v10, %v12908_v56 }
0x1116   :  { %v12190_v38 = vpop.f32.mrf.mxu1 }
0x1117   :  { %v9372_v8 = vrot.slane %v9358_v24, %v12908_v56  ;;  %v9373_v48 = vcombine.high %v9365_v27, %v9365_v27  ;;  %v9381_v20 = vrot.slane %v9365_v27, %v12908_v56  ;;  %v9469_v10 = vrot.slane %v9462_v33, %v12908_v56 }
0x1118   :  { %v8789_v6 = vpop.f32.mrf.mxu1 }
0x1119   :  { %v9374_v58 = vcombine.high %v9372_v8, %v9372_v8  ;;  %v9395_v37 = vrot.slane %v9373_v48, %v12908_v56  ;;  %v9407_v16 = vcombine.high %v8789_v6, %v8789_v6  ;;  %v9388_v35 = vrot.slane %v9372_v8, %v12908_v56 }
0x111a   :  { %v9414_v54 = vrot.slane %v8789_v6, %v12908_v56 }
0x111b   :  { %v9402_v45 = vrot.slane %v9374_v58, %v12908_v56  ;;  %v10246_v59 = vcombine.low %v9381_v20, %v9395_v37  ;;  %v11624_v9 = vcombine.high %v9381_v20, %v9395_v37  ;;  %v9421_v62 = vrot.slane %v9407_v16, %v12908_v56 }
0x111c   :  { %v9422_v51 = vcombine.high %v9414_v54, %v9414_v54  ;;  %v9430_v43 = vrot.slane %v9414_v54, %v12908_v56 }
0x111d   :  { %v10248_v50 = vcombine.low %v9388_v35, %v9402_v45  ;;  %v11625_v39 = vcombine.high %v9388_v35, %v9402_v45  ;;  %v9423_v2 = vcombine.high %v9421_v62, %v9421_v62  ;;  %v10256_v23 = vrot.slane %v10246_v59, %v12908_v56 }
0x111e   :  { %v9444_v34 = vrot.slane %v9422_v51, %v12908_v56  ;;  %v10263_v44 = vrot.slane %v11624_v9, %v12908_v56  ;;  %v9437_v14 = vrot.slane %v9421_v62, %v12908_v56 }
0x111f   :  { %v10270_v31 = vrot.slane %v10248_v50, %v12908_v56  ;;  %v10277_v29 = vrot.slane %v11625_v39, %v12908_v56  ;;  %v9451_v1 = vrot.slane %v9423_v2, %v12908_v56 }
0x1120   :  { %v10295_v40 = vcombine.low %v9430_v43, %v9444_v34  ;;  %v11626_v32 = vcombine.high %v9430_v43, %v9444_v34  ;;  %v10278_v25 = vcombine.low %v10256_v23, %v10263_v44 }
0x1121   :  { %v10279_v17 = vcombine.low %v10270_v31, %v10277_v29  ;;  %v10297_v12 = vcombine.low %v9437_v14, %v9451_v1  ;;  %v11627_v21 = vcombine.high %v9437_v14, %v9451_v1 }
0x1122   :  { %v10305_v3 = vrot.slane %v10295_v40, %v12908_v56  ;;  %v10312_v57 = vrot.slane %v11626_v32, %v12908_v56  ;;  %v10286_v36 = vrot.slane %v10278_v25, %v12908_v56 }
0x1123   :  { %v10319_v4 = vrot.slane %v10297_v12, %v12908_v56  ;;  %v10326_v28 = vrot.slane %v11627_v21, %v12908_v56  ;;  %v10293_v46 = vrot.slane %v10279_v17, %v12908_v56 }
0x1124   :  { %v10327_v30 = vcombine.low %v10305_v3, %v10312_v57 }
0x1125   :  { %v10328_v61 = vcombine.low %v10319_v4, %v10326_v28  ;;  %v10294_v7 = vcombine.low %v10286_v36, %v10293_v46 }
0x1126   :  { %v10335_v49 = vrot.slane %v10327_v30, %v12908_v56 }
0x1127   :  { %v10342_v41 = vrot.slane %v10328_v61, %v12908_v56 }
0x1129   :  { %v10343_v22 = vcombine.low %v10335_v49, %v10342_v41 }
0x112b   :  { %v12378_v52 = vpack.i.bf16 %v10343_v22, %v10294_v7 }
0x112d   :  { %12379 = vrot.lane.b32.xlu1 %v12378_v52, %s12729_s19 }
0x1136   :  { %v15415_v5 = vpop.f32.mrf.mxu0 }
0x1138   :  { %v8848_v26 = vpop.f32.mrf.mxu0 }
0x1139   :  { %v9470_v53 = vcombine.high %v8848_v26, %v8848_v26  ;;  %v9477_v42 = vrot.slane %v8848_v26, %v12908_v56 }
0x113a   :  { %v12198_v13 = vpop.f32.mrf.mxu0 }
0x113b   :  { %v9484_v18 = vrot.slane %v9470_v53, %v12908_v56  ;;  %v9485_v47 = vcombine.high %v9477_v42, %v9477_v42  ;;  %v9493_v27 = vrot.slane %v9477_v42, %v12908_v56 }
0x113c   :  { %v8851_v11 = vpop.f32.mrf.mxu0 }
0x113d   :  { %v9486_v24 = vcombine.high %v9484_v18, %v9484_v18  ;;  %v9507_v38 = vrot.slane %v9485_v47, %v12908_v56  ;;  %v9500_v8 = vrot.slane %v9484_v18, %v12908_v56  ;;  %v9519_v48 = vcombine.high %v8851_v11, %v8851_v11 }
0x113e   :  { %v9526_v6 = vrot.slane %v8851_v11, %v12908_v56  ;;  %v12205_v58 = vpop.f32.mrf.mxu1  ;;  %v9515_v45 = vcombine.high %v9493_v27, %v9493_v27  ;;  %v10344_v43 = vcombine.low %v9469_v10, %v9493_v27 }
0x113f   :  { %v9514_v20 = vrot.slane %v9486_v24, %v12908_v56  ;;  %v9533_v37 = vrot.slane %v9519_v48, %v12908_v56  ;;  %v9517_v59 = vcombine.high %v9507_v38, %v9507_v38  ;;  %v9516_v9 = vcombine.high %v9500_v8, %v9500_v8 }
0x1140   :  { %v9534_v16 = vcombine.high %v9526_v6, %v9526_v6  ;;  %v9542_v35 = vrot.slane %v9526_v6, %v12908_v56  ;;  %v8910_v54 = vpop.f32.mrf.mxu1  ;;  %v10345_v44 = vcombine.low %v9507_v38, %v9515_v45  ;;  %v10354_v57 = vrot.slane %v10344_v43, %v12908_v56 }
0x1141   :  { %v9518_v62 = vcombine.high %v9514_v20, %v9514_v20  ;;  %v9535_v51 = vcombine.high %v9533_v37, %v9533_v37  ;;  %v9549_v50 = vrot.slane %v9533_v37, %v12908_v56  ;;  %v10346_v31 = vcombine.low %v9517_v59, %v9500_v8 }
0x1142   :  { %v12206_v39 = vpop.f32.mrf.mxu1  ;;  %v9556_v2 = vrot.slane %v9534_v16, %v12908_v56  ;;  %v9564_v34 = vcombine.high %v9542_v35, %v9542_v35  ;;  %v9582_v29 = vcombine.high %v8910_v54, %v8910_v54  ;;  %v10347_v14 = vcombine.low %v9514_v20, %v9516_v9 }
0x1143   :  { %v15432_v1 = vrot.slane %v9535_v51, %v12908_v56  ;;  %v9565_v40 = vcombine.high %v9549_v50, %v9549_v50  ;;  %v10393_v32 = vcombine.low %v9518_v62, %v9542_v35  ;;  %v9589_v12 = vrot.slane %v8910_v54, %v12908_v56 }
0x1144   :  { %v8913_v23 = vpop.f32.mrf.mxu1  ;;  %v9566_v17 = vcombine.high %v9556_v2, %v9556_v2  ;;  %v9596_v21 = vrot.slane %v9582_v29, %v12908_v56  ;;  %v10394_v25 = vcombine.low %v9556_v2, %v9564_v34  ;;  %v10361_v28 = vrot.slane %v10345_v44, %v12908_v56 }
0x1145   :  { %v9631_v3 = vcombine.high %v8913_v23, %v8913_v23  ;;  %v9638_v4 = vrot.slane %v8913_v23, %v12908_v56  ;;  %v10368_v30 = vrot.slane %v10346_v31, %v12908_v56  ;;  %v9597_v61 = vcombine.high %v9589_v12, %v9589_v12 }
0x1146   :  { %v9598_v46 = vcombine.high %v9596_v21, %v9596_v21  ;;  %v10375_v36 = vrot.slane %v10347_v14, %v12908_v56  ;;  %v10403_v49 = vrot.slane %v10393_v32, %v12908_v56  ;;  %v10395_v52 = vcombine.low %v9566_v17, %v9549_v50 }
0x1147   :  { %v9645_v41 = vrot.slane %v9631_v3, %v12908_v56  ;;  %v9646_v7 = vcombine.high %v9638_v4, %v9638_v4  ;;  %v10396_v26 = vcombine.low %v15432_v1, %v9565_v40  ;;  %v9686_v53 = vrot.slane %v12205_v58, %v12908_v56 }
0x1148   :  { %v9619_v42 = vrot.slane %v9597_v61, %v12908_v56  ;;  %v10410_v13 = vrot.slane %v10394_v25, %v12908_v56  ;;  %v9605_v18 = vrot.slane %v9589_v12, %v12908_v56  ;;  %v9626_v47 = vrot.slane %v9598_v46, %v12908_v56 }
0x1149   :  { %v9647_v11 = vcombine.high %v9645_v41, %v9645_v41  ;;  %v15451_v24 = vcombine.low %v10354_v57, %v10361_v28  ;;  %v9668_v27 = vrot.slane %v9646_v7, %v12908_v56  ;;  %v15454_v38 = vcombine.low %v10368_v30, %v10375_v36 }
0x114a   :  { %v15443_v22 = vpop.f32.mrf.mxu0  ;;  %v9612_v8 = vrot.slane %v9596_v21, %v12908_v56  ;;  %v10472_v48 = vcombine.low %v9605_v18, %v9619_v42  ;;  %v11628_v6 = vcombine.high %v9605_v18, %v9619_v42  ;;  %v10417_v20 = vrot.slane %v10395_v52, %v12908_v56 }
0x114b   :  { %v15459_v37 = vrot.slane %v9686_v53, %v12908_v56  ;;  %v9654_v16 = vrot.slane %v9638_v4, %v12908_v56  ;;  %v9675_v35 = vrot.slane %v9647_v11, %v12908_v56  ;;  %v10424_v54 = vrot.slane %v10396_v26, %v12908_v56 }
0x114c   :  { %v8972_v33 = vpop.f32.mrf.mxu0  ;;  %v15464_v10 = vcombine.low %v10403_v49, %v10410_v13  ;;  %v10474_v45 = vcombine.low %v9612_v8, %v9626_v47  ;;  %v11629_v59 = vcombine.high %v9612_v8, %v9626_v47  ;;  %v9661_v62 = vrot.slane %v9645_v41, %v12908_v56 }
0x114d   :  { %v10521_v51 = vcombine.low %v9654_v16, %v9668_v27  ;;  %v9694_v50 = vcombine.high %v8972_v33, %v8972_v33  ;;  %v9701_v39 = vrot.slane %v8972_v33, %v12908_v56  ;;  %v10482_v2 = vrot.slane %v10472_v48, %v12908_v56 }
0x114e   :  { %v12214_v58 = vpop.f32.mrf.mxu0  ;;  %v10489_v43 = vrot.slane %v11628_v6, %v12908_v56  ;;  %v11630_v34 = vcombine.high %v9654_v16, %v9668_v27  ;;  %v10523_v44 = vcombine.low %v9661_v62, %v9675_v35  ;;  %v10496_v40 = vrot.slane %v10474_v45, %v12908_v56 }
0x114f   :  { %v9708_v31 = vrot.slane %v9694_v50, %v12908_v56  ;;  %v9709_v29 = vcombine.high %v9701_v39, %v9701_v39  ;;  %v10503_v32 = vrot.slane %v11629_v59, %v12908_v56  ;;  %v11631_v17 = vcombine.high %v9661_v62, %v9675_v35 }
0x1150   :  { %v8975_v9 = vpop.f32.mrf.mxu0  ;;  %v10531_v21 = vrot.slane %v10521_v51, %v12908_v56  ;;  %v15477_v57 = vrot.slane %v9701_v39, %v12908_v56  ;;  %v10538_v4 = vrot.slane %v11630_v34, %v12908_v56  ;;  %v10545_v36 = vrot.slane %v10523_v44, %v12908_v56 }
0x1151   :  { %v9743_v23 = vcombine.high %v8975_v9, %v8975_v9  ;;  %v9750_v14 = vrot.slane %v8975_v9, %v12908_v56  ;;  %v9710_v3 = vcombine.high %v9708_v31, %v9708_v31  ;;  %v9731_v25 = vrot.slane %v9709_v29, %v12908_v56 }
0x1152   :  { %v9724_v28 = vrot.slane %v9708_v31, %v12908_v56  ;;  %v10552_v52 = vrot.slane %v11631_v17, %v12908_v56  ;;  %v10426_v18 = vcombine.low %v10417_v20, %v10424_v54  ;;  %v10504_v47 = vcombine.low %v10482_v2, %v10489_v43 }
0x1153   :  { %v9757_v12 = vrot.slane %v9743_v23, %v12908_v56  ;;  %v9758_v30 = vcombine.high %v9750_v14, %v9750_v14  ;;  %v9738_v49 = vrot.slane %v9710_v3, %v12908_v56  ;;  %v9741_v41 = vcombine.high %v9731_v25, %v9731_v25 }
0x1154   :  { %v9766_v7 = vrot.slane %v9750_v14, %v12908_v56  ;;  %v10505_v11 = vcombine.low %v10496_v40, %v10503_v32  ;;  %v9739_v33 = vcombine.high %v15477_v57, %v15477_v57  ;;  %v9740_v27 = vcombine.high %v9724_v28, %v9724_v28  ;;  %v12430_v40 = vld [vmem:[%s15826_s4 + $0x18] sm:$0xff]  }
0x1155   :  { %v9759_v61 = vcombine.high %v9757_v12, %v9757_v12  ;;  %v9773_v26 = vrot.slane %v9757_v12, %v12908_v56  ;;  %v9780_v53 = vrot.slane %v9758_v30, %v12908_v56  ;;  %v15495_v8 = vcombine.low %v9741_v41, %v9724_v28  ;;  %12232 = vmatpush3.bf16.msra.mxu1 %v12430_v40 }
0x1156   :  { %v15482_v46 = vpop.f32.mrf.mxu1  ;;  %v9742_v16 = vcombine.high %v9738_v49, %v9738_v49  ;;  %v9788_v35 = vcombine.high %v9766_v7, %v9766_v7  ;;  %v10384_v45 = vrot.slane %v15451_v24, %v12908_v56  ;;  %v10391_v59 = vrot.slane %v15454_v38, %v12908_v56  ;;  %12233 = vmatprep.subr.bf16.mxu1 %v15916_v55 }
0x1157   :  { %v15491_v42 = vrot.slane %v9759_v61, %v12908_v56  ;;  %v9789_v48 = vcombine.high %v9773_v26, %v9773_v26  ;;  %v9790_v6 = vcombine.high %v9780_v53, %v9780_v53  ;;  %v10553_v20 = vcombine.low %v10531_v21, %v10538_v4 }
0x1158   :  { %v9034_v13 = vpop.f32.mrf.mxu1  ;;  %v10554_v54 = vcombine.low %v10545_v36, %v10552_v52  ;;  %v10512_v39 = vrot.slane %v10504_v47, %v12908_v56  ;;  %v10519_v2 = vrot.slane %v10505_v11, %v12908_v56  ;;  %v10570_v24 = vcombine.low %v15459_v37, %v15477_v57 }
0x1159   :  { %v15501_v9 = vcombine.low %v9790_v6, %v9773_v26  ;;  %v15504_v62 = vcombine.low %v15491_v42, %v9789_v48  ;;  %v9806_v51 = vcombine.high %v9034_v13, %v9034_v13  ;;  %v9813_v50 = vrot.slane %v9034_v13, %v12908_v56 }
0x115a   :  { %v12222_v58 = vpop.f32.mrf.mxu1  ;;  %v15511_v43 = vcombine.low %v9731_v25, %v9739_v33  ;;  %v15513_v38 = vcombine.low %v9738_v49, %v9740_v27  ;;  %v10594_v34 = vrot.slane %v15495_v8, %v12908_v56  ;;  %v15517_v44 = vcombine.low %v9742_v16, %v9766_v7 }
0x115b   :  { %v15519_v31 = vcombine.low %v9780_v53, %v9788_v35  ;;  %v9820_v29 = vrot.slane %v9806_v51, %v12908_v56  ;;  %v9821_v14 = vcombine.high %v9813_v50, %v9813_v50  ;;  %v10643_v32 = vrot.slane %v15501_v9, %v12908_v56 }
0x115c   :  { %v9037_v23 = vpop.f32.mrf.mxu1  ;;  %v10650_v17 = vrot.slane %v15504_v62, %v12908_v56  ;;  %v10561_v12 = vrot.slane %v10553_v20, %v12908_v56  ;;  %v10568_v21 = vrot.slane %v10554_v54, %v12908_v56  ;;  %v9829_v25 = vrot.slane %v9813_v50, %v12908_v56 }
0x115d   :  { %v9822_v3 = vcombine.high %v9820_v29, %v9820_v29  ;;  %v9843_v4 = vrot.slane %v9821_v14, %v12908_v56  ;;  %v9855_v28 = vcombine.high %v9037_v23, %v9037_v23  ;;  %v9836_v30 = vrot.slane %v9820_v29, %v12908_v56 }
0x115e   :  { %v10520_v61 = vcombine.low %v10512_v39, %v10519_v2  ;;  %v10569_v36 = vcombine.low %v10561_v12, %v10568_v21  ;;  %v9862_v49 = vrot.slane %v9037_v23, %v12908_v56  ;;  %v10433_v47 = vrot.slane %v15464_v10, %v12908_v56 }
0x115f   :  { %v9850_v41 = vrot.slane %v9822_v3, %v12908_v56  ;;  %v10698_v7 = vcombine.low %v9829_v25, %v9843_v4  ;;  %v11632_v52 = vcombine.high %v9829_v25, %v9843_v4  ;;  %v9869_v26 = vrot.slane %v9855_v28, %v12908_v56  ;;  %v12431_v28 = vld [vmem:[%s15826_s4 + $0x10] sm:$0xff]   ;;  %s11459_s4 = sshll.u32 %s12732_s16, 4  ;;  %s11460_s4 = int_to_ptr.vmem [resolvable:$true] %s11459_s4 }
0x1160   :  { %v12383_v53 = vpack.i.bf16 %v10569_v36, %v10520_v61  ;;  %v9870_v13 = vcombine.high %v9862_v49, %v9862_v49  ;;  %v10440_v11 = vrot.slane %v10426_v18, %v12908_v56  ;;  %v9878_v48 = vrot.slane %v9862_v49, %v12908_v56  ;;  %12234 = vmatpush3.bf16.msra.mxu1 %v12431_v28  ;;  %s12698_s17 = scalar_lea.vmem %s11460_s4, 32  ;;  %p12703_p1 = scmp.lt.s32.totalorder %s11460_s4, %s11460_s4 }
0x1161   :  { %v10700_v33 = vcombine.low %v9836_v30, %v9850_v41  ;;  %v11633_v27 = vcombine.high %v9836_v30, %v9850_v41  ;;  %v10392_v6 = vcombine.low %v10384_v45, %v10391_v59  ;;  %v10708_v58 = vrot.slane %v10698_v7, %v12908_v56  ;;  %12263 = vmatprep.subr.bf16.mxu1 %v15916_v55  ;;  %p12699_p0 = scmp.ne.s32.totalorder %s11460_s4, %s12698_s17  ;;  %p12704_p2 = scmp.lt.s32.totalorder %s12698_s17, %s12698_s17 }
0x1162   :  { %12384 = vrot.lane.b32.xlu0 %v12383_v53, %s12730_s24  ;;  %v9871_v16 = vcombine.high %v9869_v26, %v9869_v26  ;;  %v9892_v35 = vrot.slane %v9870_v13, %v12908_v56  ;;  %v10441_v20 = vcombine.low %v10433_v47, %v10440_v11  ;;  %v10715_v54 = vrot.slane %v11632_v52, %v12908_v56 }
0x1163   :  { %v10722_v9 = vrot.slane %v10700_v33, %v12908_v56  ;;  %v10729_v10 = vrot.slane %v11633_v27, %v12908_v56  ;;  %v9885_v18 = vrot.slane %v9869_v26, %v12908_v56  ;;  %v10601_v50 = vrot.slane %v15513_v38, %v12908_v56  ;;  %p12705_p3 = por %p12704_p2, %p12703_p1 }
0x1164   :  { %v9899_v62 = vrot.slane %v9871_v16, %v12908_v56  ;;  %v10747_v51 = vcombine.low %v9878_v48, %v9892_v35  ;;  %v11634_v45 = vcombine.high %v9878_v48, %v9892_v35  ;;  %v12393_v59 = vpack.i.bf16 %v10441_v20, %v10392_v6 }
0x1165   :  { %v10629_v39 = vrot.slane %v15517_v44, %v12908_v56  ;;  %v10636_v2 = vrot.slane %v15519_v31, %v12908_v56  ;;  %v10731_v23 = vcombine.low %v10722_v9, %v10729_v10  ;;  %v9574_v21 = vrot.slane %v15415_v5, %v12908_v56  ;;  %p12706_p4 = pnand %p12705_p3, %p12699_p0 }
0x1166   :  { %v10749_v29 = vcombine.low %v9885_v18, %v9899_v62  ;;  %v11635_v14 = vcombine.high %v9885_v18, %v9899_v62  ;;  %v10757_v40 = vrot.slane %v10747_v51, %v12908_v56  ;;  %v10764_v12 = vrot.slane %v11634_v45, %v12908_v56  ;;  %12394 = vrot.lane.b32.xlu0 %v12393_v59, %s12729_s19 }
0x1167   :  { %v10587_v38 = vrot.slane %v15511_v43, %v12908_v56  ;;  %v10652_v3 = vcombine.low %v10643_v32, %v10650_v17  ;;  %v10730_v44 = vcombine.low %v10708_v58, %v10715_v54  ;;  %v10580_v30 = vrot.slane %v10570_v24, %v12908_v56 }
0x1168   :  { %v10771_v25 = vrot.slane %v10749_v29, %v12908_v56  ;;  %v10778_v31 = vrot.slane %v11635_v14, %v12908_v56  ;;  %v10779_v4 = vcombine.low %v10757_v40, %v10764_v12  ;;  %v10603_v5 = vcombine.low %v10594_v34, %v10601_v50 }
0x1169   :  { %v9567_v43 = vcombine.high %v15432_v1, %v15432_v1  ;;  %v10651_v32 = vcombine.low %v10629_v39, %v10636_v2  ;;  %v10745_v61 = vrot.slane %v10731_v23, %v12908_v56  ;;  %v9581_v36 = vrot.slane %v9574_v21, %v12908_v56 }
0x116a   :  { %v10780_v17 = vcombine.low %v10771_v25, %v10778_v31  ;;  %v10602_v49 = vcombine.low %v10580_v30, %v10587_v38  ;;  %v10738_v37 = vrot.slane %v10730_v44, %v12908_v56  ;;  %v10787_v57 = vrot.slane %v10779_v4, %v12908_v56 }
0x116b   :  { %v10666_v24 = vrot.slane %v10652_v3, %v12908_v56  ;;  %v10617_v1 = vrot.slane %v10603_v5, %v12908_v56  ;;  %v10659_v52 = vrot.slane %v10651_v32, %v12908_v56  ;;  %v10442_v26 = vcombine.low %v9567_v43, %v9581_v36 }
0x116c   :  { %v10794_v8 = vrot.slane %v10780_v17, %v12908_v56  ;;  %v10746_v34 = vcombine.low %v10738_v37, %v10745_v61  ;;  %v10610_v47 = vrot.slane %v10602_v49, %v12908_v56  ;;  %v9910_v48 = vrot.slane %v15482_v46, %v12908_v56 }
0x116d   :  { %v10667_v11 = vcombine.low %v10659_v52, %v10666_v24  ;;  %v10449_v16 = vrot.slane %v10442_v26, %v12908_v56  ;;  %v9798_v9 = vrot.slane %v15443_v22, %v12908_v56 }
0x116e   :  { %v10795_v41 = vcombine.low %v10787_v57, %v10794_v8  ;;  %v10618_v6 = vcombine.low %v10610_v47, %v10617_v1  ;;  %v9917_v59 = vrot.slane %v9910_v48, %v12908_v56 }
0x116f   :  { %v10456_v2 = vrot.slane %v10449_v16, %v12908_v56  ;;  %v9805_v48 = vrot.slane %v9798_v9, %v12908_v56 }
0x1170   :  { %v12388_v53 = vpack.i.bf16 %v10795_v41, %v10746_v34  ;;  %v12398_v10 = vpack.i.bf16 %v10667_v11, %v10618_v6 }
0x1172   :  { %v12229_v7 = vpop.f32.mrf.mxu0  ;;  %12389 = vrot.lane.b32.xlu1 %v12388_v53, %s12731_s25  ;;  %v9791_v53 = vcombine.high %v15491_v42, %v15491_v42 }
0x1173   :  { %v10022_v40 = vrot.slane %v12229_v7, %v12908_v56 }
0x1174   :  { %v9096_v13 = vpop.f32.mrf.mxu0 }
0x1175   :  { %v9918_v33 = vcombine.high %v9096_v13, %v9096_v13  ;;  %v9925_v27 = vrot.slane %v9096_v13, %v12908_v56  ;;  %v10029_v8 = vrot.slane %v10022_v40, %v12908_v56 }
0x1176   :  { %v12230_v58 = vpop.f32.mrf.mxu0  ;;  %12399 = vrot.lane.b32.xlu1 %v12398_v10, %s12730_s24 }
0x1177   :  { %v9932_v35 = vrot.slane %v9918_v33, %v12908_v56  ;;  %v9933_v20 = vcombine.high %v9925_v27, %v9925_v27  ;;  %v9941_v54 = vrot.slane %v9925_v27, %v12908_v56 }
0x1178   :  { %v9099_v18 = vpop.f32.mrf.mxu0 }
0x1179   :  { %v9934_v62 = vcombine.high %v9932_v35, %v9932_v35  ;;  %v9948_v51 = vrot.slane %v9932_v35, %v12908_v56  ;;  %v9955_v46 = vrot.slane %v9933_v20, %v12908_v56  ;;  %v9963_v45 = vcombine.high %v9941_v54, %v9941_v54 }
0x117a   :  { %v9967_v50 = vcombine.high %v9099_v18, %v9099_v18  ;;  %v9974_v39 = vrot.slane %v9099_v18, %v12908_v56  ;;  %v10796_v3 = vcombine.low %v9917_v59, %v9941_v54  ;;  %10465 = vrot.lane.b32.xlu1 %v10456_v2, %s12729_s19  ;;  %v10668_v35 = vcombine.low %v9791_v53, %v9805_v48 }
0x117b   :  { %v9962_v23 = vrot.slane %v9934_v62, %v12908_v56  ;;  %v9964_v22 = vcombine.high %v9948_v51, %v9948_v51  ;;  %v9965_v29 = vcombine.high %v9955_v46, %v9955_v46  ;;  %v10797_v14 = vcombine.low %v9955_v46, %v9963_v45 }
0x117c   :  { %v9981_v12 = vrot.slane %v9967_v50, %v12908_v56  ;;  %v9982_v21 = vcombine.high %v9974_v39, %v9974_v39  ;;  %v9990_v38 = vrot.slane %v9974_v39, %v12908_v56  ;;  %v10806_v24 = vrot.slane %v10796_v3, %v12908_v56 }
0x117d   :  { %v10798_v44 = vcombine.low %v9965_v29, %v9948_v51  ;;  %v10799_v25 = vcombine.low %v9962_v23, %v9964_v22  ;;  %v9966_v31 = vcombine.high %v9962_v23, %v9962_v23  ;;  %v10813_v43 = vrot.slane %v10797_v14, %v12908_v56 }
0x117e   :  { %v9983_v4 = vcombine.high %v9981_v12, %v9981_v12  ;;  %v9997_v28 = vrot.slane %v9981_v12, %v12908_v56  ;;  %v10004_v30 = vrot.slane %v9982_v21, %v12908_v56  ;;  %v10012_v5 = vcombine.high %v9990_v38, %v9990_v38 }
0x117f   :  { %v10820_v32 = vrot.slane %v10798_v44, %v12908_v56  ;;  %v10827_v17 = vrot.slane %v10799_v25, %v12908_v56  ;;  %v10845_v61 = vcombine.low %v9966_v31, %v9990_v38  ;;  %v10828_v13 = vcombine.low %v10806_v24, %v10813_v43 }
0x1180   :  { %v10011_v36 = vrot.slane %v9983_v4, %v12908_v56  ;;  %v10013_v49 = vcombine.high %v9997_v28, %v9997_v28  ;;  %v10014_v37 = vcombine.high %v10004_v30, %v10004_v30  ;;  %v10846_v57 = vcombine.low %v10004_v30, %v10012_v5 }
0x1181   :  { %v10829_v1 = vcombine.low %v10820_v32, %v10827_v17  ;;  %v10855_v34 = vrot.slane %v10845_v61, %v12908_v56  ;;  %v10836_v54 = vrot.slane %v10828_v13, %v12908_v56  ;;  %v10675_v9 = vrot.slane %v10668_v35, %v12908_v56 }
0x1182   :  { %v10015_v41 = vcombine.high %v10011_v36, %v10011_v36  ;;  %v10847_v7 = vcombine.low %v10014_v37, %v9997_v28  ;;  %v10848_v52 = vcombine.low %v10011_v36, %v10013_v49  ;;  %v10862_v26 = vrot.slane %v10846_v57, %v12908_v56 }
0x1183   :  { %v10843_v16 = vrot.slane %v10829_v1, %v12908_v56  ;;  %v10682_v46 = vrot.slane %v10675_v9, %v12908_v56  ;;  %v9134_v45 = vcombine.high %v15350_v60, %v15350_v60  ;;  %v9183_v59 = vcombine.high %v15382_v15, %v15382_v15 }
0x1184   :  { %v10869_v47 = vrot.slane %v10847_v7, %v12908_v56  ;;  %v10876_v11 = vrot.slane %v10848_v52, %v12908_v56  ;;  %v10877_v33 = vcombine.low %v10855_v34, %v10862_v26  ;;  %v10894_v27 = vcombine.low %v10015_v41, %v10029_v8 }
0x1185   :  { %v10844_v18 = vcombine.low %v10836_v54, %v10843_v16  ;;  %v9148_v50 = vrot.slane %v9134_v45, %v12908_v56  ;;  %v9197_v39 = vrot.slane %v9183_v59, %v12908_v56  ;;  %v9141_v2 = vrot.slane %v15350_v60, %v12908_v56 }
0x1186   :  { %v10878_v6 = vcombine.low %v10869_v47, %v10876_v11  ;;  %v10901_v58 = vrot.slane %v10894_v27, %v12908_v56  ;;  %v10885_v42 = vrot.slane %v10877_v33, %v12908_v56  ;;  %v9190_v23 = vrot.slane %v15382_v15, %v12908_v56 }
0x1187   :  { %v9150_v22 = vcombine.high %v9148_v50, %v9148_v50  ;;  %v9199_v29 = vcombine.high %v9197_v39, %v9197_v39  ;;  %v9149_v14 = vcombine.high %v9141_v2, %v9141_v2  ;;  %v9164_v38 = vrot.slane %v9148_v50, %v12908_v56 }
0x1188   :  { %v10908_v20 = vrot.slane %v10901_v58, %v12908_v56  ;;  %v10892_v10 = vrot.slane %v10878_v6, %v12908_v56  ;;  %v9198_v40 = vcombine.high %v9190_v23, %v9190_v23  ;;  %v9213_v44 = vrot.slane %v9197_v39, %v12908_v56 }
0x1189   :  { %v9178_v12 = vrot.slane %v9150_v22, %v12908_v56  ;;  %v9227_v21 = vrot.slane %v9199_v29, %v12908_v56  ;;  %v9171_v3 = vrot.slane %v9149_v14, %v12908_v56  ;;  %v9157_v60 = vrot.slane %v9141_v2, %v12908_v56 }
0x118a   :  { %10917 = vrot.lane.b32.xlu1 %v10908_v20, %s12731_s25  ;;  %v10893_v62 = vcombine.low %v10885_v42, %v10892_v10  ;;  %v9220_v25 = vrot.slane %v9198_v40, %v12908_v56  ;;  %v9206_v15 = vrot.slane %v9190_v23, %v12908_v56  ;;  %v10233_v29 = vrot.slane %v15378_v19, %v12908_v56 }
0x118b   :  { %v10032_v31 = vcombine.low %v9164_v38, %v9178_v12  ;;  %v11621_v4 = vcombine.high %v9164_v38, %v9178_v12  ;;  %v10081_v28 = vcombine.low %v9213_v44, %v9227_v21  ;;  %v11623_v30 = vcombine.high %v9213_v44, %v9227_v21 }
0x118c   :  { %v12403_v51 = vpack.i.bf16 %v10893_v62, %v10844_v18  ;;  %v10030_v5 = vcombine.low %v9157_v60, %v9171_v3  ;;  %v11620_v43 = vcombine.high %v9157_v60, %v9171_v3  ;;  %v10079_v32 = vcombine.low %v9206_v15, %v9220_v25 }
0x118d   :  { %v11622_v17 = vcombine.high %v9206_v15, %v9220_v25  ;;  %v10054_v61 = vrot.slane %v10032_v31, %v12908_v56  ;;  %v10061_v36 = vrot.slane %v11621_v4, %v12908_v56  ;;  %v10103_v49 = vrot.slane %v10081_v28, %v12908_v56 }
0x118e   :  { %12404 = vrot.lane.b32.xlu0 %v12403_v51, %s12731_s25  ;;  %v10110_v37 = vrot.slane %v11623_v30, %v12908_v56  ;;  %v10040_v57 = vrot.slane %v10030_v5, %v12908_v56  ;;  %v10047_v8 = vrot.slane %v11620_v43, %v12908_v56  ;;  %v10089_v24 = vrot.slane %v10079_v32, %v12908_v56  ;;  %v15917_v43 = vld [vmem:[#allocation10_spill] sm:$0xff] }
0x118f   :  { %v10096_v1 = vrot.slane %v11622_v17, %v12908_v56  ;;  %v10063_v34 = vcombine.low %v10054_v61, %v10061_v36  ;;  %v10240_v60 = vrot.slane %v10233_v29, %v12908_v56  ;;  %v15918_v32 = vsub.s32 5, %v15917_v43  ;;  %v15919_v36 = vld [vmem:[#allocation5_spill] sm:$0xff] }
0x1190   :  { %v10112_v41 = vcombine.low %v10103_v49, %v10110_v37  ;;  %v10062_v7 = vcombine.low %v10040_v57, %v10047_v8 }
0x1191   :  { %v10111_v52 = vcombine.low %v10089_v24, %v10096_v1  ;;  %v10077_v53 = vrot.slane %v10063_v34, %v12908_v56  ;;  %v15920_v24 = vld [vmem:[#allocation7_spill] sm:$0xff] }
0x1192   :  { %10691 = vrot.lane.b32.xlu0 %v10682_v46, %s12730_s24  ;;  %v10126_v13 = vrot.slane %v10112_v41, %v12908_v56  ;;  %v10070_v11 = vrot.slane %v10062_v7, %v12908_v56 }
0x1193   :  { %v10119_v33 = vrot.slane %v10111_v52, %v12908_v56  ;;  %v15695_v56 = vld [vmem:[%s15829_s7 + $0x8] sm:$0xff] }
0x1194   :  { %v10078_v16 = vcombine.low %v10070_v11, %v10077_v53  ;;  %v11032_v17 = vrot.slane %v15695_v56, %v15918_v32  ;;  %v15921_v53 = vld [vmem:[#allocation8_spill] sm:$0xff] }
0x1195   :  { %v10127_v35 = vcombine.low %v10119_v33, %v10126_v13 }
0x119f   :  { %v12380_v26 = vpop.permute.xlu1 %12379 }
0x11a0   :  { %v12382_v27 = vunpack.i.h.bf16 %v12380_v26  ;;  %v12381_v48 = vunpack.i.l.bf16 %v12380_v26 }
0x11a2   :  { %v10925_v54 = vsel %vm2204_vm7, %v10127_v35, %v12382_v27  ;;  %v10924_v42 = vsel %vm2204_vm7, %v10078_v16, %v12381_v48  ;;  %v15922_v27 = vld [vmem:[#allocation9_spill] sm:$0xff] }
0x11d4   :  { %v12385_v47 = vpop.permute.xlu0 %12384 }
0x11d5   :  { %v12387_v6 = vunpack.i.h.bf16 %v12385_v47  ;;  %v12386_v58 = vunpack.i.l.bf16 %v12385_v47 }
0x11d7   :  { %v10929_v62 = vsel %vm5326_vm10, %v10924_v42, %v12386_v58  ;;  %v10930_v51 = vsel %vm5326_vm10, %v10925_v54, %v12387_v6 }
0x11d8   :  { %v12395_v59 = vpop.permute.xlu0 %12394 }
0x11d9   :  { %v12397_v39 = vunpack.i.h.bf16 %v12395_v59  ;;  %v12396_v2 = vunpack.i.l.bf16 %v12395_v59 }
0x11db   :  { %v10927_v40 = vsel %vm2204_vm7, %v15388_v63, %v12397_v39  ;;  %v10926_v12 = vsel %vm2204_vm7, %v15380_v0, %v12396_v2 }
0x11e4   :  { %v12390_v20 = vpop.permute.xlu1 %12389 }
0x11e5   :  { %v12392_v10 = vunpack.i.h.bf16 %v12390_v20  ;;  %v12391_v18 = vunpack.i.l.bf16 %v12390_v20  ;;  %v15923_v20 = vld [vmem:[#allocation6_spill] sm:$0xff] }
0x11e7   :  { %v10934_v9 = vsel %vm5332_vm11, %v10929_v62, %v12391_v18  ;;  %v10935_v46 = vsel %vm5332_vm11, %v10930_v51, %v12392_v10 }
0x11e8   :  { %v10939_v45 = vpack.c.bf16 %v10935_v46, %v10934_v9  ;;  %v12400_v50 = vpop.permute.xlu1 %12399 }
0x11e9   :  { %v12402_v23 = vunpack.i.h.bf16 %v12400_v50  ;;  %v12401_v22 = vunpack.i.l.bf16 %v12400_v50 }
0x11ea   :  { %12236 = vmatmul.mubr.msk.bf16.vlgmr.msra.gmra.mxu1 %vm181_vm3, %v10939_v45 }
0x11eb   :  { %12239 = vmatprep.mubr.msk.bf16.mxu1 %vm12721_vm6, %v15916_v55  ;;  %v10932_v3 = vsel %vm5326_vm10, %v10927_v40, %v12402_v23  ;;  %v10931_v44 = vsel %vm5326_vm10, %v10926_v12, %v12401_v22 }
0x11ec   :  { %v10466_v25 = vpop.permute.xlu1 %10465 }
0x11ed   :  { %v10928_v63 = vsel %vm2204_vm7, %v10240_v60, %v10466_v25 }
0x11fc   :  { %v10918_v0 = vpop.permute.xlu1 %10917 }
0x1200   :  { %v12405_v14 = vpop.permute.xlu0 %12404 }
0x1201   :  { %v12407_v21 = vunpack.i.h.bf16 %v12405_v14  ;;  %v12406_v38 = vunpack.i.l.bf16 %v12405_v14 }
0x1203   :  { %v10936_v15 = vsel %vm5332_vm11, %v10931_v44, %v12406_v38  ;;  %v10937_v19 = vsel %vm5332_vm11, %v10932_v3, %v12407_v21 }
0x1204   :  { %v10940_v31 = vpack.c.bf16 %v10937_v19, %v10936_v15  ;;  %v10692_v4 = vpop.permute.xlu0 %10691 }
0x1205   :  { %v10933_v28 = vsel %vm5326_vm10, %v10928_v63, %v10692_v4  ;;  %v12433_v4 = vld [vmem:[%s15827_s5 + $0x10] sm:$0xff]  }
0x1206   :  { %12240 = vmatmul.mubr.msk.bf16.gmra.mxu1 %vm181_vm3, %v10940_v31  ;;  %v10938_v30 = vsel %vm5332_vm11, %v10933_v28, %v10918_v0  ;;  %v12432_v31 = vld [vmem:[%s15827_s5 + $0x18] sm:$0xff]  }
0x1207   :  { %12243 = vmatprep.mubr.msk.bf16.mxu1 %vm12721_vm6, %v15916_v55  ;;  %v10941_v5 = vpack.c.bf16 %v10938_v30, %v10938_v30  ;;  %12248 = vmatpush3.bf16.msra.mxu0 %v12432_v31 }
0x1208   :  { %12249 = vmatprep.subr.bf16.mxu0 %v15916_v55 }
0x120b   :  { %12250 = vmatpush3.bf16.msra.mxu0 %v12433_v4 }
0x120c   :  { %12291 = vmatprep.subr.bf16.mxu0 %v15916_v55 }
0x120e   :  { %12244 = vmatmul.mubr.msk.bf16.gmra.mxu1 %vm181_vm3, %v10941_v5 }
0x120f   :  { %12279 = vmatprep.mubr.msk.bf16.mxu1 %vm12721_vm6, %v15916_v55 }
0x12aa   :  { %v11002_v61 = vpop.f32.mrf.mxu1 }
0x12ab   :  { %v11024_v49 = vadd.f32 %v11002_v61, %v15919_v36  ;;  %v15924_v36 = vsub.s32 2, %v15917_v43 }
0x12ac   :  { %v12237_v37 = vpop.f32.mrf.mxu1 }
0x12ad   :  { %v15701_v57 = vadd.f32 %v11032_v17, %v11024_v49  ;;  %v15736_v49 = vrot.slane %v15695_v56, %v15924_v36 }
0x12ae   :  { %v11005_v8 = vpop.f32.mrf.mxu1 }
0x12af   :  { %v11025_v1 = vadd.f32 %v11005_v8, %v15920_v24  ;;  %v11038_v34 = vsel %vm181_vm3, %v15701_v57, 0.0 }
0x12b0   :  { %11039 = vadd.xlane.f32.xlu0 %v11038_v34  ;;  %v12238_v41 = vpop.f32.mrf.mxu1 }
0x12b1   :  { %v11034_v7 = vadd.f32 %v11032_v17, %v11025_v1  ;;  %v15925_v1 = vsub.s32 3, %v15917_v43 }
0x12b3   :  { %v11041_v52 = vsel %vm181_vm3, %v11034_v7, 0.0  ;;  %v11115_v34 = vrot.slane %v15695_v56, %v15925_v1 }
0x12b4   :  { %11042 = vadd.xlane.f32.xlu1 %v11041_v52 }
0x12c6   :  { %v11010_v26 = vpop.f32.mrf.mxu1 }
0x12c7   :  { %v11026_v13 = vadd.f32 %v11010_v26, %v15921_v53 }
0x12c8   :  { %v12241_v47 = vpop.f32.mrf.mxu1 }
0x12c9   :  { %v15708_v11 = vadd.f32 %v11032_v17, %v11026_v13 }
0x12ca   :  { %v11013_v33 = vpop.f32.mrf.mxu1 }
0x12cb   :  { %v11027_v48 = vadd.f32 %v11013_v33, %v15922_v27  ;;  %v11044_v6 = vsel %vm181_vm3, %v15708_v11, 0.0 }
0x12cc   :  { %11045 = vadd.xlane.f32.xlu0 %v11044_v6  ;;  %v12242_v58 = vpop.f32.mrf.mxu1 }
0x12cd   :  { %v11036_v16 = vadd.f32 %v11032_v17, %v11027_v48 }
0x12ce   :  { %v11018_v35 = vpop.f32.mrf.mxu1 }
0x12cf   :  { %v11028_v54 = vadd.f32 %v11018_v35, %v15923_v20  ;;  %v11047_v42 = vsel %vm181_vm3, %v11036_v16, 0.0 }
0x12d0   :  { %11048 = vadd.xlane.f32.xlu0 %v11047_v42  ;;  %v12245_v10 = vpop.f32.mrf.mxu1 }
0x12d1   :  { %v15715_v18 = vadd.f32 %v11032_v17, %v11028_v54 }
0x12d2   :  { %v11021_v62 = vpop.f32.mrf.mxu1 }
0x12d3   :  { %v11050_v19 = vsel %vm194_vm5, %v15715_v18, 0.0 }
0x12d4   :  { %v12246_v51 = vpop.f32.mrf.mxu1 }
0x1339   :  { %v11040_v9 = vpop.xlane.xlu0 %11039 }
0x133a   :  { %v11053_v46 = vmul.f32 0.03125, %v11040_v9 }
0x133c   :  { %v11058_v45 = vsub.f32 %v15701_v57, %v11053_v46 }
0x133d   :  { %v11043_v59 = vpop.xlane.xlu1 %11042 }
0x133e   :  { %v11054_v50 = vmul.f32 0.03125, %v11043_v59  ;;  %v11063_v39 = vmul.f32 %v11058_v45, %v11058_v45 }
0x1340   :  { %v11059_v2 = vsub.f32 %v11034_v7, %v11054_v50  ;;  %v11068_v23 = vsel %vm181_vm3, %v11063_v39, 0.0  ;;  %v12435_v50 = vld [vmem:[%s15828_s6 + $0x70] sm:$0xff]   ;;  %v12436_v39 = vld [vmem:[%s15828_s6 + $0x68] sm:$0xff]  }
0x1341   :  { %11069 = vadd.xlane.f32.xlu0 %v11068_v23  ;;  %v12438_v23 = vld [vmem:[%s15828_s6 + $0x58] sm:$0xff]  }
0x1342   :  { %v11064_v22 = vmul.f32 %v11059_v2, %v11059_v2 }
0x1344   :  { %v11071_v29 = vsel %vm181_vm3, %v11064_v22, 0.0  ;;  %v12439_v22 = vld [vmem:[%s15828_s6 + $0x50] sm:$0xff]  }
0x1345   :  { %11072 = vadd.xlane.f32.xlu1 %v11071_v29  ;;  %v12440_v29 = vld [vmem:[%s15828_s6 + $0x48] sm:$0xff]  }
0x1355   :  { %v11046_v14 = vpop.xlane.xlu0 %11045 }
0x1356   :  { %v11055_v40 = vmul.f32 0.03125, %v11046_v14  ;;  %v12441_v14 = vld [vmem:[%s15828_s6 + $0x40] sm:$0xff]  }
0x1358   :  { %v11060_v12 = vsub.f32 %v15708_v11, %v11055_v40 }
0x1359   :  { %v11049_v21 = vpop.xlane.xlu0 %11048 }
0x135a   :  { %v11056_v38 = vmul.f32 0.03125, %v11049_v21  ;;  %v11065_v3 = vmul.f32 %v11060_v12, %v11060_v12 }
0x135c   :  { %v11061_v44 = vsub.f32 %v11036_v16, %v11056_v38  ;;  %v11074_v25 = vsel %vm181_vm3, %v11065_v3, 0.0 }
0x135d   :  { %11075 = vadd.xlane.f32.xlu0 %v11074_v25 }
0x135e   :  { %v11066_v60 = vmul.f32 %v11061_v44, %v11061_v44 }
0x1360   :  { %v11077_v15 = vsel %vm181_vm3, %v11066_v60, 0.0 }
0x1361   :  { %11078 = vadd.xlane.f32.xlu1 %v11077_v15  ;;  %11051 = vadd.xlane.f32.xlu0 %v11050_v19  ;;  %v15926_v15 = vsub.s32 6, %v15917_v43 }
0x1363   :  { %v15791_v19 = vrot.slane %v15695_v56, %v15926_v15 }
0x13ca   :  { %v11070_v63 = vpop.xlane.xlu0 %11069 }
0x13cb   :  { %v11083_v28 = vmul.f32 0.03125, %v11070_v63 }
0x13cd   :  { %v11088_v0 = vadd.f32 1e-05, %v11083_v28 }
0x13ce   :  { %v11073_v30 = vpop.xlane.xlu1 %11072 }
0x13cf   :  { %12676 = vrsqrt.f32 %v11088_v0  ;;  %v11084_v5 = vmul.f32 0.03125, %v11073_v30 }
0x13d1   :  { %v11089_v32 = vadd.f32 1e-05, %v11084_v5 }
0x13d3   :  { %12678 = vrsqrt.f32 %v11089_v32 }
0x13dc   :  { %v12677_v17 = vpop.eup %12676 }
0x13dd   :  { %v11098_v61 = vmul.f32 %v12677_v17, %v11058_v45 }
0x13df   :  { %v11107_v24 = vmul.f32 %v15736_v49, %v11098_v61 }
0x13e0   :  { %v12679_v37 = vpop.eup %12678 }
0x13e1   :  { %v11099_v8 = vmul.f32 %v12679_v37, %v11059_v2  ;;  %v11116_v53 = vadd.f32 %v11115_v34, %v11107_v24  ;;  %v12437_v2 = vld [vmem:[%s15828_s6 + $0x60] sm:$0xff]  }
0x13e3   :  { %v11108_v52 = vmul.f32 %v15736_v49, %v11099_v8 }
0x13e5   :  { %v11117_v13 = vadd.f32 %v11115_v34, %v11108_v52 }
0x13e6   :  { %v11076_v41 = vpop.xlane.xlu0 %11075 }
0x13e7   :  { %v11085_v7 = vmul.f32 0.03125, %v11076_v41  ;;  %v11121_v48 = vpack.c.bf16 %v11117_v13, %v11116_v53 }
0x13e9   :  { %v11090_v26 = vadd.f32 1e-05, %v11085_v7  ;;  %12252 = vmatmul.mubr.msk.bf16.vlgmr.msra.gmra.mxu0 %vm181_vm3, %v11121_v48 }
0x13ea   :  { %v11079_v47 = vpop.xlane.xlu1 %11078  ;;  %v11052_v33 = vpop.xlane.xlu0 %11051  ;;  %12255 = vmatprep.mubr.msk.bf16.mxu0 %vm12721_vm6, %v15916_v55 }
0x13eb   :  { %12680 = vrsqrt.f32 %v11090_v26  ;;  %v11086_v27 = vmul.f32 0.03125, %v11079_v47  ;;  %v11057_v6 = vmul.f32 0.03125, %v11052_v33 }
0x13ed   :  { %v11091_v58 = vadd.f32 1e-05, %v11086_v27  ;;  %v11062_v16 = vsub.f32 %v15715_v18, %v11057_v6  ;;  %v12434_v18 = vld [vmem:[%s15828_s6 + $0x78] sm:$0xff]  }
0x13ee   :  { %12264 = vmatpush3.bf16.msra.mxu1 %v12434_v18 }
0x13ef   :  { %12682 = vrsqrt.f32 %v11091_v58  ;;  %v11067_v35 = vmul.f32 %v11062_v16, %v11062_v16  ;;  %12265 = vmatprep.subr.bf16.mxu1 %v15916_v55 }
0x13f1   :  { %v11080_v20 = vsel %vm194_vm5, %v11067_v35, 0.0 }
0x13f2   :  { %11081 = vadd.xlane.f32.xlu1 %v11080_v20  ;;  %12266 = vmatpush3.bf16.msra.mxu1 %v12435_v50 }
0x13f3   :  { %12267 = vmatprep.subr.bf16.mxu1 %v15916_v55 }
0x13f6   :  { %12268 = vmatpush3.bf16.msra.mxu1 %v12436_v39 }
0x13f7   :  { %12269 = vmatprep.subr.bf16.mxu1 %v15916_v55 }
0x13f8   :  { %v12681_v54 = vpop.eup %12680 }
0x13f9   :  { %v11100_v42 = vmul.f32 %v12681_v54, %v11060_v12 }
0x13fa   :  { %12270 = vmatpush3.bf16.msra.mxu1 %v12437_v2 }
0x13fb   :  { %v11109_v51 = vmul.f32 %v15736_v49, %v11100_v42  ;;  %12271 = vmatprep.subr.bf16.mxu1 %v15916_v55 }
0x13fc   :  { %v12683_v10 = vpop.eup %12682 }
0x13fd   :  { %v11101_v62 = vmul.f32 %v12683_v10, %v11061_v44  ;;  %v11118_v46 = vadd.f32 %v11115_v34, %v11109_v51 }
0x13fe   :  { %12272 = vmatpush3.bf16.msra.mxu1 %v12438_v23 }
0x13ff   :  { %v11110_v9 = vmul.f32 %v15736_v49, %v11101_v62  ;;  %12273 = vmatprep.subr.bf16.mxu1 %v15916_v55 }
0x1401   :  { %v11119_v45 = vadd.f32 %v11115_v34, %v11110_v9 }
0x1402   :  { %12274 = vmatpush3.bf16.msra.mxu1 %v12439_v22 }
0x1403   :  { %v11122_v59 = vpack.c.bf16 %v11119_v45, %v11118_v46  ;;  %12275 = vmatprep.subr.bf16.mxu1 %v15916_v55 }
0x1405   :  { %12256 = vmatmul.mubr.msk.bf16.gmra.mxu0 %vm181_vm3, %v11122_v59 }
0x1406   :  { %12259 = vmatprep.mubr.msk.bf16.mxu0 %vm12721_vm6, %v15916_v55  ;;  %12276 = vmatpush3.bf16.msra.mxu1 %v12440_v29 }
0x1407   :  { %12277 = vmatprep.subr.bf16.mxu1 %v15916_v55 }
0x140a   :  { %12278 = vmatpush3.bf16.msra.mxu1 %v12441_v14 }
0x147b   :  { %v11082_v40 = vpop.xlane.xlu1 %11081 }
0x147c   :  { %v11087_v12 = vmul.f32 0.03125, %v11082_v40 }
0x147e   :  { %v11092_v21 = vadd.f32 1e-05, %v11087_v12  ;;  %v12442_v12 = vld [vmem:[%s15830_s8 + $0x8] sm:$0xff]  }
0x147f   :  { %12292 = vmatpush3.bf16.msra.mxu0 %v12442_v12 }
0x1480   :  { %12684 = vrsqrt.f32 %v11092_v21  ;;  %v12443_v21 = vld [vmem:[%s15830_s8] sm:$0xff]   ;;  %12293 = vmatprep.subr.bf16.mxu0 %v15916_v55 }
0x1483   :  { %12294 = vmatpush3.bf16.msra.mxu0 %v12443_v21 }
0x148d   :  { %v12685_v38 = vpop.eup %12684 }
0x148e   :  { %v11102_v3 = vmul.f32 %v12685_v38, %v11062_v16 }
0x1490   :  { %v11111_v44 = vmul.f32 %v15736_v49, %v11102_v3 }
0x1492   :  { %v11120_v25 = vadd.f32 %v11115_v34, %v11111_v44 }
0x1494   :  { %v11123_v60 = vpack.c.bf16 %v11120_v25, %v11120_v25 }
0x1496   :  { %12260 = vmatmul.mubr.msk.bf16.gmra.mxu0 %vm181_vm3, %v11123_v60 }
0x1497   :  { %12295 = vmatprep.mubr.msk.bf16.mxu0 %vm12721_vm6, %v15916_v55 }
0x14a9   :  { %v11188_v31 = vpop.f32.mrf.mxu0 }
0x14aa   :  { %v11189_v4 = vadd.f32 %v11188_v31, %v15791_v19 }
0x14ab   :  { %v12253_v63 = vpop.f32.mrf.mxu0 }
0x14ac   :  { %v11215_v28 = vmul.f32 0.044715, %v11189_v4  ;;  %v11210_v48 = vmul.f32 0.5, %v11189_v4 }
0x14ad   :  { %v11191_v0 = vpop.f32.mrf.mxu0 }
0x14ae   :  { %v11220_v30 = vmul.f32 %v11215_v28, %v11189_v4  ;;  %v11192_v5 = vadd.f32 %v11191_v0, %v15791_v19 }
0x14af   :  { %v12254_v32 = vpop.f32.mrf.mxu0 }
0x14b0   :  { %v11225_v17 = vmul.f32 %v11220_v30, %v11189_v4  ;;  %v11216_v61 = vmul.f32 0.044715, %v11192_v5  ;;  %v11211_v58 = vmul.f32 0.5, %v11192_v5 }
0x14b2   :  { %v11230_v36 = vadd.f32 %v11225_v17, %v11189_v4  ;;  %v11221_v49 = vmul.f32 %v11216_v61, %v11192_v5 }
0x14b4   :  { %v11235_v37 = vmul.f32 0.7978846, %v11230_v36  ;;  %v11226_v8 = vmul.f32 %v11221_v49, %v11192_v5 }
0x14b6   :  { %12686 = vtanh.f32 %v11235_v37  ;;  %v11231_v24 = vadd.f32 %v11226_v8, %v11192_v5  ;;  %v15927_v37 = vsub.s32 7, %v15917_v43 }
0x14b8   :  { %v11236_v1 = vmul.f32 0.7978846, %v11231_v24  ;;  %v11381_v8 = vrot.slane %v15695_v56, %v15927_v37  ;;  %v11678_v56 = vld [vmem:[%s15831_s9] ss:$0 sm:$0xff] }
0x14ba   :  { %12688 = vtanh.f32 %v11236_v1 }
0x14c3   :  { %v12687_v7 = vpop.eup %12686 }
0x14c4   :  { %v11245_v33 = vadd.f32 1.0, %v12687_v7 }
0x14c5   :  { %v11196_v34 = vpop.f32.mrf.mxu0 }
0x14c6   :  { %v11197_v41 = vadd.f32 %v11196_v34, %v15791_v19  ;;  %v11250_v10 = vmul.f32 %v11245_v33, %v11210_v48 }
0x14c7   :  { %v12257_v52 = vpop.f32.mrf.mxu0  ;;  %v12689_v27 = vpop.eup %12688 }
0x14c8   :  { %v11217_v26 = vmul.f32 0.044715, %v11197_v41  ;;  %v11246_v20 = vadd.f32 1.0, %v12689_v27  ;;  %v11212_v2 = vmul.f32 0.5, %v11197_v41 }
0x14c9   :  { %v11199_v53 = vpop.f32.mrf.mxu0 }
0x14ca   :  { %v11222_v13 = vmul.f32 %v11217_v26, %v11197_v41  ;;  %v11200_v47 = vadd.f32 %v11199_v53, %v15791_v19  ;;  %v11251_v62 = vmul.f32 %v11246_v20, %v11211_v58 }
0x14cb   :  { %v12258_v6 = vpop.f32.mrf.mxu0 }
0x14cc   :  { %v11227_v16 = vmul.f32 %v11222_v13, %v11197_v41  ;;  %v11218_v35 = vmul.f32 0.044715, %v11200_v47  ;;  %v11255_v46 = vpack.c.bf16 %v11251_v62, %v11250_v10  ;;  %v11213_v23 = vmul.f32 0.5, %v11200_v47 }
0x14ce   :  { %v11232_v54 = vadd.f32 %v11227_v16, %v11197_v41  ;;  %v11223_v42 = vmul.f32 %v11218_v35, %v11200_v47  ;;  %12280 = vmatmul.mubr.bf16.vlgmr.msra.gmra.mxu1 %v11255_v46 }
0x14cf   :  { %12283 = vmatprep.mubr.msk.bf16.mxu1 %vm12721_vm6, %v15916_v55 }
0x14d0   :  { %v11237_v51 = vmul.f32 0.7978846, %v11232_v54  ;;  %v11228_v9 = vmul.f32 %v11223_v42, %v11200_v47 }
0x14d2   :  { %12690 = vtanh.f32 %v11237_v51  ;;  %v11233_v45 = vadd.f32 %v11228_v9, %v11200_v47 }
0x14d4   :  { %v11238_v59 = vmul.f32 0.7978846, %v11233_v45 }
0x14d6   :  { %12692 = vtanh.f32 %v11238_v59 }
0x14df   :  { %v12691_v18 = vpop.eup %12690 }
0x14e0   :  { %v11247_v50 = vadd.f32 1.0, %v12691_v18 }
0x14e2   :  { %v11252_v29 = vmul.f32 %v11247_v50, %v11212_v2 }
0x14e3   :  { %v12693_v39 = vpop.eup %12692 }
0x14e4   :  { %v11248_v22 = vadd.f32 1.0, %v12693_v39 }
0x14e6   :  { %v11253_v14 = vmul.f32 %v11248_v22, %v11213_v23 }
0x14e8   :  { %v11256_v40 = vpack.c.bf16 %v11253_v14, %v11252_v29 }
0x14ea   :  { %12284 = vmatmul.mubr.bf16.gmra.mxu1 %v11256_v40 }
0x14eb   :  { %12287 = vmatprep.mubr.msk.bf16.mxu1 %vm12721_vm6, %v15916_v55 }
0x1556   :  { %v11204_v38 = vpop.f32.mrf.mxu0 }
0x1557   :  { %v11205_v3 = vadd.f32 %v11204_v38, %v15791_v19 }
0x1558   :  { %v12261_v44 = vpop.f32.mrf.mxu0 }
0x1559   :  { %v11219_v25 = vmul.f32 0.044715, %v11205_v3  ;;  %v11214_v30 = vmul.f32 0.5, %v11205_v3 }
0x155a   :  { %v11207_v60 = vpop.f32.mrf.mxu0 }
0x155b   :  { %v11224_v15 = vmul.f32 %v11219_v25, %v11205_v3 }
0x155c   :  { %v12262_v31 = vpop.f32.mrf.mxu0 }
0x155d   :  { %v11229_v4 = vmul.f32 %v11224_v15, %v11205_v3 }
0x155f   :  { %v11234_v63 = vadd.f32 %v11229_v4, %v11205_v3 }
0x1561   :  { %v11239_v28 = vmul.f32 0.7978846, %v11234_v63 }
0x1563   :  { %12694 = vtanh.f32 %v11239_v28 }
0x1570   :  { %v12695_v0 = vpop.eup %12694 }
0x1571   :  { %v11249_v5 = vadd.f32 1.0, %v12695_v0 }
0x1573   :  { %v11254_v32 = vmul.f32 %v11249_v5, %v11214_v30 }
0x1575   :  { %v11257_v17 = vpack.c.bf16 %v11254_v32, %v11254_v32 }
0x1577   :  { %12288 = vmatmul.mubr.bf16.gmra.mxu1 %v11257_v17 }
0x158e   :  { %v11357_v55 = vpop.f32.mrf.mxu1 }
0x158f   :  { %v11376_v19 = vadd.f32 %v11357_v55, %v15701_v57 }
0x1590   :  { %v12281_v61 = vpop.f32.mrf.mxu1 }
0x1591   :  { %v11382_v41 = vadd.f32 %v11381_v8, %v11376_v19 }
0x1592   :  { %v11360_v36 = vpop.f32.mrf.mxu1 }
0x1594   :  { %v12282_v49 = vpop.f32.mrf.mxu1 }
0x15aa   :  { %v11364_v24 = vpop.f32.mrf.mxu1 }
0x15ab   :  { %v11377_v1 = vadd.f32 %v11364_v24, %v15708_v11 }
0x15ac   :  { %v12285_v34 = vpop.f32.mrf.mxu1 }
0x15ad   :  { %v11383_v7 = vadd.f32 %v11381_v8, %v11377_v1 }
0x15ae   :  { %v11367_v52 = vpop.f32.mrf.mxu1 }
0x15af   :  { %v11384_v26 = vsel %vm159_vm2, %v11382_v41, %v11383_v7 }
0x15b0   :  { %v11385_v53 = vpack.c.bf16 %v11384_v26, %v11384_v26  ;;  %v12286_v13 = vpop.f32.mrf.mxu1 }
0x15b2   :  { %12296 = vmatmul.mubr.msk.bf16.vlgmr.msra.gmra.mxu0 %vm181_vm3, %v11385_v53 }
0x1637   :  { %v11371_v47 = vpop.f32.mrf.mxu1 }
0x1639   :  { %v12289_v33 = vpop.f32.mrf.mxu1 }
0x163b   :  { %v11373_v57 = vpop.f32.mrf.mxu1 }
0x163d   :  { %v12290_v27 = vpop.f32.mrf.mxu1 }
0x1672   :  { %v11446_v43 = vpop.f32.mrf.mxu0 }
0x1673   :  { %v11447_v11 = vadd.f32 %v11678_v56, %v11446_v43 }
0x1674   :  { %v12297_v48 = vpop.f32.mrf.mxu0 }
0x1675   :  { %11452 = vst [vmem:[#allocation2] sm:$0x3] %v11447_v11 }
0x1676   :  { %v11449_v6 = vpop.f32.mrf.mxu0 }
0x1677   :  { %12709 = shalt.err (!%p12706_p4)
}
0x1678   :  { %11462 = dma.vmem_to_hbm [thread:$0]  %s11460_s4, 32, %s15832_s10, [#allocation3]   ;;  %v12298_v58 = vpop.f32.mrf.mxu0 }
0x1679   :  { %12718 = dma.done.wait [#allocation3], 32  }
0x167a   :  { %12719 = vsyncadd [#allocation3], 4294967264 }
0x167b   :  { %11466 = vsyncpa [#allocation3], 1 }

</bundles_post_ra>
